<compile_context>
chip_gen: v6e
topology: v6e:2x2x1
jax: 0.10.0
libtpu: 0.0.40
codegen_flags: <defaults>
</compile_context>

<pallas_src>
import jax
import jax.numpy as jnp
from jax.experimental import pallas as pl
from jax.experimental.pallas import tpu as pltpu

# Logical (PyTorch) layer sizes.
D_IN, D1, D2, D3, D_OUT = 784, 512, 256, 64, 10
# Lane-padded sizes for the narrow tail layers (multiples of 128).
P3, P_OUT = 128, 128

_EPS = 1e-5


# ----------------------------- Pallas kernel -------------------------------


def _netff_kernel(
    x_ref,
    w1_ref, b1_ref, g1_ref, be1_ref,
    w2_ref, b2_ref, g2_ref, be2_ref,
    w3_ref, b3_ref, g3_ref, be3_ref,
    w4_ref, b4_ref,
    out_ref,
):
    def linear(h_bf16, w_ref, b_ref):
        # bf16 operands on the MXU, f32 accumulation; bias add in f32.
        return (
            jnp.dot(h_bf16, w_ref[...], preferred_element_type=jnp.float32)
            + b_ref[...]
        )

    def relu_bn(h, g_ref, be_ref):
        # ReLU then training-mode BatchNorm1d. Stats + apply in f32; the cast
        # to bf16 happens here (it is needed before the next dot anyway) so
        # the inter-layer activation footprint is halved.
        h = jnp.maximum(h, 0.0)
        inv_n = 1.0 / h.shape[0]
        mu = jnp.sum(h, axis=0, keepdims=True) * inv_n
        ex2 = jnp.sum(h * h, axis=0, keepdims=True) * inv_n
        var = jnp.maximum(ex2 - mu * mu, 0.0)           # one-pass biased variance
        scale = jax.lax.rsqrt(var + _EPS) * g_ref[...]  # [1, F] work only
        shift = be_ref[...] - mu * scale
        return (h * scale + shift).astype(jnp.bfloat16)  # single BxF pass

    # Raw f32 [B, 784] input; cast once in-kernel. Mosaic pads K=784 for the
    # dot internally (784 is a multiple of the 16-row bf16 sublane pack).
    h = x_ref[...].astype(jnp.bfloat16)

    # Block 1: Linear(784, 512) -> ReLU -> BN(512)
    h = relu_bn(linear(h, w1_ref, b1_ref), g1_ref, be1_ref)
    # Block 2: Linear(512, 256) -> ReLU -> BN(256)
    h = relu_bn(linear(h, w2_ref, b2_ref), g2_ref, be2_ref)
    # Block 3: Linear(256, 128p) -> ReLU -> BN(128p)  (cols 64..127 are zero)
    h = relu_bn(linear(h, w3_ref, b3_ref), g3_ref, be3_ref)
    # Head: Linear(128p, 128p) -- lane-dense store, real logits in cols [:10].
    out_ref[...] = linear(h, w4_ref, b4_ref).astype(out_ref.dtype)


# ------------------------------ JAX wrapper ---------------------------------


def _vmem_cap_bytes():
    """~75% of physical VMEM: ~96 MiB on v5e/v6e, ~48 MiB on v7x."""
    try:
        return int(0.75 * int(pltpu.get_tpu_info().vmem_capacity_bytes))
    except Exception:
        return 48 << 20  # conservative fallback, valid on every generation


@jax.jit
def netff_forward(x, kparams):
    """x: [B, 784] or [B, 1, 28, 28] float32. kparams: dict from prepare_params."""
    B = x.shape[0]
    x = x.reshape(B, -1)  # [B, 784] f32 -- no pad/cast here (done in-kernel)

    args = (
        x,
        kparams["w1"], kparams["b1"], kparams["g1"], kparams["be1"],
        kparams["w2"], kparams["b2"], kparams["g2"], kparams["be2"],
        kparams["w3"], kparams["b3"], kparams["g3"], kparams["be3"],
        kparams["w4"], kparams["b4"],
    )

    vmem = pl.BlockSpec(memory_space=pltpu.MemorySpace.VMEM)

    # Single resident block (no grid -> no double buffering): params + input +
    # f32 layer temp + bf16 handoff per layer + output, plus fixed compiler
    # scratch headroom; capped per chip generation.
    param_bytes = sum(int(a.size) * a.dtype.itemsize for a in args[1:])
    act_bytes = B * (D_IN * 6 + (D1 + D2 + P3) * 6 + P_OUT * 4)
    vmem_bytes = min(param_bytes + act_bytes + (16 << 20), _vmem_cap_bytes())

    flops = 2 * B * (D_IN * D1 + D1 * D2 + D2 * P3 + P3 * P_OUT)
    bytes_accessed = int(x.size) * 4 + param_bytes + B * P_OUT * 4

    out_pad = pl.pallas_call(
        _netff_kernel,
        out_shape=jax.ShapeDtypeStruct((B, P_OUT), jnp.float32),
        in_specs=[vmem] * len(args),
        out_specs=vmem,
        compiler_params=pltpu.CompilerParams(vmem_limit_bytes=int(vmem_bytes)),
        cost_estimate=pl.CostEstimate(
            flops=flops,
            transcendentals=D1 + D2 + P3,          # rsqrt per BN feature
            bytes_accessed=int(bytes_accessed),
        ),
    )(*args)
    return out_pad[:, :D_OUT]


def init_params(key):
    """Master f32 parameters, PyTorch-nn.Linear-style uniform init.

    Weights stored as [in_features, out_features] (transpose of PyTorch layout)
    so the kernel computes x @ W + b directly. BN gamma=1, beta=0.
    """
    dims = [(D_IN, D1), (D1, D2), (D2, D3), (D3, D_OUT)]
    params = {}
    keys = jax.random.split(key, 2 * len(dims))
    for i, (fan_in, fan_out) in enumerate(dims):
        bound = 1.0 / (fan_in ** 0.5)
        params[f"w{i + 1}"] = jax.random.uniform(
            keys[2 * i], (fan_in, fan_out), jnp.float32, -bound, bound)
        params[f"b{i + 1}"] = jax.random.uniform(
            keys[2 * i + 1], (1, fan_out), jnp.float32, -bound, bound)
        if i < 3:
            params[f"g{i + 1}"] = jnp.ones((1, fan_out), jnp.float32)
            params[f"be{i + 1}"] = jnp.zeros((1, fan_out), jnp.float32)
    return params


def prepare_params(p):
    """Zero-pad the narrow tail feature dims to 128 and cast weights to bf16."""
    row_pad = {1: 0, 2: 0, 3: 0, 4: P3 - D3}
    col_pad = {1: 0, 2: 0, 3: P3 - D3, 4: P_OUT - D_OUT}
    kp = {}
    for i in range(1, 5):
        w = jnp.pad(p[f"w{i}"], ((0, row_pad[i]), (0, col_pad[i])))
        kp[f"w{i}"] = w.astype(jnp.bfloat16)
        kp[f"b{i}"] = jnp.pad(p[f"b{i}"], ((0, 0), (0, col_pad[i])))
    for i in range(1, 4):
        kp[f"g{i}"] = jnp.pad(p[f"g{i}"], ((0, 0), (0, col_pad[i])),
                              constant_values=1.0)
        kp[f"be{i}"] = jnp.pad(p[f"be{i}"], ((0, 0), (0, col_pad[i])))
    return kp


def _reference_forward(x, params):
    """Pure-JAX reference with matching bf16-matmul / f32-BN semantics."""
    h = x.reshape(x.shape[0], -1).astype(jnp.float32)
    for i in range(1, 4):
        w = params[f"w{i}"].astype(jnp.bfloat16)
        h = jnp.dot(h.astype(jnp.bfloat16), w,
                    preferred_element_type=jnp.float32) + params[f"b{i}"]
        h = jnp.maximum(h, 0.0)
        mu = jnp.mean(h, axis=0, keepdims=True)
        var = jnp.mean((h - mu) ** 2, axis=0, keepdims=True)
        h = (h - mu) * jax.lax.rsqrt(var + _EPS) * params[f"g{i}"] + params[f"be{i}"]
    w4 = params["w4"].astype(jnp.bfloat16)
    return jnp.dot(h.astype(jnp.bfloat16), w4,
                   preferred_element_type=jnp.float32) + params["b4"]


if __name__ == "__main__":
    key = jax.random.PRNGKey(0)
    pkey, xkey = jax.random.split(key)

    params = init_params(pkey)          # f32 master params (PyTorch semantics)
    kparams = prepare_params(params)    # padded + bf16 kernel params

    # Batch sized so the MXU LHS rows are filled (256x256 on v6e/v7x, 2x the
    # 128x128 v5e MXU); still fits comfortably in one resident VMEM block.
    B = 256
    x_img = jax.random.normal(xkey, (B, 1, 28, 28), dtype=jnp.float32)

    out = jax.block_until_ready(netff_forward(x_img, kparams))
    ref = _reference_forward(x_img, params)

    assert out.shape == (B, D_OUT)
    assert jnp.allclose(out, ref, atol=2e-2, rtol=2e-2), float(
        jnp.max(jnp.abs(out - ref)))

    print("KERNEL_OK")
</pallas_src>

<mosaic_0001>
module attributes {stable_mosaic.version = 11 : i64} {
  func.func @_netff_kernel(%arg0: memref<256x784xf32, #tpu.memory_space<vmem>>, %arg1: memref<784x512xbf16, #tpu.memory_space<vmem>>, %arg2: memref<1x512xf32, #tpu.memory_space<vmem>>, %arg3: memref<1x512xf32, #tpu.memory_space<vmem>>, %arg4: memref<1x512xf32, #tpu.memory_space<vmem>>, %arg5: memref<512x256xbf16, #tpu.memory_space<vmem>>, %arg6: memref<1x256xf32, #tpu.memory_space<vmem>>, %arg7: memref<1x256xf32, #tpu.memory_space<vmem>>, %arg8: memref<1x256xf32, #tpu.memory_space<vmem>>, %arg9: memref<256x128xbf16, #tpu.memory_space<vmem>>, %arg10: memref<1x128xf32, #tpu.memory_space<vmem>>, %arg11: memref<1x128xf32, #tpu.memory_space<vmem>>, %arg12: memref<1x128xf32, #tpu.memory_space<vmem>>, %arg13: memref<128x128xbf16, #tpu.memory_space<vmem>>, %arg14: memref<1x128xf32, #tpu.memory_space<vmem>>, %arg15: memref<256x128xf32, #tpu.memory_space<vmem>>) attributes {dimension_semantics = [], scalar_prefetch = 0 : i64, scratch_operands = 0 : i64, tpu.core_type = #tpu.core_type<tc>} {
    %c0 = arith.constant 0 : index
    %c0_0 = arith.constant 0 : index
    %0 = vector.load %arg0[%c0, %c0_0] : memref<256x784xf32, #tpu.memory_space<vmem>>, vector<256x784xf32>
    %1 = arith.truncf %0 : vector<256x784xf32> to vector<256x784xbf16>
    %c0_1 = arith.constant 0 : index
    %c0_2 = arith.constant 0 : index
    %2 = vector.load %arg1[%c0_1, %c0_2] : memref<784x512xbf16, #tpu.memory_space<vmem>>, vector<784x512xbf16>
    %cst = arith.constant dense<0.000000e+00> : vector<256x512xf32>
    %3 = tpu.matmul %1, %2, %cst {dimension_numbers = #tpu.dot_dimension_numbers<[1], [0], [0], [1], [0, 0, 1, 1], [], []>} : vector<256x784xbf16>, vector<784x512xbf16>, vector<256x512xf32> -> vector<256x512xf32>
    %c0_3 = arith.constant 0 : index
    %c0_4 = arith.constant 0 : index
    %4 = vector.load %arg2[%c0_3, %c0_4] : memref<1x512xf32, #tpu.memory_space<vmem>>, vector<1x512xf32>
    %5 = vector.broadcast %4 : vector<1x512xf32> to vector<256x512xf32>
    %6 = arith.addf %3, %5 : vector<256x512xf32>
    %cst_5 = arith.constant 0.000000e+00 : f32
    %7 = vector.broadcast %cst_5 : f32 to vector<256x512xf32>
    %8 = arith.maximumf %6, %7 : vector<256x512xf32>
    %cst_6 = arith.constant dense<0.000000e+00> : vector<512xf32>
    %9 = vector.multi_reduction <add>, %8, %cst_6 [0] : vector<256x512xf32> to vector<512xf32>
    %10 = vector.shape_cast %9 : vector<512xf32> to vector<1x512xf32>
    %cst_7 = arith.constant 3.906250e-03 : f32
    %11 = vector.broadcast %cst_7 : f32 to vector<1x512xf32>
    %12 = arith.mulf %10, %11 : vector<1x512xf32>
    %13 = arith.mulf %8, %8 : vector<256x512xf32>
    %cst_8 = arith.constant dense<0.000000e+00> : vector<512xf32>
    %14 = vector.multi_reduction <add>, %13, %cst_8 [0] : vector<256x512xf32> to vector<512xf32>
    %15 = vector.shape_cast %14 : vector<512xf32> to vector<1x512xf32>
    %cst_9 = arith.constant 3.906250e-03 : f32
    %16 = vector.broadcast %cst_9 : f32 to vector<1x512xf32>
    %17 = arith.mulf %15, %16 : vector<1x512xf32>
    %18 = arith.mulf %12, %12 : vector<1x512xf32>
    %19 = arith.subf %17, %18 : vector<1x512xf32>
    %cst_10 = arith.constant 0.000000e+00 : f32
    %20 = vector.broadcast %cst_10 : f32 to vector<1x512xf32>
    %21 = arith.maximumf %19, %20 : vector<1x512xf32>
    %cst_11 = arith.constant 9.99999974E-6 : f32
    %22 = vector.broadcast %cst_11 : f32 to vector<1x512xf32>
    %23 = arith.addf %21, %22 : vector<1x512xf32>
    %24 = math.rsqrt %23 : vector<1x512xf32>
    %c0_12 = arith.constant 0 : index
    %c0_13 = arith.constant 0 : index
    %25 = vector.load %arg3[%c0_12, %c0_13] : memref<1x512xf32, #tpu.memory_space<vmem>>, vector<1x512xf32>
    %26 = arith.mulf %24, %25 : vector<1x512xf32>
    %c0_14 = arith.constant 0 : index
    %c0_15 = arith.constant 0 : index
    %27 = vector.load %arg4[%c0_14, %c0_15] : memref<1x512xf32, #tpu.memory_space<vmem>>, vector<1x512xf32>
    %28 = arith.mulf %12, %26 : vector<1x512xf32>
    %29 = arith.subf %27, %28 : vector<1x512xf32>
    %30 = vector.broadcast %26 : vector<1x512xf32> to vector<256x512xf32>
    %31 = arith.mulf %8, %30 : vector<256x512xf32>
    %32 = vector.broadcast %29 : vector<1x512xf32> to vector<256x512xf32>
    %33 = arith.addf %31, %32 : vector<256x512xf32>
    %34 = arith.truncf %33 : vector<256x512xf32> to vector<256x512xbf16>
    %c0_16 = arith.constant 0 : index
    %c0_17 = arith.constant 0 : index
    %35 = vector.load %arg5[%c0_16, %c0_17] : memref<512x256xbf16, #tpu.memory_space<vmem>>, vector<512x256xbf16>
    %cst_18 = arith.constant dense<0.000000e+00> : vector<256x256xf32>
    %36 = tpu.matmul %34, %35, %cst_18 {dimension_numbers = #tpu.dot_dimension_numbers<[1], [0], [0], [1], [0, 0, 1, 1], [], []>} : vector<256x512xbf16>, vector<512x256xbf16>, vector<256x256xf32> -> vector<256x256xf32>
    %c0_19 = arith.constant 0 : index
    %c0_20 = arith.constant 0 : index
    %37 = vector.load %arg6[%c0_19, %c0_20] : memref<1x256xf32, #tpu.memory_space<vmem>>, vector<1x256xf32>
    %38 = vector.broadcast %37 : vector<1x256xf32> to vector<256x256xf32>
    %39 = arith.addf %36, %38 : vector<256x256xf32>
    %cst_21 = arith.constant 0.000000e+00 : f32
    %40 = vector.broadcast %cst_21 : f32 to vector<256x256xf32>
    %41 = arith.maximumf %39, %40 : vector<256x256xf32>
    %cst_22 = arith.constant dense<0.000000e+00> : vector<256xf32>
    %42 = vector.multi_reduction <add>, %41, %cst_22 [0] : vector<256x256xf32> to vector<256xf32>
    %43 = vector.shape_cast %42 : vector<256xf32> to vector<1x256xf32>
    %cst_23 = arith.constant 3.906250e-03 : f32
    %44 = vector.broadcast %cst_23 : f32 to vector<1x256xf32>
    %45 = arith.mulf %43, %44 : vector<1x256xf32>
    %46 = arith.mulf %41, %41 : vector<256x256xf32>
    %cst_24 = arith.constant dense<0.000000e+00> : vector<256xf32>
    %47 = vector.multi_reduction <add>, %46, %cst_24 [0] : vector<256x256xf32> to vector<256xf32>
    %48 = vector.shape_cast %47 : vector<256xf32> to vector<1x256xf32>
    %cst_25 = arith.constant 3.906250e-03 : f32
    %49 = vector.broadcast %cst_25 : f32 to vector<1x256xf32>
    %50 = arith.mulf %48, %49 : vector<1x256xf32>
    %51 = arith.mulf %45, %45 : vector<1x256xf32>
    %52 = arith.subf %50, %51 : vector<1x256xf32>
    %cst_26 = arith.constant 0.000000e+00 : f32
    %53 = vector.broadcast %cst_26 : f32 to vector<1x256xf32>
    %54 = arith.maximumf %52, %53 : vector<1x256xf32>
    %cst_27 = arith.constant 9.99999974E-6 : f32
    %55 = vector.broadcast %cst_27 : f32 to vector<1x256xf32>
    %56 = arith.addf %54, %55 : vector<1x256xf32>
    %57 = math.rsqrt %56 : vector<1x256xf32>
    %c0_28 = arith.constant 0 : index
    %c0_29 = arith.constant 0 : index
    %58 = vector.load %arg7[%c0_28, %c0_29] : memref<1x256xf32, #tpu.memory_space<vmem>>, vector<1x256xf32>
    %59 = arith.mulf %57, %58 : vector<1x256xf32>
    %c0_30 = arith.constant 0 : index
    %c0_31 = arith.constant 0 : index
    %60 = vector.load %arg8[%c0_30, %c0_31] : memref<1x256xf32, #tpu.memory_space<vmem>>, vector<1x256xf32>
    %61 = arith.mulf %45, %59 : vector<1x256xf32>
    %62 = arith.subf %60, %61 : vector<1x256xf32>
    %63 = vector.broadcast %59 : vector<1x256xf32> to vector<256x256xf32>
    %64 = arith.mulf %41, %63 : vector<256x256xf32>
    %65 = vector.broadcast %62 : vector<1x256xf32> to vector<256x256xf32>
    %66 = arith.addf %64, %65 : vector<256x256xf32>
    %67 = arith.truncf %66 : vector<256x256xf32> to vector<256x256xbf16>
    %c0_32 = arith.constant 0 : index
    %c0_33 = arith.constant 0 : index
    %68 = vector.load %arg9[%c0_32, %c0_33] : memref<256x128xbf16, #tpu.memory_space<vmem>>, vector<256x128xbf16>
    %cst_34 = arith.constant dense<0.000000e+00> : vector<256x128xf32>
    %69 = tpu.matmul %67, %68, %cst_34 {dimension_numbers = #tpu.dot_dimension_numbers<[1], [0], [0], [1], [0, 0, 1, 1], [], []>} : vector<256x256xbf16>, vector<256x128xbf16>, vector<256x128xf32> -> vector<256x128xf32>
    %c0_35 = arith.constant 0 : index
    %c0_36 = arith.constant 0 : index
    %70 = vector.load %arg10[%c0_35, %c0_36] : memref<1x128xf32, #tpu.memory_space<vmem>>, vector<1x128xf32>
    %71 = vector.broadcast %70 : vector<1x128xf32> to vector<256x128xf32>
    %72 = arith.addf %69, %71 : vector<256x128xf32>
    %cst_37 = arith.constant 0.000000e+00 : f32
    %73 = vector.broadcast %cst_37 : f32 to vector<256x128xf32>
    %74 = arith.maximumf %72, %73 : vector<256x128xf32>
    %cst_38 = arith.constant dense<0.000000e+00> : vector<128xf32>
    %75 = vector.multi_reduction <add>, %74, %cst_38 [0] : vector<256x128xf32> to vector<128xf32>
    %76 = vector.shape_cast %75 : vector<128xf32> to vector<1x128xf32>
    %cst_39 = arith.constant 3.906250e-03 : f32
    %77 = vector.broadcast %cst_39 : f32 to vector<1x128xf32>
    %78 = arith.mulf %76, %77 : vector<1x128xf32>
    %79 = arith.mulf %74, %74 : vector<256x128xf32>
    %cst_40 = arith.constant dense<0.000000e+00> : vector<128xf32>
    %80 = vector.multi_reduction <add>, %79, %cst_40 [0] : vector<256x128xf32> to vector<128xf32>
    %81 = vector.shape_cast %80 : vector<128xf32> to vector<1x128xf32>
    %cst_41 = arith.constant 3.906250e-03 : f32
    %82 = vector.broadcast %cst_41 : f32 to vector<1x128xf32>
    %83 = arith.mulf %81, %82 : vector<1x128xf32>
    %84 = arith.mulf %78, %78 : vector<1x128xf32>
    %85 = arith.subf %83, %84 : vector<1x128xf32>
    %cst_42 = arith.constant 0.000000e+00 : f32
    %86 = vector.broadcast %cst_42 : f32 to vector<1x128xf32>
    %87 = arith.maximumf %85, %86 : vector<1x128xf32>
    %cst_43 = arith.constant 9.99999974E-6 : f32
    %88 = vector.broadcast %cst_43 : f32 to vector<1x128xf32>
    %89 = arith.addf %87, %88 : vector<1x128xf32>
    %90 = math.rsqrt %89 : vector<1x128xf32>
    %c0_44 = arith.constant 0 : index
    %c0_45 = arith.constant 0 : index
    %91 = vector.load %arg11[%c0_44, %c0_45] : memref<1x128xf32, #tpu.memory_space<vmem>>, vector<1x128xf32>
    %92 = arith.mulf %90, %91 : vector<1x128xf32>
    %c0_46 = arith.constant 0 : index
    %c0_47 = arith.constant 0 : index
    %93 = vector.load %arg12[%c0_46, %c0_47] : memref<1x128xf32, #tpu.memory_space<vmem>>, vector<1x128xf32>
    %94 = arith.mulf %78, %92 : vector<1x128xf32>
    %95 = arith.subf %93, %94 : vector<1x128xf32>
    %96 = vector.broadcast %92 : vector<1x128xf32> to vector<256x128xf32>
    %97 = arith.mulf %74, %96 : vector<256x128xf32>
    %98 = vector.broadcast %95 : vector<1x128xf32> to vector<256x128xf32>
    %99 = arith.addf %97, %98 : vector<256x128xf32>
    %100 = arith.truncf %99 : vector<256x128xf32> to vector<256x128xbf16>
    %c0_48 = arith.constant 0 : index
    %c0_49 = arith.constant 0 : index
    %101 = vector.load %arg13[%c0_48, %c0_49] : memref<128x128xbf16, #tpu.memory_space<vmem>>, vector<128x128xbf16>
    %cst_50 = arith.constant dense<0.000000e+00> : vector<256x128xf32>
    %102 = tpu.matmul %100, %101, %cst_50 {dimension_numbers = #tpu.dot_dimension_numbers<[1], [0], [0], [1], [0, 0, 1, 1], [], []>} : vector<256x128xbf16>, vector<128x128xbf16>, vector<256x128xf32> -> vector<256x128xf32>
    %c0_51 = arith.constant 0 : index
    %c0_52 = arith.constant 0 : index
    %103 = vector.load %arg14[%c0_51, %c0_52] : memref<1x128xf32, #tpu.memory_space<vmem>>, vector<1x128xf32>
    %104 = vector.broadcast %103 : vector<1x128xf32> to vector<256x128xf32>
    %105 = arith.addf %102, %104 : vector<256x128xf32>
    %c0_53 = arith.constant 0 : index
    %c0_54 = arith.constant 0 : index
    %106 = vector.load %arg15[%c0_53, %c0_54] : memref<256x128xf32, #tpu.memory_space<vmem>>, vector<256x128xf32>
    tpu.vector_store %arg15[%c0_53, %c0_54], %105 {strides = array<i32>} : memref<256x128xf32, #tpu.memory_space<vmem>>, vector<256x128xf32>,
    return
  }
}

</mosaic_0001>

<bundles_post_ra>
// kernel: netff_forward.1
= control target key start
LH: loop header
LB: loop body
LE: loop exit
PB: predicated region body
PF: predicated region fallthrough
CT: control target
= control target key end

     0   :  { %vm1585_vm0 = vcmask 130048   ;;  %s14065_s1 = inlined_call_operand.vmem [shape: bf16[784,512], index: 1, kind: input, shape index: {}]   ;;  %s14066_s0 = inlined_call_operand.vmem [shape: f32[256,784], index: 0, kind: input, shape index: {}]   ;;  %s14067_s2 = inlined_call_operand.vmem [shape: f32[1,512], index: 2, kind: input, shape index: {}]   ;;  %s14068_s3 = inlined_call_operand.vmem [shape: f32[1,512], index: 3, kind: input, shape index: {}]   ;;  %s14069_s5 = inlined_call_operand.vmem [shape: bf16[512,256], index: 5, kind: input, shape index: {}]   ;;  %s14070_s4 = inlined_call_operand.vmem [shape: f32[1,512], index: 4, kind: input, shape index: {}]   ;;  %s14071_s9 = inlined_call_operand.vmem [shape: bf16[256,128], index: 9, kind: input, shape index: {}]   ;;  %s14072_s6 = inlined_call_operand.vmem [shape: f32[1,256], index: 6, kind: input, shape index: {}]   ;;  %s14073_s7 = inlined_call_operand.vmem [shape: f32[1,256], index: 7, kind: input, shape index: {}]   ;;  %s14074_s8 = inlined_call_operand.vmem [shape: f32[1,256], index: 8, kind: input, shape index: {}]   ;;  %s14075_s13 = inlined_call_operand.vmem [shape: bf16[128,128], index: 13, kind: input, shape index: {}]   ;;  %s14076_s10 = inlined_call_operand.vmem [shape: f32[1,128], index: 10, kind: input, shape index: {}]   ;;  %s14077_s11 = inlined_call_operand.vmem [shape: f32[1,128], index: 11, kind: input, shape index: {}]   ;;  %s14078_s12 = inlined_call_operand.vmem [shape: f32[1,128], index: 12, kind: input, shape index: {}]   ;;  %s14079_s14 = inlined_call_operand.vmem [shape: f32[1,128], index: 14, kind: input, shape index: {}]   ;;  %s14080_s15 = inlined_call_operand.vmem [shape: f32[256,128], index: 15, kind: output, shape index: {}]  }
   0x1   :  { %v6803_v0 = vld [vmem:[%s14065_s1 + $0xe4] ss:$16 sps:$4 sm:$0xff]   ;;  %v6807_v2 = vld [vmem:[%s14065_s1 + $0xe0] ss:$16 sps:$4 sm:$0xff]   ;;  %v52_v46 = vld [vmem:[%s14066_s0 + $0x8] sm:$0xff] }
   0x2   :  { %v6805_v1 = vld [vmem:[%s14065_s1 + $0x2e4] ss:$16 sps:$4 sm:$0xff]   ;;  %1634 = vmatprep.subr.bf16.mxu0 %v6803_v0  ;;  %v6808_v3 = vld [vmem:[%s14065_s1 + $0x2e0] ss:$16 sps:$4 sm:$0xff]   ;;  %v54_v48 = vld [vmem:[%s14066_s0 + $0x18] sm:$0xff] }
   0x3   :  { %1827 = vmatprep.subr.bf16.mxu1 %v6805_v1  ;;  %v6809_v4 = vld [vmem:[%s14065_s1 + $0xc4] ss:$16 sps:$4 sm:$0xff]   ;;  %1635 = vmatpush1.bf16.msra.mxu0 %v6807_v2  ;;  %v6813_v6 = vld [vmem:[%s14065_s1 + $0xc0] ss:$16 sps:$4 sm:$0xff]  }
   0x4   :  { %1828 = vmatpush1.bf16.msra.mxu1 %v6808_v3  ;;  %v6811_v5 = vld [vmem:[%s14065_s1 + $0x2c4] ss:$16 sps:$4 sm:$0xff]   ;;  %1636 = vmatprep.subr.bf16.mxu0 %v6809_v4  ;;  %v6814_v7 = vld [vmem:[%s14065_s1 + $0x2c0] ss:$16 sps:$4 sm:$0xff]  }
   0x5   :  { %1829 = vmatprep.subr.bf16.mxu1 %v6811_v5  ;;  %v6815_v8 = vld [vmem:[%s14065_s1 + $0xa4] ss:$16 sps:$4 sm:$0xff]   ;;  %v6819_v10 = vld [vmem:[%s14065_s1 + $0xa0] ss:$16 sps:$4 sm:$0xff]  }
   0x6   :  { %v6817_v9 = vld [vmem:[%s14065_s1 + $0x2a4] ss:$16 sps:$4 sm:$0xff]   ;;  %v6820_v11 = vld [vmem:[%s14065_s1 + $0x2a0] ss:$16 sps:$4 sm:$0xff]  }
   0x7   :  { %1637 = vmatpush1.bf16.msra.mxu0 %v6813_v6  ;;  %v6821_v12 = vld [vmem:[%s14065_s1 + $0x84] ss:$16 sps:$4 sm:$0xff]   ;;  %v6825_v14 = vld [vmem:[%s14065_s1 + $0x80] ss:$16 sps:$4 sm:$0xff]  }
   0x8   :  { %1830 = vmatpush1.bf16.msra.mxu1 %v6814_v7  ;;  %1638 = vmatprep.subr.bf16.mxu0 %v6815_v8  ;;  %v6823_v13 = vld [vmem:[%s14065_s1 + $0x284] ss:$16 sps:$4 sm:$0xff]   ;;  %v6826_v15 = vld [vmem:[%s14065_s1 + $0x280] ss:$16 sps:$4 sm:$0xff]   ;;  %v58_v7 = vld [vmem:[%s14066_s0 + $0x38] sm:$0xff] }
   0x9   :  { %1831 = vmatprep.subr.bf16.mxu1 %v6817_v9  ;;  %v6827_v16 = vld [vmem:[%s14065_s1 + $0x64] ss:$16 sps:$4 sm:$0xff]   ;;  %v6831_v18 = vld [vmem:[%s14065_s1 + $0x60] ss:$16 sps:$4 sm:$0xff]   ;;  %v60_v9 = vld [vmem:[%s14066_s0 + $0x48] sm:$0xff] }
   0xa   :  { %v6829_v17 = vld [vmem:[%s14065_s1 + $0x264] ss:$16 sps:$4 sm:$0xff]   ;;  %v6832_v19 = vld [vmem:[%s14065_s1 + $0x260] ss:$16 sps:$4 sm:$0xff]  }
   0xb   :  { %1639 = vmatpush1.bf16.msra.mxu0 %v6819_v10  ;;  %v6833_v20 = vld [vmem:[%s14065_s1 + $0x44] ss:$16 sps:$4 sm:$0xff]   ;;  %v6837_v22 = vld [vmem:[%s14065_s1 + $0x40] ss:$16 sps:$4 sm:$0xff]  }
   0xc   :  { %1832 = vmatpush1.bf16.msra.mxu1 %v6820_v11  ;;  %1640 = vmatprep.subr.bf16.mxu0 %v6821_v12  ;;  %v6835_v21 = vld [vmem:[%s14065_s1 + $0x244] ss:$16 sps:$4 sm:$0xff]   ;;  %v6838_v23 = vld [vmem:[%s14065_s1 + $0x240] ss:$16 sps:$4 sm:$0xff]   ;;  %v66_v11 = vld [vmem:[%s14066_s0 + $0x78] sm:$0xff] }
   0xd   :  { %1833 = vmatprep.subr.bf16.mxu1 %v6823_v13  ;;  %v6839_v24 = vld [vmem:[%s14065_s1 + $0x24] ss:$16 sps:$4 sm:$0xff]   ;;  %v6843_v26 = vld [vmem:[%s14065_s1 + $0x20] ss:$16 sps:$4 sm:$0xff]   ;;  %v68_v13 = vld [vmem:[%s14066_s0 + $0x88] sm:$0xff] }
   0xe   :  { %v6841_v25 = vld [vmem:[%s14065_s1 + $0x224] ss:$16 sps:$4 sm:$0xff]   ;;  %v6844_v27 = vld [vmem:[%s14065_s1 + $0x220] ss:$16 sps:$4 sm:$0xff]  }
   0xf   :  { %1641 = vmatpush1.bf16.msra.mxu0 %v6825_v14  ;;  %v6845_v28 = vld [vmem:[%s14065_s1 + $0x4] ss:$16 sps:$4 sm:$0xff]   ;;  %v6849_v30 = vld [vmem:[%s14065_s1] ss:$16 sps:$4 sm:$0xff]  }
  0x10   :  { %1834 = vmatpush1.bf16.msra.mxu1 %v6826_v15  ;;  %1642 = vmatprep.subr.bf16.mxu0 %v6827_v16  ;;  %v6847_v29 = vld [vmem:[%s14065_s1 + $0x204] ss:$16 sps:$4 sm:$0xff]   ;;  %v6850_v31 = vld [vmem:[%s14065_s1 + $0x200] ss:$16 sps:$4 sm:$0xff]  }
  0x11   :  { %1835 = vmatprep.subr.bf16.mxu1 %v6829_v17  ;;  %v6851_v32 = vld [vmem:[%s14065_s1 + $0x1e4] ss:$16 sps:$4 sm:$0xff]   ;;  %v6855_v34 = vld [vmem:[%s14065_s1 + $0x1e0] ss:$16 sps:$4 sm:$0xff]  }
  0x12   :  { %v6853_v33 = vld [vmem:[%s14065_s1 + $0x3e4] ss:$16 sps:$4 sm:$0xff]   ;;  %v6856_v35 = vld [vmem:[%s14065_s1 + $0x3e0] ss:$16 sps:$4 sm:$0xff]  }
  0x13   :  { %1643 = vmatpush1.bf16.msra.mxu0 %v6831_v18  ;;  %v6857_v36 = vld [vmem:[%s14065_s1 + $0x1c4] ss:$16 sps:$4 sm:$0xff]   ;;  %v6861_v38 = vld [vmem:[%s14065_s1 + $0x1c0] ss:$16 sps:$4 sm:$0xff]  }
  0x14   :  { %1836 = vmatpush1.bf16.msra.mxu1 %v6832_v19  ;;  %1644 = vmatprep.subr.bf16.mxu0 %v6833_v20  ;;  %v6859_v37 = vld [vmem:[%s14065_s1 + $0x3c4] ss:$16 sps:$4 sm:$0xff]   ;;  %v6862_v39 = vld [vmem:[%s14065_s1 + $0x3c0] ss:$16 sps:$4 sm:$0xff]  }
  0x15   :  { %1837 = vmatprep.subr.bf16.mxu1 %v6835_v21  ;;  %v6863_v40 = vld [vmem:[%s14065_s1 + $0x1a4] ss:$16 sps:$4 sm:$0xff]   ;;  %v6867_v42 = vld [vmem:[%s14065_s1 + $0x1a0] ss:$16 sps:$4 sm:$0xff]  }
  0x16   :  { %v6865_v41 = vld [vmem:[%s14065_s1 + $0x3a4] ss:$16 sps:$4 sm:$0xff]   ;;  %v6868_v43 = vld [vmem:[%s14065_s1 + $0x3a0] ss:$16 sps:$4 sm:$0xff]  }
  0x17   :  { %1645 = vmatpush1.bf16.msra.mxu0 %v6837_v22  ;;  %v6869_v44 = vld [vmem:[%s14065_s1 + $0x184] ss:$16 sps:$4 sm:$0xff]   ;;  %v6873_v50 = vld [vmem:[%s14065_s1 + $0x180] ss:$16 sps:$4 sm:$0xff]   ;;  %v72_v22 = vld [vmem:[%s14066_s0 + $0xa8] sm:$0xff] }
  0x18   :  { %1838 = vmatpush1.bf16.msra.mxu1 %v6838_v23  ;;  %1646 = vmatprep.subr.bf16.mxu0 %v6839_v24  ;;  %v6871_v45 = vld [vmem:[%s14065_s1 + $0x384] ss:$16 sps:$4 sm:$0xff]   ;;  %v6874_v51 = vld [vmem:[%s14065_s1 + $0x380] ss:$16 sps:$4 sm:$0xff]   ;;  %v74_v24 = vld [vmem:[%s14066_s0 + $0xb8] sm:$0xff] }
  0x19   :  { %1839 = vmatprep.subr.bf16.mxu1 %v6841_v25  ;;  %v59_v47 = vld [vmem:[%s14066_s0 + $0x40] sm:$0xff]  ;;  %v61_v49 = vld [vmem:[%s14066_s0 + $0x50] sm:$0xff] }
  0x1a   :  { %v6875_v52 = vld [vmem:[%s14065_s1 + $0x164] ss:$16 sps:$4 sm:$0xff]   ;;  %v7474_v53 = vpack.c.bf16 %v59_v47, %v52_v46  ;;  %v7476_v54 = vpack.c.bf16 %v61_v49, %v54_v48  ;;  %v6879_v56 = vld [vmem:[%s14065_s1 + $0x160] ss:$16 sps:$4 sm:$0xff]  }
  0x1b   :  { %1647 = vmatpush1.bf16.msra.mxu0 %v6843_v26  ;;  %v6877_v55 = vld [vmem:[%s14065_s1 + $0x364] ss:$16 sps:$4 sm:$0xff]   ;;  %v6880_v57 = vld [vmem:[%s14065_s1 + $0x360] ss:$16 sps:$4 sm:$0xff]   ;;  %v80_v26 = vld [vmem:[%s14066_s0 + $0xe8] sm:$0xff] }
  0x1c   :  { %1840 = vmatpush1.bf16.msra.mxu1 %v6844_v27  ;;  %1648 = vmatprep.subr.bf16.mxu0 %v6845_v28  ;;  %v6881_v58 = vld [vmem:[%s14065_s1 + $0x144] ss:$16 sps:$4 sm:$0xff]   ;;  %v6885_v60 = vld [vmem:[%s14065_s1 + $0x140] ss:$16 sps:$4 sm:$0xff]   ;;  %v82_v28 = vld [vmem:[%s14066_s0 + $0xf8] sm:$0xff] }
  0x1d   :  { %1841 = vmatprep.subr.bf16.mxu1 %v6847_v29  ;;  %1666 = vmatprep.mubr.bf16.mxu0 %v7474_v53  ;;  %v6883_v59 = vld [vmem:[%s14065_s1 + $0x344] ss:$16 sps:$4 sm:$0xff]   ;;  %v6886_v61 = vld [vmem:[%s14065_s1 + $0x340] ss:$16 sps:$4 sm:$0xff]  }
  0x1e   :  { %1859 = vmatprep.mubr.bf16.mxu1 %v7476_v54  ;;  %v6887_v62 = vld [vmem:[%s14065_s1 + $0x124] ss:$16 sps:$4 sm:$0xff]   ;;  %v6891_v0 = vld [vmem:[%s14065_s1 + $0x120] ss:$16 sps:$4 sm:$0xff]  }
  0x1f   :  { %1649 = vmatpush1.bf16.msra.mxu0 %v6849_v30  ;;  %v6889_v63 = vld [vmem:[%s14065_s1 + $0x324] ss:$16 sps:$4 sm:$0xff]   ;;  %v6892_v1 = vld [vmem:[%s14065_s1 + $0x320] ss:$16 sps:$4 sm:$0xff]  }
  0x20   :  { %1842 = vmatpush1.bf16.msra.mxu1 %v6850_v31  ;;  %1650 = vmatprep.subr.bf16.mxu0 %v6851_v32  ;;  %v6893_v2 = vld [vmem:[%s14065_s1 + $0x104] ss:$16 sps:$4 sm:$0xff]   ;;  %v6897_v4 = vld [vmem:[%s14065_s1 + $0x100] ss:$16 sps:$4 sm:$0xff]  }
  0x21   :  { %1843 = vmatprep.subr.bf16.mxu1 %v6853_v33  ;;  %v6895_v3 = vld [vmem:[%s14065_s1 + $0x304] ss:$16 sps:$4 sm:$0xff]   ;;  %v6898_v5 = vld [vmem:[%s14065_s1 + $0x300] ss:$16 sps:$4 sm:$0xff]  }
  0x22   :  { %v51_v6 = vld [vmem:[%s14066_s0] sm:$0xff]  ;;  %v53_v8 = vld [vmem:[%s14066_s0 + $0x10] sm:$0xff] }
  0x23   :  { %1651 = vmatpush2.bf16.msra.mxu0 %v6855_v34  ;;  %v6901_v10 = vld [vmem:[%s14065_s1 + $0x4e4] ss:$16 sps:$4 sm:$0xff]   ;;  %v7552_v15 = vpack.c.bf16 %v58_v7, %v51_v6  ;;  %v7554_v16 = vpack.c.bf16 %v60_v9, %v53_v8  ;;  %v6899_v17 = vld [vmem:[%s14065_s1 + $0x4e0] ss:$16 sps:$4 sm:$0xff]   ;;  %v114_v7 = vld [vmem:[%s14066_s0 + $0x1f8] sm:$0xff] }
  0x24   :  { %1844 = vmatpush2.bf16.msra.mxu1 %v6856_v35  ;;  %1652 = vmatprep.subr.bf16.mxu0 %v6857_v36  ;;  %v73_v12 = vld [vmem:[%s14066_s0 + $0xb0] sm:$0xff]  ;;  %v75_v14 = vld [vmem:[%s14066_s0 + $0xc0] sm:$0xff] }
  0x25   :  { %1845 = vmatprep.subr.bf16.mxu1 %v6859_v37  ;;  %v7559_v18 = vpack.c.bf16 %v73_v12, %v66_v11  ;;  %v7561_v19 = vpack.c.bf16 %v75_v14, %v68_v13  ;;  %v6904_v20 = vld [vmem:[%s14065_s1 + $0x4c4] ss:$16 sps:$4 sm:$0xff]   ;;  %v6902_v25 = vld [vmem:[%s14065_s1 + $0x4c0] ss:$16 sps:$4 sm:$0xff]   ;;  %v86_v37 = vld [vmem:[%s14066_s0 + $0x118] sm:$0xff] }
  0x26   :  { %v65_v21 = vld [vmem:[%s14066_s0 + $0x70] sm:$0xff]  ;;  %v67_v23 = vld [vmem:[%s14066_s0 + $0x80] sm:$0xff]  ;;  %v122_v11 = vld [vmem:[%s14066_s0 + $0x238] sm:$0xff] }
  0x27   :  { %1653 = vmatpush2.bf16.msra.mxu0 %v6861_v38  ;;  %v87_v27 = vld [vmem:[%s14066_s0 + $0x120] sm:$0xff]  ;;  %v89_v29 = vld [vmem:[%s14066_s0 + $0x130] sm:$0xff]  ;;  %v7600_v31 = vpack.c.bf16 %v72_v22, %v65_v21  ;;  %v7602_v32 = vpack.c.bf16 %v74_v24, %v67_v23  ;;  %v124_v13 = vld [vmem:[%s14066_s0 + $0x248] sm:$0xff] }
  0x28   :  { %1846 = vmatpush2.bf16.msra.mxu1 %v6862_v39  ;;  %1654 = vmatprep.subr.bf16.mxu0 %v6863_v40  ;;  %v6907_v30 = vld [vmem:[%s14065_s1 + $0x4a4] ss:$16 sps:$4 sm:$0xff]   ;;  %v7604_v33 = vpack.c.bf16 %v87_v27, %v80_v26  ;;  %v7606_v34 = vpack.c.bf16 %v89_v29, %v82_v28  ;;  %v6905_v35 = vld [vmem:[%s14065_s1 + $0x4a0] ss:$16 sps:$4 sm:$0xff]   ;;  %v88_v40 = vld [vmem:[%s14066_s0 + $0x128] sm:$0xff] }
  0x29   :  { %1847 = vmatprep.subr.bf16.mxu1 %v6865_v41  ;;  %v79_v36 = vld [vmem:[%s14066_s0 + $0xe0] sm:$0xff]  ;;  %v81_v39 = vld [vmem:[%s14066_s0 + $0xf0] sm:$0xff]  ;;  %v94_v41 = vld [vmem:[%s14066_s0 + $0x158] sm:$0xff] }
  0x2a   :  { %v6910_v38 = vld [vmem:[%s14065_s1 + $0x484] ss:$16 sps:$4 sm:$0xff]   ;;  %v7648_v47 = vpack.c.bf16 %v86_v37, %v79_v36  ;;  %v7650_v48 = vpack.c.bf16 %v88_v40, %v81_v39  ;;  %v128_v27 = vld [vmem:[%s14066_s0 + $0x268] sm:$0xff]  ;;  %v138_v37 = vld [vmem:[%s14066_s0 + $0x2b8] sm:$0xff] }
  0x2b   :  { %1655 = vmatpush2.bf16.msra.mxu0 %v6867_v42  ;;  %v101_v42 = vld [vmem:[%s14066_s0 + $0x190] sm:$0xff]  ;;  %v107_v6 = vld [vmem:[%s14066_s0 + $0x1c0] sm:$0xff] }
  0x2c   :  { %1848 = vmatpush2.bf16.msra.mxu1 %v6868_v43  ;;  %1656 = vmatprep.subr.bf16.mxu0 %v6869_v44  ;;  %v96_v43 = vld [vmem:[%s14066_s0 + $0x168] sm:$0xff]  ;;  %v103_v44 = vld [vmem:[%s14066_s0 + $0x1a0] sm:$0xff]  ;;  %v7652_v49 = vpack.c.bf16 %v101_v42, %v94_v41  ;;  %v109_v9 = vld [vmem:[%s14066_s0 + $0x1d0] sm:$0xff]  ;;  %v7744_v21 = vpack.c.bf16 %v114_v7, %v107_v6 }
  0x2d   :  { %1849 = vmatprep.subr.bf16.mxu1 %v6871_v45  ;;  %v6908_v45 = vld [vmem:[%s14065_s1 + $0x480] ss:$16 sps:$4 sm:$0xff]   ;;  %v6913_v46 = vld [vmem:[%s14065_s1 + $0x464] ss:$16 sps:$4 sm:$0xff]  }
  0x2e   :  { %v6922_v8 = vld [vmem:[%s14065_s1 + $0x404] ss:$16 sps:$4 sm:$0xff]   ;;  %v6926_v39 = vld [vmem:[%s14065_s1 + $0x5c0] ss:$16 sps:$4 sm:$0xff]  }
  0x2f   :  { %1657 = vmatpush2.bf16.msra.mxu0 %v6873_v50  ;;  %v7654_v50 = vpack.c.bf16 %v103_v44, %v96_v43  ;;  %v129_v12 = vld [vmem:[%s14066_s0 + $0x270] sm:$0xff]  ;;  %v131_v14 = vld [vmem:[%s14066_s0 + $0x280] sm:$0xff] }
  0x30   :  { %1850 = vmatpush2.bf16.msra.mxu1 %v6874_v51  ;;  %1658 = vmatprep.subr.bf16.mxu0 %v6875_v52  ;;  %v6911_v51 = vld [vmem:[%s14065_s1 + $0x460] ss:$16 sps:$4 sm:$0xff]   ;;  %v7748_v23 = vpack.c.bf16 %v129_v12, %v122_v11  ;;  %v7750_v24 = vpack.c.bf16 %v131_v14, %v124_v13  ;;  %v6928_v28 = vld [vmem:[%s14065_s1 + $0x5c4] ss:$16 sps:$4 sm:$0xff]   ;;  %v158_v12 = vld [vmem:[%s14066_s0 + $0x358] sm:$0xff] }
  0x31   :  { %1851 = vmatprep.subr.bf16.mxu1 %v6877_v55  ;;  %v93_v52 = vld [vmem:[%s14066_s0 + $0x150] sm:$0xff]  ;;  %v100_v55 = vld [vmem:[%s14066_s0 + $0x188] sm:$0xff]  ;;  %v123_v29 = vld [vmem:[%s14066_s0 + $0x240] sm:$0xff] }
  0x32   :  { %v121_v26 = vld [vmem:[%s14066_s0 + $0x230] sm:$0xff]  ;;  %v143_v36 = vld [vmem:[%s14066_s0 + $0x2e0] sm:$0xff]  ;;  %v164_v13 = vld [vmem:[%s14066_s0 + $0x388] sm:$0xff] }
  0x33   :  { %1659 = vmatpush2.bf16.msra.mxu0 %v6879_v56  ;;  %v6916_v56 = vld [vmem:[%s14065_s1 + $0x444] ss:$16 sps:$4 sm:$0xff]   ;;  %v7792_v41 = vpack.c.bf16 %v128_v27, %v121_v26  ;;  %v6935_v7 = vld [vmem:[%s14065_s1 + $0x560] ss:$16 sps:$4 sm:$0xff]  }
  0x34   :  { %1852 = vmatpush2.bf16.msra.mxu1 %v6880_v57  ;;  %1660 = vmatprep.subr.bf16.mxu0 %v6881_v58  ;;  %v95_v57 = vld [vmem:[%s14066_s0 + $0x160] sm:$0xff]  ;;  %v102_v58 = vld [vmem:[%s14066_s0 + $0x198] sm:$0xff] }
  0x35   :  { %1853 = vmatprep.subr.bf16.mxu1 %v6883_v59  ;;  %v108_v59 = vld [vmem:[%s14066_s0 + $0x1c8] sm:$0xff]  ;;  %v6931_v40 = vld [vmem:[%s14065_s1 + $0x5a4] ss:$16 sps:$4 sm:$0xff]  }
  0x36   :  { %v151_v11 = vld [vmem:[%s14066_s0 + $0x320] sm:$0xff] }
  0x37   :  { %1661 = vmatpush2.bf16.msra.mxu0 %v6885_v60  ;;  %v115_v60 = vld [vmem:[%s14066_s0 + $0x200] sm:$0xff] }
  0x38   :  { %1854 = vmatpush2.bf16.msra.mxu1 %v6886_v61  ;;  %1662 = vmatprep.subr.bf16.mxu0 %v6887_v62  ;;  %v110_v61 = vld [vmem:[%s14066_s0 + $0x1d8] sm:$0xff]  ;;  %v117_v62 = vld [vmem:[%s14066_s0 + $0x210] sm:$0xff]  ;;  %v171_v14 = vld [vmem:[%s14066_s0 + $0x3c0] sm:$0xff] }
  0x39   :  { %1855 = vmatprep.subr.bf16.mxu1 %v6889_v63  ;;  %v6914_v63 = vld [vmem:[%s14065_s1 + $0x440] ss:$16 sps:$4 sm:$0xff]   ;;  %v6943_v26 = vld [vmem:[%s14065_s1 + $0x524] ss:$16 sps:$4 sm:$0xff]  }
  0x3b   :  { %1663 = vmatpush2.bf16.msra.mxu0 %v6891_v0  ;;  %v6919_v0 = vld [vmem:[%s14065_s1 + $0x424] ss:$16 sps:$4 sm:$0xff]  }
  0x3c   :  { %1856 = vmatpush2.bf16.msra.mxu1 %v6892_v1  ;;  %1664 = vmatprep.subr.bf16.mxu0 %v6893_v2  ;;  %v7696_v1 = vpack.c.bf16 %v100_v55, %v93_v52  ;;  %v7698_v2 = vpack.c.bf16 %v102_v58, %v95_v57  ;;  %v6934_v52 = vld [vmem:[%s14065_s1 + $0x584] ss:$16 sps:$4 sm:$0xff]   ;;  %v150_v57 = vld [vmem:[%s14066_s0 + $0x318] sm:$0xff] }
  0x3d   :  { %1857 = vmatprep.subr.bf16.mxu1 %v6895_v3  ;;  %v7700_v3 = vpack.c.bf16 %v115_v60, %v108_v59  ;;  %v137_v55 = vld [vmem:[%s14066_s0 + $0x2b0] sm:$0xff]  ;;  %v152_v59 = vld [vmem:[%s14066_s0 + $0x328] sm:$0xff]  ;;  %v159_v60 = vld [vmem:[%s14066_s0 + $0x360] sm:$0xff] }
  0x3e   :  { %v157_v58 = vld [vmem:[%s14066_s0 + $0x350] sm:$0xff]  ;;  %v7846_v6 = vpack.c.bf16 %v159_v60, %v152_v59 }
  0x3f   :  { %1665 = vmatpush2.bf16.msra.mxu0 %v6897_v4  ;;  %v7702_v4 = vpack.c.bf16 %v117_v62, %v110_v61  ;;  %v6932_v61 = vld [vmem:[%s14065_s1 + $0x580] ss:$16 sps:$4 sm:$0xff]   ;;  %v6937_v62 = vld [vmem:[%s14065_s1 + $0x564] ss:$16 sps:$4 sm:$0xff]  }
  0x40   :  { %1858 = vmatpush2.bf16.msra.mxu1 %v6898_v5  ;;  %2020 = vmatprep.subr.bf16.mxu0 %v6901_v10  ;;  %v6917_v5 = vld [vmem:[%s14065_s1 + $0x420] ss:$16 sps:$4 sm:$0xff]   ;;  %14322 = vst [vmem:[#allocation5_spill] sm:$0xff] %v7846_v6 }
  0x41   :  { %6769 = vmatprep.subr.bf16.mxu1 %v6901_v10  ;;  %v116_v10 = vld [vmem:[%s14066_s0 + $0x208] sm:$0xff] }
  0x42   :  { %1667 = vmatmul.mubr.bf16.vlgmr.msra.gmra.mxu0 %v7552_v15  ;;  %v7746_v22 = vpack.c.bf16 %v116_v10, %v109_v9  ;;  %v149_v9 = vld [vmem:[%s14066_s0 + $0x310] sm:$0xff]  ;;  %v156_v10 = vld [vmem:[%s14066_s0 + $0x348] sm:$0xff] }
  0x43   :  { %1860 = vmatmul.mubr.bf16.vlgmr.msra.gmra.mxu1 %v7554_v16  ;;  %1676 = vmatprep.mubr.bf16.mxu0 %v7559_v18  ;;  %v7888_v27 = vpack.c.bf16 %v156_v10, %v149_v9  ;;  %v186_v9 = vld [vmem:[%s14066_s0 + $0x438] sm:$0xff]  ;;  %v192_v10 = vld [vmem:[%s14066_s0 + $0x468] sm:$0xff] }
  0x44   :  { %6785 = vmatpush1.bf16.msra.mxu1 %v6899_v17  ;;  %1869 = vmatprep.mubr.bf16.mxu1 %v7561_v19 }
  0x45   :  { %6770 = vmatprep.subr.bf16.mxu1 %v6904_v20  ;;  %2021 = vmatpush1.bf16.msra.mxu0 %v6899_v17  ;;  %v6920_v17 = vld [vmem:[%s14065_s1 + $0x400] ss:$16 sps:$4 sm:$0xff]  }
  0x46   :  { %2022 = vmatprep.subr.bf16.mxu0 %v6904_v20  ;;  %v6925_v20 = vld [vmem:[%s14065_s1 + $0x5e4] ss:$16 sps:$4 sm:$0xff]  }
  0x48   :  { %6786 = vmatpush1.bf16.msra.mxu1 %v6902_v25 }
  0x49   :  { %6771 = vmatprep.subr.bf16.mxu1 %v6907_v30  ;;  %2023 = vmatpush1.bf16.msra.mxu0 %v6902_v25  ;;  %v6923_v25 = vld [vmem:[%s14065_s1 + $0x5e0] ss:$16 sps:$4 sm:$0xff]  }
  0x4a   :  { %1677 = vmatmul.mubr.bf16.gmra.mxu0 %v7600_v31  ;;  %2024 = vmatprep.subr.bf16.mxu0 %v6907_v30  ;;  %v130_v30 = vld [vmem:[%s14066_s0 + $0x278] sm:$0xff] }
  0x4b   :  { %1870 = vmatmul.mubr.bf16.gmra.mxu1 %v7602_v32  ;;  %1686 = vmatprep.mubr.bf16.mxu0 %v7604_v33  ;;  %v7794_v42 = vpack.c.bf16 %v130_v30, %v123_v29  ;;  %v7892_v29 = vpack.c.bf16 %v171_v14, %v164_v13  ;;  %v201_v13 = vld [vmem:[%s14066_s0 + $0x4b0] sm:$0xff] }
  0x4c   :  { %1879 = vmatprep.mubr.bf16.mxu1 %v7606_v34  ;;  %6787 = vmatpush1.bf16.msra.mxu1 %v6905_v35 }
  0x4d   :  { %6772 = vmatprep.subr.bf16.mxu1 %v6910_v38  ;;  %2025 = vmatpush1.bf16.msra.mxu0 %v6905_v35  ;;  %v136_v35 = vld [vmem:[%s14066_s0 + $0x2a8] sm:$0xff]  ;;  %14319 = vst [vmem:[#allocation2_spill] sm:$0xff] %v7794_v42 }
  0x4e   :  { %2026 = vmatprep.subr.bf16.mxu0 %v6910_v38  ;;  %v145_v38 = vld [vmem:[%s14066_s0 + $0x2f0] sm:$0xff]  ;;  %v7796_v43 = vpack.c.bf16 %v143_v36, %v136_v35  ;;  %v163_v36 = vld [vmem:[%s14066_s0 + $0x380] sm:$0xff] }
  0x4f   :  { %v7798_v44 = vpack.c.bf16 %v145_v38, %v138_v37  ;;  %v6941_v35 = vld [vmem:[%s14065_s1 + $0x520] ss:$16 sps:$4 sm:$0xff]   ;;  %v170_v37 = vld [vmem:[%s14066_s0 + $0x3b8] sm:$0xff]  ;;  %v6946_v38 = vld [vmem:[%s14065_s1 + $0x504] ss:$16 sps:$4 sm:$0xff]  }
  0x50   :  { %6788 = vmatpush1.bf16.msra.mxu1 %v6908_v45 }
  0x51   :  { %6773 = vmatprep.subr.bf16.mxu1 %v6913_v46  ;;  %2027 = vmatpush1.bf16.msra.mxu0 %v6908_v45  ;;  %14320 = vst [vmem:[#allocation3_spill] sm:$0xff] %v7798_v44  ;;  %v6929_v45 = vld [vmem:[%s14065_s1 + $0x5a0] ss:$16 sps:$4 sm:$0xff]  }
  0x52   :  { %1687 = vmatmul.mubr.bf16.gmra.mxu0 %v7648_v47  ;;  %2028 = vmatprep.subr.bf16.mxu0 %v6913_v46  ;;  %v135_v46 = vld [vmem:[%s14066_s0 + $0x2a0] sm:$0xff] }
  0x53   :  { %1880 = vmatmul.mubr.bf16.gmra.mxu1 %v7650_v48  ;;  %1696 = vmatprep.mubr.bf16.mxu0 %v7652_v49 }
  0x54   :  { %1889 = vmatprep.mubr.bf16.mxu1 %v7654_v50  ;;  %6789 = vmatpush1.bf16.msra.mxu1 %v6911_v51 }
  0x55   :  { %6774 = vmatprep.subr.bf16.mxu1 %v6916_v56  ;;  %2029 = vmatpush1.bf16.msra.mxu0 %v6911_v51  ;;  %v142_v51 = vld [vmem:[%s14066_s0 + $0x2d8] sm:$0xff] }
  0x56   :  { %2030 = vmatprep.subr.bf16.mxu0 %v6916_v56  ;;  %v144_v56 = vld [vmem:[%s14066_s0 + $0x2e8] sm:$0xff] }
  0x58   :  { %6790 = vmatpush1.bf16.msra.mxu1 %v6914_v63 }
  0x59   :  { %6775 = vmatprep.subr.bf16.mxu1 %v6919_v0  ;;  %2031 = vmatpush1.bf16.msra.mxu0 %v6914_v63  ;;  %v7840_v63 = vpack.c.bf16 %v142_v51, %v135_v46  ;;  %v185_v46 = vld [vmem:[%s14066_s0 + $0x430] sm:$0xff]  ;;  %v180_v51 = vld [vmem:[%s14066_s0 + $0x408] sm:$0xff] }
  0x5a   :  { %1697 = vmatmul.mubr.bf16.gmra.mxu0 %v7696_v1  ;;  %2032 = vmatprep.subr.bf16.mxu0 %v6919_v0  ;;  %v7842_v0 = vpack.c.bf16 %v144_v56, %v137_v55  ;;  %v6944_v55 = vld [vmem:[%s14065_s1 + $0x500] ss:$16 sps:$4 sm:$0xff]   ;;  %v6949_v56 = vld [vmem:[%s14065_s1 + $0x604] ss:$16 sps:$4 sm:$0xff]  }
  0x5b   :  { %1890 = vmatmul.mubr.bf16.gmra.mxu1 %v7698_v2  ;;  %1706 = vmatprep.mubr.bf16.mxu0 %v7700_v3 }
  0x5c   :  { %1899 = vmatprep.mubr.bf16.mxu1 %v7702_v4  ;;  %6791 = vmatpush1.bf16.msra.mxu1 %v6917_v5  ;;  %14321 = vst [vmem:[#allocation4_spill] sm:$0xff] %v7842_v0 }
  0x5d   :  { %6776 = vmatprep.subr.bf16.mxu1 %v6922_v8  ;;  %2033 = vmatpush1.bf16.msra.mxu0 %v6917_v5  ;;  %v7844_v5 = vpack.c.bf16 %v157_v58, %v150_v57  ;;  %v7936_v57 = vpack.c.bf16 %v170_v37, %v163_v36  ;;  %v193_v36 = vld [vmem:[%s14066_s0 + $0x470] sm:$0xff]  ;;  %v200_v37 = vld [vmem:[%s14066_s0 + $0x4a8] sm:$0xff] }
  0x5e   :  { %2034 = vmatprep.subr.bf16.mxu0 %v6922_v8  ;;  %v6940_v8 = vld [vmem:[%s14065_s1 + $0x544] ss:$16 sps:$4 sm:$0xff]  }
  0x60   :  { %6792 = vmatpush1.bf16.msra.mxu1 %v6920_v17 }
  0x61   :  { %6777 = vmatprep.subr.bf16.mxu1 %v6925_v20  ;;  %2035 = vmatpush1.bf16.msra.mxu0 %v6920_v17  ;;  %v166_v17 = vld [vmem:[%s14066_s0 + $0x398] sm:$0xff] }
  0x62   :  { %1707 = vmatmul.mubr.bf16.gmra.mxu0 %v7744_v21  ;;  %2036 = vmatprep.subr.bf16.mxu0 %v6925_v20  ;;  %v173_v20 = vld [vmem:[%s14066_s0 + $0x3d0] sm:$0xff] }
  0x63   :  { %1900 = vmatmul.mubr.bf16.gmra.mxu1 %v7746_v22  ;;  %1716 = vmatprep.mubr.bf16.mxu0 %v7748_v23  ;;  %v7894_v30 = vpack.c.bf16 %v173_v20, %v166_v17 }
  0x64   :  { %1909 = vmatprep.mubr.bf16.mxu1 %v7750_v24  ;;  %6793 = vmatpush2.bf16.msra.mxu1 %v6923_v25 }
  0x65   :  { %6778 = vmatprep.subr.bf16.mxu1 %v6928_v28  ;;  %2037 = vmatpush2.bf16.msra.mxu0 %v6923_v25  ;;  %v6938_v25 = vld [vmem:[%s14065_s1 + $0x540] ss:$16 sps:$4 sm:$0xff]   ;;  %14324 = vst [vmem:[#allocation7_spill] sm:$0xff] %v7894_v30 }
  0x66   :  { %2038 = vmatprep.subr.bf16.mxu0 %v6928_v28  ;;  %v7890_v28 = vpack.c.bf16 %v158_v12, %v151_v11  ;;  %v199_v11 = vld [vmem:[%s14066_s0 + $0x4a0] sm:$0xff]  ;;  %v194_v12 = vld [vmem:[%s14066_s0 + $0x478] sm:$0xff] }
  0x67   :  { %v7979_v20 = vpack.c.bf16 %v199_v11, %v192_v10  ;;  %v222_v10 = vld [vmem:[%s14066_s0 + $0x558] sm:$0xff]  ;;  %v229_v11 = vld [vmem:[%s14066_s0 + $0x590] sm:$0xff] }
  0x68   :  { %6794 = vmatpush2.bf16.msra.mxu1 %v6926_v39  ;;  %14323 = vst [vmem:[#allocation6_spill] sm:$0xff] %v7890_v28 }
  0x69   :  { %6779 = vmatprep.subr.bf16.mxu1 %v6931_v40  ;;  %2039 = vmatpush2.bf16.msra.mxu0 %v6926_v39  ;;  %v165_v39 = vld [vmem:[%s14066_s0 + $0x390] sm:$0xff] }
  0x6a   :  { %1717 = vmatmul.mubr.bf16.gmra.mxu0 %v7792_v41  ;;  %2040 = vmatprep.subr.bf16.mxu0 %v6931_v40  ;;  %v172_v40 = vld [vmem:[%s14066_s0 + $0x3c8] sm:$0xff] }
  0x6b   :  { %1910 = vmatmul.mubr.bf16.gmra.mxu1 %v7794_v42  ;;  %1726 = vmatprep.mubr.bf16.mxu0 %v7796_v43  ;;  %v7938_v58 = vpack.c.bf16 %v172_v40, %v165_v39  ;;  %v213_v39 = vld [vmem:[%s14066_s0 + $0x510] sm:$0xff]  ;;  %v208_v40 = vld [vmem:[%s14066_s0 + $0x4e8] sm:$0xff] }
  0x6c   :  { %1919 = vmatprep.mubr.bf16.mxu1 %v7798_v44  ;;  %6795 = vmatpush2.bf16.msra.mxu1 %v6929_v45 }
  0x6d   :  { %6780 = vmatprep.subr.bf16.mxu1 %v6934_v52  ;;  %2041 = vmatpush2.bf16.msra.mxu0 %v6929_v45  ;;  %v178_v45 = vld [vmem:[%s14066_s0 + $0x3f8] sm:$0xff]  ;;  %14325 = vst [vmem:[#allocation8_spill] sm:$0xff] %v7938_v58 }
  0x6e   :  { %2042 = vmatprep.subr.bf16.mxu0 %v6934_v52  ;;  %v187_v52 = vld [vmem:[%s14066_s0 + $0x440] sm:$0xff]  ;;  %v7940_v59 = vpack.c.bf16 %v185_v46, %v178_v45 }
  0x6f   :  { %v7942_v60 = vpack.c.bf16 %v187_v52, %v180_v51  ;;  %v215_v45 = vld [vmem:[%s14066_s0 + $0x520] sm:$0xff]  ;;  %v8013_v51 = vpack.c.bf16 %v200_v37, %v193_v36  ;;  %v226_v37 = vld [vmem:[%s14066_s0 + $0x578] sm:$0xff] }
  0x70   :  { %6796 = vmatpush2.bf16.msra.mxu1 %v6932_v61  ;;  %v219_v36 = vld [vmem:[%s14066_s0 + $0x540] sm:$0xff] }
  0x71   :  { %6781 = vmatprep.subr.bf16.mxu1 %v6937_v62  ;;  %2043 = vmatpush2.bf16.msra.mxu0 %v6932_v61  ;;  %14326 = vst [vmem:[#allocation9_spill] sm:$0xff] %v7942_v60  ;;  %v6952_v61 = vld [vmem:[%s14065_s1 + $0xec] ss:$16 sps:$4 sm:$0xff]   ;;  %14329 = vst [vmem:[#allocation12_spill] sm:$0xff] %v8013_v51 }
  0x72   :  { %1727 = vmatmul.mubr.bf16.gmra.mxu0 %v7840_v63  ;;  %2044 = vmatprep.subr.bf16.mxu0 %v6937_v62  ;;  %v177_v62 = vld [vmem:[%s14066_s0 + $0x3f0] sm:$0xff] }
  0x73   :  { %1920 = vmatmul.mubr.bf16.gmra.mxu1 %v7842_v0  ;;  %1736 = vmatprep.mubr.bf16.mxu0 %v7844_v5 }
  0x74   :  { %1929 = vmatprep.mubr.bf16.mxu1 %v7846_v6  ;;  %6797 = vmatpush2.bf16.msra.mxu1 %v6935_v7 }
  0x75   :  { %6782 = vmatprep.subr.bf16.mxu1 %v6940_v8  ;;  %2045 = vmatpush2.bf16.msra.mxu0 %v6935_v7  ;;  %v184_v7 = vld [vmem:[%s14066_s0 + $0x428] sm:$0xff] }
  0x76   :  { %2046 = vmatprep.subr.bf16.mxu0 %v6940_v8  ;;  %v179_v8 = vld [vmem:[%s14066_s0 + $0x400] sm:$0xff]  ;;  %v7975_v14 = vpack.c.bf16 %v184_v7, %v177_v62  ;;  %v214_v7 = vld [vmem:[%s14066_s0 + $0x518] sm:$0xff] }
  0x77   :  { %v7977_v17 = vpack.c.bf16 %v186_v9, %v179_v8  ;;  %v207_v62 = vld [vmem:[%s14066_s0 + $0x4e0] sm:$0xff]  ;;  %v220_v8 = vld [vmem:[%s14066_s0 + $0x548] sm:$0xff] }
  0x78   :  { %6798 = vmatpush2.bf16.msra.mxu1 %v6938_v25  ;;  %v227_v9 = vld [vmem:[%s14066_s0 + $0x580] sm:$0xff] }
  0x79   :  { %6783 = vmatprep.subr.bf16.mxu1 %v6943_v26  ;;  %2047 = vmatpush2.bf16.msra.mxu0 %v6938_v25  ;;  %14327 = vst [vmem:[#allocation10_spill] sm:$0xff] %v7977_v17  ;;  %v7981_v25 = vpack.c.bf16 %v201_v13, %v194_v12  ;;  %v8049_v13 = vpack.c.bf16 %v214_v7, %v207_v62 }
  0x7a   :  { %1737 = vmatmul.mubr.bf16.gmra.mxu0 %v7888_v27  ;;  %2048 = vmatprep.subr.bf16.mxu0 %v6943_v26  ;;  %v191_v26 = vld [vmem:[%s14066_s0 + $0x460] sm:$0xff]  ;;  %v8083_v62 = vpack.c.bf16 %v226_v37, %v219_v36  ;;  %v242_v36 = vld [vmem:[%s14066_s0 + $0x5f8] sm:$0xff]  ;;  %v248_v37 = vld [vmem:[%s14066_s0 + $0x628] sm:$0xff] }
  0x7b   :  { %1930 = vmatmul.mubr.bf16.gmra.mxu1 %v7890_v28  ;;  %1746 = vmatprep.mubr.bf16.mxu0 %v7892_v29  ;;  %14328 = vst [vmem:[#allocation11_spill] sm:$0xff] %v7981_v25  ;;  %14331 = vst [vmem:[#allocation14_spill] sm:$0xff] %v8049_v13  ;;  %v6961_v28 = vld [vmem:[%s14065_s1 + $0xac] ss:$16 sps:$4 sm:$0xff]  }
  0x7c   :  { %1939 = vmatprep.mubr.bf16.mxu1 %v7894_v30  ;;  %6799 = vmatpush2.bf16.msra.mxu1 %v6941_v35 }
  0x7d   :  { %6784 = vmatprep.subr.bf16.mxu1 %v6946_v38  ;;  %2049 = vmatpush2.bf16.msra.mxu0 %v6941_v35  ;;  %v198_v35 = vld [vmem:[%s14066_s0 + $0x498] sm:$0xff] }
  0x7e   :  { %2050 = vmatprep.subr.bf16.mxu0 %v6946_v38  ;;  %v206_v38 = vld [vmem:[%s14066_s0 + $0x4d8] sm:$0xff]  ;;  %v8011_v46 = vpack.c.bf16 %v198_v35, %v191_v26  ;;  %v8051_v26 = vpack.c.bf16 %v227_v9, %v220_v8  ;;  %v8053_v35 = vpack.c.bf16 %v229_v11, %v222_v10  ;;  %v233_v10 = vld [vmem:[%s14066_s0 + $0x5b0] sm:$0xff]  ;;  %v240_v11 = vld [vmem:[%s14066_s0 + $0x5e8] sm:$0xff] }
  0x7f   :  { %v8015_v52 = vpack.c.bf16 %v213_v39, %v206_v38  ;;  %v221_v38 = vld [vmem:[%s14066_s0 + $0x550] sm:$0xff]  ;;  %v228_v39 = vld [vmem:[%s14066_s0 + $0x588] sm:$0xff] }
  0x80   :  { %6800 = vmatpush2.bf16.msra.mxu1 %v6944_v55  ;;  %14332 = vst [vmem:[#allocation15_spill] sm:$0xff] %v8053_v35  ;;  %v8085_v7 = vpack.c.bf16 %v228_v39, %v221_v38  ;;  %v255_v38 = vld [vmem:[%s14066_s0 + $0x660] sm:$0xff]  ;;  %v250_v39 = vld [vmem:[%s14066_s0 + $0x638] sm:$0xff] }
  0x81   :  { %2051 = vmatpush2.bf16.msra.mxu0 %v6944_v55  ;;  %2227 = vmatprep.subr.bf16.mxu1 %v6949_v56  ;;  %v8017_v55 = vpack.c.bf16 %v215_v45, %v208_v40  ;;  %v205_v56 = vld [vmem:[%s14066_s0 + $0x4d0] sm:$0xff]  ;;  %v234_v40 = vld [vmem:[%s14066_s0 + $0x5b8] sm:$0xff] }
  0x82   :  { %1747 = vmatmul.mubr.bf16.gmra.mxu0 %v7936_v57  ;;  %2406 = vmatprep.subr.bf16.mxu0 %v6952_v61  ;;  %v212_v61 = vld [vmem:[%s14066_s0 + $0x508] sm:$0xff]  ;;  %v241_v45 = vld [vmem:[%s14066_s0 + $0x5f0] sm:$0xff]  ;;  %14333 = vst [vmem:[#allocation16_spill] sm:$0xff] %v8085_v7 }
  0x83   :  { %1940 = vmatmul.mubr.bf16.gmra.mxu1 %v7938_v58  ;;  %1756 = vmatprep.mubr.bf16.mxu0 %v7940_v59  ;;  %14330 = vst [vmem:[#allocation13_spill] sm:$0xff] %v8017_v55  ;;  %v8047_v12 = vpack.c.bf16 %v212_v61, %v205_v56  ;;  %v236_v56 = vld [vmem:[%s14066_s0 + $0x5c8] sm:$0xff]  ;;  %v243_v61 = vld [vmem:[%s14066_s0 + $0x600] sm:$0xff]  ;;  %v8087_v8 = vpack.c.bf16 %v241_v45, %v234_v40  ;;  %v257_v40 = vld [vmem:[%s14066_s0 + $0x670] sm:$0xff] }
  0x84   :  { %1949 = vmatprep.mubr.bf16.mxu1 %v7942_v60  ;;  %v8089_v9 = vpack.c.bf16 %v243_v61, %v236_v56  ;;  %v8119_v45 = vpack.c.bf16 %v240_v11, %v233_v10  ;;  %v8123_v61 = vpack.c.bf16 %v255_v38, %v248_v37  ;;  %v262_v10 = vld [vmem:[%s14066_s0 + $0x698] sm:$0xff]  ;;  %v269_v11 = vld [vmem:[%s14066_s0 + $0x6d0] sm:$0xff]  ;;  %v271_v37 = vld [vmem:[%s14066_s0 + $0x6e0] sm:$0xff] }
  0x85   :  { %v62_v60 = vld [vmem:[%s14066_s0 + $0x58] sm:$0xff] }
  0x86   :  { %14334 = vst [vmem:[#allocation17_spill] sm:$0xff] %v8089_v9  ;;  %14335 = vst [vmem:[#allocation18_spill] sm:$0xff] %v8119_v45  ;;  %v6955_v58 = vld [vmem:[%s14065_s1 + $0x2ec] ss:$16 sps:$4 sm:$0xff]  }
  0x87   :  { %14337 = vst [vmem:[#allocation20_spill] sm:$0xff] %v8123_v61 }
  0x8a   :  { %1757 = vmatmul.mubr.bf16.gmra.mxu0 %v7975_v14 }
  0x8b   :  { %1950 = vmatmul.mubr.bf16.gmra.mxu1 %v7977_v17  ;;  %1766 = vmatprep.mubr.bf16.mxu0 %v7979_v20  ;;  %v55_v17 = vld [vmem:[%s14066_s0 + $0x20] sm:$0xff] }
  0x8c   :  { %1959 = vmatprep.mubr.bf16.mxu1 %v7981_v25  ;;  %v268_v25 = vld [vmem:[%s14066_s0 + $0x6c8] sm:$0xff] }
  0x92   :  { %1767 = vmatmul.mubr.bf16.gmra.mxu0 %v8011_v46 }
  0x93   :  { %1960 = vmatmul.mubr.bf16.gmra.mxu1 %v8013_v51  ;;  %1776 = vmatprep.mubr.bf16.mxu0 %v8015_v52  ;;  %v261_v51 = vld [vmem:[%s14066_s0 + $0x690] sm:$0xff] }
  0x94   :  { %1969 = vmatprep.mubr.bf16.mxu1 %v8017_v55  ;;  %v249_v55 = vld [vmem:[%s14066_s0 + $0x630] sm:$0xff] }
  0x9a   :  { %1777 = vmatmul.mubr.bf16.gmra.mxu0 %v8047_v12 }
  0x9b   :  { %1970 = vmatmul.mubr.bf16.gmra.mxu1 %v8049_v13  ;;  %1786 = vmatprep.mubr.bf16.mxu0 %v8051_v26  ;;  %v254_v13 = vld [vmem:[%s14066_s0 + $0x658] sm:$0xff] }
  0x9c   :  { %1979 = vmatprep.mubr.bf16.mxu1 %v8053_v35  ;;  %v235_v35 = vld [vmem:[%s14066_s0 + $0x5c0] sm:$0xff] }
  0x9d   :  { %v8121_v56 = vpack.c.bf16 %v242_v36, %v235_v35  ;;  %v256_v35 = vld [vmem:[%s14066_s0 + $0x668] sm:$0xff] }
  0x9e   :  { %v264_v36 = vld [vmem:[%s14066_s0 + $0x6a8] sm:$0xff] }
  0x9f   :  { %14336 = vst [vmem:[#allocation19_spill] sm:$0xff] %v8121_v56 }
  0xa2   :  { %1787 = vmatmul.mubr.bf16.gmra.mxu0 %v8083_v62 }
  0xa3   :  { %1980 = vmatmul.mubr.bf16.gmra.mxu1 %v8085_v7  ;;  %1796 = vmatprep.mubr.bf16.mxu0 %v8087_v8  ;;  %v8125_v7 = vpack.c.bf16 %v257_v40, %v250_v39  ;;  %v8157_v39 = vpack.c.bf16 %v256_v35, %v249_v55  ;;  %v8159_v40 = vpack.c.bf16 %v269_v11, %v262_v10  ;;  %v270_v55 = vld [vmem:[%s14066_s0 + $0x6d8] sm:$0xff]  ;;  %v224_v35 = vld [vmem:[%s14066_s0 + $0x568] sm:$0xff]  ;;  %v231_v10 = vld [vmem:[%s14066_s0 + $0x5a0] sm:$0xff] }
  0xa4   :  { %1989 = vmatprep.mubr.bf16.mxu1 %v8089_v9  ;;  %v247_v9 = vld [vmem:[%s14066_s0 + $0x620] sm:$0xff]  ;;  %v8191_v11 = vpack.c.bf16 %v268_v25, %v261_v51  ;;  %v230_v51 = vld [vmem:[%s14066_s0 + $0x598] sm:$0xff] }
  0xa5   :  { %14338 = vst [vmem:[#allocation21_spill] sm:$0xff] %v8125_v7  ;;  %v8155_v38 = vpack.c.bf16 %v254_v13, %v247_v9  ;;  %14340 = vst [vmem:[#allocation23_spill] sm:$0xff] %v8157_v39  ;;  %v56_v13 = vld [vmem:[%s14066_s0 + $0x28] sm:$0xff]  ;;  %v63_v9 = vld [vmem:[%s14066_s0 + $0x60] sm:$0xff] }
  0xa6   :  { %14341 = vst [vmem:[#allocation24_spill] sm:$0xff] %v8159_v40  ;;  %14343 = vst [vmem:[#allocation26_spill] sm:$0xff] %v8191_v11  ;;  %v223_v25 = vld [vmem:[%s14066_s0 + $0x560] sm:$0xff] }
  0xa7   :  { %14339 = vst [vmem:[#allocation22_spill] sm:$0xff] %v8155_v38 }
  0xaa   :  { %1797 = vmatmul.mubr.bf16.gmra.mxu0 %v8119_v45 }
  0xab   :  { %1990 = vmatmul.mubr.bf16.gmra.mxu1 %v8121_v56  ;;  %1806 = vmatprep.mubr.bf16.mxu0 %v8123_v61  ;;  %v8161_v56 = vpack.c.bf16 %v271_v37, %v264_v36  ;;  %v8195_v37 = vpack.c.bf16 %v63_v9, %v56_v13  ;;  %v238_v13 = vld [vmem:[%s14066_s0 + $0x5d8] sm:$0xff]  ;;  %v245_v9 = vld [vmem:[%s14066_s0 + $0x610] sm:$0xff] }
  0xac   :  { %1999 = vmatprep.mubr.bf16.mxu1 %v8125_v7  ;;  %v263_v7 = vld [vmem:[%s14066_s0 + $0x6a0] sm:$0xff] }
  0xad   :  { %14342 = vst [vmem:[#allocation25_spill] sm:$0xff] %v8161_v56  ;;  %v8193_v36 = vpack.c.bf16 %v270_v55, %v263_v7  ;;  %14345 = vst [vmem:[#allocation28_spill] sm:$0xff] %v8195_v37  ;;  %v70_v7 = vld [vmem:[%s14066_s0 + $0x98] sm:$0xff]  ;;  %v77_v55 = vld [vmem:[%s14066_s0 + $0xd0] sm:$0xff] }
  0xaf   :  { %14344 = vst [vmem:[#allocation27_spill] sm:$0xff] %v8193_v36 }
  0xb2   :  { %1807 = vmatmul.mubr.bf16.gmra.mxu0 %v8155_v38 }
  0xb3   :  { %2000 = vmatmul.mubr.bf16.gmra.mxu1 %v8157_v39  ;;  %1816 = vmatprep.mubr.bf16.mxu0 %v8159_v40  ;;  %v8197_v39 = vpack.c.bf16 %v231_v10, %v224_v35  ;;  %v8227_v35 = vpack.c.bf16 %v62_v60, %v55_v17  ;;  %v8229_v10 = vpack.c.bf16 %v230_v51, %v223_v25  ;;  %v69_v60 = vld [vmem:[%s14066_s0 + $0x90] sm:$0xff]  ;;  %v76_v17 = vld [vmem:[%s14066_s0 + $0xc8] sm:$0xff] }
  0xb4   :  { %2009 = vmatprep.mubr.bf16.mxu1 %v8161_v56  ;;  %v8236_v56 = vpack.c.bf16 %v245_v9, %v238_v13  ;;  %v6958_v25 = vld [vmem:[%s14065_s1 + $0xcc] ss:$16 sps:$4 sm:$0xff]   ;;  %v237_v51 = vld [vmem:[%s14066_s0 + $0x5d0] sm:$0xff]  ;;  %v259_v9 = vld [vmem:[%s14066_s0 + $0x680] sm:$0xff] }
  0xb5   :  { %14346 = vst [vmem:[#allocation29_spill] sm:$0xff] %v8197_v39  ;;  %14347 = vst [vmem:[#allocation30_spill] sm:$0xff] %v8227_v35  ;;  %v252_v13 = vld [vmem:[%s14066_s0 + $0x648] sm:$0xff] }
  0xb6   :  { %14348 = vst [vmem:[#allocation31_spill] sm:$0xff] %v8229_v10  ;;  %14350 = vst [vmem:[#allocation33_spill] sm:$0xff] %v8236_v56  ;;  %v8284_v30 = vpack.c.bf16 %v259_v9, %v252_v13  ;;  %v6965_v13 = vld [vmem:[%s14065_s1 + $0x88] ss:$16 sps:$4 sm:$0xff]  }
  0xb8   :  { %14354 = vst [vmem:[#allocation37_spill] sm:$0xff] %v8284_v30 }
  0xba   :  { %1817 = vmatmul.mubr.bf16.gmra.mxu0 %v8191_v11 }
  0xbb   :  { %2010 = vmatmul.mubr.bf16.gmra.mxu1 %v8193_v36  ;;  %2052 = vmatprep.mubr.bf16.mxu0 %v8195_v37  ;;  %v8234_v36 = vpack.c.bf16 %v77_v55, %v70_v7  ;;  %v6950_v37 = vld [vmem:[%s14065_s1 + $0xe8] ss:$16 sps:$4 sm:$0xff]  }
  0xbc   :  { %2172 = vmatprep.mubr.bf16.mxu1 %v8197_v39  ;;  %v6947_v39 = vld [vmem:[%s14065_s1 + $0x600] ss:$16 sps:$4 sm:$0xff]   ;;  %v244_v7 = vld [vmem:[%s14066_s0 + $0x608] sm:$0xff] }
  0xbd   :  { %14349 = vst [vmem:[#allocation32_spill] sm:$0xff] %v8234_v36  ;;  %v84_v55 = vld [vmem:[%s14066_s0 + $0x108] sm:$0xff] }
  0xc2   :  { %2053 = vmatmul.mubr.bf16.vlgmr.msra.gmra.mxu0 %v8227_v35 }
  0xc3   :  { %2173 = vmatmul.mubr.bf16.vlgmr.msra.gmra.mxu1 %v8229_v10  ;;  %2062 = vmatprep.mubr.bf16.mxu0 %v8234_v36  ;;  %v6956_v10 = vld [vmem:[%s14065_s1 + $0xc8] ss:$16 sps:$4 sm:$0xff]   ;;  %v8278_v36 = vpack.c.bf16 %v76_v17, %v69_v60  ;;  %v251_v17 = vld [vmem:[%s14066_s0 + $0x640] sm:$0xff] }
  0xc4   :  { %2228 = vmatpush1.bf16.msra.mxu1 %v6947_v39  ;;  %2182 = vmatprep.mubr.bf16.mxu1 %v8236_v56  ;;  %v91_v39 = vld [vmem:[%s14066_s0 + $0x140] sm:$0xff]  ;;  %v8280_v56 = vpack.c.bf16 %v244_v7, %v237_v51  ;;  %v90_v60 = vld [vmem:[%s14066_s0 + $0x138] sm:$0xff]  ;;  %v105_v7 = vld [vmem:[%s14066_s0 + $0x1b0] sm:$0xff] }
  0xc5   :  { %2599 = vmatprep.subr.bf16.mxu1 %v6955_v58  ;;  %2407 = vmatpush1.bf16.msra.mxu0 %v6950_v37  ;;  %14351 = vst [vmem:[#allocation34_spill] sm:$0xff] %v8278_v36  ;;  %v8282_v35 = vpack.c.bf16 %v91_v39, %v84_v55  ;;  %v6959_v58 = vld [vmem:[%s14065_s1 + $0xa8] ss:$16 sps:$4 sm:$0xff]   ;;  %v83_v37 = vld [vmem:[%s14066_s0 + $0x100] sm:$0xff]  ;;  %v273_v39 = vld [vmem:[%s14066_s0 + $0x6f0] sm:$0xff] }
  0xc6   :  { %14352 = vst [vmem:[#allocation35_spill] sm:$0xff] %v8280_v56  ;;  %2408 = vmatprep.subr.bf16.mxu0 %v6958_v25  ;;  %v258_v25 = vld [vmem:[%s14066_s0 + $0x678] sm:$0xff]  ;;  %v8326_v9 = vpack.c.bf16 %v90_v60, %v83_v37  ;;  %v104_v60 = vld [vmem:[%s14066_s0 + $0x1a8] sm:$0xff] }
  0xc7   :  { %14353 = vst [vmem:[#allocation36_spill] sm:$0xff] %v8282_v35  ;;  %v98_v51 = vld [vmem:[%s14066_s0 + $0x178] sm:$0xff] }
  0xc8   :  { %v266_v55 = vld [vmem:[%s14066_s0 + $0x6b8] sm:$0xff]  ;;  %14355 = vst [vmem:[#allocation38_spill] sm:$0xff] %v8326_v9 }
  0xc9   :  { %2409 = vmatpush1.bf16.msra.mxu0 %v6956_v10  ;;  %v6967_v10 = vld [vmem:[%s14065_s1 + $0x8c] ss:$16 sps:$4 sm:$0xff]  }
  0xca   :  { %2063 = vmatmul.mubr.bf16.gmra.mxu0 %v8278_v36  ;;  %2410 = vmatprep.subr.bf16.mxu0 %v6961_v28  ;;  %v6970_v36 = vld [vmem:[%s14065_s1 + $0x6c] ss:$16 sps:$4 sm:$0xff]   ;;  %v6968_v28 = vld [vmem:[%s14065_s1 + $0x68] ss:$16 sps:$4 sm:$0xff]  }
  0xcb   :  { %2183 = vmatmul.mubr.bf16.gmra.mxu1 %v8280_v56  ;;  %2072 = vmatprep.mubr.bf16.mxu0 %v8282_v35  ;;  %v8330_v56 = vpack.c.bf16 %v105_v7, %v98_v51  ;;  %v8332_v35 = vpack.c.bf16 %v273_v39, %v266_v55  ;;  %v6976_v37 = vld [vmem:[%s14065_s1 + $0x4c] ss:$16 sps:$4 sm:$0xff]   ;;  %v119_v51 = vld [vmem:[%s14066_s0 + $0x220] sm:$0xff]  ;;  %v6974_v7 = vld [vmem:[%s14065_s1 + $0x48] ss:$16 sps:$4 sm:$0xff]  }
  0xcc   :  { %2192 = vmatprep.mubr.bf16.mxu1 %v8284_v30  ;;  %v8328_v30 = vpack.c.bf16 %v258_v25, %v251_v17  ;;  %v272_v17 = vld [vmem:[%s14066_s0 + $0x6e8] sm:$0xff] }
  0xcd   :  { %2411 = vmatpush1.bf16.msra.mxu0 %v6959_v58  ;;  %14357 = vst [vmem:[#allocation40_spill] sm:$0xff] %v8330_v56  ;;  %14358 = vst [vmem:[#allocation41_spill] sm:$0xff] %v8332_v35  ;;  %v97_v58 = vld [vmem:[%s14066_s0 + $0x170] sm:$0xff]  ;;  %v112_v25 = vld [vmem:[%s14066_s0 + $0x1e8] sm:$0xff] }
  0xce   :  { %14356 = vst [vmem:[#allocation39_spill] sm:$0xff] %v8328_v30  ;;  %2412 = vmatprep.subr.bf16.mxu0 %v6967_v10  ;;  %v265_v10 = vld [vmem:[%s14066_s0 + $0x6b0] sm:$0xff]  ;;  %v8368_v55 = vpack.c.bf16 %v104_v60, %v97_v58  ;;  %v6985_v58 = vld [vmem:[%s14065_s1 + $0xc] ss:$16 sps:$4 sm:$0xff]  }
  0xcf   :  { %v8370_v39 = vpack.c.bf16 %v272_v17, %v265_v10  ;;  %v118_v60 = vld [vmem:[%s14066_s0 + $0x218] sm:$0xff]  ;;  %v57_v10 = vld [vmem:[%s14066_s0 + $0x30] sm:$0xff]  ;;  %v64_v17 = vld [vmem:[%s14066_s0 + $0x68] sm:$0xff] }
  0xd0   :  { %14359 = vst [vmem:[#allocation42_spill] sm:$0xff] %v8368_v55 }
  0xd1   :  { %2413 = vmatpush1.bf16.msra.mxu0 %v6965_v13  ;;  %14360 = vst [vmem:[#allocation43_spill] sm:$0xff] %v8370_v39  ;;  %v8372_v13 = vpack.c.bf16 %v119_v51, %v112_v25  ;;  %v126_v25 = vld [vmem:[%s14066_s0 + $0x258] sm:$0xff]  ;;  %v133_v51 = vld [vmem:[%s14066_s0 + $0x290] sm:$0xff] }
  0xd2   :  { %2073 = vmatmul.mubr.bf16.gmra.mxu0 %v8326_v9  ;;  %2414 = vmatprep.subr.bf16.mxu0 %v6970_v36  ;;  %v6977_v36 = vld [vmem:[%s14065_s1 + $0x28] ss:$16 sps:$4 sm:$0xff]  }
  0xd3   :  { %2193 = vmatmul.mubr.bf16.gmra.mxu1 %v8328_v30  ;;  %2082 = vmatprep.mubr.bf16.mxu0 %v8330_v56  ;;  %14361 = vst [vmem:[#allocation44_spill] sm:$0xff] %v8372_v13  ;;  %v6953_v30 = vld [vmem:[%s14065_s1 + $0x2e8] ss:$16 sps:$4 sm:$0xff]  }
  0xd4   :  { %2202 = vmatprep.mubr.bf16.mxu1 %v8332_v35  ;;  %v6979_v35 = vld [vmem:[%s14065_s1 + $0x2c] ss:$16 sps:$4 sm:$0xff]   ;;  %v6971_v56 = vld [vmem:[%s14065_s1 + $0x2a8] ss:$16 sps:$4 sm:$0xff]  }
  0xd5   :  { %2415 = vmatpush1.bf16.msra.mxu0 %v6968_v28  ;;  %v111_v28 = vld [vmem:[%s14066_s0 + $0x1e0] sm:$0xff]  ;;  %v6992_v9 = vld [vmem:[%s14065_s1 + $0x1c8] ss:$16 sps:$4 sm:$0xff]  }
  0xd6   :  { %2416 = vmatprep.subr.bf16.mxu0 %v6976_v37  ;;  %v14109_v37 = vmov 0  }
  0xd9   :  { %2417 = vmatpush1.bf16.msra.mxu0 %v6974_v7  ;;  %v6983_v7 = vld [vmem:[%s14065_s1 + $0x8] ss:$16 sps:$4 sm:$0xff]  }
  0xda   :  { %2083 = vmatmul.mubr.bf16.gmra.mxu0 %v8368_v55  ;;  %2418 = vmatprep.subr.bf16.mxu0 %v6979_v35  ;;  %v6964_v35 = vld [vmem:[%s14065_s1 + $0x2cc] ss:$16 sps:$4 sm:$0xff]  }
  0xdb   :  { %2203 = vmatmul.mubr.bf16.gmra.mxu1 %v8370_v39  ;;  %2092 = vmatprep.mubr.bf16.mxu0 %v8372_v13  ;;  %v8410_v39 = vpack.c.bf16 %v64_v17, %v57_v10  ;;  %v8415_v13 = vpack.c.bf16 %v133_v51, %v126_v25  ;;  %v6986_v10 = vld [vmem:[%s14065_s1 + $0x1e8] ss:$16 sps:$4 sm:$0xff]   ;;  %v6994_v51 = vld [vmem:[%s14065_s1 + $0x1cc] ss:$16 sps:$4 sm:$0xff]  }
  0xdc   :  { %2245 = vmatprep.mubr.bf16.mxu1 %v14109_v37  ;;  %v8408_v37 = vpack.c.bf16 %v118_v60, %v111_v28  ;;  %v6988_v28 = vld [vmem:[%s14065_s1 + $0x1ec] ss:$16 sps:$4 sm:$0xff]   ;;  %v71_v60 = vld [vmem:[%s14066_s0 + $0xa0] sm:$0xff]  ;;  %v6962_v25 = vld [vmem:[%s14065_s1 + $0x2c8] ss:$16 sps:$4 sm:$0xff]  }
  0xdd   :  { %2419 = vmatpush1.bf16.msra.mxu0 %v6977_v36  ;;  %14363 = vst [vmem:[#allocation46_spill] sm:$0xff] %v8410_v39  ;;  %14364 = vst [vmem:[#allocation47_spill] sm:$0xff] %v8415_v13  ;;  %v125_v36 = vld [vmem:[%s14066_s0 + $0x250] sm:$0xff]  ;;  %v78_v17 = vld [vmem:[%s14066_s0 + $0xd8] sm:$0xff] }
  0xde   :  { %14362 = vst [vmem:[#allocation45_spill] sm:$0xff] %v8408_v37  ;;  %2420 = vmatprep.subr.bf16.mxu0 %v6985_v58  ;;  %v132_v58 = vld [vmem:[%s14066_s0 + $0x288] sm:$0xff]  ;;  %v8460_v55 = vpack.c.bf16 %v78_v17, %v71_v60  ;;  %v161_v17 = vld [vmem:[%s14066_s0 + $0x370] sm:$0xff] }
  0xdf   :  { %v92_v60 = vld [vmem:[%s14066_s0 + $0x148] sm:$0xff] }
  0xe0   :  { %14367 = vst [vmem:[#allocation49_spill] sm:$0xff] %v8460_v55 }
  0xe1   :  { %2421 = vmatpush1.bf16.msra.mxu0 %v6983_v7  ;;  %v14365_v7 = vmov 0  }
  0xe2   :  { %2093 = vmatmul.mubr.bf16.gmra.mxu0 %v8408_v37  ;;  %2422 = vmatprep.subr.bf16.mxu0 %v6988_v28  ;;  %v8458_v37 = vpack.c.bf16 %v132_v58, %v125_v36  ;;  %v6982_v36 = vld [vmem:[%s14065_s1 + $0x28c] ss:$16 sps:$4 sm:$0xff]   ;;  %v85_v58 = vld [vmem:[%s14066_s0 + $0x110] sm:$0xff] }
  0xe3   :  { %6463 = vmatmul.mubr.msk.bf16.vlgmr.msra.gmra.mxu1 %vm1585_vm0, %v8410_v39  ;;  %2102 = vmatprep.mubr.bf16.mxu0 %v8415_v13  ;;  %v147_v39 = vld [vmem:[%s14066_s0 + $0x300] sm:$0xff]  ;;  %v6973_v13 = vld [vmem:[%s14065_s1 + $0x2ac] ss:$16 sps:$4 sm:$0xff]  }
  0xe4   :  { %2600 = vmatpush1.bf16.msra.mxu1 %v6953_v30  ;;  %2255 = vmatprep.mubr.bf16.mxu1 %v14365_v7  ;;  %v140_v30 = vld [vmem:[%s14066_s0 + $0x2c8] sm:$0xff]  ;;  %14366 = vst [vmem:[#allocation48_spill] sm:$0xff] %v8458_v37 }
  0xe5   :  { %2601 = vmatprep.subr.bf16.mxu1 %v6964_v35  ;;  %2423 = vmatpush2.bf16.msra.mxu0 %v6986_v10  ;;  %v8462_v35 = vpack.c.bf16 %v147_v39, %v140_v30  ;;  %v6997_v28 = vld [vmem:[%s14065_s1 + $0x1ac] ss:$16 sps:$4 sm:$0xff]   ;;  %v139_v39 = vld [vmem:[%s14066_s0 + $0x2c0] sm:$0xff] }
  0xe6   :  { %2424 = vmatprep.subr.bf16.mxu0 %v6994_v51  ;;  %v154_v10 = vld [vmem:[%s14066_s0 + $0x338] sm:$0xff] }
  0xe7   :  { %14368 = vst [vmem:[#allocation50_spill] sm:$0xff] %v8462_v35  ;;  %v6995_v51 = vld [vmem:[%s14065_s1 + $0x1a8] ss:$16 sps:$4 sm:$0xff]   ;;  %v6991_v30 = vld [vmem:[%s14065_s1 + $0x26c] ss:$16 sps:$4 sm:$0xff]  }
  0xe8   :  { %2602 = vmatpush1.bf16.msra.mxu1 %v6962_v25  ;;  %v6980_v25 = vld [vmem:[%s14065_s1 + $0x288] ss:$16 sps:$4 sm:$0xff]  }
  0xe9   :  { %2603 = vmatprep.subr.bf16.mxu1 %v6973_v13  ;;  %v146_v13 = vld [vmem:[%s14066_s0 + $0x2f8] sm:$0xff]  ;;  %2425 = vmatpush2.bf16.msra.mxu0 %v6992_v9 }
  0xea   :  { %2103 = vmatmul.mubr.bf16.gmra.mxu0 %v8458_v37  ;;  %2426 = vmatprep.subr.bf16.mxu0 %v6997_v28  ;;  %v8515_v37 = vpack.c.bf16 %v161_v17, %v154_v10  ;;  %v6989_v9 = vld [vmem:[%s14065_s1 + $0x268] ss:$16 sps:$4 sm:$0xff]   ;;  %v7000_v28 = vld [vmem:[%s14065_s1 + $0x24c] ss:$16 sps:$4 sm:$0xff]  }
  0xeb   :  { %6464 = vmatmul.mubr.msk.bf16.gmra.mxu1 %vm1585_vm0, %v8460_v55  ;;  %2112 = vmatprep.mubr.bf16.mxu0 %v8462_v35  ;;  %v8511_v55 = vpack.c.bf16 %v146_v13, %v139_v39  ;;  %v8513_v35 = vpack.c.bf16 %v92_v60, %v85_v58  ;;  %v7006_v39 = vld [vmem:[%s14065_s1 + $0x16c] ss:$16 sps:$4 sm:$0xff]   ;;  %v153_v13 = vld [vmem:[%s14066_s0 + $0x330] sm:$0xff]  ;;  %v99_v60 = vld [vmem:[%s14066_s0 + $0x180] sm:$0xff] }
  0xec   :  { %2265 = vmatprep.mubr.bf16.mxu1 %v14365_v7  ;;  %2604 = vmatpush1.bf16.msra.mxu1 %v6971_v56  ;;  %v7003_v56 = vld [vmem:[%s14065_s1 + $0x18c] ss:$16 sps:$4 sm:$0xff]   ;;  %14371 = vst [vmem:[#allocation53_spill] sm:$0xff] %v8515_v37 }
  0xed   :  { %2605 = vmatprep.subr.bf16.mxu1 %v6982_v36  ;;  %14369 = vst [vmem:[#allocation51_spill] sm:$0xff] %v8511_v55  ;;  %14370 = vst [vmem:[#allocation52_spill] sm:$0xff] %v8513_v35  ;;  %2427 = vmatpush2.bf16.msra.mxu0 %v6995_v51  ;;  %v7001_v36 = vld [vmem:[%s14065_s1 + $0x188] ss:$16 sps:$4 sm:$0xff]   ;;  %v175_v51 = vld [vmem:[%s14066_s0 + $0x3e0] sm:$0xff] }
  0xee   :  { %2428 = vmatprep.subr.bf16.mxu0 %v7003_v56  ;;  %v160_v58 = vld [vmem:[%s14066_s0 + $0x368] sm:$0xff]  ;;  %v106_v10 = vld [vmem:[%s14066_s0 + $0x1b8] sm:$0xff] }
  0xef   :  { %v168_v17 = vld [vmem:[%s14066_s0 + $0x3a8] sm:$0xff] }
  0xf0   :  { %2606 = vmatpush1.bf16.msra.mxu1 %v6980_v25  ;;  %v585_v25 = vlaneseq  ;;  %v7004_v56 = vld [vmem:[%s14065_s1 + $0x168] ss:$16 sps:$4 sm:$0xff]   ;;  %v8568_v11 = vpack.c.bf16 %v175_v51, %v168_v17  ;;  %v113_v17 = vld [vmem:[%s14066_s0 + $0x1f0] sm:$0xff] }
  0xf1   :  { %2607 = vmatprep.subr.bf16.mxu1 %v6991_v30  ;;  %v6998_v30 = vld [vmem:[%s14065_s1 + $0x248] ss:$16 sps:$4 sm:$0xff]   ;;  %2429 = vmatpush2.bf16.msra.mxu0 %v7001_v36 }
  0xf2   :  { %2113 = vmatmul.mubr.bf16.gmra.mxu0 %v8511_v55  ;;  %2430 = vmatprep.subr.bf16.mxu0 %v7006_v39  ;;  %v8566_v55 = vpack.c.bf16 %v106_v10, %v99_v60  ;;  %14374 = vst [vmem:[#allocation56_spill] sm:$0xff] %v8568_v11  ;;  %v8570_v36 = vshrl.u32 %v585_v25, 7  ;;  %v7010_v39 = vld [vmem:[%s14065_s1 + $0x148] ss:$16 sps:$4 sm:$0xff]   ;;  %v583_v60 = vld [vmem:[%s14067_s2] sm:$0xf] }
  0xf3   :  { %6465 = vmatmul.mubr.msk.bf16.gmra.mxu1 %vm1585_vm0, %v8513_v35  ;;  %2122 = vmatprep.mubr.bf16.mxu0 %v8515_v37  ;;  %v7009_v35 = vld [vmem:[%s14065_s1 + $0x22c] ss:$16 sps:$4 sm:$0xff]  }
  0xf4   :  { %2275 = vmatprep.mubr.bf16.mxu1 %v14365_v7  ;;  %2608 = vmatpush1.bf16.msra.mxu1 %v6989_v9  ;;  %v7012_v37 = vld [vmem:[%s14065_s1 + $0x14c] ss:$16 sps:$4 sm:$0xff]   ;;  %v8564_v9 = vpack.c.bf16 %v160_v58, %v153_v13  ;;  %14373 = vst [vmem:[#allocation55_spill] sm:$0xff] %v8566_v55  ;;  %14375 = vst [vmem:[#allocation57_spill] sm:$0xff] %v8570_v36  ;;  %v8599_v10 = vsub.s32 0, %v8570_v36 }
  0xf5   :  { %2609 = vmatprep.subr.bf16.mxu1 %v7000_v28  ;;  %v7007_v28 = vld [vmem:[%s14065_s1 + $0x228] ss:$16 sps:$4 sm:$0xff]   ;;  %2431 = vmatpush2.bf16.msra.mxu0 %v7004_v56  ;;  %v7015_v13 = vld [vmem:[%s14065_s1 + $0x12c] ss:$16 sps:$4 sm:$0xff]  }
  0xf6   :  { %14372 = vst [vmem:[#allocation54_spill] sm:$0xff] %v8564_v9  ;;  %2432 = vmatprep.subr.bf16.mxu0 %v7012_v37  ;;  %v7018_v58 = vld [vmem:[%s14065_s1 + $0x20c] ss:$16 sps:$4 sm:$0xff]   ;;  %v167_v37 = vld [vmem:[%s14066_s0 + $0x3a0] sm:$0xff]  ;;  %14376 = vst [vmem:[#allocation58_spill] sm:$0xff] %v8599_v10  ;;  %v8633_v40 = vrot.slane %v583_v60, %v8599_v10 }
  0xf7   :  { %v120_v25 = vld [vmem:[%s14066_s0 + $0x228] sm:$0xff]  ;;  %v182_v51 = vld [vmem:[%s14066_s0 + $0x418] sm:$0xff]  ;;  %v203_v10 = vld [vmem:[%s14066_s0 + $0x4c0] sm:$0xff] }
  0xf8   :  { %2610 = vmatpush1.bf16.msra.mxu1 %v6998_v30  ;;  %v189_v30 = vld [vmem:[%s14066_s0 + $0x450] sm:$0xff]  ;;  %v7013_v56 = vld [vmem:[%s14065_s1 + $0x128] ss:$16 sps:$4 sm:$0xff]   ;;  %v8630_v6 = vpack.c.bf16 %v120_v25, %v113_v17 }
  0xf9   :  { %2611 = vmatprep.subr.bf16.mxu1 %v7009_v35  ;;  %v174_v35 = vld [vmem:[%s14066_s0 + $0x3d8] sm:$0xff]  ;;  %2433 = vmatpush2.bf16.msra.mxu0 %v7010_v39  ;;  %v8635_v0 = vpack.c.bf16 %v189_v30, %v182_v51  ;;  %v188_v51 = vld [vmem:[%s14066_s0 + $0x448] sm:$0xff]  ;;  %v127_v30 = vld [vmem:[%s14066_s0 + $0x260] sm:$0xff] }
  0xfa   :  { %2123 = vmatmul.mubr.bf16.gmra.mxu0 %v8564_v9  ;;  %2434 = vmatprep.subr.bf16.mxu0 %v7015_v13  ;;  %v7021_v9 = vld [vmem:[%s14065_s1 + $0x10c] ss:$16 sps:$4 sm:$0xff]   ;;  %v8628_v39 = vpack.c.bf16 %v174_v35, %v167_v37  ;;  %14379 = vst [vmem:[#allocation61_spill] sm:$0xff] %v8630_v6  ;;  %v7019_v13 = vld [vmem:[%s14065_s1 + $0x108] ss:$16 sps:$4 sm:$0xff]  }
  0xfb   :  { %6466 = vmatmul.mubr.msk.bf16.gmra.mxu1 %vm1585_vm0, %v8566_v55  ;;  %2132 = vmatprep.mubr.bf16.mxu0 %v8568_v11  ;;  %v7016_v55 = vld [vmem:[%s14065_s1 + $0x208] ss:$16 sps:$4 sm:$0xff]   ;;  %v8620_v11 = vsub.s32 1, %v8570_v36  ;;  %14380 = vst [vmem:[#allocation62_spill] sm:$0xff] %v8635_v0  ;;  %v7027_v35 = vld [vmem:[%s14065_s1 + $0x3cc] ss:$16 sps:$4 sm:$0xff]  }
  0xfc   :  { %2285 = vmatprep.mubr.bf16.mxu1 %v14365_v7  ;;  %2612 = vmatpush1.bf16.msra.mxu1 %v7007_v28  ;;  %v7024_v28 = vld [vmem:[%s14065_s1 + $0x3ec] ss:$16 sps:$4 sm:$0xff]   ;;  %14378 = vst [vmem:[#allocation60_spill] sm:$0xff] %v8628_v39  ;;  %v7025_v36 = vld [vmem:[%s14065_s1 + $0x3c8] ss:$16 sps:$4 sm:$0xff]  }
  0xfd   :  { %14377 = vst [vmem:[#allocation59_spill] sm:$0xff] %v8620_v11  ;;  %2613 = vmatprep.subr.bf16.mxu1 %v7018_v58  ;;  %2435 = vmatpush2.bf16.msra.mxu0 %v7013_v56  ;;  %v7022_v58 = vld [vmem:[%s14065_s1 + $0x3e8] ss:$16 sps:$4 sm:$0xff]   ;;  %v8644_v37 = vrot.slane %v583_v60, %v8620_v11 }
  0xfe   :  { %2436 = vmatprep.subr.bf16.mxu0 %v7021_v9  ;;  %v181_v9 = vld [vmem:[%s14066_s0 + $0x410] sm:$0xff]  ;;  %v134_v56 = vld [vmem:[%s14066_s0 + $0x298] sm:$0xff] }
  0xff   :  { %v8685_v61 = vpack.c.bf16 %v188_v51, %v181_v9  ;;  %v148_v51 = vld [vmem:[%s14066_s0 + $0x308] sm:$0xff] }
 0x100   :  { %2614 = vmatpush1.bf16.msra.mxu1 %v7016_v55  ;;  %v7048_v55 = vld [vmem:[%s14065_s1 + $0x4ec] ss:$16 sps:$4 sm:$0xff]  }
 0x101   :  { %2615 = vmatprep.subr.bf16.mxu1 %v7024_v28  ;;  %2437 = vmatpush2.bf16.msra.mxu0 %v7019_v13  ;;  %14381 = vst [vmem:[#allocation63_spill] sm:$0xff] %v8685_v61  ;;  %v8687_v13 = vpack.c.bf16 %v134_v56, %v127_v30 }
 0x102   :  { %v1668_v17 = vpop.f32.mrf.mxu0  ;;  %2133 = vmatmul.mubr.bf16.gmra.mxu0 %v8628_v39  ;;  %v7030_v39 = vld [vmem:[%s14065_s1 + $0x3ac] ss:$16 sps:$4 sm:$0xff]   ;;  %2792 = vmatprep.subr.bf16.mxu0 %v7048_v55 }
 0x103   :  { %v1861_v25 = vpop.f32.mrf.mxu1  ;;  %6467 = vmatmul.mubr.msk.bf16.gmra.mxu1 %vm1585_vm0, %v8630_v6  ;;  %v1669_v60 = vadd.f32 %v1668_v17, %v8633_v40  ;;  %2142 = vmatprep.mubr.bf16.mxu0 %v8635_v0  ;;  %v196_v17 = vld [vmem:[%s14066_s0 + $0x488] sm:$0xff]  ;;  %14382 = vst [vmem:[#allocation64_spill] sm:$0xff] %v8687_v13 }
 0x104   :  { %2295 = vmatprep.mubr.bf16.mxu1 %v14365_v7  ;;  %v1670_v28 = vpop.f32.mrf.mxu0  ;;  %2616 = vmatpush2.bf16.msra.mxu1 %v7022_v58 }
 0x105   :  { %v1863_v11 = vpop.f32.mrf.mxu1  ;;  %v8679_v6 = vadd.f32 %v1861_v25, %v1669_v60  ;;  %v1671_v0 = vadd.f32 %v1670_v28, %v8644_v37  ;;  %2617 = vmatprep.subr.bf16.mxu1 %v7027_v35  ;;  %v8692_v25 = vpack.c.bf16 %v203_v10, %v196_v17  ;;  %v7028_v35 = vld [vmem:[%s14065_s1 + $0x3a8] ss:$16 sps:$4 sm:$0xff]  }
 0x106   :  { %v1672_v38 = vpop.f32.mrf.mxu0  ;;  %v202_v10 = vld [vmem:[%s14066_s0 + $0x4b8] sm:$0xff] }
 0x107   :  { %v1865_v44 = vpop.f32.mrf.mxu1  ;;  %v8689_v58 = vadd.f32 %v1863_v11, %v1671_v0  ;;  %v1673_v42 = vadd.f32 %v1672_v38, %v8633_v40  ;;  %14384 = vst [vmem:[#allocation66_spill] sm:$0xff] %v8692_v25  ;;  %v7033_v0 = vld [vmem:[%s14065_s1 + $0x38c] ss:$16 sps:$4 sm:$0xff]  }
 0x108   :  { %v1674_v60 = vpop.f32.mrf.mxu0  ;;  %2618 = vmatpush2.bf16.msra.mxu1 %v7025_v36  ;;  %v195_v36 = vld [vmem:[%s14066_s0 + $0x480] sm:$0xff]  ;;  %v210_v17 = vld [vmem:[%s14066_s0 + $0x4f8] sm:$0xff] }
 0x109   :  { %14383 = vst [vmem:[#allocation65_spill] sm:$0xff] %v8689_v58  ;;  %v1867_v28 = vpop.f32.mrf.mxu1  ;;  %v8697_v55 = vadd.f32 %v1865_v44, %v1673_v42  ;;  %v1675_v9 = vadd.f32 %v1674_v60, %v8644_v37  ;;  %2619 = vmatprep.subr.bf16.mxu1 %v7030_v39  ;;  %v141_v39 = vld [vmem:[%s14066_s0 + $0x2d0] sm:$0xff]  ;;  %v8738_v45 = vpack.c.bf16 %v202_v10, %v195_v36  ;;  %v7039_v10 = vld [vmem:[%s14065_s1 + $0x34c] ss:$16 sps:$4 sm:$0xff]  }
 0x10a   :  { %v1678_v11 = vpop.f32.mrf.mxu0  ;;  %2143 = vmatmul.mubr.bf16.gmra.mxu0 %v8685_v61  ;;  %v217_v60 = vld [vmem:[%s14066_s0 + $0x530] sm:$0xff] }
 0x10b   :  { %14385 = vst [vmem:[#allocation67_spill] sm:$0xff] %v8697_v55  ;;  %v1871_v38 = vpop.f32.mrf.mxu1  ;;  %6468 = vmatmul.mubr.msk.bf16.gmra.mxu1 %vm1585_vm0, %v8687_v13  ;;  %v8709_v42 = vadd.f32 %v1867_v28, %v1675_v9  ;;  %v1679_v44 = vadd.f32 %v1678_v11, %v8633_v40  ;;  %2152 = vmatprep.mubr.bf16.mxu0 %v8692_v25  ;;  %v7031_v28 = vld [vmem:[%s14065_s1 + $0x388] ss:$16 sps:$4 sm:$0xff]   ;;  %v7036_v13 = vld [vmem:[%s14065_s1 + $0x36c] ss:$16 sps:$4 sm:$0xff]   ;;  %14387 = vst [vmem:[#allocation69_spill] sm:$0xff] %v8738_v45 }
 0x10c   :  { %2305 = vmatprep.mubr.bf16.mxu1 %v14365_v7  ;;  %v1680_v30 = vpop.f32.mrf.mxu0  ;;  %2620 = vmatpush2.bf16.msra.mxu1 %v7028_v35  ;;  %v8745_v58 = vpack.c.bf16 %v217_v60, %v210_v17  ;;  %v162_v17 = vld [vmem:[%s14066_s0 + $0x378] sm:$0xff] }
 0x10d   :  { %14386 = vst [vmem:[#allocation68_spill] sm:$0xff] %v8709_v42  ;;  %v1873_v56 = vpop.f32.mrf.mxu1  ;;  %v8732_v9 = vadd.f32 %v1871_v38, %v1679_v44  ;;  %v1681_v11 = vadd.f32 %v1680_v30, %v8644_v37  ;;  %2621 = vmatprep.subr.bf16.mxu1 %v7033_v0  ;;  %v8740_v42 = vpack.c.bf16 %v148_v51, %v141_v39  ;;  %v7034_v0 = vld [vmem:[%s14065_s1 + $0x368] ss:$16 sps:$4 sm:$0xff]   ;;  %v209_v51 = vld [vmem:[%s14066_s0 + $0x4f0] sm:$0xff] }
 0x10e   :  { %v1682_v25 = vpop.f32.mrf.mxu0  ;;  %14389 = vst [vmem:[#allocation71_spill] sm:$0xff] %v8745_v58 }
 0x10f   :  { %v1875_v61 = vpop.f32.mrf.mxu1  ;;  %14388 = vst [vmem:[#allocation70_spill] sm:$0xff] %v8740_v42  ;;  %v8742_v35 = vadd.f32 %v1873_v56, %v1681_v11  ;;  %v1683_v55 = vadd.f32 %v1682_v25, %v8633_v40  ;;  %v155_v56 = vld [vmem:[%s14066_s0 + $0x340] sm:$0xff]  ;;  %v7037_v11 = vld [vmem:[%s14065_s1 + $0x348] ss:$16 sps:$4 sm:$0xff]  }
 0x110   :  { %v1684_v38 = vpop.f32.mrf.mxu0  ;;  %2622 = vmatpush2.bf16.msra.mxu1 %v7031_v28 }
 0x111   :  { %v1877_v44 = vpop.f32.mrf.mxu1  ;;  %v8750_v30 = vadd.f32 %v1875_v61, %v1683_v55  ;;  %v1685_v36 = vadd.f32 %v1684_v38, %v8644_v37  ;;  %2623 = vmatprep.subr.bf16.mxu1 %v7036_v13  ;;  %v216_v13 = vld [vmem:[%s14066_s0 + $0x528] sm:$0xff] }
 0x112   :  { %v1688_v39 = vpop.f32.mrf.mxu0  ;;  %2153 = vmatmul.mubr.bf16.gmra.mxu0 %v8738_v45  ;;  %v8787_v45 = vpack.c.bf16 %v162_v17, %v155_v56 }
 0x113   :  { %14390 = vst [vmem:[#allocation72_spill] sm:$0xff] %v8750_v30  ;;  %v1881_v25 = vpop.f32.mrf.mxu1  ;;  %6469 = vmatmul.mubr.msk.bf16.gmra.mxu1 %vm1585_vm0, %v8740_v42  ;;  %v8762_v61 = vadd.f32 %v1877_v44, %v1685_v36  ;;  %v1689_v55 = vadd.f32 %v1688_v39, %v8633_v40  ;;  %2162 = vmatprep.mubr.bf16.mxu0 %v8745_v58  ;;  %v7042_v36 = vld [vmem:[%s14065_s1 + $0x32c] ss:$16 sps:$4 sm:$0xff]  }
 0x114   :  { %2315 = vmatprep.mubr.bf16.mxu1 %v14365_v7  ;;  %v1690_v60 = vpop.f32.mrf.mxu0  ;;  %2624 = vmatpush2.bf16.msra.mxu1 %v7034_v0  ;;  %v8785_v58 = vpack.c.bf16 %v216_v13, %v209_v51  ;;  %14393 = vst [vmem:[#allocation75_spill] sm:$0xff] %v8787_v45  ;;  %v7045_v51 = vld [vmem:[%s14065_s1 + $0x30c] ss:$16 sps:$4 sm:$0xff]  }
 0x115   :  { %14391 = vst [vmem:[#allocation73_spill] sm:$0xff] %v8762_v61  ;;  %v1883_v28 = vpop.f32.mrf.mxu1  ;;  %v8779_v38 = vadd.f32 %v1881_v25, %v1689_v55  ;;  %v1691_v44 = vadd.f32 %v1690_v60, %v8644_v37  ;;  %2625 = vmatprep.subr.bf16.mxu1 %v7039_v10  ;;  %v7040_v10 = vld [vmem:[%s14065_s1 + $0x328] ss:$16 sps:$4 sm:$0xff]  }
 0x116   :  { %v1692_v39 = vpop.f32.mrf.mxu0  ;;  %14392 = vst [vmem:[#allocation74_spill] sm:$0xff] %v8785_v58 }
 0x117   :  { %v1885_v42 = vpop.f32.mrf.mxu1  ;;  %v8789_v0 = vadd.f32 %v1883_v28, %v1691_v44  ;;  %v1693_v61 = vadd.f32 %v1692_v39, %v8633_v40  ;;  %v7043_v44 = vld [vmem:[%s14065_s1 + $0x308] ss:$16 sps:$4 sm:$0xff]  }
 0x118   :  { %v1694_v30 = vpop.f32.mrf.mxu0  ;;  %2626 = vmatpush2.bf16.msra.mxu1 %v7037_v11 }
 0x119   :  { %v1887_v25 = vpop.f32.mrf.mxu1  ;;  %v8795_v55 = vadd.f32 %v1885_v42, %v1693_v61  ;;  %v1695_v60 = vadd.f32 %v1694_v30, %v8644_v37  ;;  %2627 = vmatprep.subr.bf16.mxu1 %v7042_v36  ;;  %v169_v42 = vld [vmem:[%s14066_s0 + $0x3b0] sm:$0xff]  ;;  %v176_v30 = vld [vmem:[%s14066_s0 + $0x3e8] sm:$0xff] }
 0x11a   :  { %v1698_v13 = vpop.f32.mrf.mxu0  ;;  %2163 = vmatmul.mubr.bf16.gmra.mxu0 %v8785_v58 }
 0x11b   :  { %v1891_v56 = vpop.f32.mrf.mxu1  ;;  %6470 = vmatmul.mubr.msk.bf16.gmra.mxu1 %vm1585_vm0, %v8787_v45  ;;  %v8804_v17 = vadd.f32 %v1887_v25, %v1695_v60  ;;  %v1699_v28 = vadd.f32 %v1698_v13, %v8633_v40  ;;  %2438 = vmatprep.mubr.bf16.mxu0 %v7474_v53  ;;  %v7051_v53 = vld [vmem:[%s14065_s1 + $0x60c] ss:$16 sps:$4 sm:$0xff]   ;;  %v8824_v13 = vpack.c.bf16 %v176_v30, %v169_v42 }
 0x11c   :  { %2325 = vmatprep.mubr.bf16.mxu1 %v14365_v7  ;;  %v1700_v61 = vpop.f32.mrf.mxu0  ;;  %2628 = vmatpush2.bf16.msra.mxu1 %v7040_v10  ;;  %v7054_v42 = vld [vmem:[%s14065_s1 + $0x4cc] ss:$16 sps:$4 sm:$0xff]  }
 0x11d   :  { %14394 = vst [vmem:[#allocation76_spill] sm:$0xff] %v8804_v17  ;;  %v1893_v11 = vpop.f32.mrf.mxu1  ;;  %v8818_v36 = vadd.f32 %v1891_v56, %v1699_v28  ;;  %v1701_v39 = vadd.f32 %v1700_v61, %v8644_v37  ;;  %2629 = vmatprep.subr.bf16.mxu1 %v7045_v51  ;;  %14395 = vst [vmem:[#allocation77_spill] sm:$0xff] %v8824_v13  ;;  %v7046_v56 = vld [vmem:[%s14065_s1 + $0x4e8] ss:$16 sps:$4 sm:$0xff]  }
 0x11e   :  { %v1702_v25 = vpop.f32.mrf.mxu0 }
 0x11f   :  { %v1895_v60 = vpop.f32.mrf.mxu1  ;;  %v8826_v45 = vadd.f32 %v1893_v11, %v1701_v39  ;;  %v1703_v10 = vadd.f32 %v1702_v25, %v8633_v40  ;;  %v190_v39 = vld [vmem:[%s14066_s0 + $0x458] sm:$0xff] }
 0x120   :  { %v1704_v58 = vpop.f32.mrf.mxu0  ;;  %2630 = vmatpush2.bf16.msra.mxu1 %v7043_v44 }
 0x121   :  { %v1897_v17 = vpop.f32.mrf.mxu1  ;;  %v8832_v51 = vadd.f32 %v1895_v60, %v1703_v10  ;;  %v1705_v28 = vadd.f32 %v1704_v58, %v8644_v37  ;;  %2999 = vmatprep.subr.bf16.mxu1 %v7051_v53  ;;  %v183_v58 = vld [vmem:[%s14066_s0 + $0x420] sm:$0xff] }
 0x122   :  { %v1708_v30 = vpop.f32.mrf.mxu0  ;;  %2439 = vmatmul.mubr.bf16.vlgmr.msra.gmra.mxu0 %v7552_v15  ;;  %v7052_v15 = vld [vmem:[%s14065_s1 + $0x4c8] ss:$16 sps:$4 sm:$0xff]  }
 0x123   :  { %14396 = vst [vmem:[#allocation78_spill] sm:$0xff] %v8832_v51  ;;  %v1901_v61 = vpop.f32.mrf.mxu1  ;;  %6471 = vmatmul.mubr.msk.bf16.gmra.mxu1 %vm1585_vm0, %v8824_v13  ;;  %v8841_v11 = vadd.f32 %v1897_v17, %v1705_v28  ;;  %v1709_v44 = vadd.f32 %v1708_v30, %v8633_v40  ;;  %2448 = vmatprep.mubr.bf16.mxu0 %v7559_v18  ;;  %v7057_v18 = vld [vmem:[%s14065_s1 + $0x4ac] ss:$16 sps:$4 sm:$0xff]  }
 0x124   :  { %2335 = vmatprep.mubr.bf16.mxu1 %v14365_v7  ;;  %v1710_v53 = vpop.f32.mrf.mxu0  ;;  %2793 = vmatpush1.bf16.msra.mxu0 %v7046_v56  ;;  %v8861_v30 = vpack.c.bf16 %v190_v39, %v183_v58  ;;  %v7060_v58 = vld [vmem:[%s14065_s1 + $0x48c] ss:$16 sps:$4 sm:$0xff]  }
 0x125   :  { %14397 = vst [vmem:[#allocation79_spill] sm:$0xff] %v8841_v11  ;;  %v1903_v25 = vpop.f32.mrf.mxu1  ;;  %v8855_v17 = vadd.f32 %v1901_v61, %v1709_v44  ;;  %v1711_v60 = vadd.f32 %v1710_v53, %v8644_v37  ;;  %2794 = vmatprep.subr.bf16.mxu0 %v7054_v42  ;;  %v7055_v61 = vld [vmem:[%s14065_s1 + $0x4a8] ss:$16 sps:$4 sm:$0xff]  }
 0x126   :  { %v1712_v10 = vpop.f32.mrf.mxu0  ;;  %14398 = vst [vmem:[#allocation80_spill] sm:$0xff] %v8861_v30 }
 0x127   :  { %v1905_v28 = vpop.f32.mrf.mxu1  ;;  %v8863_v13 = vadd.f32 %v1903_v25, %v1711_v60  ;;  %v1713_v56 = vadd.f32 %v1712_v10, %v8633_v40  ;;  %v204_v60 = vld [vmem:[%s14066_s0 + $0x4c8] sm:$0xff] }
 0x128   :  { %v1714_v11 = vpop.f32.mrf.mxu0  ;;  %2795 = vmatpush1.bf16.msra.mxu0 %v7052_v15 }
 0x129   :  { %v1907_v51 = vpop.f32.mrf.mxu1  ;;  %v8869_v42 = vadd.f32 %v1905_v28, %v1713_v56  ;;  %v1715_v44 = vadd.f32 %v1714_v11, %v8644_v37  ;;  %2796 = vmatprep.subr.bf16.mxu0 %v7057_v18  ;;  %v197_v11 = vld [vmem:[%s14066_s0 + $0x490] sm:$0xff] }
 0x12a   :  { %v1718_v39 = vpop.f32.mrf.mxu0  ;;  %2449 = vmatmul.mubr.bf16.gmra.mxu0 %v7600_v31  ;;  %v7058_v31 = vld [vmem:[%s14065_s1 + $0x488] ss:$16 sps:$4 sm:$0xff]  }
 0x12b   :  { %14399 = vst [vmem:[#allocation81_spill] sm:$0xff] %v8869_v42  ;;  %v1911_v53 = vpop.f32.mrf.mxu1  ;;  %6472 = vmatmul.mubr.msk.bf16.gmra.mxu1 %vm1585_vm0, %v8861_v30  ;;  %v8878_v25 = vadd.f32 %v1907_v51, %v1715_v44  ;;  %v1719_v15 = vadd.f32 %v1718_v39, %v8633_v40  ;;  %2458 = vmatprep.mubr.bf16.mxu0 %v7604_v33  ;;  %v7063_v33 = vld [vmem:[%s14065_s1 + $0x46c] ss:$16 sps:$4 sm:$0xff]  }
 0x12c   :  { %2345 = vmatprep.mubr.bf16.mxu1 %v14365_v7  ;;  %v1720_v18 = vpop.f32.mrf.mxu0  ;;  %2797 = vmatpush1.bf16.msra.mxu0 %v7055_v61  ;;  %v8898_v39 = vpack.c.bf16 %v204_v60, %v197_v11  ;;  %v7066_v11 = vld [vmem:[%s14065_s1 + $0x44c] ss:$16 sps:$4 sm:$0xff]  }
 0x12d   :  { %14400 = vst [vmem:[#allocation82_spill] sm:$0xff] %v8878_v25  ;;  %v1913_v10 = vpop.f32.mrf.mxu1  ;;  %v8892_v51 = vadd.f32 %v1911_v53, %v1719_v15  ;;  %v1721_v28 = vadd.f32 %v1720_v18, %v8644_v37  ;;  %2798 = vmatprep.subr.bf16.mxu0 %v7060_v58  ;;  %v7061_v53 = vld [vmem:[%s14065_s1 + $0x468] ss:$16 sps:$4 sm:$0xff]  }
 0x12e   :  { %v1722_v56 = vpop.f32.mrf.mxu0  ;;  %14401 = vst [vmem:[#allocation83_spill] sm:$0xff] %v8898_v39 }
 0x12f   :  { %v1915_v44 = vpop.f32.mrf.mxu1  ;;  %v8900_v30 = vadd.f32 %v1913_v10, %v1721_v28  ;;  %v1723_v61 = vadd.f32 %v1722_v56, %v8633_v40  ;;  %v218_v28 = vld [vmem:[%s14066_s0 + $0x538] sm:$0xff] }
 0x130   :  { %v1724_v25 = vpop.f32.mrf.mxu0  ;;  %2799 = vmatpush1.bf16.msra.mxu0 %v7058_v31 }
 0x131   :  { %v1917_v42 = vpop.f32.mrf.mxu1  ;;  %v8906_v58 = vadd.f32 %v1915_v44, %v1723_v61  ;;  %v1725_v15 = vadd.f32 %v1724_v25, %v8644_v37  ;;  %2800 = vmatprep.subr.bf16.mxu0 %v7063_v33  ;;  %v211_v25 = vld [vmem:[%s14066_s0 + $0x500] sm:$0xff] }
 0x132   :  { %v1728_v60 = vpop.f32.mrf.mxu0  ;;  %2459 = vmatmul.mubr.bf16.gmra.mxu0 %v7648_v47  ;;  %v7064_v47 = vld [vmem:[%s14065_s1 + $0x448] ss:$16 sps:$4 sm:$0xff]  }
 0x133   :  { %14402 = vst [vmem:[#allocation84_spill] sm:$0xff] %v8906_v58  ;;  %v1921_v18 = vpop.f32.mrf.mxu1  ;;  %6473 = vmatmul.mubr.msk.bf16.gmra.mxu1 %vm1585_vm0, %v8898_v39  ;;  %v8915_v10 = vadd.f32 %v1917_v42, %v1725_v15  ;;  %v1729_v31 = vadd.f32 %v1728_v60, %v8633_v40  ;;  %2468 = vmatprep.mubr.bf16.mxu0 %v7652_v49  ;;  %v7069_v49 = vld [vmem:[%s14065_s1 + $0x42c] ss:$16 sps:$4 sm:$0xff]  }
 0x134   :  { %2355 = vmatprep.mubr.bf16.mxu1 %v14365_v7  ;;  %v1730_v33 = vpop.f32.mrf.mxu0  ;;  %2801 = vmatpush1.bf16.msra.mxu0 %v7061_v53  ;;  %v8935_v60 = vpack.c.bf16 %v218_v28, %v211_v25  ;;  %v7072_v25 = vld [vmem:[%s14065_s1 + $0x40c] ss:$16 sps:$4 sm:$0xff]  }
 0x135   :  { %14403 = vst [vmem:[#allocation85_spill] sm:$0xff] %v8915_v10  ;;  %v1923_v56 = vpop.f32.mrf.mxu1  ;;  %v8929_v42 = vadd.f32 %v1921_v18, %v1729_v31  ;;  %v1731_v44 = vadd.f32 %v1730_v33, %v8644_v37  ;;  %2802 = vmatprep.subr.bf16.mxu0 %v7066_v11  ;;  %v7067_v18 = vld [vmem:[%s14065_s1 + $0x428] ss:$16 sps:$4 sm:$0xff]  }
 0x136   :  { %v1732_v61 = vpop.f32.mrf.mxu0  ;;  %14404 = vst [vmem:[#allocation86_spill] sm:$0xff] %v8935_v60 }
 0x137   :  { %v1925_v15 = vpop.f32.mrf.mxu1  ;;  %v8937_v39 = vadd.f32 %v1923_v56, %v1731_v44  ;;  %v1733_v53 = vadd.f32 %v1732_v61, %v8633_v40  ;;  %v232_v44 = vld [vmem:[%s14066_s0 + $0x5a8] sm:$0xff] }
 0x138   :  { %v1734_v10 = vpop.f32.mrf.mxu0  ;;  %2803 = vmatpush1.bf16.msra.mxu0 %v7064_v47 }
 0x139   :  { %v1927_v58 = vpop.f32.mrf.mxu1  ;;  %v8943_v11 = vadd.f32 %v1925_v15, %v1733_v53  ;;  %v1735_v31 = vadd.f32 %v1734_v10, %v8644_v37  ;;  %2804 = vmatprep.subr.bf16.mxu0 %v7069_v49  ;;  %v225_v10 = vld [vmem:[%s14066_s0 + $0x570] sm:$0xff] }
 0x13a   :  { %v1738_v28 = vpop.f32.mrf.mxu0  ;;  %2469 = vmatmul.mubr.bf16.gmra.mxu0 %v7696_v1  ;;  %v7070_v1 = vld [vmem:[%s14065_s1 + $0x408] ss:$16 sps:$4 sm:$0xff]  }
 0x13b   :  { %14405 = vst [vmem:[#allocation87_spill] sm:$0xff] %v8943_v11  ;;  %v1931_v33 = vpop.f32.mrf.mxu1  ;;  %6474 = vmatmul.mubr.msk.bf16.gmra.mxu1 %vm1585_vm0, %v8935_v60  ;;  %v8952_v56 = vadd.f32 %v1927_v58, %v1735_v31  ;;  %v1739_v47 = vadd.f32 %v1738_v28, %v8633_v40  ;;  %2478 = vmatprep.mubr.bf16.mxu0 %v7700_v3  ;;  %v7075_v3 = vld [vmem:[%s14065_s1 + $0x5ec] ss:$16 sps:$4 sm:$0xff]  }
 0x13c   :  { %2365 = vmatprep.mubr.bf16.mxu1 %v14365_v7  ;;  %v1740_v49 = vpop.f32.mrf.mxu0  ;;  %2805 = vmatpush1.bf16.msra.mxu0 %v7067_v18  ;;  %v8972_v28 = vpack.c.bf16 %v232_v44, %v225_v10  ;;  %v7078_v10 = vld [vmem:[%s14065_s1 + $0x5cc] ss:$16 sps:$4 sm:$0xff]  }
 0x13d   :  { %14406 = vst [vmem:[#allocation88_spill] sm:$0xff] %v8952_v56  ;;  %v1933_v61 = vpop.f32.mrf.mxu1  ;;  %v8966_v58 = vadd.f32 %v1931_v33, %v1739_v47  ;;  %v1741_v15 = vadd.f32 %v1740_v49, %v8644_v37  ;;  %2806 = vmatprep.subr.bf16.mxu0 %v7072_v25  ;;  %v7073_v33 = vld [vmem:[%s14065_s1 + $0x5e8] ss:$16 sps:$4 sm:$0xff]  }
 0x13e   :  { %v1742_v53 = vpop.f32.mrf.mxu0  ;;  %14407 = vst [vmem:[#allocation89_spill] sm:$0xff] %v8972_v28 }
 0x13f   :  { %v1935_v31 = vpop.f32.mrf.mxu1  ;;  %v8974_v60 = vadd.f32 %v1933_v61, %v1741_v15  ;;  %v1743_v18 = vadd.f32 %v1742_v53, %v8633_v40  ;;  %v246_v15 = vld [vmem:[%s14066_s0 + $0x618] sm:$0xff] }
 0x140   :  { %v1744_v56 = vpop.f32.mrf.mxu0  ;;  %2807 = vmatpush1.bf16.msra.mxu0 %v7070_v1 }
 0x141   :  { %v1937_v11 = vpop.f32.mrf.mxu1  ;;  %v8980_v25 = vadd.f32 %v1935_v31, %v1743_v18  ;;  %v1745_v47 = vadd.f32 %v1744_v56, %v8644_v37  ;;  %2808 = vmatprep.subr.bf16.mxu0 %v7075_v3  ;;  %v239_v56 = vld [vmem:[%s14066_s0 + $0x5e0] sm:$0xff] }
 0x142   :  { %v1748_v44 = vpop.f32.mrf.mxu0  ;;  %2479 = vmatmul.mubr.bf16.gmra.mxu0 %v7744_v21  ;;  %v7076_v21 = vld [vmem:[%s14065_s1 + $0x5c8] ss:$16 sps:$4 sm:$0xff]  }
 0x143   :  { %14408 = vst [vmem:[#allocation90_spill] sm:$0xff] %v8980_v25  ;;  %v1941_v49 = vpop.f32.mrf.mxu1  ;;  %6475 = vmatmul.mubr.msk.bf16.gmra.mxu1 %vm1585_vm0, %v8972_v28  ;;  %v8989_v61 = vadd.f32 %v1937_v11, %v1745_v47  ;;  %v1749_v1 = vadd.f32 %v1748_v44, %v8633_v40  ;;  %2488 = vmatprep.mubr.bf16.mxu0 %v7748_v23  ;;  %v7081_v23 = vld [vmem:[%s14065_s1 + $0x5ac] ss:$16 sps:$4 sm:$0xff]  }
 0x144   :  { %2375 = vmatprep.mubr.bf16.mxu1 %v14365_v7  ;;  %v1750_v3 = vpop.f32.mrf.mxu0  ;;  %2809 = vmatpush2.bf16.msra.mxu0 %v7073_v33  ;;  %v9009_v44 = vpack.c.bf16 %v246_v15, %v239_v56  ;;  %v7084_v56 = vld [vmem:[%s14065_s1 + $0x58c] ss:$16 sps:$4 sm:$0xff]  }
 0x145   :  { %14409 = vst [vmem:[#allocation91_spill] sm:$0xff] %v8989_v61  ;;  %v1943_v53 = vpop.f32.mrf.mxu1  ;;  %v9003_v11 = vadd.f32 %v1941_v49, %v1749_v1  ;;  %v1751_v31 = vadd.f32 %v1750_v3, %v8644_v37  ;;  %2810 = vmatprep.subr.bf16.mxu0 %v7078_v10  ;;  %v7079_v49 = vld [vmem:[%s14065_s1 + $0x5a8] ss:$16 sps:$4 sm:$0xff]  }
 0x146   :  { %v1752_v18 = vpop.f32.mrf.mxu0  ;;  %14410 = vst [vmem:[#allocation92_spill] sm:$0xff] %v9009_v44 }
 0x147   :  { %v1945_v47 = vpop.f32.mrf.mxu1  ;;  %v9011_v28 = vadd.f32 %v1943_v53, %v1751_v31  ;;  %v1753_v33 = vadd.f32 %v1752_v18, %v8633_v40  ;;  %v260_v31 = vld [vmem:[%s14066_s0 + $0x688] sm:$0xff] }
 0x148   :  { %v1754_v61 = vpop.f32.mrf.mxu0  ;;  %2811 = vmatpush2.bf16.msra.mxu0 %v7076_v21 }
 0x149   :  { %v1947_v25 = vpop.f32.mrf.mxu1  ;;  %v9017_v10 = vadd.f32 %v1945_v47, %v1753_v33  ;;  %v1755_v1 = vadd.f32 %v1754_v61, %v8644_v37  ;;  %2812 = vmatprep.subr.bf16.mxu0 %v7081_v23  ;;  %v253_v61 = vld [vmem:[%s14066_s0 + $0x650] sm:$0xff] }
 0x14a   :  { %v1758_v15 = vpop.f32.mrf.mxu0  ;;  %2489 = vmatmul.mubr.bf16.gmra.mxu0 %v7792_v41  ;;  %v7082_v41 = vld [vmem:[%s14065_s1 + $0x588] ss:$16 sps:$4 sm:$0xff]  }
 0x14b   :  { %14411 = vst [vmem:[#allocation93_spill] sm:$0xff] %v9017_v10  ;;  %v1951_v3 = vpop.f32.mrf.mxu1  ;;  %6476 = vmatmul.mubr.msk.bf16.gmra.mxu1 %vm1585_vm0, %v9009_v44  ;;  %v9026_v53 = vadd.f32 %v1947_v25, %v1755_v1  ;;  %v1759_v21 = vadd.f32 %v1758_v15, %v8633_v40  ;;  %2498 = vmatprep.mubr.bf16.mxu0 %v7796_v43  ;;  %v7087_v43 = vld [vmem:[%s14065_s1 + $0x56c] ss:$16 sps:$4 sm:$0xff]  }
 0x14c   :  { %2385 = vmatprep.mubr.bf16.mxu1 %v14365_v7  ;;  %v1760_v23 = vpop.f32.mrf.mxu0  ;;  %2813 = vmatpush2.bf16.msra.mxu0 %v7079_v49  ;;  %v9046_v15 = vpack.c.bf16 %v260_v31, %v253_v61  ;;  %v7090_v61 = vld [vmem:[%s14065_s1 + $0x54c] ss:$16 sps:$4 sm:$0xff]  }
 0x14d   :  { %14412 = vst [vmem:[#allocation94_spill] sm:$0xff] %v9026_v53  ;;  %v1953_v18 = vpop.f32.mrf.mxu1  ;;  %v9040_v25 = vadd.f32 %v1951_v3, %v1759_v21  ;;  %v1761_v47 = vadd.f32 %v1760_v23, %v8644_v37  ;;  %2814 = vmatprep.subr.bf16.mxu0 %v7084_v56  ;;  %v7085_v3 = vld [vmem:[%s14065_s1 + $0x568] ss:$16 sps:$4 sm:$0xff]  }
 0x14e   :  { %v1762_v33 = vpop.f32.mrf.mxu0  ;;  %14413 = vst [vmem:[#allocation95_spill] sm:$0xff] %v9046_v15 }
 0x14f   :  { %v1955_v1 = vpop.f32.mrf.mxu1  ;;  %v9048_v44 = vadd.f32 %v1953_v18, %v1761_v47  ;;  %v1763_v49 = vadd.f32 %v1762_v33, %v8633_v40  ;;  %v274_v47 = vld [vmem:[%s14066_s0 + $0x6f8] sm:$0xff] }
 0x150   :  { %v1764_v53 = vpop.f32.mrf.mxu0  ;;  %2815 = vmatpush2.bf16.msra.mxu0 %v7082_v41 }
 0x151   :  { %v1957_v10 = vpop.f32.mrf.mxu1  ;;  %v9054_v56 = vadd.f32 %v1955_v1, %v1763_v49  ;;  %v1765_v21 = vadd.f32 %v1764_v53, %v8644_v37  ;;  %2816 = vmatprep.subr.bf16.mxu0 %v7087_v43  ;;  %v267_v53 = vld [vmem:[%s14066_s0 + $0x6c0] sm:$0xff] }
 0x152   :  { %v1768_v31 = vpop.f32.mrf.mxu0  ;;  %2499 = vmatmul.mubr.bf16.gmra.mxu0 %v7840_v63  ;;  %v7088_v63 = vld [vmem:[%s14065_s1 + $0x548] ss:$16 sps:$4 sm:$0xff]  }
 0x153   :  { %v1961_v23 = vpop.f32.mrf.mxu1  ;;  %6477 = vmatmul.mubr.msk.bf16.gmra.mxu1 %vm1585_vm0, %v9046_v15  ;;  %v9063_v18 = vadd.f32 %v1957_v10, %v1765_v21  ;;  %v1769_v41 = vadd.f32 %v1768_v31, %v8633_v40  ;;  %2508 = vmatprep.mubr.bf16.mxu0 %v7844_v5  ;;  %v7093_v5 = vld [vmem:[%s14065_s1 + $0x52c] ss:$16 sps:$4 sm:$0xff]   ;;  %v9083_v31 = vpack.c.bf16 %v274_v47, %v267_v53 }
 0x154   :  { %2395 = vmatprep.mubr.bf16.mxu1 %v14365_v7  ;;  %v1770_v43 = vpop.f32.mrf.mxu0  ;;  %2817 = vmatpush2.bf16.msra.mxu0 %v7085_v3  ;;  %v7096_v53 = vld [vmem:[%s14065_s1 + $0x50c] ss:$16 sps:$4 sm:$0xff]  }
 0x155   :  { %14414 = vst [vmem:[#allocation96_spill] sm:$0xff] %v9063_v18  ;;  %v1963_v33 = vpop.f32.mrf.mxu1  ;;  %v9077_v10 = vadd.f32 %v1961_v23, %v1769_v41  ;;  %v1771_v1 = vadd.f32 %v1770_v43, %v8644_v37  ;;  %2818 = vmatprep.subr.bf16.mxu0 %v7090_v61  ;;  %14415 = vst [vmem:[#allocation97_spill] sm:$0xff] %v9083_v31  ;;  %v7091_v23 = vld [vmem:[%s14065_s1 + $0x528] ss:$16 sps:$4 sm:$0xff]  }
 0x156   :  { %v1772_v49 = vpop.f32.mrf.mxu0 }
 0x157   :  { %v1965_v21 = vpop.f32.mrf.mxu1  ;;  %v9085_v15 = vadd.f32 %v1963_v33, %v1771_v1  ;;  %v1773_v3 = vadd.f32 %v1772_v49, %v8633_v40 }
 0x158   :  { %v1774_v7 = vpop.f32.mrf.mxu0  ;;  %2819 = vmatpush2.bf16.msra.mxu0 %v7088_v63 }
 0x159   :  { %v1967_v18 = vpop.f32.mrf.mxu1  ;;  %v9091_v61 = vadd.f32 %v1965_v21, %v1773_v3  ;;  %v1775_v41 = vadd.f32 %v1774_v7, %v8644_v37  ;;  %2820 = vmatprep.subr.bf16.mxu0 %v7093_v5  ;;  %v7094_v5 = vld [vmem:[%s14065_s1 + $0x508] ss:$16 sps:$4 sm:$0xff]  }
 0x15a   :  { %v1778_v47 = vpop.f32.mrf.mxu0  ;;  %2509 = vmatmul.mubr.bf16.gmra.mxu0 %v7888_v27 }
 0x15b   :  { %v1971_v43 = vpop.f32.mrf.mxu1  ;;  %6478 = vmatmul.mubr.msk.bf16.gmra.mxu1 %vm1585_vm0, %v9083_v31  ;;  %v9100_v33 = vadd.f32 %v1967_v18, %v1775_v41  ;;  %v1779_v63 = vadd.f32 %v1778_v47, %v8633_v40  ;;  %2518 = vmatprep.mubr.bf16.mxu0 %v7892_v29 }
 0x15c   :  { %2631 = vmatprep.mubr.bf16.mxu1 %v7476_v54  ;;  %v1780_v7 = vpop.f32.mrf.mxu0  ;;  %2821 = vmatpush2.bf16.msra.mxu0 %v7091_v23  ;;  %v7049_v54 = vld [vmem:[%s14065_s1 + $0x608] ss:$16 sps:$4 sm:$0xff]  }
 0x15d   :  { %v1973_v1 = vpop.f32.mrf.mxu1  ;;  %v9108_v49 = vadd.f32 %v1971_v43, %v1779_v63  ;;  %v1781_v21 = vadd.f32 %v1780_v7, %v8644_v37  ;;  %2822 = vmatprep.subr.bf16.mxu0 %v7096_v53 }
 0x15e   :  { %v1782_v27 = vpop.f32.mrf.mxu0 }
 0x15f   :  { %v1975_v18 = vpop.f32.mrf.mxu1  ;;  %v9111_v3 = vadd.f32 %v1973_v1, %v1781_v21  ;;  %v1783_v29 = vadd.f32 %v1782_v27, %v8633_v40 }
 0x160   :  { %v1784_v23 = vpop.f32.mrf.mxu0  ;;  %2823 = vmatpush2.bf16.msra.mxu0 %v7094_v5 }
 0x161   :  { %v1977_v41 = vpop.f32.mrf.mxu1  ;;  %v9117_v47 = vadd.f32 %v1975_v18, %v1783_v29  ;;  %v1785_v43 = vadd.f32 %v1784_v23, %v8644_v37 }
 0x162   :  { %v1788_v63 = vpop.f32.mrf.mxu0  ;;  %2519 = vmatmul.mubr.bf16.gmra.mxu0 %v7936_v57 }
 0x163   :  { %v1981_v7 = vpop.f32.mrf.mxu1  ;;  %2632 = vmatmul.mubr.bf16.vlgmr.msra.gmra.mxu1 %v7554_v16  ;;  %v9122_v53 = vadd.f32 %v1977_v41, %v1785_v43  ;;  %v1789_v1 = vadd.f32 %v1788_v63, %v8633_v40  ;;  %2528 = vmatprep.mubr.bf16.mxu0 %v7940_v59 }
 0x164   :  { %3000 = vmatpush1.bf16.msra.mxu1 %v7049_v54  ;;  %v1790_v21 = vpop.f32.mrf.mxu0  ;;  %2641 = vmatprep.mubr.bf16.mxu1 %v7561_v19 }
 0x165   :  { %v1983_v27 = vpop.f32.mrf.mxu1  ;;  %v9127_v5 = vadd.f32 %v1981_v7, %v1789_v1  ;;  %v1791_v18 = vadd.f32 %v1790_v21, %v8644_v37 }
 0x166   :  { %v1792_v29 = vpop.f32.mrf.mxu0 }
 0x167   :  { %v1985_v23 = vpop.f32.mrf.mxu1  ;;  %v9130_v57 = vadd.f32 %v1983_v27, %v1791_v18  ;;  %v1793_v16 = vadd.f32 %v1792_v29, %v8633_v40 }
 0x168   :  { %v1794_v41 = vpop.f32.mrf.mxu0 }
 0x169   :  { %v1987_v43 = vpop.f32.mrf.mxu1  ;;  %v9133_v63 = vadd.f32 %v1985_v23, %v1793_v16  ;;  %v1795_v59 = vadd.f32 %v1794_v41, %v8644_v37 }
 0x16a   :  { %v1798_v54 = vpop.f32.mrf.mxu0  ;;  %2529 = vmatmul.mubr.bf16.gmra.mxu0 %v7975_v14 }
 0x16b   :  { %v1991_v31 = vpop.f32.mrf.mxu1  ;;  %2642 = vmatmul.mubr.bf16.gmra.mxu1 %v7602_v32  ;;  %v9138_v19 = vadd.f32 %v1987_v43, %v1795_v59  ;;  %v1799_v7 = vadd.f32 %v1798_v54, %v8633_v40  ;;  %2538 = vmatprep.mubr.bf16.mxu0 %v7979_v20 }
 0x16c   :  { %2651 = vmatprep.mubr.bf16.mxu1 %v7606_v34  ;;  %v1800_v1 = vpop.f32.mrf.mxu0 }
 0x16d   :  { %v1993_v21 = vpop.f32.mrf.mxu1  ;;  %v9143_v27 = vadd.f32 %v1991_v31, %v1799_v7  ;;  %v1801_v18 = vadd.f32 %v1800_v1, %v8644_v37 }
 0x16e   :  { %v1802_v29 = vpop.f32.mrf.mxu0 }
 0x16f   :  { %v1995_v23 = vpop.f32.mrf.mxu1  ;;  %v9146_v16 = vadd.f32 %v1993_v21, %v1801_v18  ;;  %v1803_v32 = vadd.f32 %v1802_v29, %v8633_v40 }
 0x170   :  { %v1804_v14 = vpop.f32.mrf.mxu0 }
 0x171   :  { %v1997_v41 = vpop.f32.mrf.mxu1  ;;  %v9149_v43 = vadd.f32 %v1995_v23, %v1803_v32  ;;  %v1805_v20 = vadd.f32 %v1804_v14, %v8644_v37 }
 0x172   :  { %v1808_v59 = vpop.f32.mrf.mxu0  ;;  %2539 = vmatmul.mubr.bf16.gmra.mxu0 %v8011_v46 }
 0x173   :  { %v2001_v34 = vpop.f32.mrf.mxu1  ;;  %2652 = vmatmul.mubr.bf16.gmra.mxu1 %v7650_v48  ;;  %v9154_v31 = vadd.f32 %v1997_v41, %v1805_v20  ;;  %v1809_v54 = vadd.f32 %v1808_v59, %v8633_v40  ;;  %2548 = vmatprep.mubr.bf16.mxu0 %v8015_v52 }
 0x174   :  { %2661 = vmatprep.mubr.bf16.mxu1 %v7654_v50  ;;  %v1810_v7 = vpop.f32.mrf.mxu0 }
 0x175   :  { %v2003_v1 = vpop.f32.mrf.mxu1  ;;  %v9159_v21 = vadd.f32 %v2001_v34, %v1809_v54  ;;  %v1811_v18 = vadd.f32 %v1810_v7, %v8644_v37 }
 0x176   :  { %v1812_v29 = vpop.f32.mrf.mxu0 }
 0x177   :  { %v2005_v23 = vpop.f32.mrf.mxu1  ;;  %v9162_v32 = vadd.f32 %v2003_v1, %v1811_v18  ;;  %v1813_v48 = vadd.f32 %v1812_v29, %v8633_v40 }
 0x178   :  { %v1814_v46 = vpop.f32.mrf.mxu0 }
 0x179   :  { %v2007_v14 = vpop.f32.mrf.mxu1  ;;  %v9165_v41 = vadd.f32 %v2005_v23, %v1813_v48  ;;  %v1815_v52 = vadd.f32 %v1814_v46, %v8644_v37 }
 0x17a   :  { %v1818_v20 = vpop.f32.mrf.mxu0  ;;  %2549 = vmatmul.mubr.bf16.gmra.mxu0 %v8047_v12 }
 0x17b   :  { %v2011_v50 = vpop.f32.mrf.mxu1  ;;  %2662 = vmatmul.mubr.bf16.gmra.mxu1 %v7698_v2  ;;  %v9170_v59 = vadd.f32 %v2007_v14, %v1815_v52  ;;  %v1819_v34 = vadd.f32 %v1818_v20, %v8633_v40  ;;  %2558 = vmatprep.mubr.bf16.mxu0 %v8051_v26 }
 0x17c   :  { %2671 = vmatprep.mubr.bf16.mxu1 %v7702_v4  ;;  %v1820_v54 = vpop.f32.mrf.mxu0 }
 0x17d   :  { %v2013_v7 = vpop.f32.mrf.mxu1  ;;  %v9175_v1 = vadd.f32 %v2011_v50, %v1819_v34  ;;  %v1821_v18 = vadd.f32 %v1820_v54, %v8644_v37  ;;  %v14416_v54 = vld [vmem:[#allocation65_spill] sm:$0xff] }
 0x17e   :  { %v1822_v29 = vpop.f32.mrf.mxu0 }
 0x17f   :  { %v2015_v23 = vpop.f32.mrf.mxu1  ;;  %v9178_v48 = vadd.f32 %v2013_v7, %v1821_v18  ;;  %v1823_v2 = vadd.f32 %v1822_v29, %v8633_v40  ;;  %v14418_v29 = vld [vmem:[#allocation67_spill] sm:$0xff] }
 0x180   :  { %v1824_v12 = vpop.f32.mrf.mxu0 }
 0x181   :  { %v2017_v46 = vpop.f32.mrf.mxu1  ;;  %v9181_v14 = vadd.f32 %v2015_v23, %v1823_v2  ;;  %v1825_v26 = vadd.f32 %v1824_v12, %v8644_v37  ;;  %v14420_v2 = vld [vmem:[#allocation68_spill] sm:$0xff] }
 0x182   :  { %v2054_v52 = vpop.f32.mrf.mxu0  ;;  %2559 = vmatmul.mubr.bf16.gmra.mxu0 %v8083_v62 }
 0x183   :  { %v2174_v4 = vpop.f32.mrf.mxu1  ;;  %2672 = vmatmul.mubr.bf16.gmra.mxu1 %v7746_v22  ;;  %v9186_v20 = vadd.f32 %v2017_v46, %v1825_v26  ;;  %v9189_v50 = vadd.f32 %v2054_v52, %v8679_v6  ;;  %2568 = vmatprep.mubr.bf16.mxu0 %v8087_v8  ;;  %v14423_v52 = vld [vmem:[#allocation2_spill] sm:$0xff] }
 0x184   :  { %v9192_v34 = vadd.f32 %v2174_v4, %v9127_v5  ;;  %2681 = vmatprep.mubr.bf16.mxu1 %v7750_v24  ;;  %v2056_v40 = vpop.f32.mrf.mxu0 }
 0x185   :  { %v2176_v37 = vpop.f32.mrf.mxu1  ;;  %v9197_v7 = vadd.f32 %v2056_v40, %v14416_v54  ;;  %v14425_v40 = vld [vmem:[#allocation20_spill] sm:$0xff] }
 0x186   :  { %v9200_v62 = vadd.f32 %v2176_v37, %v9130_v57  ;;  %v2058_v22 = vpop.f32.mrf.mxu0  ;;  %v14422_v57 = vld [vmem:[#allocation18_spill] sm:$0xff]  ;;  %v14426_v37 = vld [vmem:[#allocation3_spill] sm:$0xff] }
 0x187   :  { %v2178_v18 = vpop.f32.mrf.mxu1  ;;  %v9203_v6 = vadd.f32 %v2058_v22, %v14418_v29 }
 0x188   :  { %14417 = vst [vmem:[#allocation65_spill] sm:$0xff] %v9200_v62  ;;  %v9206_v5 = vadd.f32 %v2178_v18, %v9133_v63  ;;  %v2060_v23 = vpop.f32.mrf.mxu0  ;;  %v14500_v62 = vmov 0  }
 0x189   :  { %v2180_v8 = vpop.f32.mrf.mxu1  ;;  %v9209_v24 = vadd.f32 %v2060_v23, %v14420_v2 }
 0x18a   :  { %14419 = vst [vmem:[#allocation67_spill] sm:$0xff] %v9206_v5  ;;  %v9212_v12 = vadd.f32 %v2180_v8, %v9138_v19  ;;  %v2064_v46 = vpop.f32.mrf.mxu0  ;;  %2569 = vmatmul.mubr.bf16.gmra.mxu0 %v14422_v57  ;;  %v14428_v8 = vld [vmem:[#allocation72_spill] sm:$0xff]  ;;  %v14497_v5 = vld [vmem:[#allocation27_spill] sm:$0xff] }
 0x18b   :  { %v2184_v26 = vpop.f32.mrf.mxu1  ;;  %2682 = vmatmul.mubr.bf16.gmra.mxu1 %v14423_v52  ;;  %v9217_v4 = vadd.f32 %v2064_v46, %v8732_v9  ;;  %2578 = vmatprep.mubr.bf16.mxu0 %v14425_v40 }
 0x18c   :  { %14421 = vst [vmem:[#allocation68_spill] sm:$0xff] %v9212_v12  ;;  %v9220_v63 = vadd.f32 %v2184_v26, %v9143_v27  ;;  %2691 = vmatprep.mubr.bf16.mxu1 %v14426_v37  ;;  %v2066_v54 = vpop.f32.mrf.mxu0  ;;  %v14430_v26 = vld [vmem:[#allocation73_spill] sm:$0xff]  ;;  %v14433_v37 = vld [vmem:[#allocation4_spill] sm:$0xff] }
 0x18d   :  { %v2186_v22 = vpop.f32.mrf.mxu1  ;;  %v9225_v19 = vadd.f32 %v2066_v54, %v8742_v35 }
 0x18e   :  { %14424 = vst [vmem:[#allocation18_spill] sm:$0xff] %v9220_v63  ;;  %v9228_v18 = vadd.f32 %v2186_v22, %v9146_v16  ;;  %v2068_v29 = vpop.f32.mrf.mxu0  ;;  %v14432_v16 = vld [vmem:[#allocation22_spill] sm:$0xff]  ;;  %v14435_v22 = vld [vmem:[#allocation24_spill] sm:$0xff] }
 0x18f   :  { %v2188_v23 = vpop.f32.mrf.mxu1  ;;  %v9231_v9 = vadd.f32 %v2068_v29, %v14428_v8  ;;  %v14436_v29 = vld [vmem:[#allocation5_spill] sm:$0xff] }
 0x190   :  { %14427 = vst [vmem:[#allocation2_spill] sm:$0xff] %v9228_v18  ;;  %v9234_v27 = vadd.f32 %v2188_v23, %v9149_v43  ;;  %v2070_v2 = vpop.f32.mrf.mxu0 }
 0x191   :  { %v2190_v46 = vpop.f32.mrf.mxu1  ;;  %v9237_v57 = vadd.f32 %v2070_v2, %v14430_v26 }
 0x192   :  { %14429 = vst [vmem:[#allocation20_spill] sm:$0xff] %v9234_v27  ;;  %v9240_v52 = vadd.f32 %v2190_v46, %v9154_v31  ;;  %v2074_v35 = vpop.f32.mrf.mxu0  ;;  %2579 = vmatmul.mubr.bf16.gmra.mxu0 %v14432_v16  ;;  %v14439_v16 = vld [vmem:[#allocation76_spill] sm:$0xff]  ;;  %v14479_v27 = vld [vmem:[#allocation93_spill] sm:$0xff] }
 0x193   :  { %v2194_v40 = vpop.f32.mrf.mxu1  ;;  %2692 = vmatmul.mubr.bf16.gmra.mxu1 %v14433_v37  ;;  %v9245_v54 = vadd.f32 %v2074_v35, %v8779_v38  ;;  %2588 = vmatprep.mubr.bf16.mxu0 %v14435_v22 }
 0x194   :  { %14431 = vst [vmem:[#allocation3_spill] sm:$0xff] %v9240_v52  ;;  %v9248_v43 = vadd.f32 %v2194_v40, %v9159_v21  ;;  %2701 = vmatprep.mubr.bf16.mxu1 %v14436_v29  ;;  %v2076_v23 = vpop.f32.mrf.mxu0 }
 0x195   :  { %v2196_v8 = vpop.f32.mrf.mxu1  ;;  %v9253_v31 = vadd.f32 %v2076_v23, %v8789_v0  ;;  %v14442_v23 = vld [vmem:[#allocation6_spill] sm:$0xff] }
 0x196   :  { %14434 = vst [vmem:[#allocation72_spill] sm:$0xff] %v9248_v43  ;;  %v9256_v2 = vadd.f32 %v2196_v8, %v9162_v32  ;;  %v2078_v46 = vpop.f32.mrf.mxu0  ;;  %v14441_v32 = vld [vmem:[#allocation26_spill] sm:$0xff]  ;;  %v14444_v8 = vld [vmem:[#allocation7_spill] sm:$0xff] }
 0x197   :  { %v2198_v26 = vpop.f32.mrf.mxu1  ;;  %v9259_v38 = vadd.f32 %v2078_v46, %v8795_v55  ;;  %v14445_v46 = vld [vmem:[#allocation28_spill] sm:$0xff]  ;;  %v14473_v43 = vld [vmem:[#allocation90_spill] sm:$0xff] }
 0x198   :  { %14437 = vst [vmem:[#allocation73_spill] sm:$0xff] %v9256_v2  ;;  %v9262_v21 = vadd.f32 %v2198_v26, %v9165_v41  ;;  %v2080_v35 = vpop.f32.mrf.mxu0 }
 0x199   :  { %v2200_v40 = vpop.f32.mrf.mxu1  ;;  %v9265_v37 = vadd.f32 %v2080_v35, %v14439_v16 }
 0x19a   :  { %14438 = vst [vmem:[#allocation22_spill] sm:$0xff] %v9262_v21  ;;  %v9268_v22 = vadd.f32 %v2200_v40, %v9170_v59  ;;  %v2084_v0 = vpop.f32.mrf.mxu0  ;;  %2589 = vmatmul.mubr.bf16.gmra.mxu0 %v14441_v32  ;;  %v14467_v21 = vld [vmem:[#allocation87_spill] sm:$0xff] }
 0x19b   :  { %v2204_v29 = vpop.f32.mrf.mxu1  ;;  %2702 = vmatmul.mubr.bf16.gmra.mxu1 %v14442_v23  ;;  %v9273_v55 = vadd.f32 %v2084_v0, %v8818_v36  ;;  %2824 = vmatprep.mubr.bf16.mxu0 %v14445_v46  ;;  %v14447_v23 = vld [vmem:[#allocation78_spill] sm:$0xff] }
 0x19c   :  { %14440 = vst [vmem:[#allocation4_spill] sm:$0xff] %v9268_v22  ;;  %v9276_v41 = vadd.f32 %v2204_v29, %v9175_v1  ;;  %2711 = vmatprep.mubr.bf16.mxu1 %v14444_v8  ;;  %v2086_v26 = vpop.f32.mrf.mxu0  ;;  %v14449_v8 = vld [vmem:[#allocation79_spill] sm:$0xff] }
 0x19d   :  { %v2206_v35 = vpop.f32.mrf.mxu1  ;;  %v9281_v59 = vadd.f32 %v2086_v26, %v8826_v45 }
 0x19e   :  { %14443 = vst [vmem:[#allocation24_spill] sm:$0xff] %v9276_v41  ;;  %v9284_v40 = vadd.f32 %v2206_v35, %v9178_v48  ;;  %v2088_v16 = vpop.f32.mrf.mxu0  ;;  %v14451_v48 = vld [vmem:[#allocation8_spill] sm:$0xff]  ;;  %v14452_v35 = vld [vmem:[#allocation30_spill] sm:$0xff] }
 0x19f   :  { %v2208_v32 = vpop.f32.mrf.mxu1  ;;  %v9287_v36 = vadd.f32 %v2088_v16, %v14447_v23  ;;  %v14454_v23 = vld [vmem:[#allocation32_spill] sm:$0xff] }
 0x1a0   :  { %14446 = vst [vmem:[#allocation5_spill] sm:$0xff] %v9284_v40  ;;  %v9290_v1 = vadd.f32 %v2208_v32, %v9181_v14  ;;  %v2090_v0 = vpop.f32.mrf.mxu0  ;;  %v14453_v32 = vld [vmem:[#allocation9_spill] sm:$0xff]  ;;  %v14461_v40 = vld [vmem:[#allocation84_spill] sm:$0xff] }
 0x1a1   :  { %v2210_v29 = vpop.f32.mrf.mxu1  ;;  %v9293_v46 = vadd.f32 %v2090_v0, %v14449_v8 }
 0x1a2   :  { %14448 = vst [vmem:[#allocation76_spill] sm:$0xff] %v9290_v1  ;;  %v9296_v41 = vadd.f32 %v2210_v29, %v9186_v20  ;;  %v2094_v45 = vpop.f32.mrf.mxu0  ;;  %2825 = vmatmul.mubr.bf16.vlgmr.msra.gmra.mxu0 %v14452_v35 }
 0x1a3   :  { %v2247_v26 = vpop.f32.mrf.mxu1  ;;  %2712 = vmatmul.mubr.bf16.gmra.mxu1 %v14451_v48  ;;  %v9301_v16 = vadd.f32 %v2094_v45, %v8855_v17  ;;  %2834 = vmatprep.mubr.bf16.mxu0 %v14454_v23 }
 0x1a4   :  { %14450 = vst [vmem:[#allocation26_spill] sm:$0xff] %v9296_v41  ;;  %v9304_v14 = vadd.f32 %v2247_v26, %v9189_v50  ;;  %2721 = vmatprep.mubr.bf16.mxu1 %v14453_v32  ;;  %v2096_v0 = vpop.f32.mrf.mxu0  ;;  %v14455_v41 = vld [vmem:[#allocation81_spill] sm:$0xff]  ;;  %v14456_v32 = vld [vmem:[#allocation82_spill] sm:$0xff] }
 0x1a5   :  { %v2249_v8 = vpop.f32.mrf.mxu1  ;;  %v9309_v20 = vadd.f32 %v2096_v0, %v8863_v13 }
 0x1a6   :  { %v9312_v29 = vadd.f32 %v2249_v8, %v9197_v7  ;;  %v2098_v48 = vpop.f32.mrf.mxu0  ;;  %v14457_v7 = vld [vmem:[#allocation10_spill] sm:$0xff] }
 0x1a7   :  { %v2251_v35 = vpop.f32.mrf.mxu1  ;;  %v9315_v17 = vadd.f32 %v2098_v48, %v14455_v41  ;;  %v14458_v8 = vld [vmem:[#allocation34_spill] sm:$0xff]  ;;  %v14459_v48 = vld [vmem:[#allocation11_spill] sm:$0xff] }
 0x1a8   :  { %v9318_v50 = vadd.f32 %v2251_v35, %v9203_v6  ;;  %v2100_v45 = vpop.f32.mrf.mxu0  ;;  %v14460_v6 = vld [vmem:[#allocation36_spill] sm:$0xff] }
 0x1a9   :  { %v2253_v26 = vpop.f32.mrf.mxu1  ;;  %v9321_v23 = vadd.f32 %v2100_v45, %v14456_v32 }
 0x1aa   :  { %v9324_v1 = vadd.f32 %v2253_v26, %v9209_v24  ;;  %v2104_v13 = vpop.f32.mrf.mxu0  ;;  %2835 = vmatmul.mubr.bf16.gmra.mxu0 %v14458_v8 }
 0x1ab   :  { %v2257_v0 = vpop.f32.mrf.mxu1  ;;  %2722 = vmatmul.mubr.bf16.gmra.mxu1 %v14457_v7  ;;  %v9329_v41 = vadd.f32 %v2104_v13, %v8892_v51  ;;  %2844 = vmatprep.mubr.bf16.mxu0 %v14460_v6 }
 0x1ac   :  { %2731 = vmatprep.mubr.bf16.mxu1 %v14459_v48  ;;  %v9334_v35 = vadd.f32 %v2257_v0, %v9217_v4  ;;  %v2106_v45 = vpop.f32.mrf.mxu0  ;;  %v14462_v4 = vld [vmem:[#allocation85_spill] sm:$0xff] }
 0x1ad   :  { %v2259_v32 = vpop.f32.mrf.mxu1  ;;  %v9337_v24 = vadd.f32 %v2106_v45, %v8900_v30 }
 0x1ae   :  { %v9340_v26 = vadd.f32 %v2259_v32, %v9225_v19  ;;  %v2108_v7 = vpop.f32.mrf.mxu0  ;;  %v14463_v19 = vld [vmem:[#allocation12_spill] sm:$0xff]  ;;  %v14464_v32 = vld [vmem:[#allocation38_spill] sm:$0xff] }
 0x1af   :  { %v2261_v8 = vpop.f32.mrf.mxu1  ;;  %v9343_v51 = vadd.f32 %v2108_v7, %v14461_v40  ;;  %v14465_v7 = vld [vmem:[#allocation13_spill] sm:$0xff] }
 0x1b0   :  { %v9346_v13 = vadd.f32 %v2261_v8, %v9231_v9  ;;  %v2110_v48 = vpop.f32.mrf.mxu0  ;;  %v14466_v9 = vld [vmem:[#allocation40_spill] sm:$0xff] }
 0x1b1   :  { %v2263_v6 = vpop.f32.mrf.mxu1  ;;  %v9349_v0 = vadd.f32 %v2110_v48, %v14462_v4 }
 0x1b2   :  { %v9352_v22 = vadd.f32 %v2263_v6, %v9237_v57  ;;  %v2114_v30 = vpop.f32.mrf.mxu0  ;;  %2845 = vmatmul.mubr.bf16.gmra.mxu0 %v14464_v32 }
 0x1b3   :  { %v2267_v45 = vpop.f32.mrf.mxu1  ;;  %2732 = vmatmul.mubr.bf16.gmra.mxu1 %v14463_v19  ;;  %v9357_v40 = vadd.f32 %v2114_v30, %v8929_v42  ;;  %2854 = vmatprep.mubr.bf16.mxu0 %v14466_v9 }
 0x1b4   :  { %2741 = vmatprep.mubr.bf16.mxu1 %v14465_v7  ;;  %v9362_v8 = vadd.f32 %v2267_v45, %v9245_v54  ;;  %v2116_v48 = vpop.f32.mrf.mxu0  ;;  %v14468_v54 = vld [vmem:[#allocation88_spill] sm:$0xff] }
 0x1b5   :  { %v2269_v4 = vpop.f32.mrf.mxu1  ;;  %v9365_v57 = vadd.f32 %v2116_v48, %v8937_v39 }
 0x1b6   :  { %v9368_v6 = vadd.f32 %v2269_v4, %v9253_v31  ;;  %v2118_v19 = vpop.f32.mrf.mxu0  ;;  %v14469_v31 = vld [vmem:[#allocation14_spill] sm:$0xff] }
 0x1b7   :  { %v2271_v32 = vpop.f32.mrf.mxu1  ;;  %v9371_v42 = vadd.f32 %v2118_v19, %v14467_v21  ;;  %v14470_v4 = vld [vmem:[#allocation42_spill] sm:$0xff]  ;;  %v14471_v19 = vld [vmem:[#allocation15_spill] sm:$0xff] }
 0x1b8   :  { %v9374_v30 = vadd.f32 %v2271_v32, %v9259_v38  ;;  %v2120_v7 = vpop.f32.mrf.mxu0  ;;  %v14472_v38 = vld [vmem:[#allocation44_spill] sm:$0xff] }
 0x1b9   :  { %v2273_v9 = vpop.f32.mrf.mxu1  ;;  %v9377_v45 = vadd.f32 %v2120_v7, %v14468_v54 }
 0x1ba   :  { %v9380_v2 = vadd.f32 %v2273_v9, %v9265_v37  ;;  %v2124_v39 = vpop.f32.mrf.mxu0  ;;  %2855 = vmatmul.mubr.bf16.gmra.mxu0 %v14470_v4 }
 0x1bb   :  { %v2277_v48 = vpop.f32.mrf.mxu1  ;;  %2742 = vmatmul.mubr.bf16.gmra.mxu1 %v14469_v31  ;;  %v9385_v21 = vadd.f32 %v2124_v39, %v8966_v58  ;;  %2864 = vmatprep.mubr.bf16.mxu0 %v14472_v38 }
 0x1bc   :  { %2751 = vmatprep.mubr.bf16.mxu1 %v14471_v19  ;;  %v9390_v32 = vadd.f32 %v2277_v48, %v9273_v55  ;;  %v2126_v7 = vpop.f32.mrf.mxu0  ;;  %v14474_v55 = vld [vmem:[#allocation91_spill] sm:$0xff] }
 0x1bd   :  { %v2279_v54 = vpop.f32.mrf.mxu1  ;;  %v9393_v37 = vadd.f32 %v2126_v7, %v8974_v60 }
 0x1be   :  { %v9396_v9 = vadd.f32 %v2279_v54, %v9281_v59  ;;  %v2128_v31 = vpop.f32.mrf.mxu0  ;;  %v14475_v59 = vld [vmem:[#allocation16_spill] sm:$0xff]  ;;  %v14476_v54 = vld [vmem:[#allocation45_spill] sm:$0xff] }
 0x1bf   :  { %v2281_v4 = vpop.f32.mrf.mxu1  ;;  %v9399_v58 = vadd.f32 %v2128_v31, %v14473_v43  ;;  %v14477_v31 = vld [vmem:[#allocation17_spill] sm:$0xff] }
 0x1c0   :  { %v9402_v39 = vadd.f32 %v2281_v4, %v9287_v36  ;;  %v2130_v19 = vpop.f32.mrf.mxu0  ;;  %v14478_v36 = vld [vmem:[#allocation47_spill] sm:$0xff] }
 0x1c1   :  { %v2283_v38 = vpop.f32.mrf.mxu1  ;;  %v9405_v48 = vadd.f32 %v2130_v19, %v14474_v55 }
 0x1c2   :  { %v9408_v52 = vadd.f32 %v2283_v38, %v9293_v46  ;;  %v2134_v60 = vpop.f32.mrf.mxu0  ;;  %2865 = vmatmul.mubr.bf16.gmra.mxu0 %v14476_v54 }
 0x1c3   :  { %v2287_v7 = vpop.f32.mrf.mxu1  ;;  %2752 = vmatmul.mubr.bf16.gmra.mxu1 %v14475_v59  ;;  %v9413_v43 = vadd.f32 %v2134_v60, %v9003_v11  ;;  %2874 = vmatprep.mubr.bf16.mxu0 %v14478_v36 }
 0x1c4   :  { %2761 = vmatprep.mubr.bf16.mxu1 %v14477_v31  ;;  %v9418_v4 = vadd.f32 %v2287_v7, %v9301_v16  ;;  %v2136_v19 = vpop.f32.mrf.mxu0  ;;  %v14480_v16 = vld [vmem:[#allocation94_spill] sm:$0xff] }
 0x1c5   :  { %v2289_v55 = vpop.f32.mrf.mxu1  ;;  %v9421_v46 = vadd.f32 %v2136_v19, %v9011_v28 }
 0x1c6   :  { %v9424_v38 = vadd.f32 %v2289_v55, %v9309_v20  ;;  %v2138_v59 = vpop.f32.mrf.mxu0  ;;  %v14481_v20 = vld [vmem:[#allocation19_spill] sm:$0xff]  ;;  %v14482_v55 = vld [vmem:[#allocation48_spill] sm:$0xff] }
 0x1c7   :  { %v2291_v54 = vpop.f32.mrf.mxu1  ;;  %v9427_v11 = vadd.f32 %v2138_v59, %v14479_v27  ;;  %v14483_v59 = vld [vmem:[#allocation21_spill] sm:$0xff] }
 0x1c8   :  { %v9430_v60 = vadd.f32 %v2291_v54, %v9315_v17  ;;  %v2140_v31 = vpop.f32.mrf.mxu0  ;;  %v14484_v17 = vld [vmem:[#allocation50_spill] sm:$0xff] }
 0x1c9   :  { %v2293_v36 = vpop.f32.mrf.mxu1  ;;  %v9433_v7 = vadd.f32 %v2140_v31, %v14480_v16 }
 0x1ca   :  { %v9436_v18 = vadd.f32 %v2293_v36, %v9321_v23  ;;  %v2144_v28 = vpop.f32.mrf.mxu0  ;;  %2875 = vmatmul.mubr.bf16.gmra.mxu0 %v14482_v55 }
 0x1cb   :  { %v2297_v19 = vpop.f32.mrf.mxu1  ;;  %2762 = vmatmul.mubr.bf16.gmra.mxu1 %v14481_v20  ;;  %v9441_v27 = vadd.f32 %v2144_v28, %v9040_v25  ;;  %2884 = vmatprep.mubr.bf16.mxu0 %v14484_v17 }
 0x1cc   :  { %2771 = vmatprep.mubr.bf16.mxu1 %v14483_v59  ;;  %v9446_v54 = vadd.f32 %v2297_v19, %v9329_v41  ;;  %v2146_v31 = vpop.f32.mrf.mxu0  ;;  %v14485_v41 = vld [vmem:[#allocation96_spill] sm:$0xff] }
 0x1cd   :  { %v2299_v16 = vpop.f32.mrf.mxu1  ;;  %v9449_v23 = vadd.f32 %v2146_v31, %v9048_v44 }
 0x1ce   :  { %v9452_v36 = vadd.f32 %v2299_v16, %v9337_v24  ;;  %v2148_v20 = vpop.f32.mrf.mxu0  ;;  %v14486_v24 = vld [vmem:[#allocation23_spill] sm:$0xff] }
 0x1cf   :  { %v2301_v55 = vpop.f32.mrf.mxu1  ;;  %v9455_v25 = vadd.f32 %v2148_v20, %v9054_v56  ;;  %v14487_v16 = vld [vmem:[#allocation51_spill] sm:$0xff]  ;;  %v9469_v56 = vmax.f32 %v9318_v50, 0.0  ;;  %v14489_v20 = vld [vmem:[#allocation25_spill] sm:$0xff] }
 0x1d0   :  { %v9458_v28 = vadd.f32 %v2301_v55, %v9343_v51  ;;  %v2150_v59 = vpop.f32.mrf.mxu0  ;;  %v14490_v55 = vld [vmem:[#allocation53_spill] sm:$0xff] }
 0x1d1   :  { %v2303_v17 = vpop.f32.mrf.mxu1  ;;  %v9461_v19 = vadd.f32 %v2150_v59, %v14485_v41  ;;  %14488 = vst [vmem:[#allocation6_spill] sm:$0xff] %v9469_v56  ;;  %v9477_v59 = vmax.f32 %v9304_v14, 0.0 }
 0x1d2   :  { %v9464_v63 = vadd.f32 %v2303_v17, %v9349_v0  ;;  %v2154_v44 = vpop.f32.mrf.mxu0  ;;  %2885 = vmatmul.mubr.bf16.gmra.mxu0 %v14487_v16 }
 0x1d3   :  { %v2307_v31 = vpop.f32.mrf.mxu1  ;;  %2772 = vmatmul.mubr.bf16.gmra.mxu1 %v14486_v24  ;;  %v9472_v51 = vadd.f32 %v2154_v44, %v9077_v10  ;;  %2894 = vmatprep.mubr.bf16.mxu0 %v14490_v55  ;;  %14491 = vst [vmem:[#allocation7_spill] sm:$0xff] %v9477_v59  ;;  %v9483_v24 = vmax.f32 %v9324_v1, 0.0  ;;  %v9489_v10 = vmax.f32 %v9312_v29, 0.0  ;;  %v3458_v29 = vmul.f32 %v9477_v59, %v9477_v59 }
 0x1d4   :  { %2781 = vmatprep.mubr.bf16.mxu1 %v14489_v20  ;;  %v9480_v0 = vadd.f32 %v2307_v31, %v9357_v40  ;;  %v2156_v17 = vpop.f32.mrf.mxu0  ;;  %v3462_v40 = vmul.f32 %v9469_v56, %v9469_v56  ;;  %v9497_v31 = vmax.f32 %v9334_v35, 0.0 }
 0x1d5   :  { %v2309_v41 = vpop.f32.mrf.mxu1  ;;  %14492 = vst [vmem:[#allocation28_spill] sm:$0xff] %v9483_v24  ;;  %v9486_v50 = vadd.f32 %v2156_v17, %v9085_v15  ;;  %14493 = vst [vmem:[#allocation78_spill] sm:$0xff] %v9489_v10  ;;  %v3463_v55 = vmul.f32 %v9483_v24, %v9483_v24  ;;  %v9510_v17 = vmax.f32 %v9340_v26, 0.0  ;;  %v14498_v26 = vld [vmem:[#allocation54_spill] sm:$0xff] }
 0x1d6   :  { %v9492_v44 = vadd.f32 %v2309_v41, %v9365_v57  ;;  %v2158_v16 = vpop.f32.mrf.mxu0  ;;  %14494 = vst [vmem:[#allocation79_spill] sm:$0xff] %v9497_v31  ;;  %v3306_v41 = vadd.f32 %v9469_v56, %v9477_v59  ;;  %v9537_v56 = vmax.f32 %v9352_v22, 0.0 }
 0x1d7   :  { %v2311_v14 = vpop.f32.mrf.mxu1  ;;  %v9500_v1 = vadd.f32 %v2158_v16, %v9091_v61  ;;  %14495 = vst [vmem:[#allocation8_spill] sm:$0xff] %v9510_v17  ;;  %v9523_v16 = vmax.f32 %v9346_v13, 0.0  ;;  %v3343_v13 = vadd.f32 %v9483_v24, %v9489_v10 }
 0x1d8   :  { %v9503_v15 = vadd.f32 %v2311_v14, %v9371_v42  ;;  %v2160_v20 = vpop.f32.mrf.mxu0  ;;  %v3459_v42 = vmul.f32 %v9489_v10, %v9489_v10  ;;  %14501 = vst [vmem:[#allocation9_spill] sm:$0xff] %v9537_v56 }
 0x1d9   :  { %v2313_v57 = vpop.f32.mrf.mxu1  ;;  %v9513_v35 = vadd.f32 %v2160_v20, %v9100_v33  ;;  %14496 = vst [vmem:[#allocation30_spill] sm:$0xff] %v9523_v16  ;;  %v3586_v33 = vadd.f32 %v3462_v40, %v3458_v29  ;;  %v3470_v22 = vmul.f32 %v9523_v16, %v9523_v16  ;;  %v3344_v24 = vadd.f32 %v3343_v13, %v9510_v17 }
 0x1da   :  { %v9516_v61 = vadd.f32 %v2313_v57, %v9377_v45  ;;  %v2164_v14 = vpop.f32.mrf.mxu0  ;;  %2895 = vmatmul.mubr.bf16.gmra.mxu0 %v14498_v26  ;;  %v3466_v45 = vmul.f32 %v9497_v31, %v9497_v31  ;;  %v14499_v57 = vld [vmem:[#allocation56_spill] sm:$0xff] }
 0x1db   :  { %v2317_v12 = vpop.f32.mrf.mxu1  ;;  %2782 = vmatmul.mubr.bf16.gmra.mxu1 %v14497_v5  ;;  %v9530_v20 = vadd.f32 %v2164_v14, %v9108_v49  ;;  %2904 = vmatprep.mubr.bf16.mxu0 %v14499_v57  ;;  %v9540_v5 = vmax.f32 %v9362_v8, 0.0  ;;  %v3623_v49 = vadd.f32 %v3463_v55, %v3459_v42  ;;  %v3307_v14 = vadd.f32 %v3306_v41, %v9497_v31 }
 0x1dc   :  { %3017 = vmatprep.mubr.bf16.mxu1 %v14500_v62  ;;  %v9543_v40 = vadd.f32 %v2317_v12, %v9385_v21  ;;  %v2166_v29 = vpop.f32.mrf.mxu0  ;;  %v3467_v57 = vmul.f32 %v9510_v17, %v9510_v17  ;;  %v9554_v8 = vmax.f32 %v9368_v6, 0.0  ;;  %v9557_v12 = vmax.f32 %v9374_v30, 0.0 }
 0x1dd   :  { %14502 = vst [vmem:[#allocation32_spill] sm:$0xff] %v9540_v5  ;;  %v2319_v26 = vpop.f32.mrf.mxu1  ;;  %v9549_v59 = vadd.f32 %v2166_v29, %v9111_v3  ;;  %v3587_v41 = vadd.f32 %v3586_v33, %v3466_v45  ;;  %v3471_v6 = vmul.f32 %v9537_v56, %v9537_v56  ;;  %v3474_v30 = vmul.f32 %v9540_v5, %v9540_v5 }
 0x1de   :  { %14503 = vst [vmem:[#allocation81_spill] sm:$0xff] %v9554_v8  ;;  %14504 = vst [vmem:[#allocation82_spill] sm:$0xff] %v9557_v12  ;;  %v9560_v21 = vadd.f32 %v2319_v26, %v9393_v37  ;;  %v2168_v55 = vpop.f32.mrf.mxu0  ;;  %v9574_v37 = vmax.f32 %v9380_v2, 0.0  ;;  %v9577_v26 = vmax.f32 %v9390_v32, 0.0  ;;  %v3624_v13 = vadd.f32 %v3623_v49, %v3467_v57 }
 0x1df   :  { %v2321_v42 = vpop.f32.mrf.mxu1  ;;  %v9564_v3 = vadd.f32 %v2168_v55, %v9117_v47  ;;  %v3308_v47 = vadd.f32 %v3307_v14, %v9523_v16  ;;  %v3475_v17 = vmul.f32 %v9554_v8, %v9554_v8  ;;  %v3478_v2 = vmul.f32 %v9557_v12, %v9557_v12  ;;  %v14508_v14 = vld [vmem:[#allocation60_spill] sm:$0xff] }
 0x1e0   :  { %v9567_v29 = vadd.f32 %v2321_v42, %v9399_v58  ;;  %14505 = vst [vmem:[#allocation10_spill] sm:$0xff] %v9574_v37  ;;  %14506 = vst [vmem:[#allocation34_spill] sm:$0xff] %v9577_v26  ;;  %v2170_v33 = vpop.f32.mrf.mxu0  ;;  %v3588_v42 = vadd.f32 %v3587_v41, %v3470_v22  ;;  %v9591_v32 = vmax.f32 %v9396_v9, 0.0  ;;  %v9601_v22 = vmax.f32 %v9402_v39, 0.0  ;;  %v14511_v9 = vld [vmem:[#allocation62_spill] sm:$0xff] }
 0x1e1   :  { %v2323_v45 = vpop.f32.mrf.mxu1  ;;  %v9581_v58 = vadd.f32 %v2170_v33, %v9122_v53  ;;  %v14509_v53 = vld [vmem:[#allocation46_spill] sm:$0xff]  ;;  %v3309_v57 = vadd.f32 %v3308_v47, %v9540_v5  ;;  %v3625_v33 = vadd.f32 %v3624_v13, %v3471_v6 }
 0x1e2   :  { %v9584_v55 = vadd.f32 %v2323_v45, %v9405_v48  ;;  %14507 = vst [vmem:[#allocation11_spill] sm:$0xff] %v9591_v32  ;;  %v9593_v49 = vpop.f32.mrf.mxu0  ;;  %2905 = vmatmul.mubr.bf16.gmra.mxu0 %v14508_v14  ;;  %v3345_v48 = vadd.f32 %v3344_v24, %v9537_v56  ;;  %14510 = vst [vmem:[#allocation36_spill] sm:$0xff] %v9601_v22  ;;  %v3589_v45 = vadd.f32 %v3588_v42, %v3474_v30 }
 0x1e3   :  { %v2327_v10 = vpop.f32.mrf.mxu1  ;;  %6479 = vmatmul.mubr.msk.bf16.vlgmr.msra.gmra.mxu1 %vm1585_vm0, %v14509_v53  ;;  %2914 = vmatprep.mubr.bf16.mxu0 %v14511_v9  ;;  %v3479_v14 = vmul.f32 %v9574_v37, %v9574_v37  ;;  %v3482_v24 = vmul.f32 %v9577_v26, %v9577_v26  ;;  %v9620_v9 = vmax.f32 %v9418_v4, 0.0  ;;  %v3626_v6 = vadd.f32 %v3625_v33, %v3475_v17 }
 0x1e4   :  { %v9604_v41 = vadd.f32 %v2327_v10, %v9413_v43  ;;  %3027 = vmatprep.mubr.bf16.mxu1 %v14500_v62  ;;  %v9612_v47 = vpop.f32.mrf.mxu0  ;;  %v3346_v39 = vadd.f32 %v3345_v48, %v9554_v8  ;;  %v3310_v43 = vadd.f32 %v3309_v57, %v9557_v12  ;;  %v9617_v10 = vmax.f32 %v9408_v52, 0.0  ;;  %v14519_v8 = vld [vmem:[#allocation49_spill] sm:$0xff] }
 0x1e5   :  { %v2329_v53 = vpop.f32.mrf.mxu1  ;;  %14513 = vst [vmem:[#allocation85_spill] sm:$0xff] %v9620_v9  ;;  %v3590_v30 = vadd.f32 %v3589_v45, %v3478_v2  ;;  %v3483_v13 = vmul.f32 %v9591_v32, %v9591_v32  ;;  %v3486_v52 = vmul.f32 %v9601_v22, %v9601_v22  ;;  %v9633_v57 = vmax.f32 %v9424_v38, 0.0 }
 0x1e6   :  { %14512 = vst [vmem:[#allocation84_spill] sm:$0xff] %v9617_v10  ;;  %v9625_v42 = vadd.f32 %v2329_v53, %v9421_v46  ;;  %v9627_v5 = vpop.f32.mrf.mxu0  ;;  %v3347_v48 = vadd.f32 %v3346_v39, %v9574_v37  ;;  %v3627_v17 = vadd.f32 %v3626_v6, %v3479_v14  ;;  %v3311_v2 = vadd.f32 %v3310_v43, %v9577_v26 }
 0x1e7   :  { %v2331_v56 = vpop.f32.mrf.mxu1  ;;  %14514 = vst [vmem:[#allocation12_spill] sm:$0xff] %v9633_v57  ;;  %v3591_v33 = vadd.f32 %v3590_v30, %v3482_v24  ;;  %v9640_v46 = vmax.f32 %v9430_v60, 0.0  ;;  %v3487_v39 = vmul.f32 %v9617_v10, %v9617_v10  ;;  %v3490_v38 = vmul.f32 %v9620_v9, %v9620_v9  ;;  %v14518_v30 = vld [vmem:[#allocation63_spill] sm:$0xff] }
 0x1e8   :  { %v9636_v4 = vadd.f32 %v2331_v56, %v9427_v11  ;;  %v9642_v53 = vpop.f32.mrf.mxu0  ;;  %v9649_v37 = vmax.f32 %v9436_v18, 0.0  ;;  %v3348_v56 = vadd.f32 %v3347_v48, %v9591_v32  ;;  %v3628_v14 = vadd.f32 %v3627_v17, %v3483_v13  ;;  %v14520_v13 = vld [vmem:[#allocation66_spill] sm:$0xff] }
 0x1e9   :  { %14515 = vst [vmem:[#allocation38_spill] sm:$0xff] %v9640_v46  ;;  %v2333_v45 = vpop.f32.mrf.mxu1  ;;  %v3312_v60 = vadd.f32 %v3311_v2, %v9601_v22  ;;  %v9657_v24 = vmax.f32 %v9446_v54, 0.0  ;;  %v3592_v18 = vadd.f32 %v3591_v33, %v3486_v52  ;;  %v3494_v17 = vmul.f32 %v9640_v46, %v9640_v46 }
 0x1ea   :  { %14516 = vst [vmem:[#allocation13_spill] sm:$0xff] %v9649_v37  ;;  %v9652_v11 = vadd.f32 %v2333_v45, %v9433_v7  ;;  %v9659_v6 = vpop.f32.mrf.mxu0  ;;  %2915 = vmatmul.mubr.bf16.gmra.mxu0 %v14518_v30  ;;  %v3491_v7 = vmul.f32 %v9633_v57, %v9633_v57  ;;  %v3349_v54 = vadd.f32 %v3348_v56, %v9617_v10  ;;  %v9675_v2 = vmax.f32 %v9452_v36, 0.0 }
 0x1eb   :  { %14517 = vst [vmem:[#allocation40_spill] sm:$0xff] %v9657_v24  ;;  %v2337_v43 = vpop.f32.mrf.mxu1  ;;  %6480 = vmatmul.mubr.msk.bf16.gmra.mxu1 %vm1585_vm0, %v14519_v8  ;;  %2924 = vmatprep.mubr.bf16.mxu0 %v14520_v13  ;;  %v9678_v8 = vmax.f32 %v9458_v28, 0.0  ;;  %v3313_v45 = vadd.f32 %v3312_v60, %v9620_v9  ;;  %v3495_v30 = vmul.f32 %v9649_v37, %v9649_v37  ;;  %v9689_v36 = vmax.f32 %v9464_v63, 0.0 }
 0x1ec   :  { %v9667_v48 = vadd.f32 %v2337_v43, %v9441_v27  ;;  %3037 = vmatprep.mubr.bf16.mxu1 %v14500_v62  ;;  %14521 = vst [vmem:[#allocation87_spill] sm:$0xff] %v9675_v2  ;;  %v9680_v33 = vpop.f32.mrf.mxu0  ;;  %v3629_v27 = vadd.f32 %v3628_v14, %v3487_v39  ;;  %v3593_v43 = vadd.f32 %v3592_v18, %v3490_v38  ;;  %v9698_v14 = vmax.f32 %v9480_v0, 0.0 }
 0x1ed   :  { %14522 = vst [vmem:[#allocation88_spill] sm:$0xff] %v9678_v8  ;;  %v2339_v52 = vpop.f32.mrf.mxu1  ;;  %v3350_v56 = vadd.f32 %v3349_v54, %v9633_v57  ;;  %v3498_v13 = vmul.f32 %v9657_v24, %v9657_v24  ;;  %14523 = vst [vmem:[#allocation14_spill] sm:$0xff] %v9689_v36  ;;  %v3314_v38 = vadd.f32 %v3313_v45, %v9640_v46  ;;  %v9708_v54 = vmax.f32 %v9492_v44, 0.0 }
 0x1ee   :  { %v9692_v28 = vadd.f32 %v2339_v52, %v9449_v23  ;;  %v9694_v32 = vpop.f32.mrf.mxu0  ;;  %v3630_v39 = vadd.f32 %v3629_v27, %v3491_v7  ;;  %14524 = vst [vmem:[#allocation42_spill] sm:$0xff] %v9698_v14  ;;  %v3594_v18 = vadd.f32 %v3593_v43, %v3494_v17  ;;  %v3499_v63 = vmul.f32 %v9675_v2, %v9675_v2 }
 0x1ef   :  { %v2341_v10 = vpop.f32.mrf.mxu1  ;;  %v3502_v23 = vmul.f32 %v9678_v8, %v9678_v8  ;;  %14525 = vst [vmem:[#allocation15_spill] sm:$0xff] %v9708_v54  ;;  %v3351_v27 = vadd.f32 %v3350_v56, %v9649_v37  ;;  %v9714_v45 = vmax.f32 %v9503_v15, 0.0  ;;  %v3503_v43 = vmul.f32 %v9689_v36, %v9689_v36  ;;  %v14528_v56 = vld [vmem:[#allocation69_spill] sm:$0xff] }
 0x1f0   :  { %v9701_v60 = vadd.f32 %v2341_v10, %v9455_v25  ;;  %v9710_v7 = vpop.f32.mrf.mxu0  ;;  %v3631_v0 = vadd.f32 %v3630_v39, %v3495_v30  ;;  %v3315_v10 = vadd.f32 %v3314_v38, %v9657_v24  ;;  %v3595_v17 = vadd.f32 %v3594_v18, %v3498_v13  ;;  %v14529_v30 = vld [vmem:[#allocation52_spill] sm:$0xff]  ;;  %v14582_v24 = vld [vmem:[#allocation22_spill] sm:$0xff] }
 0x1f1   :  { %v2343_v52 = vpop.f32.mrf.mxu1  ;;  %14526 = vst [vmem:[#allocation44_spill] sm:$0xff] %v9714_v45  ;;  %v9723_v44 = vmax.f32 %v9516_v61, 0.0  ;;  %v3506_v15 = vmul.f32 %v9698_v14, %v9698_v14  ;;  %v9734_v13 = vmax.f32 %v9543_v40, 0.0  ;;  %v14531_v61 = vld [vmem:[#allocation71_spill] sm:$0xff] }
 0x1f2   :  { %v9717_v25 = vadd.f32 %v2343_v52, %v9461_v19  ;;  %v9725_v46 = vpop.f32.mrf.mxu0  ;;  %2925 = vmatmul.mubr.bf16.gmra.mxu0 %v14528_v56  ;;  %v3352_v19 = vadd.f32 %v3351_v27, %v9675_v2  ;;  %v3632_v38 = vadd.f32 %v3631_v0, %v3499_v63  ;;  %v3316_v18 = vadd.f32 %v3315_v10, %v9678_v8 }
 0x1f3   :  { %14527 = vst [vmem:[#allocation90_spill] sm:$0xff] %v9723_v44  ;;  %v2347_v57 = vpop.f32.mrf.mxu1  ;;  %6481 = vmatmul.mubr.msk.bf16.gmra.mxu1 %vm1585_vm0, %v14529_v30  ;;  %14530 = vst [vmem:[#allocation91_spill] sm:$0xff] %v9734_v13  ;;  %2934 = vmatprep.mubr.bf16.mxu0 %v14531_v61  ;;  %v3596_v52 = vadd.f32 %v3595_v17, %v3502_v23  ;;  %v3507_v27 = vmul.f32 %v9708_v54, %v9708_v54  ;;  %v9753_v61 = vmax.f32 %v9567_v29, 0.0 }
 0x1f4   :  { %v9737_v39 = vadd.f32 %v2347_v57, %v9472_v51  ;;  %3047 = vmatprep.mubr.bf16.mxu1 %v14500_v62  ;;  %v9744_v30 = vpop.f32.mrf.mxu0  ;;  %v3353_v40 = vadd.f32 %v3352_v19, %v9689_v36  ;;  %v3510_v51 = vmul.f32 %v9714_v45, %v9714_v45  ;;  %v9750_v57 = vmax.f32 %v9560_v21, 0.0 }
 0x1f5   :  { %v2349_v56 = vpop.f32.mrf.mxu1  ;;  %14533 = vst [vmem:[#allocation45_spill] sm:$0xff] %v9753_v61  ;;  %v3633_v63 = vadd.f32 %v3632_v38, %v3503_v43  ;;  %v3317_v23 = vadd.f32 %v3316_v18, %v9698_v14  ;;  %v3511_v0 = vmul.f32 %v9723_v44, %v9723_v44  ;;  %v3597_v36 = vadd.f32 %v3596_v52, %v3506_v15 }
 0x1f6   :  { %14532 = vst [vmem:[#allocation16_spill] sm:$0xff] %v9750_v57  ;;  %v9759_v10 = vadd.f32 %v2349_v56, %v9486_v50  ;;  %v9761_v19 = vpop.f32.mrf.mxu0  ;;  %v3514_v21 = vmul.f32 %v9734_v13, %v9734_v13  ;;  %v9766_v2 = vmax.f32 %v9584_v55, 0.0  ;;  %v3354_v43 = vadd.f32 %v3353_v40, %v9708_v54 }
 0x1f7   :  { %v2351_v17 = vpop.f32.mrf.mxu1  ;;  %v3634_v38 = vadd.f32 %v3633_v63, %v3507_v27  ;;  %v3318_v18 = vadd.f32 %v3317_v23, %v9714_v45  ;;  %v9774_v50 = vmax.f32 %v9604_v41, 0.0  ;;  %v3598_v15 = vadd.f32 %v3597_v36, %v3510_v51  ;;  %v14537_v36 = vld [vmem:[#allocation74_spill] sm:$0xff]  ;;  %v14538_v51 = vld [vmem:[#allocation55_spill] sm:$0xff] }
 0x1f8   :  { %14534 = vst [vmem:[#allocation17_spill] sm:$0xff] %v9766_v2  ;;  %v9769_v29 = vadd.f32 %v2351_v17, %v9500_v1  ;;  %v9776_v37 = vpop.f32.mrf.mxu0  ;;  %v3515_v52 = vmul.f32 %v9750_v57, %v9750_v57  ;;  %v3518_v55 = vmul.f32 %v9753_v61, %v9753_v61  ;;  %v3355_v27 = vadd.f32 %v3354_v43, %v9723_v44 }
 0x1f9   :  { %14535 = vst [vmem:[#allocation47_spill] sm:$0xff] %v9774_v50  ;;  %v2353_v56 = vpop.f32.mrf.mxu1  ;;  %v3635_v40 = vadd.f32 %v3634_v38, %v3511_v0  ;;  %v3319_v63 = vadd.f32 %v3318_v18, %v9734_v13  ;;  %v9788_v41 = vmax.f32 %v9625_v42, 0.0  ;;  %v3599_v54 = vadd.f32 %v3598_v15, %v3514_v21  ;;  %v14540_v38 = vld [vmem:[#allocation29_spill] sm:$0xff] }
 0x1fa   :  { %v9783_v1 = vadd.f32 %v2353_v56, %v9513_v35  ;;  %v9790_v17 = vpop.f32.mrf.mxu0  ;;  %2935 = vmatmul.mubr.bf16.gmra.mxu0 %v14537_v36  ;;  %v3519_v35 = vmul.f32 %v9766_v2, %v9766_v2  ;;  %v9798_v43 = vmax.f32 %v9636_v4, 0.0  ;;  %v3356_v42 = vadd.f32 %v3355_v27, %v9750_v57 }
 0x1fb   :  { %14536 = vst [vmem:[#allocation93_spill] sm:$0xff] %v9788_v41  ;;  %v2357_v23 = vpop.f32.mrf.mxu1  ;;  %6482 = vmatmul.mubr.msk.bf16.gmra.mxu1 %vm1585_vm0, %v14538_v51  ;;  %2944 = vmatprep.mubr.bf16.mxu0 %v14540_v38  ;;  %v3522_v18 = vmul.f32 %v9774_v50, %v9774_v50  ;;  %v9807_v56 = vmax.f32 %v9652_v11, 0.0  ;;  %v3636_v36 = vadd.f32 %v3635_v40, %v3515_v52  ;;  %v9819_v38 = vmax.f32 %v9692_v28, 0.0 }
 0x1fc   :  { %14539 = vst [vmem:[#allocation94_spill] sm:$0xff] %v9798_v43  ;;  %v2358_v0 = vadd.f32 %v2357_v23, %v9530_v20  ;;  %3057 = vmatprep.mubr.bf16.mxu1 %v14500_v62  ;;  %v9809_v15 = vpop.f32.mrf.mxu0  ;;  %v3320_v4 = vadd.f32 %v3319_v63, %v9753_v61  ;;  %v3600_v51 = vadd.f32 %v3599_v54, %v3518_v55  ;;  %v9813_v20 = vmax.f32 %v9667_v48, 0.0 }
 0x1fd   :  { %14541 = vst [vmem:[#allocation19_spill] sm:$0xff] %v9807_v56  ;;  %v2359_v21 = vpop.f32.mrf.mxu1  ;;  %v3357_v23 = vadd.f32 %v3356_v42, %v9766_v2  ;;  %v3523_v27 = vmul.f32 %v9788_v41, %v9788_v41  ;;  %14543 = vst [vmem:[#allocation21_spill] sm:$0xff] %v9819_v38  ;;  %v3637_v52 = vadd.f32 %v3636_v36, %v3519_v35  ;;  %v9827_v48 = vmax.f32 %v9701_v60, 0.0  ;;  %v14547_v2 = vld [vmem:[#allocation31_spill] sm:$0xff] }
 0x1fe   :  { %14542 = vst [vmem:[#allocation48_spill] sm:$0xff] %v9813_v20  ;;  %v2360_v11 = vadd.f32 %v2359_v21, %v9549_v59  ;;  %v9822_v44 = vpop.f32.mrf.mxu0  ;;  %v3526_v54 = vmul.f32 %v9798_v43, %v9798_v43  ;;  %v3321_v40 = vadd.f32 %v3320_v4, %v9774_v50  ;;  %v3601_v63 = vadd.f32 %v3600_v51, %v3522_v18 }
 0x1ff   :  { %v2361_v57 = vpop.f32.mrf.mxu1  ;;  %14544 = vst [vmem:[#allocation50_spill] sm:$0xff] %v9827_v48  ;;  %v3527_v28 = vmul.f32 %v9807_v56, %v9807_v56  ;;  %v9834_v59 = vmax.f32 %v9717_v25, 0.0  ;;  %v3358_v35 = vadd.f32 %v3357_v23, %v9788_v41  ;;  %v3530_v60 = vmul.f32 %v9813_v20, %v9813_v20  ;;  %v14548_v23 = vld [vmem:[#allocation61_spill] sm:$0xff] }
 0x200   :  { %v2362_v55 = vadd.f32 %v2361_v57, %v9564_v3  ;;  %v9836_v21 = vpop.f32.mrf.mxu0  ;;  %v9842_v36 = vmax.f32 %v9737_v39, 0.0  ;;  %v3638_v57 = vadd.f32 %v3637_v52, %v3523_v27  ;;  %v3322_v18 = vadd.f32 %v3321_v40, %v9798_v43  ;;  %v14550_v52 = vld [vmem:[#allocation33_spill] sm:$0xff] }
 0x201   :  { %14545 = vst [vmem:[#allocation96_spill] sm:$0xff] %v9834_v59  ;;  %v2363_v42 = vpop.f32.mrf.mxu1  ;;  %v3531_v25 = vmul.f32 %v9819_v38, %v9819_v38  ;;  %v3602_v41 = vadd.f32 %v3601_v63, %v3526_v54  ;;  %v3534_v39 = vmul.f32 %v9827_v48, %v9827_v48  ;;  %v3359_v40 = vadd.f32 %v3358_v35, %v9807_v56 }
 0x202   :  { %14546 = vst [vmem:[#allocation23_spill] sm:$0xff] %v9842_v36  ;;  %v2364_v3 = vadd.f32 %v2363_v42, %v9581_v58  ;;  %v9848_v51 = vpop.f32.mrf.mxu0  ;;  %2945 = vmatmul.mubr.bf16.gmra.mxu0 %v14547_v2  ;;  %v9856_v58 = vmax.f32 %v9769_v29, 0.0  ;;  %v3639_v42 = vadd.f32 %v3638_v57, %v3527_v28  ;;  %v3323_v2 = vadd.f32 %v3322_v18, %v9813_v20  ;;  %v14553_v18 = vld [vmem:[#allocation65_spill] sm:$0xff] }
 0x203   :  { %v2367_v4 = vpop.f32.mrf.mxu1  ;;  %6483 = vmatmul.mubr.msk.bf16.gmra.mxu1 %vm1585_vm0, %v14548_v23  ;;  %2954 = vmatprep.mubr.bf16.mxu0 %v14550_v52  ;;  %v3535_v54 = vmul.f32 %v9834_v59, %v9834_v59  ;;  %v3603_v43 = vadd.f32 %v3602_v41, %v3530_v60  ;;  %v3538_v29 = vmul.f32 %v9842_v36, %v9842_v36  ;;  %v9882_v60 = vmax.f32 %v9783_v1, 0.0 }
 0x204   :  { %14549 = vst [vmem:[#allocation51_spill] sm:$0xff] %v9856_v58  ;;  %v2368_v27 = vadd.f32 %v2367_v4, %v9192_v34  ;;  %3067 = vmatprep.mubr.bf16.mxu1 %v14500_v62  ;;  %v9865_v23 = vpop.f32.mrf.mxu0  ;;  %v9870_v34 = vmax.f32 %v9759_v10, 0.0  ;;  %v9872_v4 = vmax.f32 %v2358_v0, 0.0  ;;  %v3360_v35 = vadd.f32 %v3359_v40, %v9819_v38  ;;  %v14555_v10 = vld [vmem:[#allocation67_spill] sm:$0xff] }
 0x205   :  { %v2369_v63 = vpop.f32.mrf.mxu1  ;;  %v3640_v28 = vadd.f32 %v3639_v42, %v3531_v25  ;;  %v3324_v57 = vadd.f32 %v3323_v2, %v9827_v48  ;;  %v3604_v50 = vadd.f32 %v3603_v43, %v3534_v39  ;;  %v3542_v41 = vmul.f32 %v9856_v58, %v9856_v58  ;;  %14554 = vst [vmem:[#allocation27_spill] sm:$0xff] %v9882_v60  ;;  %v14557_v39 = vld [vmem:[#allocation68_spill] sm:$0xff] }
 0x206   :  { %14551 = vst [vmem:[#allocation25_spill] sm:$0xff] %v9870_v34  ;;  %14552 = vst [vmem:[#allocation53_spill] sm:$0xff] %v9872_v4  ;;  %v2370_v52 = vadd.f32 %v2369_v63, %v14553_v18  ;;  %v9877_v20 = vpop.f32.mrf.mxu0  ;;  %v3361_v61 = vadd.f32 %v3360_v35, %v9834_v59  ;;  %v9887_v42 = vmax.f32 %v2362_v55, 0.0  ;;  %v3539_v43 = vmul.f32 %v9870_v34, %v9870_v34 }
 0x207   :  { %v2371_v56 = vpop.f32.mrf.mxu1  ;;  %v3641_v40 = vadd.f32 %v3640_v28, %v3535_v54  ;;  %v3325_v25 = vadd.f32 %v3324_v57, %v9842_v36  ;;  %v3605_v18 = vadd.f32 %v3604_v50, %v3538_v29  ;;  %v3546_v1 = vmul.f32 %v9872_v4, %v9872_v4  ;;  %v14560_v50 = vld [vmem:[#allocation35_spill] sm:$0xff]  ;;  %v14561_v29 = vld [vmem:[#allocation64_spill] sm:$0xff] }
 0x208   :  { %v2372_v0 = vadd.f32 %v2371_v56, %v14555_v10  ;;  %14556 = vst [vmem:[#allocation54_spill] sm:$0xff] %v9887_v42  ;;  %v9889_v63 = vpop.f32.mrf.mxu0  ;;  %v3362_v56 = vadd.f32 %v3361_v61, %v9870_v34  ;;  %v9898_v35 = vmax.f32 %v2360_v11, 0.0  ;;  %v9900_v55 = vmax.f32 %v2368_v27, 0.0  ;;  %v14563_v34 = vld [vmem:[#allocation37_spill] sm:$0xff] }
 0x209   :  { %v2373_v2 = vpop.f32.mrf.mxu1  ;;  %v3326_v54 = vadd.f32 %v3325_v25, %v9856_v58  ;;  %v3606_v10 = vadd.f32 %v3605_v18, %v3542_v41  ;;  %v3550_v11 = vmul.f32 %v9887_v42, %v9887_v42  ;;  %v9914_v27 = vmax.f32 %v2364_v3, 0.0  ;;  %v14567_v3 = vld [vmem:[#allocation2_spill] sm:$0xff] }
 0x20a   :  { %v2374_v38 = vadd.f32 %v2373_v2, %v14557_v39  ;;  %14558 = vst [vmem:[#allocation56_spill] sm:$0xff] %v9898_v35  ;;  %14559 = vst [vmem:[#allocation60_spill] sm:$0xff] %v9900_v55  ;;  %v9902_v57 = vpop.f32.mrf.mxu0  ;;  %2955 = vmatmul.mubr.bf16.gmra.mxu0 %v14560_v50  ;;  %v3543_v2 = vmul.f32 %v9882_v60, %v9882_v60  ;;  %v14562_v39 = vld [vmem:[#allocation18_spill] sm:$0xff]  ;;  %v9916_v25 = vmax.f32 %v2372_v0, 0.0 }
 0x20b   :  { %v2377_v28 = vpop.f32.mrf.mxu1  ;;  %6484 = vmatmul.mubr.msk.bf16.gmra.mxu1 %vm1585_vm0, %v14561_v29  ;;  %2964 = vmatprep.mubr.bf16.mxu0 %v14563_v34  ;;  %14564 = vst [vmem:[#allocation46_spill] sm:$0xff] %v9914_v27  ;;  %v3642_v41 = vadd.f32 %v3641_v40, %v3539_v43  ;;  %v3363_v18 = vadd.f32 %v3362_v56, %v9882_v60  ;;  %v9932_v43 = vmax.f32 %v2370_v52, 0.0  ;;  %v14569_v56 = vld [vmem:[#allocation20_spill] sm:$0xff] }
 0x20c   :  { %v2378_v61 = vadd.f32 %v2377_v28, %v14562_v39  ;;  %3077 = vmatprep.mubr.bf16.mxu1 %v14500_v62  ;;  %14565 = vst [vmem:[#allocation62_spill] sm:$0xff] %v9916_v25  ;;  %v9918_v59 = vpop.f32.mrf.mxu0  ;;  %v3327_v29 = vadd.f32 %v3326_v54, %v9872_v4  ;;  %v3607_v28 = vadd.f32 %v3606_v10, %v3546_v1  ;;  %v14574_v4 = vld [vmem:[#allocation70_spill] sm:$0xff] }
 0x20d   :  { %v2379_v50 = vpop.f32.mrf.mxu1  ;;  %v3547_v34 = vmul.f32 %v9898_v35, %v9898_v35  ;;  %v3554_v39 = vmul.f32 %v9900_v55, %v9900_v55  ;;  %v3643_v13 = vadd.f32 %v3642_v41, %v3543_v2  ;;  %14568 = vst [vmem:[#allocation49_spill] sm:$0xff] %v9932_v43  ;;  %v3364_v54 = vadd.f32 %v3363_v18, %v9898_v35 }
 0x20e   :  { %v9926_v58 = vmax.f32 %v2378_v61, 0.0  ;;  %v2380_v0 = vadd.f32 %v2379_v50, %v14567_v3  ;;  %v9929_v48 = vpop.f32.mrf.mxu0  ;;  %v3328_v40 = vadd.f32 %v3327_v29, %v9887_v42  ;;  %v3608_v10 = vadd.f32 %v3607_v28, %v3550_v11  ;;  %v14572_v29 = vld [vmem:[#allocation3_spill] sm:$0xff] }
 0x20f   :  { %v2381_v36 = vpop.f32.mrf.mxu1  ;;  %v3551_v60 = vmul.f32 %v9914_v27, %v9914_v27  ;;  %v3558_v61 = vmul.f32 %v9916_v25, %v9916_v25  ;;  %v9943_v41 = vmax.f32 %v2374_v38, 0.0  ;;  %v14573_v42 = vld [vmem:[#allocation39_spill] sm:$0xff] }
 0x210   :  { %14566 = vst [vmem:[#allocation63_spill] sm:$0xff] %v9926_v58  ;;  %v2382_v1 = vadd.f32 %v2381_v36, %v14569_v56  ;;  %v9940_v3 = vpop.f32.mrf.mxu0  ;;  %v3329_v2 = vadd.f32 %v3328_v40, %v9900_v55  ;;  %v3644_v56 = vadd.f32 %v3643_v13, %v3547_v34  ;;  %v3609_v18 = vadd.f32 %v3608_v10, %v3554_v39  ;;  %v14575_v40 = vld [vmem:[#allocation57_spill] sm:$0xff]  ;;  %v14577_v34 = vld [vmem:[#allocation72_spill] sm:$0xff] }
 0x211   :  { %v2383_v50 = vpop.f32.mrf.mxu1  ;;  %14570 = vst [vmem:[#allocation66_spill] sm:$0xff] %v9943_v41  ;;  %v3562_v11 = vmul.f32 %v9926_v58, %v9926_v58  ;;  %v9956_v38 = vsub.s32 2, %v14575_v40  ;;  %v14578_v10 = vld [vmem:[#allocation41_spill] sm:$0xff] }
 0x212   :  { %v9945_v52 = vmax.f32 %v2382_v1, 0.0  ;;  %v2384_v36 = vadd.f32 %v2383_v50, %v14572_v29  ;;  %v9950_v35 = vpop.f32.mrf.mxu0  ;;  %2965 = vmatmul.mubr.bf16.gmra.mxu0 %v14573_v42  ;;  %v3555_v1 = vmul.f32 %v9932_v43, %v9932_v43  ;;  %v3330_v13 = vadd.f32 %v3329_v2, %v9916_v25 }
 0x213   :  { %v2387_v28 = vpop.f32.mrf.mxu1  ;;  %6485 = vmatmul.mubr.msk.bf16.gmra.mxu1 %vm1585_vm0, %v14574_v4  ;;  %14576 = vst [vmem:[#allocation52_spill] sm:$0xff] %v9956_v38  ;;  %2974 = vmatprep.mubr.bf16.mxu0 %v14578_v10  ;;  %v3365_v50 = vadd.f32 %v3364_v54, %v9914_v27  ;;  %v3610_v42 = vadd.f32 %v3609_v18, %v3558_v61  ;;  %v9965_v29 = vmax.f32 %v2380_v0, 0.0  ;;  %v14581_v0 = vld [vmem:[#allocation73_spill] sm:$0xff] }
 0x214   :  { %14571 = vst [vmem:[#allocation69_spill] sm:$0xff] %v9945_v52  ;;  %v2388_v39 = vadd.f32 %v2387_v28, %v14577_v34  ;;  %3087 = vmatprep.mubr.bf16.mxu1 %v14500_v62  ;;  %v3566_v4 = vmul.f32 %v9945_v52, %v9945_v52  ;;  %v9969_v45 = vpop.f32.mrf.mxu0  ;;  %v3645_v14 = vadd.f32 %v3644_v56, %v3551_v60  ;;  %v9977_v61 = vmax.f32 %v2384_v36, 0.0 }
 0x215   :  { %14579 = vst [vmem:[#allocation71_spill] sm:$0xff] %v9965_v29  ;;  %v2389_v55 = vpop.f32.mrf.mxu1  ;;  %v3559_v2 = vmul.f32 %v9943_v41, %v9943_v41  ;;  %v3331_v28 = vadd.f32 %v3330_v13, %v9926_v58  ;;  %v3366_v10 = vadd.f32 %v3365_v50, %v9932_v43  ;;  %v3611_v54 = vadd.f32 %v3610_v42, %v3562_v11  ;;  %v14590_v58 = vld [vmem:[#allocation5_spill] sm:$0xff] }
 0x216   :  { %v9974_v34 = vmax.f32 %v2388_v39, 0.0  ;;  %14580 = vst [vmem:[#allocation74_spill] sm:$0xff] %v9977_v61  ;;  %v2390_v18 = vadd.f32 %v2389_v55, %v14581_v0  ;;  %v9980_v25 = vpop.f32.mrf.mxu0  ;;  %v3646_v8 = vadd.f32 %v3645_v14, %v3555_v1  ;;  %v3563_v11 = vmul.f32 %v9965_v29, %v9965_v29 }
 0x217   :  { %v2391_v27 = vpop.f32.mrf.mxu1  ;;  %v3332_v60 = vadd.f32 %v3331_v28, %v9945_v52  ;;  %v3367_v39 = vadd.f32 %v3366_v10, %v9943_v41  ;;  %v3612_v36 = vadd.f32 %v3611_v54, %v3566_v4  ;;  %v14584_v28 = vld [vmem:[#allocation4_spill] sm:$0xff]  ;;  %v14585_v54 = vld [vmem:[#allocation43_spill] sm:$0xff] }
 0x218   :  { %v3570_v56 = vmul.f32 %v9974_v34, %v9974_v34  ;;  %v2392_v13 = vadd.f32 %v2391_v27, %v14582_v24  ;;  %v9989_v50 = vmax.f32 %v2390_v18, 0.0  ;;  %v9991_v42 = vpop.f32.mrf.mxu0  ;;  %v3647_v0 = vadd.f32 %v3646_v8, %v3559_v2  ;;  %v14586_v18 = vld [vmem:[#allocation75_spill] sm:$0xff] }
 0x219   :  { %v2393_v55 = vpop.f32.mrf.mxu1  ;;  %v3333_v14 = vadd.f32 %v3332_v60, %v9974_v34  ;;  %v3368_v24 = vadd.f32 %v3367_v39, %v9965_v29  ;;  %v3567_v27 = vmul.f32 %v9977_v61, %v9977_v61 }
 0x21a   :  { %14583 = vst [vmem:[#allocation55_spill] sm:$0xff] %v9989_v50  ;;  %v9994_v1 = vmax.f32 %v2392_v13, 0.0  ;;  %v2394_v43 = vadd.f32 %v2393_v55, %v14584_v28  ;;  %v3613_v10 = vadd.f32 %v3612_v36, %v3570_v56  ;;  %v10000_v4 = vpop.f32.mrf.mxu0  ;;  %2975 = vmatmul.mubr.bf16.gmra.mxu0 %v14585_v54  ;;  %v14588_v13 = vld [vmem:[#allocation24_spill] sm:$0xff]  ;;  %v7231_v56 = vld [vmem:[%s14067_s2] sm:$0xf]  ;;  %v10019_v55 = vsub.s32 3, %v14575_v40 }
 0x21b   :  { %v2397_v41 = vpop.f32.mrf.mxu1  ;;  %6486 = vmatmul.mubr.msk.bf16.gmra.mxu1 %vm1585_vm0, %v14586_v18  ;;  %v10016_v36 = vrot.slane %v7231_v56, %v9956_v38  ;;  %v3571_v28 = vmul.f32 %v9989_v50, %v9989_v50 }
 0x21c   :  { %v3334_v8 = vadd.f32 %v3333_v14, %v9994_v1  ;;  %v3574_v2 = vmul.f32 %v9994_v1, %v9994_v1  ;;  %v10008_v60 = vmax.f32 %v2394_v43, 0.0  ;;  %v2398_v39 = vadd.f32 %v2397_v41, %v14588_v13  ;;  %3097 = vmatprep.mubr.bf16.mxu1 %v14500_v62  ;;  %14589 = vst [vmem:[#allocation31_spill] sm:$0xff] %v10019_v55  ;;  %v10023_v54 = vpop.f32.mrf.mxu0 }
 0x21d   :  { %v3648_v14 = vadd.f32 %v3647_v0, %v3563_v11  ;;  %v2399_v43 = vpop.f32.mrf.mxu1  ;;  %v3369_v41 = vadd.f32 %v3368_v24, %v9977_v61  ;;  %v14591_v24 = vld [vmem:[#allocation76_spill] sm:$0xff]  ;;  %v14593_v61 = vld [vmem:[#allocation26_spill] sm:$0xff] }
 0x21e   :  { %14587 = vst [vmem:[#allocation29_spill] sm:$0xff] %v10008_v60  ;;  %v3614_v18 = vadd.f32 %v3613_v10, %v3574_v2  ;;  %v10026_v13 = vmax.f32 %v2398_v39, 0.0  ;;  %v3575_v52 = vmul.f32 %v10008_v60, %v10008_v60  ;;  %v2400_v38 = vadd.f32 %v2399_v43, %v14590_v58  ;;  %v10031_v22 = vpop.f32.mrf.mxu0 }
 0x21f   :  { %v3649_v29 = vadd.f32 %v3648_v14, %v3567_v27  ;;  %v2401_v9 = vpop.f32.mrf.mxu1  ;;  %v3370_v11 = vadd.f32 %v3369_v41, %v9989_v50  ;;  %v2441_v27 = vadd.f32 %v9593_v49, %v10016_v36  ;;  %v10041_v2 = vrot.slane %v7231_v56, %v10019_v55 }
 0x220   :  { %v3335_v0 = vadd.f32 %v3334_v8, %v10026_v13  ;;  %v3578_v26 = vmul.f32 %v10026_v13, %v10026_v13  ;;  %v2402_v10 = vadd.f32 %v2401_v9, %v14591_v24  ;;  %v10043_v58 = vmax.f32 %v2400_v38, 0.0  ;;  %v10045_v43 = vpop.f32.mrf.mxu0 }
 0x221   :  { %v3650_v39 = vadd.f32 %v3649_v29, %v3571_v28  ;;  %v2403_v14 = vpop.f32.mrf.mxu1  ;;  %14592 = vst [vmem:[#allocation61_spill] sm:$0xff] %v10045_v43  ;;  %v3371_v41 = vadd.f32 %v3370_v11, %v10008_v60  ;;  %v14594_v29 = vld [vmem:[#allocation77_spill] sm:$0xff] }
 0x222   :  { %v3615_v8 = vadd.f32 %v3614_v18, %v3578_v26  ;;  %v10048_v50 = vmax.f32 %v2402_v10, 0.0  ;;  %v2404_v12 = vadd.f32 %v2403_v14, %v14593_v61  ;;  %v3579_v49 = vmul.f32 %v10043_v58, %v10043_v58  ;;  %v10053_v24 = vpop.f32.mrf.mxu0 }
 0x223   :  { %v3651_v9 = vadd.f32 %v3650_v39, %v3575_v52  ;;  %v2633_v56 = vpop.f32.mrf.mxu1  ;;  %6487 = vmatmul.mubr.msk.bf16.gmra.mxu1 %vm1585_vm0, %v14594_v29  ;;  %v3372_v38 = vadd.f32 %v3371_v41, %v10043_v58  ;;  %v2443_v52 = vadd.f32 %v9612_v47, %v10041_v2 }
 0x224   :  { %v3336_v28 = vadd.f32 %v3335_v0, %v10048_v50  ;;  %v3582_v26 = vmul.f32 %v10048_v50, %v10048_v50  ;;  %v10061_v18 = vmax.f32 %v2404_v12, 0.0  ;;  %3107 = vmatprep.mubr.bf16.mxu1 %v14500_v62  ;;  %v10066_v11 = vadd.f32 %v2633_v56, %v2441_v27  ;;  %v10068_v10 = vpop.f32.mrf.mxu0 }
 0x225   :  { %v3652_v61 = vadd.f32 %v3651_v9, %v3579_v49  ;;  %v2635_v39 = vpop.f32.mrf.mxu1  ;;  %v2445_v12 = vadd.f32 %v9627_v5, %v10016_v36 }
 0x226   :  { %v3337_v14 = vrot.slane %v3336_v28, 4  ;;  %v3616_v41 = vadd.f32 %v3615_v8, %v3582_v26  ;;  %v3373_v0 = vadd.f32 %v3372_v38, %v10061_v18  ;;  %v3583_v29 = vmul.f32 %v10061_v18, %v10061_v18  ;;  %v10077_v55 = vpop.f32.mrf.mxu0 }
 0x227   :  { %v10075_v60 = vadd.f32 %v2635_v39, %v2443_v52  ;;  %v2637_v47 = vpop.f32.mrf.mxu1  ;;  %v2447_v8 = vadd.f32 %v9642_v53, %v10041_v2  ;;  %v2451_v38 = vadd.f32 %v9659_v6, %v10016_v36 }
 0x228   :  { %v3338_v27 = vadd.f32 %v3337_v14, %v3336_v28  ;;  %v3617_v9 = vrot.slane %v3616_v41, 4  ;;  %v3374_v49 = vrot.slane %v3373_v0, 4  ;;  %v3653_v56 = vadd.f32 %v3652_v61, %v3583_v29  ;;  %v10085_v16 = vpop.f32.mrf.mxu0  ;;  %v14597_v14 = vld [vmem:[#allocation80_spill] sm:$0xff] }
 0x229   :  { %v10083_v26 = vadd.f32 %v2637_v47, %v2445_v12  ;;  %v2639_v5 = vpop.f32.mrf.mxu1  ;;  %v2453_v47 = vadd.f32 %v9680_v33, %v10041_v2 }
 0x22a   :  { %v3339_v52 = vrot.slane %v3338_v27, 2  ;;  %v3618_v39 = vadd.f32 %v3617_v9, %v3616_v41  ;;  %v3375_v31 = vadd.f32 %v3374_v49, %v3373_v0  ;;  %v3654_v40 = vrot.slane %v3653_v56, 4  ;;  %v10089_v28 = vpop.f32.mrf.mxu0 }
 0x22b   :  { %14595 = vst [vmem:[#allocation33_spill] sm:$0xff] %v10083_v26  ;;  %v10087_v43 = vadd.f32 %v2639_v5, %v2447_v8  ;;  %v2643_v61 = vpop.f32.mrf.mxu1  ;;  %6488 = vmatmul.mubr.msk.bf16.gmra.mxu1 %vm1585_vm0, %v14597_v14 }
 0x22c   :  { %v3340_v53 = vadd.f32 %v3339_v52, %v3338_v27  ;;  %v3619_v29 = vrot.slane %v3618_v39, 2  ;;  %v3376_v6 = vrot.slane %v3375_v31, 2  ;;  %v3655_v12 = vadd.f32 %v3654_v40, %v3653_v56  ;;  %3117 = vmatprep.mubr.bf16.mxu1 %v14500_v62  ;;  %v10098_v0 = vpop.f32.mrf.mxu0 }
 0x22d   :  { %14596 = vst [vmem:[#allocation65_spill] sm:$0xff] %v10087_v43  ;;  %v10096_v41 = vadd.f32 %v2643_v61, %v2451_v38  ;;  %v2645_v9 = vpop.f32.mrf.mxu1  ;;  %v2455_v27 = vadd.f32 %v9694_v32, %v10016_v36  ;;  %v2457_v61 = vadd.f32 %v9710_v7, %v10041_v2 }
 0x22e   :  { %v3341_v49 = vrot.slane %v3340_v53, 1  ;;  %v3620_v8 = vadd.f32 %v3619_v29, %v3618_v39  ;;  %v3377_v5 = vadd.f32 %v3376_v6, %v3375_v31  ;;  %v3656_v43 = vrot.slane %v3655_v12, 2  ;;  %v10104_v40 = vpop.f32.mrf.mxu0 }
 0x22f   :  { %14598 = vst [vmem:[#allocation67_spill] sm:$0xff] %v10096_v41  ;;  %v10102_v52 = vadd.f32 %v2645_v9, %v2453_v47  ;;  %v2647_v56 = vpop.f32.mrf.mxu1  ;;  %v2461_v39 = vadd.f32 %v9725_v46, %v10016_v36 }
 0x230   :  { %v3342_v14 = vadd.f32 %v3341_v49, %v3340_v53  ;;  %v3621_v26 = vrot.slane %v3620_v8, 1  ;;  %v3378_v33 = vrot.slane %v3377_v5, 1  ;;  %v3657_v38 = vadd.f32 %v3656_v43, %v3655_v12  ;;  %v10112_v29 = vpop.f32.mrf.mxu0  ;;  %v14602_v12 = vld [vmem:[#allocation83_spill] sm:$0xff] }
 0x231   :  { %14599 = vst [vmem:[#allocation68_spill] sm:$0xff] %v10102_v52  ;;  %v10110_v31 = vadd.f32 %v2647_v56, %v2455_v27  ;;  %v2649_v32 = vpop.f32.mrf.mxu1 }
 0x232   :  { %v10114_v6 = vmul.f32 0.00390625, %v3342_v14  ;;  %v3622_v47 = vadd.f32 %v3621_v26, %v3620_v8  ;;  %v3379_v9 = vadd.f32 %v3378_v33, %v3377_v5  ;;  %v3658_v52 = vrot.slane %v3657_v38, 1  ;;  %v10118_v49 = vpop.f32.mrf.mxu0 }
 0x233   :  { %14600 = vst [vmem:[#allocation35_spill] sm:$0xff] %v10110_v31  ;;  %v10116_v53 = vadd.f32 %v2649_v32, %v2457_v61  ;;  %v2653_v43 = vpop.f32.mrf.mxu1  ;;  %6489 = vmatmul.mubr.msk.bf16.gmra.mxu1 %vm1585_vm0, %v14602_v12  ;;  %v2463_v26 = vadd.f32 %v9744_v30, %v10041_v2  ;;  %v2465_v33 = vadd.f32 %v9761_v19, %v10016_v36 }
 0x234   :  { %v3734_v7 = vmul.f32 0.00390625, %v3622_v47  ;;  %v3738_v46 = vmul.f32 %v10114_v6, %v10114_v6  ;;  %v10124_v27 = vmul.f32 0.00390625, %v3379_v9  ;;  %v3659_v56 = vadd.f32 %v3658_v52, %v3657_v38  ;;  %3127 = vmatprep.mubr.bf16.mxu1 %v14500_v62  ;;  %v10131_v5 = vpop.f32.mrf.mxu0 }
 0x235   :  { %14601 = vst [vmem:[#allocation64_spill] sm:$0xff] %v10116_v53  ;;  %v10129_v8 = vadd.f32 %v2653_v43, %v2461_v39  ;;  %v2655_v14 = vpop.f32.mrf.mxu1  ;;  %v2467_v52 = vadd.f32 %v9776_v37, %v10041_v2  ;;  %v2471_v39 = vadd.f32 %v9790_v17, %v10016_v36  ;;  %v2473_v17 = vadd.f32 %v9809_v15, %v10041_v2 }
 0x236   :  { %v3742_v61 = vsub.f32 %v3734_v7, %v3738_v46  ;;  %v3735_v32 = vmul.f32 0.00390625, %v3659_v56  ;;  %v3739_v47 = vmul.f32 %v10124_v27, %v10124_v27  ;;  %v10139_v38 = vadd.f32 %v2655_v14, %v2463_v26  ;;  %v10141_v9 = vpop.f32.mrf.mxu0  ;;  %v14607_v14 = vld [vmem:[#allocation86_spill] sm:$0xff] }
 0x237   :  { %14603 = vst [vmem:[#allocation18_spill] sm:$0xff] %v10129_v8  ;;  %v2657_v30 = vpop.f32.mrf.mxu1  ;;  %v2477_v15 = vadd.f32 %v9836_v21, %v10041_v2  ;;  %v2483_v21 = vadd.f32 %v9865_v23, %v10041_v2 }
 0x238   :  { %14604 = vst [vmem:[#allocation37_spill] sm:$0xff] %v10139_v38  ;;  %v3746_v43 = vmax.f32 %v3742_v61, 0.0  ;;  %v3743_v12 = vsub.f32 %v3735_v32, %v3739_v47  ;;  %v10145_v8 = vadd.f32 %v2657_v30, %v2465_v33  ;;  %v10147_v19 = vpop.f32.mrf.mxu0  ;;  %v2475_v47 = vadd.f32 %v9822_v44, %v10016_v36  ;;  %v3758_v44 = vld [vmem:[%s14068_s3] sm:$0xf] }
 0x239   :  { %v2659_v7 = vpop.f32.mrf.mxu1 }
 0x23a   :  { %14605 = vst [vmem:[#allocation2_spill] sm:$0xff] %v10145_v8  ;;  %v3750_v46 = vadd.f32 1e-05, %v3746_v43  ;;  %v3747_v56 = vmax.f32 %v3743_v12, 0.0  ;;  %v10149_v53 = vadd.f32 %v2659_v7, %v2467_v52  ;;  %v10151_v37 = vpop.f32.mrf.mxu0  ;;  %v14617_v8 = vld [vmem:[#allocation92_spill] sm:$0xff] }
 0x23b   :  { %v2663_v26 = vpop.f32.mrf.mxu1  ;;  %6490 = vmatmul.mubr.msk.bf16.gmra.mxu1 %vm1585_vm0, %v14607_v14 }
 0x23c   :  { %14606 = vst [vmem:[#allocation20_spill] sm:$0xff] %v10149_v53  ;;  %7217 = vrsqrt.f32 %v3750_v46  ;;  %v10157_v61 = vadd.f32 %v2663_v26, %v2471_v39  ;;  %3137 = vmatprep.mubr.bf16.mxu1 %v14500_v62  ;;  %v10160_v33 = vpop.f32.mrf.mxu0  ;;  %v3751_v52 = vadd.f32 1e-05, %v3747_v56  ;;  %v2481_v39 = vadd.f32 %v9848_v51, %v10016_v36 }
 0x23d   :  { %v2665_v32 = vpop.f32.mrf.mxu1 }
 0x23e   :  { %14608 = vst [vmem:[#allocation3_spill] sm:$0xff] %v10157_v61  ;;  %v10164_v30 = vadd.f32 %v2665_v32, %v2473_v17  ;;  %v10166_v43 = vpop.f32.mrf.mxu0  ;;  %7219 = vrsqrt.f32 %v3751_v52  ;;  %v14612_v32 = vld [vmem:[#allocation89_spill] sm:$0xff] }
 0x23f   :  { %v2667_v12 = vpop.f32.mrf.mxu1 }
 0x240   :  { %14609 = vst [vmem:[#allocation39_spill] sm:$0xff] %v10164_v30  ;;  %v10172_v7 = vadd.f32 %v2667_v12, %v2475_v47  ;;  %v10174_v46 = vpop.f32.mrf.mxu0  ;;  %v2485_v12 = vadd.f32 %v9877_v20, %v10016_v36 }
 0x241   :  { %v2669_v26 = vpop.f32.mrf.mxu1 }
 0x242   :  { %14610 = vst [vmem:[#allocation70_spill] sm:$0xff] %v10172_v7  ;;  %v10176_v14 = vadd.f32 %v2669_v26, %v2477_v15  ;;  %v10181_v56 = vpop.f32.mrf.mxu0  ;;  %v14614_v15 = vld [vmem:[#allocation58_spill] sm:$0xff] }
 0x243   :  { %v2673_v17 = vpop.f32.mrf.mxu1  ;;  %6491 = vmatmul.mubr.msk.bf16.gmra.mxu1 %vm1585_vm0, %v14612_v32  ;;  %v3763_v26 = vrot.slane %v3758_v44, %v14614_v15 }
 0x244   :  { %14611 = vst [vmem:[#allocation72_spill] sm:$0xff] %v10176_v14  ;;  %v10187_v51 = vadd.f32 %v2673_v17, %v2481_v39  ;;  %3147 = vmatprep.mubr.bf16.mxu1 %v14500_v62  ;;  %v10190_v47 = vpop.f32.mrf.mxu0  ;;  %v2491_v39 = vadd.f32 %v9902_v57, %v10016_v36 }
 0x245   :  { %v2675_v52 = vpop.f32.mrf.mxu1 }
 0x246   :  { %14613 = vst [vmem:[#allocation41_spill] sm:$0xff] %v10187_v51  ;;  %v10195_v14 = vadd.f32 %v2675_v52, %v2483_v21  ;;  %v10197_v7 = vpop.f32.mrf.mxu0 }
 0x247   :  { %v2677_v32 = vpop.f32.mrf.mxu1 }
 0x248   :  { %14615 = vst [vmem:[#allocation73_spill] sm:$0xff] %v10195_v14  ;;  %v10199_v30 = vadd.f32 %v2677_v32, %v2485_v12  ;;  %v10203_v17 = vpop.f32.mrf.mxu0 }
 0x249   :  { %v7218_v23 = vpop.eup %7217  ;;  %v10205_v51 = vpop.f32.mrf.mxu1 }
 0x24a   :  { %14616 = vst [vmem:[#allocation22_spill] sm:$0xff] %v10199_v30  ;;  %v3780_v61 = vmul.f32 %v7218_v23, %v3763_v26  ;;  %v10207_v53 = vpop.f32.mrf.mxu0  ;;  %v14622_v23 = vld [vmem:[#allocation59_spill] sm:$0xff] }
 0x24b   :  { %v2683_v20 = vpop.f32.mrf.mxu1  ;;  %6492 = vmatmul.mubr.msk.bf16.gmra.mxu1 %vm1585_vm0, %v14617_v8  ;;  %v3767_v30 = vrot.slane %v3758_v44, %v14622_v23  ;;  %v7220_v8 = vpop.eup %7219  ;;  %v2495_v44 = vadd.f32 %v9929_v48, %v10016_v36 }
 0x24c   :  { %v10212_v21 = vmul.f32 %v3780_v61, %v10114_v6  ;;  %v10215_v52 = vrot.slane %v3780_v61, %v14614_v15  ;;  %3157 = vmatprep.mubr.bf16.mxu1 %v14500_v62  ;;  %v10218_v57 = vadd.f32 %v2683_v20, %v2491_v39  ;;  %v10220_v12 = vpop.f32.mrf.mxu0 }
 0x24d   :  { %v2685_v32 = vpop.f32.mrf.mxu1  ;;  %v3781_v31 = vmul.f32 %v7220_v8, %v3767_v30 }
 0x24e   :  { %14618 = vst [vmem:[#allocation4_spill] sm:$0xff] %v10212_v21  ;;  %14619 = vst [vmem:[#allocation43_spill] sm:$0xff] %v10215_v52  ;;  %v10224_v26 = vmul.f32 %v10215_v52, %v10048_v50  ;;  %v10227_v14 = vpop.f32.mrf.mxu0  ;;  %v2493_v50 = vadd.f32 %v9918_v59, %v10041_v2  ;;  %v10248_v30 = vmul.f32 %v10215_v52, %v9994_v1 }
 0x24f   :  { %14620 = vst [vmem:[#allocation75_spill] sm:$0xff] %v10218_v57  ;;  %v2687_v6 = vpop.f32.mrf.mxu1  ;;  %v14623_v57 = vld [vmem:[#allocation95_spill] sm:$0xff]  ;;  %v10252_v8 = vmul.f32 %v10215_v52, %v10026_v13  ;;  %v10260_v48 = vrot.slane %v3781_v31, %v14614_v15  ;;  %v2505_v15 = vadd.f32 %v9980_v25, %v10016_v36 }
 0x250   :  { %14621 = vst [vmem:[#allocation24_spill] sm:$0xff] %v10224_v26  ;;  %v10229_v38 = vpop.f32.mrf.mxu0  ;;  %v10244_v26 = vmul.f32 %v10215_v52, %v9974_v34  ;;  %14625 = vst [vmem:[#allocation76_spill] sm:$0xff] %v10248_v30  ;;  %v10262_v23 = vadd.f32 %v2685_v32, %v2493_v50  ;;  %v10264_v34 = vadd.f32 %v2687_v6, %v2495_v44  ;;  %v14632_v50 = vld [vmem:[#allocation97_spill] sm:$0xff] }
 0x251   :  { %v10231_v61 = vpop.f32.mrf.mxu1  ;;  %14626 = vst [vmem:[#allocation26_spill] sm:$0xff] %v10252_v8  ;;  %14628 = vst [vmem:[#allocation80_spill] sm:$0xff] %v10260_v48  ;;  %v10272_v8 = vmul.f32 %v10260_v48, %v10061_v18  ;;  %v2501_v6 = vadd.f32 %v9950_v35, %v10016_v36  ;;  %v2511_v18 = vadd.f32 %v10000_v4, %v10016_v36 }
 0x252   :  { %v10233_v39 = vpop.f32.mrf.mxu0  ;;  %14624 = vst [vmem:[#allocation5_spill] sm:$0xff] %v10244_v26  ;;  %14629 = vst [vmem:[#allocation83_spill] sm:$0xff] %v10262_v23  ;;  %v2521_v35 = vadd.f32 %v10053_v24, %v10016_v36  ;;  %v2513_v4 = vadd.f32 %v10023_v54, %v10041_v2  ;;  %v2523_v54 = vadd.f32 %v10068_v10, %v10041_v2 }
 0x253   :  { %v2693_v20 = vpop.f32.mrf.mxu1  ;;  %6493 = vmatmul.mubr.msk.bf16.gmra.mxu1 %vm1585_vm0, %v14623_v57  ;;  %14630 = vst [vmem:[#allocation86_spill] sm:$0xff] %v10264_v34  ;;  %14631 = vst [vmem:[#allocation89_spill] sm:$0xff] %v10272_v8  ;;  %v2503_v8 = vadd.f32 %v9969_v45, %v10041_v2  ;;  %v2515_v45 = vadd.f32 %v10031_v22, %v10016_v36  ;;  %v2531_v10 = vadd.f32 %v10089_v28, %v10016_v36  ;;  %v7100_v28 = vld [vmem:[%s14069_s5 + $0x170] ss:$8 sps:$4 sm:$0xff]  }
 0x254   :  { %3167 = vmatprep.mubr.bf16.mxu1 %v14500_v62  ;;  %v10254_v57 = vpop.f32.mrf.mxu0  ;;  %v10257_v62 = vmul.f32 %v3781_v31, %v10124_v27  ;;  %v10300_v52 = vadd.f32 %v2693_v20, %v2501_v6 }
 0x255   :  { %v2695_v59 = vpop.f32.mrf.mxu1 }
 0x256   :  { %14627 = vst [vmem:[#allocation77_spill] sm:$0xff] %v10257_v62  ;;  %v10266_v26 = vpop.f32.mrf.mxu0  ;;  %14634 = vst [vmem:[#allocation95_spill] sm:$0xff] %v10300_v52  ;;  %v10306_v34 = vadd.f32 %v2695_v59, %v2503_v8 }
 0x257   :  { %v2697_v1 = vpop.f32.mrf.mxu1 }
 0x258   :  { %v10274_v30 = vpop.f32.mrf.mxu0  ;;  %14635 = vst [vmem:[#allocation97_spill] sm:$0xff] %v10306_v34  ;;  %v10308_v25 = vadd.f32 %v2697_v1, %v2505_v15  ;;  %v2525_v1 = vadd.f32 %v10077_v55, %v10016_v36  ;;  %v7097_v55 = vld [vmem:[%s14069_s5 + $0x70] ss:$8 sps:$4 sm:$0xff]  }
 0x259   :  { %v10276_v27 = vpop.f32.mrf.mxu1 }
 0x25a   :  { %v10278_v31 = vpop.f32.mrf.mxu0  ;;  %14636 = vst [vmem:[#allocation98_spill] sm:$0xff] %v10308_v25 }
 0x25b   :  { %v2703_v32 = vpop.f32.mrf.mxu1  ;;  %6494 = vmatmul.mubr.msk.bf16.gmra.mxu1 %vm1585_vm0, %v14632_v50  ;;  %v10296_v50 = vmul.f32 %v10260_v48, %v10043_v58 }
 0x25c   :  { %v10284_v44 = vpop.f32.mrf.mxu0  ;;  %v10314_v58 = vadd.f32 %v2703_v32, %v2511_v18 }
 0x25d   :  { %v2705_v13 = vpop.f32.mrf.mxu1  ;;  %14633 = vst [vmem:[#allocation92_spill] sm:$0xff] %v10296_v50 }
 0x25e   :  { %v10292_v62 = vpop.f32.mrf.mxu0  ;;  %14637 = vst [vmem:[#allocation99_spill] sm:$0xff] %v10314_v58  ;;  %v10316_v50 = vadd.f32 %v2705_v13, %v2513_v4 }
 0x25f   :  { %v2707_v21 = vpop.f32.mrf.mxu1 }
 0x260   :  { %v10310_v23 = vpop.f32.mrf.mxu0  ;;  %14638 = vst [vmem:[#allocation100_spill] sm:$0xff] %v10316_v50  ;;  %v10318_v24 = vadd.f32 %v2707_v21, %v2515_v45 }
 0x261   :  { %v10312_v41 = vpop.f32.mrf.mxu1 }
 0x262   :  { %14639 = vst [vmem:[#allocation101_spill] sm:$0xff] %v10318_v24  ;;  %v2826_v6 = vpop.f32.mrf.mxu0 }
 0x263   :  { %v2713_v20 = vpop.f32.mrf.mxu1  ;;  %v10325_v15 = vadd.f32 %v2826_v6, %v10066_v11  ;;  %v7102_v6 = vld [vmem:[%s14069_s5 + $0x174] ss:$8 sps:$4 sm:$0xff]  }
 0x264   :  { %v10322_v22 = vadd.f32 %v2713_v20, %v2521_v35  ;;  %v2828_v59 = vpop.f32.mrf.mxu0  ;;  %4765 = vmatprep.subr.bf16.mxu1 %v7102_v6 }
 0x265   :  { %v2715_v8 = vpop.f32.mrf.mxu1  ;;  %v10332_v21 = vadd.f32 %v2828_v59, %v10075_v60  ;;  %v7099_v60 = vld [vmem:[%s14069_s5 + $0x74] ss:$8 sps:$4 sm:$0xff]   ;;  %4766 = vmatpush1.bf16.msra.mxu1 %v7100_v28  ;;  %v7106_v28 = vld [vmem:[%s14069_s5 + $0x160] ss:$8 sps:$4 sm:$0xff]  }
 0x266   :  { %14640 = vst [vmem:[#allocation102_spill] sm:$0xff] %v10322_v22  ;;  %v10329_v32 = vadd.f32 %v2715_v8, %v2523_v54  ;;  %v10334_v18 = vpop.f32.mrf.mxu0  ;;  %v2533_v54 = vadd.f32 %v10098_v0, %v10041_v2  ;;  %4572 = vmatprep.subr.bf16.mxu0 %v7099_v60  ;;  %v2541_v0 = vadd.f32 %v10118_v49, %v10016_v36  ;;  %v7103_v60 = vld [vmem:[%s14069_s5 + $0x60] ss:$8 sps:$4 sm:$0xff]   ;;  %v7108_v49 = vld [vmem:[%s14069_s5 + $0x164] ss:$8 sps:$4 sm:$0xff]  }
 0x267   :  { %v2717_v13 = vpop.f32.mrf.mxu1  ;;  %4573 = vmatpush1.bf16.msra.mxu0 %v7097_v55  ;;  %v7105_v55 = vld [vmem:[%s14069_s5 + $0x64] ss:$8 sps:$4 sm:$0xff]   ;;  %4767 = vmatprep.subr.bf16.mxu1 %v7108_v49  ;;  %v7112_v49 = vld [vmem:[%s14069_s5 + $0x150] ss:$8 sps:$4 sm:$0xff]  }
 0x268   :  { %14641 = vst [vmem:[#allocation103_spill] sm:$0xff] %v10329_v32  ;;  %v10338_v35 = vadd.f32 %v2717_v13, %v2525_v1  ;;  %v10342_v4 = vpop.f32.mrf.mxu0  ;;  %v2535_v13 = vadd.f32 %v10104_v40, %v10016_v36  ;;  %4574 = vmatprep.subr.bf16.mxu0 %v7105_v55 }
 0x269   :  { %v10340_v11 = vpop.f32.mrf.mxu1  ;;  %4768 = vmatpush1.bf16.msra.mxu1 %v7106_v28 }
 0x26a   :  { %14642 = vst [vmem:[#allocation104_spill] sm:$0xff] %v10338_v35  ;;  %v10350_v20 = vpop.f32.mrf.mxu0 }
 0x26b   :  { %v2723_v45 = vpop.f32.mrf.mxu1  ;;  %4575 = vmatpush1.bf16.msra.mxu0 %v7103_v60  ;;  %v2551_v60 = vadd.f32 %v10151_v37, %v10016_v36  ;;  %v7114_v37 = vld [vmem:[%s14069_s5 + $0x154] ss:$8 sps:$4 sm:$0xff]  }
 0x26c   :  { %v10360_v8 = vadd.f32 %v2723_v45, %v2531_v10  ;;  %v10362_v1 = vpop.f32.mrf.mxu0  ;;  %4769 = vmatprep.subr.bf16.mxu1 %v7114_v37  ;;  %v7118_v37 = vld [vmem:[%s14069_s5 + $0x140] ss:$8 sps:$4 sm:$0xff]  }
 0x26d   :  { %v2725_v59 = vpop.f32.mrf.mxu1  ;;  %4770 = vmatpush1.bf16.msra.mxu1 %v7112_v49 }
 0x26e   :  { %14643 = vst [vmem:[#allocation105_spill] sm:$0xff] %v10360_v8  ;;  %v10366_v48 = vadd.f32 %v2725_v59, %v2533_v54  ;;  %v10368_v32 = vpop.f32.mrf.mxu0  ;;  %v2543_v54 = vadd.f32 %v10131_v5, %v10041_v2  ;;  %v7109_v5 = vld [vmem:[%s14069_s5 + $0x50] ss:$8 sps:$4 sm:$0xff]  }
 0x26f   :  { %v2727_v35 = vpop.f32.mrf.mxu1 }
 0x270   :  { %14644 = vst [vmem:[#allocation106_spill] sm:$0xff] %v10366_v48  ;;  %v10372_v10 = vadd.f32 %v2727_v35, %v2535_v13  ;;  %v10382_v45 = vpop.f32.mrf.mxu0 }
 0x271   :  { %v10380_v40 = vpop.f32.mrf.mxu1 }
 0x272   :  { %14645 = vst [vmem:[#allocation107_spill] sm:$0xff] %v10372_v10  ;;  %v10390_v6 = vpop.f32.mrf.mxu0  ;;  %v2545_v10 = vadd.f32 %v10141_v9, %v10016_v36 }
 0x273   :  { %v2733_v35 = vpop.f32.mrf.mxu1 }
 0x274   :  { %v10394_v59 = vadd.f32 %v2733_v35, %v2541_v0  ;;  %v10396_v55 = vpop.f32.mrf.mxu0  ;;  %v7111_v0 = vld [vmem:[%s14069_s5 + $0x54] ss:$8 sps:$4 sm:$0xff]   ;;  %v2553_v35 = vadd.f32 %v10160_v33, %v10041_v2  ;;  %v7115_v33 = vld [vmem:[%s14069_s5 + $0x40] ss:$8 sps:$4 sm:$0xff]  }
 0x275   :  { %v2735_v13 = vpop.f32.mrf.mxu1  ;;  %4576 = vmatprep.subr.bf16.mxu0 %v7111_v0 }
 0x276   :  { %14646 = vst [vmem:[#allocation108_spill] sm:$0xff] %v10394_v59  ;;  %v10400_v48 = vadd.f32 %v2735_v13, %v2543_v54  ;;  %v10402_v22 = vpop.f32.mrf.mxu0  ;;  %4577 = vmatpush1.bf16.msra.mxu0 %v7109_v5  ;;  %v2561_v5 = vadd.f32 %v10181_v56, %v10016_v36  ;;  %v7120_v56 = vld [vmem:[%s14069_s5 + $0x144] ss:$8 sps:$4 sm:$0xff]  }
 0x277   :  { %v2737_v8 = vpop.f32.mrf.mxu1  ;;  %4771 = vmatprep.subr.bf16.mxu1 %v7120_v56  ;;  %v7124_v56 = vld [vmem:[%s14069_s5 + $0x130] ss:$8 sps:$4 sm:$0xff]  }
 0x278   :  { %14647 = vst [vmem:[#allocation109_spill] sm:$0xff] %v10400_v48  ;;  %v10406_v24 = vadd.f32 %v2737_v8, %v2545_v10  ;;  %v10416_v9 = vpop.f32.mrf.mxu0  ;;  %4772 = vmatpush1.bf16.msra.mxu1 %v7118_v37 }
 0x279   :  { %v10414_v28 = vpop.f32.mrf.mxu1 }
 0x27a   :  { %14648 = vst [vmem:[#allocation110_spill] sm:$0xff] %v10406_v24  ;;  %v10424_v10 = vpop.f32.mrf.mxu0  ;;  %v2555_v24 = vadd.f32 %v10166_v43, %v10016_v36 }
 0x27b   :  { %v2743_v8 = vpop.f32.mrf.mxu1 }
 0x27c   :  { %v10428_v54 = vadd.f32 %v2743_v8, %v2551_v60  ;;  %v10430_v0 = vpop.f32.mrf.mxu0  ;;  %v7117_v60 = vld [vmem:[%s14069_s5 + $0x44] ss:$8 sps:$4 sm:$0xff]   ;;  %v2563_v8 = vadd.f32 %v10190_v47, %v10041_v2  ;;  %v7121_v47 = vld [vmem:[%s14069_s5 + $0x30] ss:$8 sps:$4 sm:$0xff]  }
 0x27d   :  { %v2745_v13 = vpop.f32.mrf.mxu1  ;;  %4578 = vmatprep.subr.bf16.mxu0 %v7117_v60 }
 0x27e   :  { %14649 = vst [vmem:[#allocation111_spill] sm:$0xff] %v10428_v54  ;;  %v10434_v48 = vadd.f32 %v2745_v13, %v2553_v35  ;;  %v10436_v50 = vpop.f32.mrf.mxu0  ;;  %4579 = vmatpush1.bf16.msra.mxu0 %v7115_v33  ;;  %v2571_v33 = vadd.f32 %v10207_v53, %v10016_v36  ;;  %v7126_v53 = vld [vmem:[%s14069_s5 + $0x134] ss:$8 sps:$4 sm:$0xff]  }
 0x27f   :  { %v2747_v59 = vpop.f32.mrf.mxu1  ;;  %4773 = vmatprep.subr.bf16.mxu1 %v7126_v53  ;;  %v7130_v53 = vld [vmem:[%s14069_s5 + $0x120] ss:$8 sps:$4 sm:$0xff]  }
 0x280   :  { %14650 = vst [vmem:[#allocation112_spill] sm:$0xff] %v10434_v48  ;;  %v10440_v58 = vadd.f32 %v2747_v59, %v2555_v24  ;;  %v10450_v43 = vpop.f32.mrf.mxu0  ;;  %4774 = vmatpush1.bf16.msra.mxu1 %v7124_v56 }
 0x281   :  { %v10448_v49 = vpop.f32.mrf.mxu1 }
 0x282   :  { %14651 = vst [vmem:[#allocation113_spill] sm:$0xff] %v10440_v58  ;;  %v10458_v59 = vpop.f32.mrf.mxu0  ;;  %v2565_v58 = vadd.f32 %v10197_v7, %v10016_v36 }
 0x283   :  { %v2753_v24 = vpop.f32.mrf.mxu1 }
 0x284   :  { %v10462_v35 = vadd.f32 %v2753_v24, %v2561_v5  ;;  %v10464_v60 = vpop.f32.mrf.mxu0  ;;  %v7123_v5 = vld [vmem:[%s14069_s5 + $0x34] ss:$8 sps:$4 sm:$0xff]   ;;  %v2573_v24 = vadd.f32 %v10220_v12, %v10041_v2  ;;  %v7127_v12 = vld [vmem:[%s14069_s5 + $0x20] ss:$8 sps:$4 sm:$0xff]  }
 0x285   :  { %v2755_v13 = vpop.f32.mrf.mxu1  ;;  %4580 = vmatprep.subr.bf16.mxu0 %v7123_v5 }
 0x286   :  { %14652 = vst [vmem:[#allocation114_spill] sm:$0xff] %v10462_v35  ;;  %v10468_v48 = vadd.f32 %v2755_v13, %v2563_v8  ;;  %v10470_v25 = vpop.f32.mrf.mxu0  ;;  %4581 = vmatpush1.bf16.msra.mxu0 %v7121_v47  ;;  %v2581_v47 = vadd.f32 %v10233_v39, %v10016_v36  ;;  %v7132_v39 = vld [vmem:[%s14069_s5 + $0x124] ss:$8 sps:$4 sm:$0xff]  }
 0x287   :  { %v2757_v54 = vpop.f32.mrf.mxu1  ;;  %4775 = vmatprep.subr.bf16.mxu1 %v7132_v39  ;;  %v7136_v39 = vld [vmem:[%s14069_s5 + $0x110] ss:$8 sps:$4 sm:$0xff]  }
 0x288   :  { %14653 = vst [vmem:[#allocation115_spill] sm:$0xff] %v10468_v48  ;;  %v10474_v34 = vadd.f32 %v2757_v54, %v2565_v58  ;;  %v10484_v7 = vpop.f32.mrf.mxu0  ;;  %4776 = vmatpush1.bf16.msra.mxu1 %v7130_v53 }
 0x289   :  { %v10482_v37 = vpop.f32.mrf.mxu1 }
 0x28a   :  { %14654 = vst [vmem:[#allocation116_spill] sm:$0xff] %v10474_v34  ;;  %v10492_v54 = vpop.f32.mrf.mxu0  ;;  %v2575_v34 = vadd.f32 %v10227_v14, %v10016_v36 }
 0x28b   :  { %v2763_v58 = vpop.f32.mrf.mxu1  ;;  %14655 = vst [vmem:[#allocation117_spill] sm:$0xff] %v10492_v54 }
 0x28c   :  { %v10496_v8 = vadd.f32 %v2763_v58, %v2571_v33  ;;  %v10498_v5 = vpop.f32.mrf.mxu0  ;;  %v7129_v33 = vld [vmem:[%s14069_s5 + $0x24] ss:$8 sps:$4 sm:$0xff]   ;;  %v2583_v58 = vadd.f32 %v10254_v57, %v10041_v2  ;;  %v7133_v57 = vld [vmem:[%s14069_s5 + $0x10] ss:$8 sps:$4 sm:$0xff]  }
 0x28d   :  { %v2765_v13 = vpop.f32.mrf.mxu1  ;;  %4582 = vmatprep.subr.bf16.mxu0 %v7129_v33 }
 0x28e   :  { %14656 = vst [vmem:[#allocation118_spill] sm:$0xff] %v10496_v8  ;;  %v10502_v48 = vadd.f32 %v2765_v13, %v2573_v24  ;;  %v10504_v52 = vpop.f32.mrf.mxu0  ;;  %4583 = vmatpush1.bf16.msra.mxu0 %v7127_v12  ;;  %v2591_v12 = vadd.f32 %v10278_v31, %v10016_v36  ;;  %v7138_v31 = vld [vmem:[%s14069_s5 + $0x114] ss:$8 sps:$4 sm:$0xff]  }
 0x28f   :  { %v2767_v35 = vpop.f32.mrf.mxu1  ;;  %4777 = vmatprep.subr.bf16.mxu1 %v7138_v31 }
 0x290   :  { %14657 = vst [vmem:[#allocation119_spill] sm:$0xff] %v10502_v48  ;;  %v10508_v54 = vadd.f32 %v2767_v35, %v2575_v34  ;;  %v10518_v14 = vpop.f32.mrf.mxu0  ;;  %4778 = vmatpush1.bf16.msra.mxu1 %v7136_v39 }
 0x291   :  { %v10516_v56 = vpop.f32.mrf.mxu1  ;;  %14659 = vst [vmem:[#allocation121_spill] sm:$0xff] %v10518_v14 }
 0x292   :  { %14658 = vst [vmem:[#allocation120_spill] sm:$0xff] %v10508_v54  ;;  %v10526_v35 = vpop.f32.mrf.mxu0  ;;  %v2585_v54 = vadd.f32 %v10266_v26, %v10016_v36 }
 0x293   :  { %v2773_v34 = vpop.f32.mrf.mxu1  ;;  %14660 = vst [vmem:[#allocation122_spill] sm:$0xff] %v10526_v35 }
 0x294   :  { %v10530_v24 = vadd.f32 %v2773_v34, %v2581_v47  ;;  %v10532_v33 = vpop.f32.mrf.mxu0  ;;  %v7135_v47 = vld [vmem:[%s14069_s5 + $0x14] ss:$8 sps:$4 sm:$0xff]   ;;  %v2593_v34 = vadd.f32 %v10284_v44, %v10041_v2  ;;  %v7139_v44 = vld [vmem:[%s14069_s5] ss:$8 sps:$4 sm:$0xff]  }
 0x295   :  { %v2775_v13 = vpop.f32.mrf.mxu1  ;;  %4584 = vmatprep.subr.bf16.mxu0 %v7135_v47 }
 0x296   :  { %14661 = vst [vmem:[#allocation123_spill] sm:$0xff] %v10530_v24  ;;  %v10536_v48 = vadd.f32 %v2775_v13, %v2583_v58  ;;  %v10538_v14 = vpop.f32.mrf.mxu0  ;;  %4585 = vmatpush1.bf16.msra.mxu0 %v7133_v57 }
 0x297   :  { %v2777_v8 = vpop.f32.mrf.mxu1 }
 0x298   :  { %14662 = vst [vmem:[#allocation124_spill] sm:$0xff] %v10536_v48  ;;  %v10542_v35 = vadd.f32 %v2777_v8, %v2585_v54  ;;  %v10552_v26 = vpop.f32.mrf.mxu0 }
 0x299   :  { %v10550_v53 = vpop.f32.mrf.mxu1  ;;  %14664 = vst [vmem:[#allocation126_spill] sm:$0xff] %v10552_v26 }
 0x29a   :  { %14663 = vst [vmem:[#allocation125_spill] sm:$0xff] %v10542_v35  ;;  %v10560_v8 = vpop.f32.mrf.mxu0  ;;  %v2595_v35 = vadd.f32 %v10292_v62, %v10016_v36  ;;  %v7142_v36 = vld [vmem:[%s14069_s5 + $0x100] ss:$8 sps:$4 sm:$0xff]   ;;  %v7144_v62 = vld [vmem:[%s14069_s5 + $0x104] ss:$8 sps:$4 sm:$0xff]  }
 0x29b   :  { %v2783_v54 = vpop.f32.mrf.mxu1  ;;  %14665 = vst [vmem:[#allocation127_spill] sm:$0xff] %v10560_v8  ;;  %4779 = vmatprep.subr.bf16.mxu1 %v7144_v62 }
 0x29c   :  { %v10564_v58 = vadd.f32 %v2783_v54, %v2591_v12  ;;  %v10566_v47 = vpop.f32.mrf.mxu0  ;;  %v7141_v12 = vld [vmem:[%s14069_s5 + $0x4] ss:$8 sps:$4 sm:$0xff]   ;;  %4780 = vmatpush1.bf16.msra.mxu1 %v7142_v36 }
 0x29d   :  { %v2785_v13 = vpop.f32.mrf.mxu1  ;;  %4586 = vmatprep.subr.bf16.mxu0 %v7141_v12 }
 0x29e   :  { %14666 = vst [vmem:[#allocation128_spill] sm:$0xff] %v10564_v58  ;;  %v10570_v48 = vadd.f32 %v2785_v13, %v2593_v34  ;;  %v10572_v26 = vpop.f32.mrf.mxu0  ;;  %4587 = vmatpush1.bf16.msra.mxu0 %v7139_v44 }
 0x29f   :  { %v2787_v24 = vpop.f32.mrf.mxu1  ;;  %14668 = vst [vmem:[#allocation130_spill] sm:$0xff] %v10572_v26 }
 0x2a0   :  { %14667 = vst [vmem:[#allocation129_spill] sm:$0xff] %v10570_v48  ;;  %v10574_v8 = vadd.f32 %v2787_v24, %v2595_v35  ;;  %v10584_v39 = vpop.f32.mrf.mxu0 }
 0x2a1   :  { %v10582_v57 = vpop.f32.mrf.mxu1  ;;  %14671 = vst [vmem:[#allocation133_spill] sm:$0xff] %v10584_v39 }
 0x2a2   :  { %14669 = vst [vmem:[#allocation131_spill] sm:$0xff] %v10574_v8  ;;  %14670 = vst [vmem:[#allocation132_spill] sm:$0xff] %v10582_v57  ;;  %v10592_v35 = vpop.f32.mrf.mxu0 }
 0x2a3   :  { %14672 = vst [vmem:[#allocation134_spill] sm:$0xff] %v10592_v35  ;;  %v3019_v24 = vpop.f32.mrf.mxu1 }
 0x2a4   :  { %v10595_v31 = vadd.f32 %v3019_v24, %v10325_v15  ;;  %v10597_v54 = vpop.f32.mrf.mxu0 }
 0x2a5   :  { %14673 = vst [vmem:[#allocation135_spill] sm:$0xff] %v10597_v54  ;;  %v3021_v34 = vpop.f32.mrf.mxu1 }
 0x2a6   :  { %v10600_v13 = vadd.f32 %v3021_v34, %v10332_v21  ;;  %v10602_v12 = vpop.f32.mrf.mxu0 }
 0x2a7   :  { %14674 = vst [vmem:[#allocation136_spill] sm:$0xff] %v10602_v12  ;;  %v10604_v8 = vpop.f32.mrf.mxu1 }
 0x2a8   :  { %v10606_v48 = vpop.f32.mrf.mxu0 }
 0x2a9   :  { %14675 = vst [vmem:[#allocation137_spill] sm:$0xff] %v10606_v48  ;;  %v10608_v57 = vpop.f32.mrf.mxu1 }
 0x2aa   :  { %v10610_v44 = vpop.f32.mrf.mxu0 }
 0x2ab   :  { %14676 = vst [vmem:[#allocation138_spill] sm:$0xff] %v10610_v44  ;;  %v10612_v15 = vpop.f32.mrf.mxu1 }
 0x2ac   :  { %v10614_v62 = vpop.f32.mrf.mxu0 }
 0x2ad   :  { %14677 = vst [vmem:[#allocation139_spill] sm:$0xff] %v10614_v62  ;;  %v10616_v24 = vpop.f32.mrf.mxu1 }
 0x2ae   :  { %v10618_v36 = vpop.f32.mrf.mxu0 }
 0x2af   :  { %14678 = vst [vmem:[#allocation140_spill] sm:$0xff] %v10618_v36  ;;  %v10620_v21 = vpop.f32.mrf.mxu1 }
 0x2b0   :  { %v10622_v34 = vpop.f32.mrf.mxu0 }
 0x2b1   :  { %14679 = vst [vmem:[#allocation141_spill] sm:$0xff] %v10622_v34  ;;  %v10624_v58 = vpop.f32.mrf.mxu1 }
 0x2b2   :  { %14680 = vst [vmem:[#allocation142_spill] sm:$0xff] %v10624_v58  ;;  %v10626_v12 = vpop.f32.mrf.mxu0 }
 0x2b3   :  { %14681 = vst [vmem:[#allocation143_spill] sm:$0xff] %v10626_v12  ;;  %v10628_v48 = vpop.f32.mrf.mxu1 }
 0x2b4   :  { %14682 = vst [vmem:[#allocation144_spill] sm:$0xff] %v10628_v48  ;;  %v10630_v54 = vpop.f32.mrf.mxu0 }
 0x2b5   :  { %14683 = vst [vmem:[#allocation145_spill] sm:$0xff] %v10630_v54  ;;  %v10632_v44 = vpop.f32.mrf.mxu1  ;;  %v2487_v54 = vadd.f32 %v9889_v63, %v10041_v2  ;;  %v2557_v63 = vadd.f32 %v10174_v46, %v10041_v2 }
 0x2b6   :  { %v10634_v35 = vpop.f32.mrf.mxu0 }
 0x2b7   :  { %14684 = vst [vmem:[#allocation146_spill] sm:$0xff] %v10634_v35  ;;  %v10636_v62 = vpop.f32.mrf.mxu1  ;;  %v2497_v35 = vadd.f32 %v9940_v3, %v10041_v2  ;;  %v2567_v3 = vadd.f32 %v10203_v17, %v10041_v2  ;;  %v14696_v17 = vld [vmem:[#allocation33_spill] sm:$0xff] }
 0x2b8   :  { %14685 = vst [vmem:[#allocation147_spill] sm:$0xff] %v10636_v62  ;;  %v10638_v39 = vpop.f32.mrf.mxu0 }
 0x2b9   :  { %14686 = vst [vmem:[#allocation148_spill] sm:$0xff] %v10638_v39  ;;  %v10640_v36 = vpop.f32.mrf.mxu1  ;;  %v2507_v39 = vadd.f32 %v9991_v42, %v10041_v2  ;;  %v2680_v42 = vadd.f32 %v10205_v51, %v2487_v54  ;;  %v14700_v54 = vld [vmem:[#allocation35_spill] sm:$0xff] }
 0x2ba   :  { %14687 = vst [vmem:[#allocation149_spill] sm:$0xff] %v10640_v36  ;;  %v10642_v26 = vpop.f32.mrf.mxu0  ;;  %v14693_v36 = vld [vmem:[#allocation61_spill] sm:$0xff] }
 0x2bb   :  { %14688 = vst [vmem:[#allocation150_spill] sm:$0xff] %v10642_v26  ;;  %v10644_v34 = vpop.f32.mrf.mxu1  ;;  %v2517_v26 = vadd.f32 %v14693_v36, %v10041_v2  ;;  %v2577_v36 = vadd.f32 %v10229_v38, %v10041_v2  ;;  %v2831_v38 = vadd.f32 %v10334_v18, %v14696_v17  ;;  %v14701_v18 = vld [vmem:[#allocation64_spill] sm:$0xff]  ;;  %v14703_v17 = vld [vmem:[#allocation37_spill] sm:$0xff] }
 0x2bc   :  { %14689 = vst [vmem:[#allocation151_spill] sm:$0xff] %v10644_v34  ;;  %v10648_v12 = vpop.f32.mrf.mxu0  ;;  %v2527_v34 = vadd.f32 %v10085_v16, %v10041_v2  ;;  %v2690_v16 = vadd.f32 %v10231_v61, %v2497_v35  ;;  %v14697_v35 = vld [vmem:[#allocation65_spill] sm:$0xff] }
 0x2bd   :  { %v10646_v58 = vpop.f32.mrf.mxu1  ;;  %14691 = vst [vmem:[#allocation153_spill] sm:$0xff] %v10648_v12  ;;  %v2537_v12 = vadd.f32 %v10112_v29, %v10041_v2  ;;  %v2587_v29 = vadd.f32 %v10274_v30, %v10041_v2  ;;  %v2710_v51 = vadd.f32 %v10312_v41, %v2517_v26  ;;  %v2833_v30 = vadd.f32 %v10342_v4, %v14697_v35  ;;  %v14704_v35 = vld [vmem:[#allocation2_spill] sm:$0xff] }
 0x2be   :  { %14690 = vst [vmem:[#allocation152_spill] sm:$0xff] %v10646_v58  ;;  %v10683_v46 = vpop.f32.mrf.mxu0  ;;  %v10691_v61 = vadd.f32 %v10340_v11, %v2527_v34  ;;  %v2843_v11 = vadd.f32 %v10382_v45, %v14701_v18  ;;  %v14702_v34 = vld [vmem:[#allocation18_spill] sm:$0xff] }
 0x2bf   :  { %v10650_v48 = vpop.f32.mrf.mxu1  ;;  %v10702_v41 = vadd.f32 %v10380_v40, %v2537_v12  ;;  %v2847_v4 = vadd.f32 %v10390_v6, %v14702_v34  ;;  %v14705_v40 = vld [vmem:[#allocation20_spill] sm:$0xff]  ;;  %v14710_v34 = vld [vmem:[#allocation41_spill] sm:$0xff] }
 0x2c0   :  { %14692 = vst [vmem:[#allocation154_spill] sm:$0xff] %v10650_v48  ;;  %v2547_v48 = vadd.f32 %v10147_v19, %v10041_v2  ;;  %v2700_v19 = vadd.f32 %v10276_v27, %v2507_v39  ;;  %v14698_v27 = vld [vmem:[#allocation67_spill] sm:$0xff]  ;;  %v10721_v12 = vadd.f32 %v10416_v9, %v14705_v40  ;;  %v14709_v9 = vld [vmem:[#allocation72_spill] sm:$0xff]  ;;  %v14712_v40 = vld [vmem:[#allocation22_spill] sm:$0xff] }
 0x2c1   :  { %v10666_v58 = vpop.f32.mrf.mxu1  ;;  %v2837_v39 = vadd.f32 %v10350_v20, %v14698_v27  ;;  %v2849_v20 = vadd.f32 %v10396_v55, %v14703_v17  ;;  %v14706_v27 = vld [vmem:[#allocation3_spill] sm:$0xff]  ;;  %v10731_v55 = vpop.f32.mrf.mxu0  ;;  %v10744_v18 = vadd.f32 %v10450_v43, %v14709_v9  ;;  %v14711_v17 = vld [vmem:[#allocation73_spill] sm:$0xff]  ;;  %v10763_v43 = vadd.f32 %v10482_v37, %v2567_v3 }
 0x2c2   :  { %14694 = vst [vmem:[#allocation61_spill] sm:$0xff] %v10666_v58  ;;  %v10681_v58 = vadd.f32 %v10310_v23, %v10041_v2  ;;  %v14699_v2 = vld [vmem:[#allocation68_spill] sm:$0xff]  ;;  %v10725_v45 = vadd.f32 %v10424_v10, %v14706_v27  ;;  %v3024_v10 = vadd.f32 %v10604_v8, %v2831_v38  ;;  %v10766_v8 = vadd.f32 %v10484_v7, %v2680_v42  ;;  %v14714_v38 = vld [vmem:[#allocation117_spill] sm:$0xff]  ;;  %v14719_v9 = vld [vmem:[#allocation95_spill] sm:$0xff] }
 0x2c3   :  { %v10685_v62 = vpop.f32.mrf.mxu1  ;;  %v2839_v23 = vadd.f32 %v10362_v1, %v14699_v2  ;;  %v10714_v1 = vadd.f32 %v10402_v22, %v14704_v35  ;;  %v14707_v2 = vld [vmem:[#allocation39_spill] sm:$0xff]  ;;  %v14708_v22 = vld [vmem:[#allocation70_spill] sm:$0xff]  ;;  %v10753_v35 = vadd.f32 %v10464_v60, %v14711_v17  ;;  %v14718_v37 = vld [vmem:[#allocation121_spill] sm:$0xff]  ;;  %v3030_v7 = vadd.f32 %v10612_v15, %v2837_v39  ;;  %v10787_v42 = vpop.f32.mrf.mxu0 }
 0x2c4   :  { %14695 = vst [vmem:[#allocation155_spill] sm:$0xff] %v10681_v58  ;;  %v2841_v58 = vadd.f32 %v10368_v32, %v14700_v54  ;;  %v10717_v32 = vadd.f32 %v10414_v28, %v2547_v48  ;;  %v10729_v6 = vadd.f32 %v10430_v0, %v14707_v2  ;;  %v10737_v48 = vadd.f32 %v10436_v50, %v14708_v22  ;;  %v14715_v60 = vld [vmem:[#allocation83_spill] sm:$0xff]  ;;  %v14721_v17 = vld [vmem:[#allocation97_spill] sm:$0xff] }
 0x2c5   :  { %v10704_v26 = vpop.f32.mrf.mxu1  ;;  %v10740_v28 = vadd.f32 %v10448_v49, %v2557_v63  ;;  %v10749_v0 = vadd.f32 %v10458_v59, %v14710_v34  ;;  %v10757_v50 = vadd.f32 %v10470_v25, %v14712_v40  ;;  %v3026_v49 = vadd.f32 %v10608_v57, %v2833_v30  ;;  %v14713_v59 = vld [vmem:[#allocation75_spill] sm:$0xff]  ;;  %v14716_v25 = vld [vmem:[#allocation86_spill] sm:$0xff] }
 0x2c6   :  { %v10770_v27 = vadd.f32 %v14714_v38, %v14713_v59  ;;  %v10774_v2 = vadd.f32 %v10498_v5, %v14715_v60  ;;  %v10778_v22 = vadd.f32 %v10504_v52, %v14716_v25  ;;  %v10781_v57 = vadd.f32 %v10516_v56, %v2577_v36  ;;  %v14720_v34 = vld [vmem:[#allocation122_spill] sm:$0xff]  ;;  %v14729_v25 = vld [vmem:[#allocation99_spill] sm:$0xff] }
 0x2c7   :  { %v10733_v54 = vpop.f32.mrf.mxu1  ;;  %v10784_v3 = vadd.f32 %v14718_v37, %v2690_v16  ;;  %v10793_v5 = vadd.f32 %v14720_v34, %v14719_v9  ;;  %v10797_v52 = vadd.f32 %v10532_v33, %v14721_v17  ;;  %v14722_v40 = vld [vmem:[#allocation98_spill] sm:$0xff]  ;;  %v10803_v36 = vmax.f32 %v3024_v10, 0.0  ;;  %v10838_v17 = vpop.f32.mrf.mxu0 }
 0x2c8   :  { %14717 = vst [vmem:[#allocation33_spill] sm:$0xff] %v10781_v57  ;;  %v10801_v56 = vadd.f32 %v10538_v14, %v14722_v40  ;;  %v10806_v15 = vadd.f32 %v10550_v53, %v2587_v29  ;;  %v10809_v16 = vmax.f32 %v10595_v31, 0.0  ;;  %v10811_v39 = vmax.f32 %v3026_v49, 0.0  ;;  %v14727_v33 = vld [vmem:[#allocation126_spill] sm:$0xff]  ;;  %v14730_v14 = vld [vmem:[#allocation127_spill] sm:$0xff]  ;;  %v14733_v31 = vld [vmem:[#allocation100_spill] sm:$0xff] }
 0x2c9   :  { %v10760_v63 = vpop.f32.mrf.mxu1  ;;  %14723 = vst [vmem:[#allocation65_spill] sm:$0xff] %v10803_v36  ;;  %v3032_v59 = vadd.f32 %v10616_v24, %v2839_v23  ;;  %v10817_v60 = vadd.f32 %v14727_v33, %v2700_v19  ;;  %v10821_v37 = vadd.f32 %v14730_v14, %v14729_v25  ;;  %v10824_v10 = vmax.f32 %v10600_v13, 0.0  ;;  %v14735_v49 = vld [vmem:[#allocation101_spill] sm:$0xff]  ;;  %v14736_v24 = vld [vmem:[#allocation130_spill] sm:$0xff]  ;;  %v14746_v14 = vld [vmem:[#allocation135_spill] sm:$0xff] }
 0x2ca   :  { %14724 = vst [vmem:[#allocation67_spill] sm:$0xff] %v10806_v15  ;;  %14725 = vst [vmem:[#allocation68_spill] sm:$0xff] %v10809_v16  ;;  %v3034_v53 = vadd.f32 %v10620_v21, %v2841_v58  ;;  %v10829_v29 = vadd.f32 %v10566_v47, %v14733_v31  ;;  %v10833_v23 = vadd.f32 %v14736_v24, %v14735_v49  ;;  %v10835_v9 = vmax.f32 %v3030_v7, 0.0  ;;  %v14739_v19 = vld [vmem:[#allocation142_spill] sm:$0xff]  ;;  %v14740_v13 = vld [vmem:[#allocation133_spill] sm:$0xff] }
 0x2cb   :  { %v10789_v30 = vpop.f32.mrf.mxu1  ;;  %14726 = vst [vmem:[#allocation35_spill] sm:$0xff] %v10811_v39  ;;  %14728 = vst [vmem:[#allocation64_spill] sm:$0xff] %v10817_v60  ;;  %v3036_v34 = vadd.f32 %v14739_v19, %v2843_v11  ;;  %v10843_v33 = vadd.f32 %v14740_v13, %v2710_v51  ;;  %v14742_v58 = vld [vmem:[#allocation102_spill] sm:$0xff]  ;;  %v14745_v47 = vld [vmem:[#allocation103_spill] sm:$0xff]  ;;  %v3464_v7 = vmul.f32 %v10803_v36, %v10803_v36  ;;  %v10859_v24 = vmax.f32 %v3032_v59, 0.0 }
 0x2cc   :  { %14731 = vst [vmem:[#allocation18_spill] sm:$0xff] %v10821_v37  ;;  %14732 = vst [vmem:[#allocation37_spill] sm:$0xff] %v10824_v10  ;;  %v14743_v21 = vld [vmem:[#allocation134_spill] sm:$0xff]  ;;  %v10851_v31 = vadd.f32 %v14746_v14, %v14745_v47  ;;  %v3460_v11 = vmul.f32 %v10809_v16, %v10809_v16  ;;  %v3465_v49 = vmul.f32 %v10811_v39, %v10811_v39  ;;  %v14749_v51 = vld [vmem:[#allocation144_spill] sm:$0xff] }
 0x2cd   :  { %v10814_v38 = vpop.f32.mrf.mxu1  ;;  %14734 = vst [vmem:[#allocation2_spill] sm:$0xff] %v10829_v29  ;;  %14737 = vst [vmem:[#allocation20_spill] sm:$0xff] %v10833_v23  ;;  %v10847_v25 = vadd.f32 %v14743_v21, %v14742_v58  ;;  %v3040_v19 = vadd.f32 %v14749_v51, %v2847_v4  ;;  %v3461_v58 = vmul.f32 %v10824_v10, %v10824_v10  ;;  %v14750_v21 = vld [vmem:[#allocation104_spill] sm:$0xff]  ;;  %v14753_v15 = vld [vmem:[#allocation137_spill] sm:$0xff]  ;;  %v10880_v51 = vmax.f32 %v3036_v34, 0.0  ;;  %v10883_v23 = vpop.f32.mrf.mxu0 }
 0x2ce   :  { %14738 = vst [vmem:[#allocation3_spill] sm:$0xff] %v10835_v9  ;;  %14741 = vst [vmem:[#allocation39_spill] sm:$0xff] %v10843_v33  ;;  %v14751_v47 = vld [vmem:[#allocation136_spill] sm:$0xff]  ;;  %v3380_v59 = vadd.f32 %v10803_v36, %v10809_v16  ;;  %v3468_v4 = vmul.f32 %v10835_v9, %v10835_v9  ;;  %v3042_v33 = vadd.f32 %v10632_v44, %v2849_v20  ;;  %v14760_v36 = vld [vmem:[#allocation147_spill] sm:$0xff] }
 0x2cf   :  { %v10840_v40 = vpop.f32.mrf.mxu1  ;;  %14744 = vst [vmem:[#allocation70_spill] sm:$0xff] %v10847_v25  ;;  %14747 = vst [vmem:[#allocation72_spill] sm:$0xff] %v10851_v31  ;;  %v10868_v14 = vadd.f32 %v14751_v47, %v14750_v21  ;;  %v10872_v31 = vadd.f32 %v14753_v15, %v10691_v61  ;;  %v10874_v25 = vmax.f32 %v3034_v53, 0.0  ;;  %v3660_v47 = vadd.f32 %v3464_v7, %v3460_v11  ;;  %v14757_v15 = vld [vmem:[#allocation105_spill] sm:$0xff]  ;;  %v14758_v53 = vld [vmem:[#allocation138_spill] sm:$0xff] }
 0x2d0   :  { %14748 = vst [vmem:[#allocation41_spill] sm:$0xff] %v10859_v24  ;;  %14756 = vst [vmem:[#allocation117_spill] sm:$0xff] %v10880_v51  ;;  %v3417_v61 = vadd.f32 %v10811_v39, %v10824_v10  ;;  %v3044_v16 = vadd.f32 %v14760_v36, %v10714_v1  ;;  %v14761_v34 = vld [vmem:[#allocation106_spill] sm:$0xff]  ;;  %v14762_v29 = vld [vmem:[#allocation139_spill] sm:$0xff]  ;;  %v3469_v44 = vmul.f32 %v10859_v24, %v10859_v24  ;;  %v10901_v20 = vmax.f32 %v3040_v19, 0.0  ;;  %v10928_v10 = vpop.f32.mrf.mxu0 }
 0x2d1   :  { %v10862_v13 = vpop.f32.mrf.mxu1  ;;  %14752 = vst [vmem:[#allocation73_spill] sm:$0xff] %v10868_v14  ;;  %14754 = vst [vmem:[#allocation22_spill] sm:$0xff] %v10872_v31  ;;  %v10891_v31 = vadd.f32 %v14758_v53, %v14757_v15  ;;  %v3697_v14 = vadd.f32 %v3465_v49, %v3461_v58  ;;  %v10897_v37 = vadd.f32 %v14762_v29, %v14761_v34  ;;  %v14764_v39 = vld [vmem:[#allocation107_spill] sm:$0xff]  ;;  %v14765_v15 = vld [vmem:[#allocation140_spill] sm:$0xff] }
 0x2d2   :  { %14755 = vst [vmem:[#allocation75_spill] sm:$0xff] %v10874_v25  ;;  %v3381_v11 = vadd.f32 %v3380_v59, %v10835_v9  ;;  %v10908_v53 = vadd.f32 %v14765_v15, %v14764_v39  ;;  %v3472_v1 = vmul.f32 %v10874_v25, %v10874_v25  ;;  %v14767_v36 = vld [vmem:[#allocation149_spill] sm:$0xff]  ;;  %v3661_v58 = vadd.f32 %v3660_v47, %v3468_v4 }
 0x2d3   :  { %v10885_v21 = vpop.f32.mrf.mxu1  ;;  %14759 = vst [vmem:[#allocation83_spill] sm:$0xff] %v10891_v31  ;;  %14763 = vst [vmem:[#allocation86_spill] sm:$0xff] %v10897_v37  ;;  %v3046_v29 = vadd.f32 %v14767_v36, %v10721_v12  ;;  %v7147_v49 = vld [vmem:[%s14069_s5 + $0xf4] ss:$8 sps:$4 sm:$0xff]   ;;  %v3473_v39 = vmul.f32 %v10880_v51, %v10880_v51  ;;  %v10926_v15 = vmax.f32 %v3042_v33, 0.0  ;;  %v14771_v33 = vld [vmem:[#allocation151_spill] sm:$0xff]  ;;  %v3476_v57 = vmul.f32 %v10901_v20, %v10901_v20 }
 0x2d4   :  { %14766 = vst [vmem:[#allocation121_spill] sm:$0xff] %v10908_v53  ;;  %v7150_v19 = vld [vmem:[%s14069_s5 + $0x1f4] ss:$8 sps:$4 sm:$0xff]   ;;  %v7145_v36 = vld [vmem:[%s14069_s5 + $0xf0] ss:$8 sps:$4 sm:$0xff]   ;;  %v3382_v47 = vadd.f32 %v3381_v11, %v10874_v25  ;;  %v3050_v9 = vadd.f32 %v14771_v33, %v10725_v45  ;;  %4588 = vmatprep.subr.bf16.mxu0 %v7147_v49  ;;  %v14773_v37 = vld [vmem:[#allocation143_spill] sm:$0xff] }
 0x2d5   :  { %v10903_v7 = vpop.f32.mrf.mxu1  ;;  %v14768_v59 = vld [vmem:[#allocation141_spill] sm:$0xff]  ;;  %14770 = vst [vmem:[#allocation122_spill] sm:$0xff] %v10926_v15  ;;  %4781 = vmatprep.subr.bf16.mxu1 %v7150_v19  ;;  %v14772_v53 = vld [vmem:[#allocation108_spill] sm:$0xff]  ;;  %4589 = vmatpush2.bf16.msra.mxu0 %v7145_v36  ;;  %v10953_v11 = vmax.f32 %v3046_v29, 0.0  ;;  %v14780_v29 = vld [vmem:[#allocation154_spill] sm:$0xff] }
 0x2d6   :  { %v10922_v34 = vadd.f32 %v14768_v59, %v10702_v41  ;;  %v7148_v4 = vld [vmem:[%s14069_s5 + $0x1f0] ss:$8 sps:$4 sm:$0xff]   ;;  %v3418_v41 = vadd.f32 %v3417_v61, %v10859_v24  ;;  %v10940_v59 = vmax.f32 %v3044_v16, 0.0  ;;  %v10946_v31 = vadd.f32 %v14773_v37, %v14772_v53  ;;  %v7153_v37 = vld [vmem:[%s14069_s5 + $0xe4] ss:$8 sps:$4 sm:$0xff]  }
 0x2d7   :  { %v10930_v12 = vpop.f32.mrf.mxu1  ;;  %4782 = vmatpush2.bf16.msra.mxu1 %v7148_v4  ;;  %v3662_v61 = vadd.f32 %v3661_v58, %v3472_v1  ;;  %14775 = vst [vmem:[#allocation98_spill] sm:$0xff] %v10953_v11  ;;  %v14776_v45 = vld [vmem:[#allocation152_spill] sm:$0xff]  ;;  %v14777_v53 = vld [vmem:[#allocation109_spill] sm:$0xff]  ;;  %v3477_v1 = vmul.f32 %v10926_v15, %v10926_v15  ;;  %v3054_v58 = vadd.f32 %v14780_v29, %v10737_v48  ;;  %v14782_v33 = vld [vmem:[#allocation146_spill] sm:$0xff]  ;;  %v10987_v48 = vmax.f32 %v3050_v9, 0.0 }
 0x2d8   :  { %14769 = vst [vmem:[#allocation95_spill] sm:$0xff] %v10922_v34  ;;  %v3698_v34 = vadd.f32 %v3697_v14, %v3469_v44  ;;  %14774 = vst [vmem:[#allocation97_spill] sm:$0xff] %v10946_v31  ;;  %v3419_v16 = vadd.f32 %v3418_v41, %v10880_v51  ;;  %v3052_v49 = vadd.f32 %v14776_v45, %v10729_v6  ;;  %v7156_v14 = vld [vmem:[%s14069_s5 + $0x1e4] ss:$8 sps:$4 sm:$0xff]   ;;  %v14778_v19 = vld [vmem:[#allocation145_spill] sm:$0xff]  ;;  %v10971_v6 = vpop.f32.mrf.mxu0  ;;  %4590 = vmatprep.subr.bf16.mxu0 %v7153_v37 }
 0x2d9   :  { %v10950_v60 = vpop.f32.mrf.mxu1  ;;  %v10965_v36 = vadd.f32 %v14778_v19, %v14777_v53  ;;  %v7151_v41 = vld [vmem:[%s14069_s5 + $0xe0] ss:$8 sps:$4 sm:$0xff]   ;;  %v3480_v53 = vmul.f32 %v10940_v59, %v10940_v59  ;;  %v14783_v19 = vld [vmem:[#allocation61_spill] sm:$0xff]  ;;  %4783 = vmatprep.subr.bf16.mxu1 %v7156_v14  ;;  %v3383_v51 = vadd.f32 %v3382_v47, %v10901_v20  ;;  %v3663_v24 = vadd.f32 %v3662_v61, %v3476_v57  ;;  %v14784_v25 = vld [vmem:[#allocation148_spill] sm:$0xff] }
 0x2da   :  { %v3699_v44 = vadd.f32 %v3698_v34, %v3473_v39  ;;  %v7154_v34 = vld [vmem:[%s14069_s5 + $0x1e0] ss:$8 sps:$4 sm:$0xff]   ;;  %v3056_v29 = vadd.f32 %v14783_v19, %v10744_v18  ;;  %4591 = vmatpush2.bf16.msra.mxu0 %v7151_v41  ;;  %v3481_v9 = vmul.f32 %v10953_v11, %v10953_v11  ;;  %v3060_v18 = vadd.f32 %v10685_v62, %v10749_v0  ;;  %v7159_v57 = vld [vmem:[%s14069_s5 + $0xd4] ss:$8 sps:$4 sm:$0xff]   ;;  %v11018_v14 = vpop.f32.mrf.mxu0  ;;  %v7157_v0 = vld [vmem:[%s14069_s5 + $0xd0] ss:$8 sps:$4 sm:$0xff]  }
 0x2db   :  { %14779 = vst [vmem:[#allocation126_spill] sm:$0xff] %v10965_v36  ;;  %v10973_v4 = vpop.f32.mrf.mxu1  ;;  %v14781_v39 = vld [vmem:[#allocation110_spill] sm:$0xff]  ;;  %v10994_v36 = vadd.f32 %v14784_v25, %v10717_v32  ;;  %4784 = vmatpush2.bf16.msra.mxu1 %v7154_v34  ;;  %v7162_v32 = vld [vmem:[%s14069_s5 + $0x1d4] ss:$8 sps:$4 sm:$0xff]   ;;  %v3384_v47 = vadd.f32 %v3383_v51, %v10940_v59  ;;  %v14786_v61 = vld [vmem:[#allocation111_spill] sm:$0xff]  ;;  %v3484_v51 = vmul.f32 %v10987_v48, %v10987_v48 }
 0x2dc   :  { %v10983_v45 = vadd.f32 %v14782_v33, %v14781_v39  ;;  %v3420_v39 = vadd.f32 %v3419_v16, %v10926_v15  ;;  %v11001_v33 = vmax.f32 %v3052_v49, 0.0  ;;  %v3700_v25 = vadd.f32 %v3699_v44, %v3477_v1  ;;  %v14787_v16 = vld [vmem:[#allocation150_spill] sm:$0xff]  ;;  %v7160_v44 = vld [vmem:[%s14069_s5 + $0x1d0] ss:$8 sps:$4 sm:$0xff]   ;;  %4592 = vmatprep.subr.bf16.mxu0 %v7159_v57  ;;  %4785 = vmatprep.subr.bf16.mxu1 %v7162_v32 }
 0x2dd   :  { %v10996_v31 = vpop.f32.mrf.mxu1  ;;  %v11014_v37 = vadd.f32 %v14787_v16, %v14786_v61  ;;  %v11016_v49 = vmax.f32 %v3054_v58, 0.0  ;;  %v3664_v1 = vadd.f32 %v3663_v24, %v3480_v53  ;;  %v11030_v41 = vmax.f32 %v3056_v29, 0.0  ;;  %v14789_v19 = vld [vmem:[#allocation112_spill] sm:$0xff]  ;;  %v14790_v61 = vld [vmem:[#allocation153_spill] sm:$0xff] }
 0x2de   :  { %14785 = vst [vmem:[#allocation99_spill] sm:$0xff] %v11001_v33  ;;  %v3062_v58 = vadd.f32 %v10704_v26, %v10753_v35  ;;  %v3421_v34 = vadd.f32 %v3420_v39, %v10953_v11  ;;  %v11037_v16 = vadd.f32 %v14790_v61, %v14789_v19  ;;  %v3064_v15 = vadd.f32 %v10733_v54, %v10757_v50  ;;  %v7165_v39 = vld [vmem:[%s14069_s5 + $0xc4] ss:$8 sps:$4 sm:$0xff]   ;;  %v14791_v57 = vld [vmem:[#allocation113_spill] sm:$0xff] }
 0x2df   :  { %v11020_v62 = vpop.f32.mrf.mxu1  ;;  %14788 = vst [vmem:[#allocation127_spill] sm:$0xff] %v11030_v41  ;;  %4593 = vmatpush2.bf16.msra.mxu0 %v7157_v0  ;;  %4786 = vmatpush2.bf16.msra.mxu1 %v7160_v44  ;;  %v3701_v53 = vadd.f32 %v3700_v25, %v3481_v9  ;;  %v3485_v29 = vmul.f32 %v11001_v33, %v11001_v33  ;;  %v11045_v26 = vmax.f32 %v3060_v18, 0.0  ;;  %v7168_v54 = vld [vmem:[%s14069_s5 + $0x1c4] ss:$8 sps:$4 sm:$0xff]   ;;  %v7163_v25 = vld [vmem:[%s14069_s5 + $0xc0] ss:$8 sps:$4 sm:$0xff]  }
 0x2e0   :  { %v3066_v35 = vadd.f32 %v10760_v63, %v10766_v8  ;;  %v3385_v50 = vadd.f32 %v3384_v47, %v10987_v48  ;;  %v11058_v9 = vadd.f32 %v10683_v46, %v14791_v57  ;;  %v3488_v18 = vmul.f32 %v11016_v49, %v11016_v49  ;;  %v11066_v8 = vpop.f32.mrf.mxu0  ;;  %v7166_v46 = vld [vmem:[%s14069_s5 + $0x1c0] ss:$8 sps:$4 sm:$0xff]   ;;  %4594 = vmatprep.subr.bf16.mxu0 %v7165_v39 }
 0x2e1   :  { %v11041_v24 = vpop.f32.mrf.mxu1  ;;  %v11064_v63 = vadd.f32 %v10731_v55, %v10740_v28  ;;  %v3665_v47 = vadd.f32 %v3664_v1, %v3484_v51  ;;  %v3489_v0 = vmul.f32 %v11030_v41, %v11030_v41  ;;  %v11078_v44 = vmax.f32 %v3062_v58, 0.0  ;;  %4787 = vmatprep.subr.bf16.mxu1 %v7168_v54  ;;  %v14793_v61 = vld [vmem:[#allocation114_spill] sm:$0xff] }
 0x2e2   :  { %v3070_v55 = vadd.f32 %v10789_v30, %v10770_v27  ;;  %v3422_v28 = vadd.f32 %v3421_v34, %v11001_v33  ;;  %v3386_v19 = vadd.f32 %v3385_v50, %v11016_v49  ;;  %v11086_v57 = vadd.f32 %v10787_v42, %v14793_v61  ;;  %v7171_v42 = vld [vmem:[%s14069_s5 + $0xb4] ss:$8 sps:$4 sm:$0xff]   ;;  %v2962_v54 = vpop.f32.mrf.mxu0  ;;  %v7172_v50 = vld [vmem:[%s14069_s5 + $0x1b0] ss:$8 sps:$4 sm:$0xff]  }
 0x2e3   :  { %v11068_v32 = vpop.f32.mrf.mxu1  ;;  %14792 = vst [vmem:[#allocation100_spill] sm:$0xff] %v11078_v44  ;;  %v11088_v11 = vmax.f32 %v3064_v15, 0.0  ;;  %4595 = vmatpush2.bf16.msra.mxu0 %v7163_v25  ;;  %4788 = vmatpush2.bf16.msra.mxu1 %v7166_v46  ;;  %v3702_v51 = vadd.f32 %v3701_v53, %v3485_v29  ;;  %v3492_v27 = vmul.f32 %v11045_v26, %v11045_v26  ;;  %v11094_v30 = vmax.f32 %v3066_v35, 0.0  ;;  %v7174_v15 = vld [vmem:[%s14069_s5 + $0x1b4] ss:$8 sps:$4 sm:$0xff]   ;;  %v14795_v53 = vld [vmem:[#allocation115_spill] sm:$0xff] }
 0x2e4   :  { %v3072_v58 = vadd.f32 %v10814_v38, %v10774_v2  ;;  %v3666_v34 = vadd.f32 %v3665_v47, %v3488_v18  ;;  %v3423_v39 = vadd.f32 %v3422_v28, %v11030_v41  ;;  %v11107_v29 = vadd.f32 %v10838_v17, %v14795_v53  ;;  %v7169_v38 = vld [vmem:[%s14069_s5 + $0xb0] ss:$8 sps:$4 sm:$0xff]   ;;  %4596 = vmatprep.subr.bf16.mxu0 %v7171_v42 }
 0x2e5   :  { %v11090_v1 = vpop.f32.mrf.mxu1  ;;  %14794 = vst [vmem:[#allocation101_spill] sm:$0xff] %v11094_v30  ;;  %v3074_v35 = vadd.f32 %v10840_v40, %v10778_v22  ;;  %v3703_v18 = vadd.f32 %v3702_v51, %v3489_v0  ;;  %v3493_v25 = vmul.f32 %v11078_v44, %v11078_v44  ;;  %v11121_v17 = vmax.f32 %v3070_v55, 0.0  ;;  %v14796_v46 = vld [vmem:[#allocation116_spill] sm:$0xff]  ;;  %4789 = vmatprep.subr.bf16.mxu1 %v7174_v15  ;;  %v7175_v15 = vld [vmem:[%s14069_s5 + $0xa0] ss:$8 sps:$4 sm:$0xff]  }
 0x2e6   :  { %v3076_v22 = vadd.f32 %v10862_v13, %v10784_v3  ;;  %v3387_v40 = vadd.f32 %v3386_v19, %v11045_v26  ;;  %v11128_v47 = vadd.f32 %v10883_v23, %v14796_v46  ;;  %v3496_v28 = vmul.f32 %v11088_v11, %v11088_v11  ;;  %v7177_v23 = vld [vmem:[%s14069_s5 + $0xa4] ss:$8 sps:$4 sm:$0xff]  }
 0x2e7   :  { %v11111_v2 = vpop.f32.mrf.mxu1  ;;  %4597 = vmatpush2.bf16.msra.mxu0 %v7169_v38  ;;  %v3667_v0 = vadd.f32 %v3666_v34, %v3492_v27  ;;  %v11136_v55 = vadd.f32 %v10928_v10, %v10763_v43  ;;  %v3497_v3 = vmul.f32 %v11094_v30, %v11094_v30  ;;  %v11140_v13 = vmax.f32 %v3072_v58, 0.0  ;;  %4790 = vmatpush2.bf16.msra.mxu1 %v7172_v50  ;;  %v7180_v19 = vld [vmem:[%s14069_s5 + $0x1a4] ss:$8 sps:$4 sm:$0xff]   ;;  %v2966_v10 = vpop.f32.mrf.mxu0  ;;  %v7178_v34 = vld [vmem:[%s14069_s5 + $0x1a0] ss:$8 sps:$4 sm:$0xff]  }
 0x2e8   :  { %v3424_v51 = vadd.f32 %v3423_v39, %v11078_v44  ;;  %v3388_v27 = vadd.f32 %v3387_v40, %v11088_v11  ;;  %v11150_v43 = vmax.f32 %v3074_v35, 0.0  ;;  %v3080_v58 = vadd.f32 %v10885_v21, %v10793_v5  ;;  %v14798_v39 = vld [vmem:[#allocation118_spill] sm:$0xff]  ;;  %4598 = vmatprep.subr.bf16.mxu0 %v7177_v23  ;;  %4791 = vmatprep.subr.bf16.mxu1 %v7180_v19  ;;  %v14800_v46 = vld [vmem:[#allocation119_spill] sm:$0xff]  ;;  %v14802_v23 = vld [vmem:[#allocation64_spill] sm:$0xff] }
 0x2e9   :  { %v11132_v61 = vpop.f32.mrf.mxu1  ;;  %14797 = vst [vmem:[#allocation130_spill] sm:$0xff] %v11140_v13  ;;  %v3704_v53 = vadd.f32 %v3703_v18, %v3493_v25  ;;  %v11164_v38 = vadd.f32 %v10971_v6, %v14798_v39  ;;  %v3500_v35 = vmul.f32 %v11121_v17, %v11121_v17  ;;  %v11168_v50 = vmax.f32 %v3076_v22, 0.0  ;;  %v14806_v44 = vld [vmem:[#allocation2_spill] sm:$0xff] }
 0x2ea   :  { %v3668_v5 = vadd.f32 %v3667_v0, %v3496_v28  ;;  %v3425_v21 = vadd.f32 %v3424_v51, %v11094_v30  ;;  %v3082_v40 = vadd.f32 %v10903_v7, %v10797_v52  ;;  %v3084_v18 = vadd.f32 %v10930_v12, %v10801_v56  ;;  %v14801_v28 = vld [vmem:[#allocation120_spill] sm:$0xff] }
 0x2eb   :  { %v11154_v42 = vpop.f32.mrf.mxu1  ;;  %14799 = vst [vmem:[#allocation142_spill] sm:$0xff] %v11168_v50  ;;  %4599 = vmatpush2.bf16.msra.mxu0 %v7175_v15  ;;  %v3705_v6 = vadd.f32 %v3704_v53, %v3497_v3  ;;  %v11179_v39 = vadd.f32 %v11018_v14, %v14800_v46  ;;  %v3501_v22 = vmul.f32 %v11140_v13, %v11140_v13  ;;  %v7183_v52 = vld [vmem:[%s14069_s5 + $0x94] ss:$8 sps:$4 sm:$0xff]   ;;  %v11196_v14 = vmax.f32 %v3080_v58, 0.0  ;;  %v2968_v3 = vpop.f32.mrf.mxu0  ;;  %v7181_v51 = vld [vmem:[%s14069_s5 + $0x90] ss:$8 sps:$4 sm:$0xff]  }
 0x2ec   :  { %v11185_v0 = vadd.f32 %v11066_v8, %v14801_v28  ;;  %4792 = vmatpush2.bf16.msra.mxu1 %v7178_v34  ;;  %v7186_v56 = vld [vmem:[%s14069_s5 + $0x194] ss:$8 sps:$4 sm:$0xff]   ;;  %v3389_v7 = vadd.f32 %v3388_v27, %v11121_v17  ;;  %v3504_v12 = vmul.f32 %v11150_v43, %v11150_v43  ;;  %v3086_v8 = vadd.f32 %v10950_v60, %v14802_v23  ;;  %v7184_v15 = vld [vmem:[%s14069_s5 + $0x190] ss:$8 sps:$4 sm:$0xff]   ;;  %v14804_v46 = vld [vmem:[#allocation18_spill] sm:$0xff] }
 0x2ed   :  { %v11175_v25 = vpop.f32.mrf.mxu1  ;;  %v3669_v27 = vadd.f32 %v3668_v5, %v3500_v35  ;;  %v14803_v34 = vld [vmem:[#allocation33_spill] sm:$0xff]  ;;  %v3505_v58 = vmul.f32 %v11168_v50, %v11168_v50  ;;  %v3090_v60 = vadd.f32 %v10973_v4, %v14804_v46  ;;  %4600 = vmatprep.subr.bf16.mxu0 %v7183_v52  ;;  %v3426_v28 = vadd.f32 %v3425_v21, %v11140_v13  ;;  %v14808_v4 = vld [vmem:[#allocation20_spill] sm:$0xff] }
 0x2ee   :  { %v11209_v53 = vadd.f32 %v2962_v54, %v14803_v34  ;;  %v11216_v23 = vmax.f32 %v3082_v40, 0.0  ;;  %v11218_v30 = vmax.f32 %v3084_v18, 0.0  ;;  %v3092_v41 = vadd.f32 %v10996_v31, %v14806_v44  ;;  %4793 = vmatprep.subr.bf16.mxu1 %v7186_v56  ;;  %v14807_v34 = vld [vmem:[#allocation123_spill] sm:$0xff] }
 0x2ef   :  { %v11200_v19 = vpop.f32.mrf.mxu1  ;;  %4601 = vmatpush2.bf16.msra.mxu0 %v7181_v51  ;;  %v3706_v54 = vadd.f32 %v3705_v6, %v3501_v22  ;;  %v3390_v5 = vadd.f32 %v3389_v7, %v11150_v43  ;;  %v11226_v33 = vadd.f32 %v2966_v10, %v14807_v34  ;;  %v3094_v21 = vadd.f32 %v11020_v62, %v14808_v4  ;;  %v7189_v40 = vld [vmem:[%s14069_s5 + $0x84] ss:$8 sps:$4 sm:$0xff]   ;;  %v2970_v6 = vpop.f32.mrf.mxu0  ;;  %v7187_v56 = vld [vmem:[%s14069_s5 + $0x80] ss:$8 sps:$4 sm:$0xff]  }
 0x2f0   :  { %14805 = vst [vmem:[#allocation133_spill] sm:$0xff] %v11216_v23  ;;  %4794 = vmatpush2.bf16.msra.mxu1 %v7184_v15  ;;  %v7192_v31 = vld [vmem:[%s14069_s5 + $0x184] ss:$8 sps:$4 sm:$0xff]   ;;  %v3670_v44 = vadd.f32 %v3669_v27, %v3504_v12  ;;  %v3508_v18 = vmul.f32 %v11196_v14, %v11196_v14  ;;  %v11238_v22 = vmax.f32 %v3086_v8, 0.0  ;;  %v7190_v7 = vld [vmem:[%s14069_s5 + $0x180] ss:$8 sps:$4 sm:$0xff]   ;;  %v3427_v12 = vadd.f32 %v3426_v28, %v11168_v50 }
 0x2f1   :  { %v11222_v35 = vpop.f32.mrf.mxu1  ;;  %v14810_v10 = vld [vmem:[#allocation39_spill] sm:$0xff]  ;;  %v3707_v51 = vadd.f32 %v3706_v54, %v3505_v58  ;;  %v14811_v15 = vld [vmem:[#allocation124_spill] sm:$0xff]  ;;  %v11252_v8 = vmax.f32 %v3090_v60, 0.0  ;;  %4602 = vmatprep.subr.bf16.mxu0 %v7189_v40  ;;  %4795 = vmatprep.subr.bf16.mxu1 %v7192_v31  ;;  %v3512_v46 = vmul.f32 %v11218_v30, %v11218_v30  ;;  %v11258_v34 = vmax.f32 %v3092_v41, 0.0  ;;  %v14813_v4 = vld [vmem:[#allocation70_spill] sm:$0xff] }
 0x2f2   :  { %14809 = vst [vmem:[#allocation102_spill] sm:$0xff] %v11238_v22  ;;  %v3096_v52 = vadd.f32 %v11041_v24, %v14810_v10  ;;  %v11250_v27 = vadd.f32 %v2968_v3, %v14811_v15  ;;  %v3509_v24 = vmul.f32 %v11216_v23, %v11216_v23  ;;  %v3100_v10 = vadd.f32 %v11068_v32, %v14813_v4  ;;  %v14814_v58 = vld [vmem:[#allocation125_spill] sm:$0xff]  ;;  %v14815_v40 = vld [vmem:[#allocation72_spill] sm:$0xff] }
 0x2f3   :  { %v3119_v62 = vpop.f32.mrf.mxu1  ;;  %14812 = vst [vmem:[#allocation134_spill] sm:$0xff] %v11258_v34  ;;  %4603 = vmatpush2.bf16.msra.mxu0 %v7187_v56  ;;  %v3391_v3 = vadd.f32 %v3390_v5, %v11196_v14  ;;  %v11264_v60 = vadd.f32 %v2970_v6, %v14814_v58  ;;  %v11266_v54 = vmax.f32 %v3094_v21, 0.0  ;;  %v3102_v31 = vadd.f32 %v11090_v1, %v14815_v40  ;;  %v14817_v32 = vld [vmem:[#allocation73_spill] sm:$0xff]  ;;  %v14818_v58 = vld [vmem:[#allocation22_spill] sm:$0xff] }
 0x2f4   :  { %4796 = vmatpush2.bf16.msra.mxu1 %v7190_v7  ;;  %v3671_v15 = vadd.f32 %v3670_v44, %v3508_v18  ;;  %v3513_v41 = vmul.f32 %v11238_v22, %v11238_v22  ;;  %v11272_v50 = vmax.f32 %v3096_v52, 0.0  ;;  %v3104_v56 = vadd.f32 %v11111_v2, %v14817_v32  ;;  %v14820_v32 = vld [vmem:[#allocation83_spill] sm:$0xff] }
 0x2f5   :  { %v3121_v28 = vpop.f32.mrf.mxu1  ;;  %v3428_v5 = vadd.f32 %v3427_v12, %v11216_v23  ;;  %v3392_v6 = vadd.f32 %v3391_v3, %v11218_v30  ;;  %v3516_v21 = vmul.f32 %v11252_v8, %v11252_v8  ;;  %v3106_v1 = vadd.f32 %v11132_v61, %v14818_v58 }
 0x2f6   :  { %14816 = vst [vmem:[#allocation103_spill] sm:$0xff] %v11272_v50  ;;  %v3708_v44 = vadd.f32 %v3707_v51, %v3509_v24  ;;  %v3672_v18 = vadd.f32 %v3671_v15, %v3512_v46  ;;  %v3517_v52 = vmul.f32 %v11258_v34, %v11258_v34  ;;  %v11284_v7 = vmax.f32 %v3100_v10, 0.0 }
 0x2f7   :  { %v3123_v4 = vpop.f32.mrf.mxu1  ;;  %v3429_v2 = vadd.f32 %v3428_v5, %v11238_v22  ;;  %v3520_v12 = vmul.f32 %v11266_v54, %v11266_v54  ;;  %v11289_v3 = vmax.f32 %v3102_v31, 0.0  ;;  %v3110_v23 = vadd.f32 %v11154_v42, %v14820_v32  ;;  %v14821_v5 = vld [vmem:[#allocation86_spill] sm:$0xff]  ;;  %v14822_v31 = vld [vmem:[#allocation121_spill] sm:$0xff] }
 0x2f8   :  { %14819 = vst [vmem:[#allocation135_spill] sm:$0xff] %v11284_v7  ;;  %v3709_v13 = vadd.f32 %v3708_v44, %v3513_v41  ;;  %v3393_v61 = vadd.f32 %v3392_v6, %v11252_v8  ;;  %v3521_v51 = vmul.f32 %v11272_v50, %v11272_v50  ;;  %v11296_v24 = vmax.f32 %v3104_v56, 0.0 }
 0x2f9   :  { %v3125_v40 = vpop.f32.mrf.mxu1  ;;  %v3673_v10 = vadd.f32 %v3672_v18, %v3516_v21  ;;  %v11298_v15 = vmax.f32 %v3106_v1, 0.0  ;;  %v3112_v58 = vadd.f32 %v11175_v25, %v14821_v5  ;;  %v3114_v22 = vadd.f32 %v11200_v19, %v14822_v31  ;;  %v14823_v18 = vld [vmem:[#allocation95_spill] sm:$0xff] }
 0x2fa   :  { %v3430_v42 = vadd.f32 %v3429_v2, %v11258_v34  ;;  %v3710_v41 = vadd.f32 %v3709_v13, %v3517_v52  ;;  %v3394_v6 = vadd.f32 %v3393_v61, %v11266_v54  ;;  %v3524_v44 = vmul.f32 %v11284_v7, %v11284_v7  ;;  %v14824_v52 = vld [vmem:[#allocation97_spill] sm:$0xff] }
 0x2fb   :  { %v3129_v46 = vpop.f32.mrf.mxu1  ;;  %v3674_v32 = vadd.f32 %v3673_v10, %v3520_v12  ;;  %v3525_v21 = vmul.f32 %v11289_v3, %v11289_v3  ;;  %v11310_v1 = vmax.f32 %v3110_v23, 0.0  ;;  %v3116_v25 = vadd.f32 %v11222_v35, %v14823_v18 }
 0x2fc   :  { %v3431_v19 = vadd.f32 %v3430_v42, %v11272_v50  ;;  %v3711_v5 = vadd.f32 %v3710_v41, %v3521_v51  ;;  %v3528_v13 = vmul.f32 %v11296_v24, %v11296_v24  ;;  %v3120_v2 = vadd.f32 %v3119_v62, %v14824_v52  ;;  %v14825_v42 = vld [vmem:[#allocation126_spill] sm:$0xff] }
 0x2fd   :  { %v3131_v56 = vpop.f32.mrf.mxu1  ;;  %v3395_v31 = vadd.f32 %v3394_v6, %v11284_v7  ;;  %v3529_v12 = vmul.f32 %v11298_v15, %v11298_v15  ;;  %v11321_v10 = vmax.f32 %v3112_v58, 0.0  ;;  %v11323_v23 = vmax.f32 %v3114_v22, 0.0 }
 0x2fe   :  { %v3675_v34 = vadd.f32 %v3674_v32, %v3524_v44  ;;  %v3432_v35 = vadd.f32 %v3431_v19, %v11289_v3  ;;  %v3122_v51 = vadd.f32 %v3121_v28, %v14825_v42  ;;  %v3124_v41 = vadd.f32 %v3123_v4, %v10983_v45 }
 0x2ff   :  { %v3133_v61 = vpop.f32.mrf.mxu1  ;;  %v3712_v50 = vadd.f32 %v3711_v5, %v3525_v21  ;;  %v3396_v62 = vadd.f32 %v3395_v31, %v11296_v24  ;;  %v3532_v6 = vmul.f32 %v11310_v1, %v11310_v1  ;;  %v11331_v52 = vmax.f32 %v3116_v25, 0.0 }
 0x300   :  { %v3676_v58 = vadd.f32 %v3675_v34, %v3528_v13  ;;  %v3433_v22 = vadd.f32 %v3432_v35, %v11298_v15  ;;  %v11334_v7 = vmax.f32 %v3120_v2, 0.0  ;;  %v3130_v44 = vadd.f32 %v3129_v46, %v11014_v37 }
 0x301   :  { %v3135_v18 = vpop.f32.mrf.mxu1  ;;  %v3713_v28 = vadd.f32 %v3712_v50, %v3529_v12  ;;  %v3533_v45 = vmul.f32 %v11321_v10, %v11321_v10  ;;  %v3536_v4 = vmul.f32 %v11323_v23, %v11323_v23  ;;  %v3126_v21 = vadd.f32 %v3125_v40, %v10994_v36 }
 0x302   :  { %v3397_v25 = vadd.f32 %v3396_v62, %v11310_v1  ;;  %v11343_v19 = vmax.f32 %v3122_v51, 0.0  ;;  %v11345_v34 = vmax.f32 %v3124_v41, 0.0  ;;  %v3134_v5 = vadd.f32 %v3133_v61, %v11058_v9 }
 0x303   :  { %v3139_v32 = vpop.f32.mrf.mxu1  ;;  %v3677_v37 = vadd.f32 %v3676_v58, %v3532_v6  ;;  %v3434_v50 = vadd.f32 %v3433_v22, %v11321_v10  ;;  %v3537_v46 = vmul.f32 %v11331_v52, %v11331_v52  ;;  %v3132_v2 = vadd.f32 %v3131_v56, %v11037_v16 }
 0x304   :  { %v3398_v31 = vadd.f32 %v3397_v25, %v11323_v23  ;;  %v3540_v36 = vmul.f32 %v11334_v7, %v11334_v7  ;;  %v11355_v40 = vmax.f32 %v3130_v44, 0.0  ;;  %v3140_v12 = vadd.f32 %v3139_v32, %v11086_v57  ;;  %v2972_v25 = vpop.f32.mrf.mxu0 }
 0x305   :  { %v3141_v13 = vpop.f32.mrf.mxu1  ;;  %v3714_v9 = vadd.f32 %v3713_v28, %v3533_v45  ;;  %v3678_v61 = vadd.f32 %v3677_v37, %v3536_v4  ;;  %v3435_v42 = vadd.f32 %v3434_v50, %v11331_v52  ;;  %v11359_v51 = vmax.f32 %v3126_v21, 0.0 }
 0x306   :  { %v3541_v41 = vmul.f32 %v11343_v19, %v11343_v19  ;;  %v3544_v16 = vmul.f32 %v11345_v34, %v11345_v34  ;;  %v11365_v56 = vmax.f32 %v3134_v5, 0.0  ;;  %v3399_v57 = vadd.f32 %v3398_v31, %v11334_v7 }
 0x307   :  { %v3143_v35 = vpop.f32.mrf.mxu1  ;;  %v3715_v58 = vadd.f32 %v3714_v9, %v3537_v46  ;;  %v11369_v22 = vmax.f32 %v3132_v2, 0.0  ;;  %v3136_v44 = vadd.f32 %v3135_v18, %v11064_v63  ;;  %v3679_v32 = vadd.f32 %v3678_v61, %v3540_v36 }
 0x308   :  { %v3144_v62 = vadd.f32 %v3143_v35, %v11128_v47  ;;  %v3436_v28 = vadd.f32 %v3435_v42, %v11343_v19  ;;  %v3548_v45 = vmul.f32 %v11355_v40, %v11355_v40  ;;  %v11375_v4 = vmax.f32 %v3140_v12, 0.0 }
 0x309   :  { %v3145_v6 = vpop.f32.mrf.mxu1  ;;  %v3400_v47 = vadd.f32 %v3399_v57, %v11345_v34  ;;  %v3545_v5 = vmul.f32 %v11359_v51, %v11359_v51  ;;  %v3142_v37 = vadd.f32 %v3141_v13, %v11107_v29  ;;  %v3716_v63 = vadd.f32 %v3715_v58, %v3541_v41  ;;  %v2976_v41 = vpop.f32.mrf.mxu0 }
 0x30a   :  { %v3680_v18 = vadd.f32 %v3679_v32, %v3544_v16  ;;  %v3552_v46 = vmul.f32 %v11365_v56, %v11365_v56  ;;  %v11384_v2 = vmax.f32 %v3144_v62, 0.0  ;;  %v3437_v36 = vadd.f32 %v3436_v28, %v11359_v51 }
 0x30b   :  { %v3149_v21 = vpop.f32.mrf.mxu1  ;;  %v3401_v12 = vadd.f32 %v3400_v47, %v11355_v40  ;;  %v3549_v35 = vmul.f32 %v11369_v22, %v11369_v22  ;;  %v11390_v9 = vmax.f32 %v3136_v44, 0.0  ;;  %v3146_v13 = vadd.f32 %v3145_v6, %v11136_v55 }
 0x30c   :  { %v3150_v50 = vadd.f32 %v3149_v21, %v11164_v38  ;;  %v3681_v29 = vadd.f32 %v3680_v18, %v3548_v45  ;;  %v3556_v38 = vmul.f32 %v11375_v4, %v11375_v4  ;;  %v3717_v16 = vadd.f32 %v3716_v63, %v3545_v5 }
 0x30d   :  { %v3151_v31 = vpop.f32.mrf.mxu1  ;;  %v3402_v62 = vadd.f32 %v3401_v12, %v11365_v56  ;;  %v11398_v58 = vmax.f32 %v3142_v37, 0.0  ;;  %v3438_v44 = vadd.f32 %v3437_v36, %v11369_v22  ;;  %v3560_v28 = vmul.f32 %v11384_v2, %v11384_v2 }
 0x30e   :  { %v11395_v61 = vmax.f32 %v3150_v50, 0.0  ;;  %v3682_v32 = vadd.f32 %v3681_v29, %v3552_v46  ;;  %v3152_v45 = vadd.f32 %v3151_v31, %v11179_v39  ;;  %v3718_v6 = vadd.f32 %v3717_v16, %v3549_v35  ;;  %v2978_v46 = vpop.f32.mrf.mxu0  ;;  %v14828_v35 = vld [vmem:[#allocation67_spill] sm:$0xff] }
 0x30f   :  { %v3153_v42 = vpop.f32.mrf.mxu1  ;;  %14826 = vst [vmem:[#allocation144_spill] sm:$0xff] %v11398_v58  ;;  %v3553_v21 = vmul.f32 %v11390_v9, %v11390_v9  ;;  %v3403_v47 = vadd.f32 %v3402_v62, %v11375_v4  ;;  %v11410_v50 = vmax.f32 %v3146_v13, 0.0  ;;  %v3439_v39 = vadd.f32 %v3438_v44, %v11390_v9 }
 0x310   :  { %v3154_v57 = vadd.f32 %v3153_v42, %v11185_v0  ;;  %v3683_v37 = vadd.f32 %v3682_v32, %v3556_v38  ;;  %v3564_v0 = vmul.f32 %v11395_v61, %v11395_v61  ;;  %v3557_v31 = vmul.f32 %v11398_v58, %v11398_v58 }
 0x311   :  { %v3155_v55 = vpop.f32.mrf.mxu1  ;;  %14827 = vst [vmem:[#allocation104_spill] sm:$0xff] %v11410_v50  ;;  %v3404_v36 = vadd.f32 %v3403_v47, %v11384_v2  ;;  %v2973_v29 = vadd.f32 %v2972_v25, %v14828_v35  ;;  %v11421_v13 = vmax.f32 %v3152_v45, 0.0  ;;  %v3719_v16 = vadd.f32 %v3718_v6, %v3553_v21  ;;  %v2980_v45 = vpop.f32.mrf.mxu0 }
 0x312   :  { %v11408_v5 = vmax.f32 %v3154_v57, 0.0  ;;  %v3156_v63 = vadd.f32 %v3155_v55, %v11209_v53  ;;  %v3684_v38 = vadd.f32 %v3683_v37, %v3560_v28  ;;  %v3440_v62 = vadd.f32 %v3439_v39, %v11398_v58 }
 0x313   :  { %v3159_v18 = vpop.f32.mrf.mxu1  ;;  %14829 = vst [vmem:[#allocation136_spill] sm:$0xff] %v11421_v13  ;;  %v3405_v57 = vadd.f32 %v3404_v36, %v11395_v61  ;;  %v3561_v32 = vmul.f32 %v11410_v50, %v11410_v50  ;;  %v3720_v47 = vadd.f32 %v3719_v16, %v3557_v31  ;;  %v3565_v39 = vmul.f32 %v11421_v13, %v11421_v13 }
 0x314   :  { %v3160_v12 = vadd.f32 %v3159_v18, %v11226_v33  ;;  %v3568_v42 = vmul.f32 %v11408_v5, %v11408_v5  ;;  %v3685_v33 = vadd.f32 %v3684_v38, %v3564_v0  ;;  %v11431_v55 = vmax.f32 %v3156_v63, 0.0 }
 0x315   :  { %v3161_v53 = vpop.f32.mrf.mxu1  ;;  %v3406_v37 = vadd.f32 %v3405_v57, %v11408_v5  ;;  %v3441_v18 = vadd.f32 %v3440_v62, %v11410_v50 }
 0x316   :  { %v11427_v44 = vmax.f32 %v3160_v12, 0.0  ;;  %v3162_v25 = vadd.f32 %v3161_v53, %v11250_v27  ;;  %v3686_v0 = vadd.f32 %v3685_v33, %v3568_v42  ;;  %v14831_v27 = vld [vmem:[#allocation128_spill] sm:$0xff]  ;;  %v3721_v53 = vadd.f32 %v3720_v47, %v3561_v32  ;;  %v14835_v32 = vld [vmem:[#allocation129_spill] sm:$0xff] }
 0x317   :  { %v3163_v28 = vpop.f32.mrf.mxu1  ;;  %v2977_v12 = vadd.f32 %v2976_v41, %v14831_v27  ;;  %v3442_v16 = vadd.f32 %v3441_v18, %v11421_v13  ;;  %v2979_v47 = vadd.f32 %v2978_v46, %v14835_v32 }
 0x318   :  { %v3572_v6 = vmul.f32 %v11427_v44, %v11427_v44  ;;  %v3164_v21 = vadd.f32 %v3163_v28, %v11264_v60  ;;  %v11441_v63 = vmax.f32 %v3162_v25, 0.0  ;;  %v3407_v31 = vadd.f32 %v3406_v37, %v11427_v44  ;;  %v2982_v28 = vpop.f32.mrf.mxu0  ;;  %v14833_v37 = vld [vmem:[#allocation155_spill] sm:$0xff] }
 0x319   :  { %v3165_v36 = vpop.f32.mrf.mxu1  ;;  %v3569_v60 = vmul.f32 %v11431_v55, %v11431_v55  ;;  %v3722_v18 = vadd.f32 %v3721_v53, %v3565_v39 }
 0x31a   :  { %14830 = vst [vmem:[#allocation137_spill] sm:$0xff] %v11441_v63  ;;  %v11445_v35 = vmax.f32 %v3164_v21, 0.0  ;;  %v3166_v38 = vadd.f32 %v3165_v36, %v2973_v29  ;;  %v3687_v62 = vadd.f32 %v3686_v0, %v3572_v6  ;;  %v14834_v21 = vld [vmem:[#allocation132_spill] sm:$0xff]  ;;  %v3573_v36 = vmul.f32 %v11441_v63, %v11441_v63  ;;  %v14836_v0 = vld [vmem:[#allocation131_spill] sm:$0xff] }
 0x31b   :  { %v3169_v57 = vpop.f32.mrf.mxu1  ;;  %v2790_v29 = vadd.f32 %v14834_v21, %v14833_v37  ;;  %v2981_v27 = vadd.f32 %v2980_v45, %v14836_v0  ;;  %v3723_v58 = vadd.f32 %v3722_v18, %v3569_v60 }
 0x31c   :  { %v3408_v42 = vadd.f32 %v3407_v31, %v11445_v35  ;;  %v3576_v33 = vmul.f32 %v11445_v35, %v11445_v35  ;;  %v11453_v41 = vmax.f32 %v3166_v38, 0.0  ;;  %v3170_v25 = vadd.f32 %v3169_v57, %v2977_v12 }
 0x31d   :  { %v3171_v6 = vpop.f32.mrf.mxu1  ;;  %v3443_v31 = vadd.f32 %v3442_v16, %v11431_v55  ;;  %v2983_v38 = vadd.f32 %v2982_v28, %v2790_v29  ;;  %v3724_v21 = vadd.f32 %v3723_v58, %v3573_v36 }
 0x31e   :  { %14832 = vst [vmem:[#allocation105_spill] sm:$0xff] %v11453_v41  ;;  %v3688_v13 = vadd.f32 %v3687_v62, %v3576_v33  ;;  %v11462_v50 = vmax.f32 %v3170_v25, 0.0  ;;  %v3577_v12 = vmul.f32 %v11453_v41, %v11453_v41  ;;  %v3172_v57 = vadd.f32 %v3171_v6, %v2979_v47 }
 0x31f   :  { %v3173_v37 = vpop.f32.mrf.mxu1  ;;  %v3444_v46 = vadd.f32 %v3443_v31, %v11441_v63 }
 0x320   :  { %v3409_v39 = vadd.f32 %v3408_v42, %v11462_v50  ;;  %v3580_v53 = vmul.f32 %v11462_v50, %v11462_v50  ;;  %v3174_v45 = vadd.f32 %v3173_v37, %v2981_v27  ;;  %v11470_v16 = vmax.f32 %v3172_v57, 0.0 }
 0x321   :  { %v3175_v62 = vpop.f32.mrf.mxu1  ;;  %v3445_v28 = vadd.f32 %v3444_v46, %v11453_v41  ;;  %v3725_v29 = vadd.f32 %v3724_v21, %v3577_v12 }
 0x322   :  { %v3689_v60 = vadd.f32 %v3688_v13, %v3580_v53  ;;  %v11473_v33 = vmax.f32 %v3174_v45, 0.0  ;;  %v3176_v25 = vadd.f32 %v3175_v62, %v2983_v38  ;;  %v3581_v32 = vmul.f32 %v11470_v16, %v11470_v16 }
 0x323   :  { %v3446_v42 = vadd.f32 %v3445_v28, %v11470_v16 }
 0x324   :  { %v3410_v47 = vadd.f32 %v3409_v39, %v11473_v33  ;;  %v3584_v58 = vmul.f32 %v11473_v33, %v11473_v33  ;;  %v11481_v18 = vmax.f32 %v3176_v25, 0.0  ;;  %v3726_v36 = vadd.f32 %v3725_v29, %v3581_v32 }
 0x326   :  { %v3411_v6 = vrot.slane %v3410_v47, 4  ;;  %v3690_v0 = vadd.f32 %v3689_v60, %v3584_v58  ;;  %v3447_v13 = vadd.f32 %v3446_v42, %v11481_v18  ;;  %v3585_v27 = vmul.f32 %v11481_v18, %v11481_v18 }
 0x328   :  { %v3412_v31 = vadd.f32 %v3411_v6, %v3410_v47  ;;  %v3691_v38 = vrot.slane %v3690_v0, 4  ;;  %v3448_v12 = vrot.slane %v3447_v13, 4  ;;  %v3727_v57 = vadd.f32 %v3726_v36, %v3585_v27 }
 0x32a   :  { %v3413_v37 = vrot.slane %v3412_v31, 2  ;;  %v3692_v46 = vadd.f32 %v3691_v38, %v3690_v0  ;;  %v3449_v39 = vadd.f32 %v3448_v12, %v3447_v13  ;;  %v3728_v53 = vrot.slane %v3727_v57, 4 }
 0x32c   :  { %v3414_v45 = vadd.f32 %v3413_v37, %v3412_v31  ;;  %v3693_v21 = vrot.slane %v3692_v46, 2  ;;  %v3450_v62 = vrot.slane %v3449_v39, 2  ;;  %v3729_v28 = vadd.f32 %v3728_v53, %v3727_v57 }
 0x32e   :  { %v3415_v25 = vrot.slane %v3414_v45, 1  ;;  %v3694_v29 = vadd.f32 %v3693_v21, %v3692_v46  ;;  %v3451_v60 = vadd.f32 %v3450_v62, %v3449_v39  ;;  %v3730_v32 = vrot.slane %v3729_v28, 2 }
 0x32f   :  { %v7234_v46 = vmov 1966171168  }
 0x330   :  { %v3416_v42 = vadd.f32 %v3415_v25, %v3414_v45  ;;  %v3695_v58 = vrot.slane %v3694_v29, 1  ;;  %v3452_v41 = vrot.slane %v3451_v60, 1  ;;  %v3731_v63 = vadd.f32 %v3730_v32, %v3729_v28  ;;  %v14837_v25 = vld [vmem:[#allocation7_spill] sm:$0xff]  ;;  %v14839_v32 = vld [vmem:[#allocation57_spill] sm:$0xff] }
 0x331   :  { %v3796_v39 = vunpack.c.l.s4 %v7234_v46 }
 0x332   :  { %v11486_v47 = vmul.f32 0.00390625, %v3416_v42  ;;  %v3696_v6 = vadd.f32 %v3695_v58, %v3694_v29  ;;  %v3453_v36 = vadd.f32 %v3452_v41, %v3451_v60  ;;  %v3732_v27 = vrot.slane %v3731_v63, 1  ;;  %v14838_v29 = vld [vmem:[#allocation43_spill] sm:$0xff]  ;;  %v14841_v42 = vld [vmem:[#allocation6_spill] sm:$0xff] }
 0x333   :  { %v3797_v41 = vunpack.c.0.s8 %v3796_v39  ;;  %v11496_v60 = vmul.f32 %v14838_v29, %v14837_v25  ;;  %v11503_v58 = vmul.f32 %v14838_v29, %v14841_v42  ;;  %v14851_v39 = vld [vmem:[#allocation36_spill] sm:$0xff] }
 0x334   :  { %v3736_v0 = vmul.f32 0.00390625, %v3696_v6  ;;  %v3740_v13 = vmul.f32 %v11486_v47, %v11486_v47  ;;  %v11490_v31 = vmul.f32 0.00390625, %v3453_v36  ;;  %v3733_v38 = vadd.f32 %v3732_v27, %v3731_v63  ;;  %v14842_v6 = vld [vmem:[#allocation79_spill] sm:$0xff]  ;;  %v14843_v27 = vld [vmem:[#allocation30_spill] sm:$0xff] }
 0x335   :  { %v11499_v63 = vsub.s32 %v3797_v41, %v14839_v32  ;;  %v11507_v36 = vmul.f32 %v14838_v29, %v14842_v6  ;;  %v14859_v32 = vld [vmem:[#allocation88_spill] sm:$0xff]  ;;  %v14861_v6 = vld [vmem:[#allocation42_spill] sm:$0xff] }
 0x336   :  { %v3744_v12 = vsub.f32 %v3736_v0, %v3740_v13  ;;  %v3737_v57 = vmul.f32 0.00390625, %v3733_v38  ;;  %v3741_v37 = vmul.f32 %v11490_v31, %v11490_v31  ;;  %v11511_v0 = vmul.f32 %v14838_v29, %v14843_v27  ;;  %v14845_v13 = vld [vmem:[#allocation32_spill] sm:$0xff] }
 0x337   :  { %14840 = vst [vmem:[#allocation138_spill] sm:$0xff] %v11499_v63  ;;  %v11515_v38 = vmul.f32 %v14838_v29, %v14845_v13  ;;  %v11543_v42 = vmul.f32 %v14838_v29, %v14859_v32  ;;  %v11547_v27 = vmul.f32 %v14838_v29, %v14861_v6  ;;  %v14863_v13 = vld [vmem:[#allocation44_spill] sm:$0xff] }
 0x338   :  { %v3748_v53 = vmax.f32 %v3744_v12, 0.0  ;;  %v3745_v45 = vsub.f32 %v3737_v57, %v3741_v37  ;;  %14844 = vst [vmem:[#allocation147_spill] sm:$0xff] %v11511_v0  ;;  %v14847_v12 = vld [vmem:[#allocation82_spill] sm:$0xff] }
 0x339   :  { %14846 = vst [vmem:[#allocation106_spill] sm:$0xff] %v11515_v38  ;;  %v11519_v57 = vmul.f32 %v14838_v29, %v14847_v12  ;;  %v14849_v37 = vld [vmem:[#allocation34_spill] sm:$0xff]  ;;  %14860 = vst [vmem:[#allocation108_spill] sm:$0xff] %v11543_v42  ;;  %v11551_v12 = vmul.f32 %v14838_v29, %v14863_v13 }
 0x33a   :  { %v3752_v21 = vadd.f32 1e-05, %v3748_v53  ;;  %v3749_v62 = vmax.f32 %v3745_v45, 0.0  ;;  %v11523_v46 = vmul.f32 %v14838_v29, %v14849_v37  ;;  %v11527_v53 = vmul.f32 %v14838_v29, %v14851_v39  ;;  %v14853_v45 = vld [vmem:[#allocation85_spill] sm:$0xff]  ;;  %14862 = vst [vmem:[#allocation143_spill] sm:$0xff] %v11547_v27  ;;  %v14865_v37 = vld [vmem:[#allocation91_spill] sm:$0xff] }
 0x33b   :  { %14848 = vst [vmem:[#allocation139_spill] sm:$0xff] %v11519_v57  ;;  %14864 = vst [vmem:[#allocation152_spill] sm:$0xff] %v11551_v12  ;;  %v11555_v39 = vmul.f32 %v14838_v29, %v14865_v37  ;;  %v14871_v42 = vld [vmem:[#allocation94_spill] sm:$0xff]  ;;  %v14873_v27 = vld [vmem:[#allocation48_spill] sm:$0xff] }
 0x33c   :  { %7221 = vrsqrt.f32 %v3752_v21  ;;  %v3753_v28 = vadd.f32 1e-05, %v3749_v62  ;;  %14850 = vst [vmem:[#allocation107_spill] sm:$0xff] %v11523_v46  ;;  %14852 = vst [vmem:[#allocation140_spill] sm:$0xff] %v11527_v53  ;;  %v11531_v21 = vmul.f32 %v14838_v29, %v14853_v45  ;;  %v14855_v62 = vld [vmem:[#allocation38_spill] sm:$0xff]  ;;  %v14867_v45 = vld [vmem:[#allocation45_spill] sm:$0xff]  ;;  %v11567_v6 = vmul.f32 %v14838_v29, %v14871_v42 }
 0x33d   :  { %v11535_v41 = vmul.f32 %v14838_v29, %v14855_v62  ;;  %14866 = vst [vmem:[#allocation109_spill] sm:$0xff] %v11555_v39  ;;  %v11559_v62 = vmul.f32 %v14838_v29, %v14867_v45  ;;  %v11571_v13 = vmul.f32 %v14838_v29, %v14873_v27  ;;  %v14875_v12 = vld [vmem:[#allocation50_spill] sm:$0xff]  ;;  %v14877_v39 = vld [vmem:[#allocation23_spill] sm:$0xff]  ;;  %v14895_v53 = vld [vmem:[#allocation80_spill] sm:$0xff] }
 0x33e   :  { %7223 = vrsqrt.f32 %v3753_v28  ;;  %14854 = vst [vmem:[#allocation149_spill] sm:$0xff] %v11531_v21  ;;  %v14857_v28 = vld [vmem:[#allocation40_spill] sm:$0xff]  ;;  %14872 = vst [vmem:[#allocation110_spill] sm:$0xff] %v11567_v6  ;;  %v11575_v37 = vmul.f32 %v14838_v29, %v14875_v12  ;;  %v11579_v45 = vmul.f32 %v14838_v29, %v14877_v39  ;;  %v7232_v27 = vld [vmem:[%s14068_s3] sm:$0xf] }
 0x33f   :  { %14856 = vst [vmem:[#allocation141_spill] sm:$0xff] %v11535_v41  ;;  %v11539_v25 = vmul.f32 %v14838_v29, %v14857_v28  ;;  %14868 = vst [vmem:[#allocation145_spill] sm:$0xff] %v11559_v62  ;;  %v14869_v28 = vld [vmem:[#allocation47_spill] sm:$0xff]  ;;  %v14884_v12 = vld [vmem:[#allocation54_spill] sm:$0xff] }
 0x340   :  { %v11563_v32 = vmul.f32 %v14838_v29, %v14869_v28  ;;  %14874 = vst [vmem:[#allocation146_spill] sm:$0xff] %v11571_v13  ;;  %14876 = vst [vmem:[#allocation61_spill] sm:$0xff] %v11575_v37  ;;  %v14879_v62 = vld [vmem:[#allocation51_spill] sm:$0xff]  ;;  %v14883_v13 = vld [vmem:[#allocation52_spill] sm:$0xff]  ;;  %v11595_v37 = vmul.f32 %v14838_v29, %v14884_v12 }
 0x341   :  { %14858 = vst [vmem:[#allocation151_spill] sm:$0xff] %v11539_v25  ;;  %14878 = vst [vmem:[#allocation148_spill] sm:$0xff] %v11579_v45  ;;  %v11583_v28 = vmul.f32 %v14838_v29, %v14879_v62  ;;  %v3771_v6 = vrot.slane %v7232_v27, %v14883_v13  ;;  %v14886_v39 = vld [vmem:[#allocation60_spill] sm:$0xff]  ;;  %v14888_v62 = vld [vmem:[#allocation62_spill] sm:$0xff] }
 0x342   :  { %14870 = vst [vmem:[#allocation154_spill] sm:$0xff] %v11563_v32  ;;  %v14881_v32 = vld [vmem:[#allocation53_spill] sm:$0xff]  ;;  %14885 = vst [vmem:[#allocation112_spill] sm:$0xff] %v11595_v37  ;;  %v11599_v45 = vmul.f32 %v14838_v29, %v14886_v39  ;;  %v14894_v21 = vld [vmem:[#allocation78_spill] sm:$0xff] }
 0x343   :  { %14880 = vst [vmem:[#allocation111_spill] sm:$0xff] %v11583_v28  ;;  %v11587_v42 = vmul.f32 %v14838_v29, %v14881_v32  ;;  %v11603_v28 = vmul.f32 %v14838_v29, %v14888_v62  ;;  %v14890_v32 = vld [vmem:[#allocation63_spill] sm:$0xff]  ;;  %v14892_v25 = vld [vmem:[#allocation69_spill] sm:$0xff]  ;;  %v11615_v12 = vmul.f32 %v14895_v53, %v14894_v21  ;;  %v14897_v37 = vld [vmem:[#allocation28_spill] sm:$0xff] }
 0x344   :  { %14887 = vst [vmem:[#allocation153_spill] sm:$0xff] %v11599_v45  ;;  %v11611_v41 = vmul.f32 %v14838_v29, %v14892_v25  ;;  %v11619_v39 = vmul.f32 %v14895_v53, %v14897_v37  ;;  %v14899_v45 = vld [vmem:[#allocation8_spill] sm:$0xff]  ;;  %v14906_v21 = vld [vmem:[#allocation81_spill] sm:$0xff]  ;;  %v14908_v37 = vld [vmem:[#allocation10_spill] sm:$0xff] }
 0x345   :  { %14882 = vst [vmem:[#allocation150_spill] sm:$0xff] %v11587_v42  ;;  %14889 = vst [vmem:[#allocation113_spill] sm:$0xff] %v11603_v28  ;;  %v11607_v42 = vmul.f32 %v14838_v29, %v14890_v32  ;;  %v11623_v62 = vmul.f32 %v14895_v53, %v14899_v45  ;;  %v14901_v32 = vld [vmem:[#allocation4_spill] sm:$0xff]  ;;  %v14904_v29 = vld [vmem:[#allocation9_spill] sm:$0xff] }
 0x346   :  { %14893 = vst [vmem:[#allocation115_spill] sm:$0xff] %v11611_v41  ;;  %14896 = vst [vmem:[#allocation116_spill] sm:$0xff] %v11615_v12  ;;  %v11633_v25 = vmul.f32 %v14895_v53, %v14904_v29  ;;  %v11637_v12 = vmul.f32 %v14895_v53, %v14906_v21  ;;  %v14910_v45 = vld [vmem:[#allocation11_spill] sm:$0xff]  ;;  %v14912_v41 = vld [vmem:[#allocation84_spill] sm:$0xff] }
 0x347   :  { %14891 = vst [vmem:[#allocation114_spill] sm:$0xff] %v11607_v42  ;;  %14898 = vst [vmem:[#allocation118_spill] sm:$0xff] %v11619_v39  ;;  %v14902_v42 = vld [vmem:[#allocation77_spill] sm:$0xff]  ;;  %v11641_v39 = vmul.f32 %v14895_v53, %v14908_v37 }
 0x348   :  { %14900 = vst [vmem:[#allocation119_spill] sm:$0xff] %v11623_v62  ;;  %v14903_v46 = vcombine.low %v14901_v32, %v14902_v42  ;;  %14905 = vst [vmem:[#allocation120_spill] sm:$0xff] %v11633_v25  ;;  %v11645_v62 = vmul.f32 %v14895_v53, %v14910_v45  ;;  %v14914_v42 = vld [vmem:[#allocation12_spill] sm:$0xff]  ;;  %v14916_v25 = vld [vmem:[#allocation13_spill] sm:$0xff] }
 0x349   :  { %v7222_v28 = vpop.eup %7221  ;;  %14907 = vst [vmem:[#allocation64_spill] sm:$0xff] %v11637_v12  ;;  %14909 = vst [vmem:[#allocation33_spill] sm:$0xff] %v11641_v39  ;;  %v11653_v32 = vmul.f32 %v14895_v53, %v14914_v42  ;;  %v11657_v21 = vmul.f32 %v14895_v53, %v14916_v25  ;;  %v14918_v12 = vld [vmem:[#allocation87_spill] sm:$0xff]  ;;  %v14920_v39 = vld [vmem:[#allocation14_spill] sm:$0xff] }
 0x34a   :  { %v11629_v57 = vrot.slane %v14903_v46, %v11499_v63  ;;  %14911 = vst [vmem:[#allocation18_spill] sm:$0xff] %v11645_v62  ;;  %v11649_v46 = vmul.f32 %v14895_v53, %v14912_v41  ;;  %v3782_v29 = vmul.f32 %v7222_v28, %v3771_v6  ;;  %v11661_v37 = vmul.f32 %v14895_v53, %v14918_v12  ;;  %v14922_v62 = vld [vmem:[#allocation15_spill] sm:$0xff]  ;;  %v14926_v6 = vld [vmem:[#allocation16_spill] sm:$0xff]  ;;  %v14928_v12 = vld [vmem:[#allocation58_spill] sm:$0xff] }
 0x34b   :  { %14915 = vst [vmem:[#allocation123_spill] sm:$0xff] %v11653_v32  ;;  %14917 = vst [vmem:[#allocation20_spill] sm:$0xff] %v11657_v21  ;;  %v11665_v45 = vmul.f32 %v14895_v53, %v14920_v39  ;;  %v11669_v41 = vmul.f32 %v14895_v53, %v14922_v62  ;;  %v11677_v28 = vmul.f32 %v14895_v53, %v14926_v6  ;;  %v14929_v21 = vld [vmem:[#allocation17_spill] sm:$0xff]  ;;  %v7224_v6 = vpop.eup %7223 }
 0x34c   :  { %14913 = vst [vmem:[#allocation2_spill] sm:$0xff] %v11649_v46  ;;  %14919 = vst [vmem:[#allocation39_spill] sm:$0xff] %v11661_v37  ;;  %v14924_v46 = vld [vmem:[#allocation90_spill] sm:$0xff]  ;;  %v3787_v25 = vmul.f32 %v3782_v29, %v11486_v47  ;;  %v3830_v37 = vrot.slane %v3782_v29, %v14928_v12  ;;  %v11683_v39 = vmul.f32 %v14895_v53, %v14929_v21  ;;  %v14938_v29 = vld [vmem:[#allocation96_spill] sm:$0xff] }
 0x34d   :  { %14921 = vst [vmem:[#allocation124_spill] sm:$0xff] %v11665_v45  ;;  %14923 = vst [vmem:[#allocation70_spill] sm:$0xff] %v11669_v41  ;;  %v11673_v42 = vmul.f32 %v14895_v53, %v14924_v46  ;;  %v14931_v45 = vld [vmem:[#allocation93_spill] sm:$0xff]  ;;  %v14933_v41 = vld [vmem:[#allocation19_spill] sm:$0xff]  ;;  %v11700_v38 = vmul.f32 %v14895_v53, %v14938_v29 }
 0x34e   :  { %14927 = vst [vmem:[#allocation72_spill] sm:$0xff] %v11677_v28  ;;  %14930 = vst [vmem:[#allocation73_spill] sm:$0xff] %v11683_v39  ;;  %v11687_v62 = vmul.f32 %v14895_v53, %v14931_v45  ;;  %v11691_v46 = vmul.f32 %v14895_v53, %v14933_v41  ;;  %v14936_v28 = vld [vmem:[#allocation21_spill] sm:$0xff]  ;;  %v11707_v45 = vmul.f32 %v3830_v37, %v11473_v33  ;;  %v14943_v41 = vld [vmem:[#allocation27_spill] sm:$0xff] }
 0x34f   :  { %14925 = vst [vmem:[#allocation125_spill] sm:$0xff] %v11673_v42  ;;  %v14935_v42 = vld [vmem:[#allocation31_spill] sm:$0xff]  ;;  %v11696_v47 = vmul.f32 %v14895_v53, %v14936_v28  ;;  %14939 = vst [vmem:[#allocation121_spill] sm:$0xff] %v11700_v38  ;;  %v14940_v21 = vld [vmem:[#allocation25_spill] sm:$0xff] }
 0x350   :  { %14932 = vst [vmem:[#allocation22_spill] sm:$0xff] %v11687_v62  ;;  %14934 = vst [vmem:[#allocation83_spill] sm:$0xff] %v11691_v46  ;;  %v3775_v32 = vrot.slane %v7232_v27, %v14935_v42  ;;  %v11704_v39 = vmul.f32 %v14895_v53, %v14940_v21  ;;  %v11711_v46 = vmul.f32 %v14895_v53, %v14943_v41  ;;  %v14945_v27 = vld [vmem:[#allocation56_spill] sm:$0xff]  ;;  %v14947_v28 = vld [vmem:[#allocation46_spill] sm:$0xff] }
 0x351   :  { %14937 = vst [vmem:[#allocation86_spill] sm:$0xff] %v11696_v47  ;;  %14942 = vst [vmem:[#allocation97_spill] sm:$0xff] %v11707_v45  ;;  %v11715_v62 = vmul.f32 %v14895_v53, %v14945_v27  ;;  %v11719_v47 = vmul.f32 %v14895_v53, %v14947_v28  ;;  %v14949_v29 = vld [vmem:[#allocation49_spill] sm:$0xff]  ;;  %v14951_v21 = vld [vmem:[#allocation66_spill] sm:$0xff] }
 0x352   :  { %14941 = vst [vmem:[#allocation95_spill] sm:$0xff] %v11704_v39  ;;  %14944 = vst [vmem:[#allocation126_spill] sm:$0xff] %v11711_v46  ;;  %v11723_v38 = vmul.f32 %v14895_v53, %v14949_v29  ;;  %v11727_v33 = vmul.f32 %v14895_v53, %v14951_v21  ;;  %v14953_v39 = vld [vmem:[#allocation71_spill] sm:$0xff]  ;;  %v14955_v46 = vld [vmem:[#allocation74_spill] sm:$0xff] }
 0x353   :  { %14946 = vst [vmem:[#allocation67_spill] sm:$0xff] %v11715_v62  ;;  %14948 = vst [vmem:[#allocation128_spill] sm:$0xff] %v11719_v47  ;;  %v11731_v41 = vmul.f32 %v14895_v53, %v14953_v39  ;;  %v11735_v27 = vmul.f32 %v14895_v53, %v14955_v46  ;;  %v14957_v62 = vld [vmem:[#allocation55_spill] sm:$0xff]  ;;  %v14959_v47 = vld [vmem:[#allocation29_spill] sm:$0xff]  ;;  %v3783_v39 = vmul.f32 %v7224_v6, %v3775_v32 }
 0x354   :  { %14950 = vst [vmem:[#allocation155_spill] sm:$0xff] %v11723_v38  ;;  %14952 = vst [vmem:[#allocation132_spill] sm:$0xff] %v11727_v33  ;;  %v11739_v28 = vmul.f32 %v14895_v53, %v14957_v62  ;;  %v11743_v29 = vmul.f32 %v14895_v53, %v14959_v47  ;;  %v14961_v38 = vld [vmem:[#allocation68_spill] sm:$0xff]  ;;  %v14962_v21 = vld [vmem:[#allocation65_spill] sm:$0xff]  ;;  %v11758_v62 = vmul.f32 %v3830_v37, %v10901_v20 }
 0x355   :  { %14954 = vst [vmem:[#allocation129_spill] sm:$0xff] %v11731_v41  ;;  %14956 = vst [vmem:[#allocation131_spill] sm:$0xff] %v11735_v27  ;;  %v11746_v45 = vmul.f32 %v3830_v37, %v14961_v38  ;;  %v11749_v33 = vmul.f32 %v3830_v37, %v14962_v21  ;;  %v14963_v41 = vld [vmem:[#allocation3_spill] sm:$0xff]  ;;  %v11764_v53 = vmul.f32 %v3830_v37, %v10987_v48 }
 0x356   :  { %14958 = vst [vmem:[#allocation7_spill] sm:$0xff] %v11739_v28  ;;  %14960 = vst [vmem:[#allocation43_spill] sm:$0xff] %v11743_v29  ;;  %v11752_v0 = vmul.f32 %v3830_v37, %v14963_v41  ;;  %v14964_v46 = vld [vmem:[#allocation75_spill] sm:$0xff]  ;;  %v11761_v28 = vmul.f32 %v3830_v37, %v10940_v59  ;;  %v11767_v38 = vmul.f32 %v3830_v37, %v11016_v49  ;;  %v14976_v29 = vld [vmem:[#allocation122_spill] sm:$0xff] }
 0x357   :  { %v11755_v27 = vmul.f32 %v3830_v37, %v14964_v46  ;;  %v11770_v32 = vmul.f32 %v3830_v37, %v11045_v26  ;;  %v11773_v6 = vmul.f32 %v3830_v37, %v11088_v11  ;;  %v11776_v47 = vmul.f32 %v3830_v37, %v11121_v17 }
 0x358   :  { %v11779_v20 = vmul.f32 %v3830_v37, %v11150_v43  ;;  %v11782_v59 = vmul.f32 %v3830_v37, %v11196_v14  ;;  %v11785_v48 = vmul.f32 %v3830_v37, %v11218_v30  ;;  %v11788_v49 = vmul.f32 %v3830_v37, %v11252_v8  ;;  %v14966_v14 = vld [vmem:[#allocation135_spill] sm:$0xff] }
 0x359   :  { %v11791_v26 = vmul.f32 %v3830_v37, %v11427_v44  ;;  %v11794_v11 = vmul.f32 %v3830_v37, %v11445_v35  ;;  %v11797_v17 = vmul.f32 %v3830_v37, %v11462_v50  ;;  %v11800_v43 = vmul.f32 %v3830_v37, %v11266_v54 }
 0x35a   :  { %v11803_v41 = vmul.f32 %v3830_v37, %v14966_v14  ;;  %v3788_v30 = vmul.f32 %v3783_v39, %v11490_v31  ;;  %v3834_v8 = vrot.slane %v3783_v39, %v14928_v12  ;;  %v11808_v21 = vmul.f32 %v3830_v37, %v11296_v24  ;;  %v14970_v14 = vld [vmem:[#allocation35_spill] sm:$0xff] }
 0x35b   :  { %14965 = vst [vmem:[#allocation57_spill] sm:$0xff] %v11797_v17  ;;  %v11811_v44 = vmul.f32 %v3830_v37, %v11310_v1  ;;  %v11814_v35 = vmul.f32 %v3830_v37, %v11323_v23  ;;  %v11817_v50 = vmul.f32 %v3830_v37, %v11334_v7  ;;  %v11820_v54 = vmul.f32 %v3830_v37, %v11345_v34  ;;  %v14978_v17 = vld [vmem:[#allocation98_spill] sm:$0xff] }
 0x35c   :  { %v11823_v46 = vmul.f32 %v3830_v37, %v11355_v40  ;;  %v3794_v31 = vcombine.low %v3787_v25, %v3788_v30  ;;  %v11826_v39 = vmul.f32 %v3834_v8, %v11481_v18  ;;  %v11829_v24 = vmul.f32 %v3830_v37, %v11365_v56  ;;  %v14968_v25 = vld [vmem:[#allocation37_spill] sm:$0xff] }
 0x35d   :  { %v11832_v1 = vmul.f32 %v3830_v37, %v11375_v4  ;;  %v11835_v23 = vmul.f32 %v3830_v37, %v11384_v2  ;;  %v11838_v7 = vmul.f32 %v3830_v37, %v11395_v61  ;;  %v11841_v34 = vmul.f32 %v3830_v37, %v11408_v5  ;;  %v14972_v30 = vld [vmem:[#allocation41_spill] sm:$0xff] }
 0x35e   :  { %14967 = vst [vmem:[#allocation6_spill] sm:$0xff] %v11826_v39  ;;  %v3808_v40 = vrot.slane %v3794_v31, %v11499_v63  ;;  %v11845_v18 = vmul.f32 %v3834_v8, %v14968_v25  ;;  %v11848_v56 = vmul.f32 %v3834_v8, %v14970_v14  ;;  %v11851_v4 = vmul.f32 %v3834_v8, %v14972_v30  ;;  %v14974_v39 = vld [vmem:[#allocation117_spill] sm:$0xff]  ;;  %v14980_v31 = vld [vmem:[#allocation99_spill] sm:$0xff] }
 0x35f   :  { %v11854_v2 = vmul.f32 %v3834_v8, %v14974_v39  ;;  %v11857_v61 = vmul.f32 %v3834_v8, %v14976_v29  ;;  %v11860_v5 = vmul.f32 %v3834_v8, %v14978_v17  ;;  %v11864_v25 = vmul.f32 %v3834_v8, %v14980_v31  ;;  %v3784_v39 = vld [vmem:[%s14070_s4] sm:$0xf]  ;;  %v14986_v29 = vld [vmem:[#allocation101_spill] sm:$0xff] }
 0x360   :  { %14969 = vst [vmem:[#allocation79_spill] sm:$0xff] %v11845_v18  ;;  %14971 = vst [vmem:[#allocation30_spill] sm:$0xff] %v11848_v56  ;;  %v3809_v37 = vcombine.low %v11629_v57, %v3808_v40  ;;  %v14982_v18 = vld [vmem:[#allocation127_spill] sm:$0xff]  ;;  %v14984_v56 = vld [vmem:[#allocation100_spill] sm:$0xff] }
 0x361   :  { %14973 = vst [vmem:[#allocation32_spill] sm:$0xff] %v11851_v4  ;;  %14975 = vst [vmem:[#allocation82_spill] sm:$0xff] %v11854_v2  ;;  %v11867_v14 = vmul.f32 %v3834_v8, %v14982_v18  ;;  %v11870_v30 = vmul.f32 %v3834_v8, %v14984_v56  ;;  %v14987_v17 = vld [vmem:[#allocation130_spill] sm:$0xff]  ;;  %v14989_v31 = vld [vmem:[#allocation133_spill] sm:$0xff] }
 0x362   :  { %14977 = vst [vmem:[#allocation34_spill] sm:$0xff] %v11857_v61  ;;  %14979 = vst [vmem:[#allocation36_spill] sm:$0xff] %v11860_v5  ;;  %v11876_v61 = vmul.f32 %v3834_v8, %v14986_v29  ;;  %v11879_v5 = vmul.f32 %v3834_v8, %v14987_v17  ;;  %v14988_v57 = vld [vmem:[#allocation142_spill] sm:$0xff]  ;;  %v3816_v18 = vrot.slane %v3809_v37, %v11499_v63  ;;  %v14992_v4 = vld [vmem:[#allocation103_spill] sm:$0xff] }
 0x363   :  { %14981 = vst [vmem:[#allocation85_spill] sm:$0xff] %v11864_v25  ;;  %14983 = vst [vmem:[#allocation38_spill] sm:$0xff] %v11867_v14  ;;  %v11882_v40 = vmul.f32 %v3834_v8, %v14988_v57  ;;  %v11885_v25 = vmul.f32 %v3834_v8, %v14989_v31  ;;  %v14990_v56 = vld [vmem:[#allocation102_spill] sm:$0xff]  ;;  %v11895_v29 = vmul.f32 %v3834_v8, %v14992_v4 }
 0x364   :  { %14985 = vst [vmem:[#allocation40_spill] sm:$0xff] %v11870_v30  ;;  %v11889_v30 = vmul.f32 %v3834_v8, %v14990_v56  ;;  %v14991_v14 = vld [vmem:[#allocation134_spill] sm:$0xff]  ;;  %v11898_v17 = vmul.f32 %v3834_v8, %v11289_v3  ;;  %v11901_v57 = vmul.f32 %v3834_v8, %v11298_v15  ;;  %v11904_v31 = vmul.f32 %v3834_v8, %v11321_v10  ;;  %v15001_v15 = vld [vmem:[#allocation144_spill] sm:$0xff] }
 0x365   :  { %v11892_v2 = vmul.f32 %v3834_v8, %v14991_v14  ;;  %v11907_v37 = vmul.f32 %v3834_v8, %v11331_v52  ;;  %v3818_v56 = vsub.f32 %v3784_v39, %v3816_v18  ;;  %v11910_v63 = vmul.f32 %v3834_v8, %v11343_v19  ;;  %v15003_v10 = vld [vmem:[#allocation104_spill] sm:$0xff]  ;;  %v15009_v18 = vld [vmem:[#allocation59_spill] sm:$0xff] }
 0x366   :  { %14993 = vst [vmem:[#allocation88_spill] sm:$0xff] %v11898_v17  ;;  %14994 = vst [vmem:[#allocation42_spill] sm:$0xff] %v11901_v57  ;;  %v11913_v14 = vmul.f32 %v3834_v8, %v11359_v51  ;;  %v11916_v4 = vmul.f32 %v3834_v8, %v11369_v22  ;;  %v11919_v3 = vmul.f32 %v3834_v8, %v11390_v9  ;;  %v15006_v22 = vld [vmem:[#allocation136_spill] sm:$0xff]  ;;  %v15031_v17 = vld [vmem:[#allocation110_spill] sm:$0xff] }
 0x367   :  { %14995 = vst [vmem:[#allocation44_spill] sm:$0xff] %v11904_v31  ;;  %14996 = vst [vmem:[#allocation91_spill] sm:$0xff] %v11907_v37  ;;  %v11922_v57 = vmul.f32 %v3834_v8, %v15001_v15  ;;  %v11925_v31 = vmul.f32 %v3834_v8, %v15003_v10  ;;  %v11928_v52 = vmul.f32 %v3834_v8, %v11470_v16  ;;  %v15010_v16 = vld [vmem:[#allocation137_spill] sm:$0xff]  ;;  %v15028_v37 = vld [vmem:[#allocation154_spill] sm:$0xff] }
 0x368   :  { %14997 = vst [vmem:[#allocation45_spill] sm:$0xff] %v11910_v63  ;;  %14998 = vst [vmem:[#allocation47_spill] sm:$0xff] %v11913_v14  ;;  %v11931_v19 = vrot.slane %v3818_v56, %v14928_v12  ;;  %v11934_v51 = vrot.slane %v3818_v56, %v14883_v13  ;;  %v11937_v39 = vmul.f32 %v3834_v8, %v15006_v22  ;;  %v15012_v12 = vld [vmem:[#allocation105_spill] sm:$0xff] }
 0x369   :  { %14999 = vst [vmem:[#allocation94_spill] sm:$0xff] %v11916_v4  ;;  %15000 = vst [vmem:[#allocation48_spill] sm:$0xff] %v11919_v3  ;;  %v11940_v9 = vmul.f32 %v3834_v8, %v11431_v55  ;;  %v11943_v15 = vrot.slane %v3818_v56, %v15009_v18  ;;  %v11946_v10 = vrot.slane %v3818_v56, %v14935_v42  ;;  %v15015_v56 = vld [vmem:[#allocation106_spill] sm:$0xff]  ;;  %v15017_v18 = vld [vmem:[#allocation107_spill] sm:$0xff] }
 0x36a   :  { %15002 = vst [vmem:[#allocation50_spill] sm:$0xff] %v11922_v57  ;;  %15004 = vst [vmem:[#allocation23_spill] sm:$0xff] %v11925_v31  ;;  %v11952_v31 = vmul.f32 %v3834_v8, %v15012_v12  ;;  %v11956_v13 = vadd.f32 %v11931_v19, %v11496_v60  ;;  %v11960_v55 = vadd.f32 %v11934_v51, %v11746_v45  ;;  %v15022_v57 = vld [vmem:[#allocation108_spill] sm:$0xff]  ;;  %v15023_v3 = vld [vmem:[#allocation143_spill] sm:$0xff] }
 0x36b   :  { %15005 = vst [vmem:[#allocation51_spill] sm:$0xff] %v11928_v52  ;;  %15007 = vst [vmem:[#allocation53_spill] sm:$0xff] %v11937_v39  ;;  %v11949_v52 = vmul.f32 %v3834_v8, %v15010_v16  ;;  %v11964_v22 = vadd.f32 %v11931_v19, %v11503_v58  ;;  %v11968_v42 = vadd.f32 %v11934_v51, %v11749_v33  ;;  %v15014_v8 = vld [vmem:[#allocation147_spill] sm:$0xff]  ;;  %v15024_v4 = vld [vmem:[#allocation152_spill] sm:$0xff] }
 0x36c   :  { %15008 = vst [vmem:[#allocation52_spill] sm:$0xff] %v11940_v9  ;;  %15013 = vst [vmem:[#allocation60_spill] sm:$0xff] %v11952_v31  ;;  %v11972_v12 = vadd.f32 %v11931_v19, %v11507_v36  ;;  %v11976_v60 = vadd.f32 %v11934_v51, %v11752_v0  ;;  %v11980_v45 = vadd.f32 %v11931_v19, %v15014_v8  ;;  %v15016_v16 = vld [vmem:[#allocation139_spill] sm:$0xff]  ;;  %v15018_v31 = vld [vmem:[#allocation140_spill] sm:$0xff] }
 0x36d   :  { %15011 = vst [vmem:[#allocation54_spill] sm:$0xff] %v11949_v52  ;;  %v11984_v58 = vadd.f32 %v11934_v51, %v11755_v27  ;;  %v11988_v33 = vadd.f32 %v11931_v19, %v15015_v56  ;;  %v11992_v36 = vadd.f32 %v11934_v51, %v11758_v62  ;;  %v11996_v0 = vadd.f32 %v11931_v19, %v15016_v16  ;;  %v15019_v52 = vld [vmem:[#allocation149_spill] sm:$0xff]  ;;  %v15021_v39 = vld [vmem:[#allocation151_spill] sm:$0xff] }
 0x36e   :  { %v12000_v8 = vadd.f32 %v11934_v51, %v11761_v28  ;;  %v12004_v27 = vadd.f32 %v11931_v19, %v15017_v18  ;;  %v12008_v56 = vadd.f32 %v11934_v51, %v11764_v53  ;;  %v12012_v62 = vadd.f32 %v11931_v19, %v15018_v31  ;;  %v15020_v9 = vld [vmem:[#allocation141_spill] sm:$0xff] }
 0x36f   :  { %v12016_v16 = vadd.f32 %v11934_v51, %v11767_v38  ;;  %v12020_v28 = vadd.f32 %v11931_v19, %v15019_v52  ;;  %v12024_v18 = vadd.f32 %v11934_v51, %v11770_v32  ;;  %v12028_v53 = vadd.f32 %v11931_v19, %v15020_v9  ;;  %v15025_v14 = vld [vmem:[#allocation109_spill] sm:$0xff] }
 0x370   :  { %v12032_v31 = vadd.f32 %v11934_v51, %v11773_v6  ;;  %v12036_v38 = vadd.f32 %v11931_v19, %v15021_v39  ;;  %v12040_v52 = vadd.f32 %v11934_v51, %v11776_v47  ;;  %v12044_v32 = vadd.f32 %v11931_v19, %v15022_v57  ;;  %v15027_v63 = vld [vmem:[#allocation145_spill] sm:$0xff] }
 0x371   :  { %v12048_v9 = vadd.f32 %v11934_v51, %v11779_v20  ;;  %v12052_v6 = vadd.f32 %v11931_v19, %v15023_v3  ;;  %v12056_v39 = vadd.f32 %v11934_v51, %v11782_v59  ;;  %v12060_v47 = vadd.f32 %v11931_v19, %v15024_v4 }
 0x372   :  { %v12064_v57 = vadd.f32 %v11934_v51, %v11785_v48  ;;  %v12068_v20 = vadd.f32 %v11931_v19, %v15025_v14  ;;  %v12072_v3 = vadd.f32 %v11934_v51, %v11788_v49  ;;  %v12076_v59 = vadd.f32 %v11931_v19, %v15027_v63 }
 0x373   :  { %v12080_v4 = vadd.f32 %v11934_v51, %v11800_v43  ;;  %v12084_v48 = vadd.f32 %v11931_v19, %v15028_v37  ;;  %v12088_v14 = vadd.f32 %v11934_v51, %v11803_v41  ;;  %v12092_v49 = vadd.f32 %v11931_v19, %v15031_v17 }
 0x374   :  { %15026 = vst [vmem:[#allocation62_spill] sm:$0xff] %v12072_v3  ;;  %v12096_v63 = vadd.f32 %v11934_v51, %v11808_v21  ;;  %v15034_v3 = vld [vmem:[#allocation146_spill] sm:$0xff]  ;;  %v12104_v37 = vadd.f32 %v11934_v51, %v11811_v44  ;;  %v12112_v17 = vadd.f32 %v11934_v51, %v11814_v35 }
 0x375   :  { %15029 = vst [vmem:[#allocation63_spill] sm:$0xff] %v12084_v48  ;;  %15030 = vst [vmem:[#allocation69_spill] sm:$0xff] %v12088_v14  ;;  %v12100_v43 = vadd.f32 %v11931_v19, %v15034_v3  ;;  %v15037_v48 = vld [vmem:[#allocation61_spill] sm:$0xff]  ;;  %v15040_v14 = vld [vmem:[#allocation148_spill] sm:$0xff]  ;;  %v12120_v3 = vadd.f32 %v11934_v51, %v11817_v50 }
 0x376   :  { %15032 = vst [vmem:[#allocation78_spill] sm:$0xff] %v12092_v49  ;;  %15033 = vst [vmem:[#allocation80_spill] sm:$0xff] %v12096_v63  ;;  %v12108_v41 = vadd.f32 %v11931_v19, %v15037_v48  ;;  %v12116_v21 = vadd.f32 %v11931_v19, %v15040_v14  ;;  %v12128_v48 = vadd.f32 %v11934_v51, %v11820_v54  ;;  %v15122_v49 = vld [vmem:[#allocation95_spill] sm:$0xff] }
 0x377   :  { %15035 = vst [vmem:[#allocation28_spill] sm:$0xff] %v12100_v43  ;;  %15036 = vst [vmem:[#allocation8_spill] sm:$0xff] %v12104_v37  ;;  %v15043_v43 = vld [vmem:[#allocation111_spill] sm:$0xff]  ;;  %v15046_v37 = vld [vmem:[#allocation150_spill] sm:$0xff]  ;;  %v12136_v14 = vadd.f32 %v11934_v51, %v11823_v46 }
 0x378   :  { %15038 = vst [vmem:[#allocation4_spill] sm:$0xff] %v12108_v41  ;;  %15039 = vst [vmem:[#allocation77_spill] sm:$0xff] %v12112_v17  ;;  %v12124_v44 = vadd.f32 %v11931_v19, %v15043_v43  ;;  %v12132_v35 = vadd.f32 %v11931_v19, %v15046_v37  ;;  %v12144_v43 = vadd.f32 %v11934_v51, %v11829_v24  ;;  %v15135_v17 = vld [vmem:[#allocation128_spill] sm:$0xff] }
 0x379   :  { %15041 = vst [vmem:[#allocation9_spill] sm:$0xff] %v12116_v21  ;;  %15042 = vst [vmem:[#allocation81_spill] sm:$0xff] %v12120_v3  ;;  %v15049_v21 = vld [vmem:[#allocation112_spill] sm:$0xff]  ;;  %v15052_v3 = vld [vmem:[#allocation153_spill] sm:$0xff]  ;;  %v12152_v37 = vadd.f32 %v11934_v51, %v11832_v1 }
 0x37a   :  { %15044 = vst [vmem:[#allocation10_spill] sm:$0xff] %v12124_v44  ;;  %15045 = vst [vmem:[#allocation11_spill] sm:$0xff] %v12128_v48  ;;  %v12140_v50 = vadd.f32 %v11931_v19, %v15049_v21  ;;  %v12148_v54 = vadd.f32 %v11931_v19, %v15052_v3  ;;  %v12160_v21 = vadd.f32 %v11934_v51, %v11835_v23  ;;  %v15142_v44 = vld [vmem:[#allocation155_spill] sm:$0xff] }
 0x37b   :  { %15047 = vst [vmem:[#allocation84_spill] sm:$0xff] %v12132_v35  ;;  %15048 = vst [vmem:[#allocation12_spill] sm:$0xff] %v12136_v14  ;;  %v15055_v35 = vld [vmem:[#allocation113_spill] sm:$0xff]  ;;  %v15058_v14 = vld [vmem:[#allocation114_spill] sm:$0xff]  ;;  %v12168_v3 = vadd.f32 %v11934_v51, %v11838_v7 }
 0x37c   :  { %15050 = vst [vmem:[#allocation13_spill] sm:$0xff] %v12140_v50  ;;  %15051 = vst [vmem:[#allocation87_spill] sm:$0xff] %v12144_v43  ;;  %v12156_v46 = vadd.f32 %v11931_v19, %v15055_v35  ;;  %v12164_v24 = vadd.f32 %v11931_v19, %v15058_v14  ;;  %v12176_v35 = vadd.f32 %v11934_v51, %v11841_v34 }
 0x37d   :  { %15053 = vst [vmem:[#allocation14_spill] sm:$0xff] %v12148_v54  ;;  %15054 = vst [vmem:[#allocation15_spill] sm:$0xff] %v12152_v37  ;;  %v15061_v54 = vld [vmem:[#allocation115_spill] sm:$0xff]  ;;  %v15064_v37 = vld [vmem:[#allocation5_spill] sm:$0xff]  ;;  %v12184_v14 = vadd.f32 %v11934_v51, %v11791_v26 }
 0x37e   :  { %15056 = vst [vmem:[#allocation90_spill] sm:$0xff] %v12156_v46  ;;  %15057 = vst [vmem:[#allocation16_spill] sm:$0xff] %v12160_v21  ;;  %v12172_v1 = vadd.f32 %v11931_v19, %v15061_v54  ;;  %v12180_v23 = vadd.f32 %v11931_v19, %v15064_v37  ;;  %v12192_v54 = vadd.f32 %v11934_v51, %v11794_v11  ;;  %v15086_v46 = vld [vmem:[#allocation64_spill] sm:$0xff] }
 0x37f   :  { %15059 = vst [vmem:[#allocation17_spill] sm:$0xff] %v12164_v24  ;;  %15060 = vst [vmem:[#allocation93_spill] sm:$0xff] %v12168_v3  ;;  %v15067_v24 = vld [vmem:[#allocation76_spill] sm:$0xff]  ;;  %v15070_v3 = vld [vmem:[#allocation26_spill] sm:$0xff]  ;;  %v4112_v11 = vpack.c.bf16 %v11964_v22, %v11956_v13 }
 0x380   :  { %15062 = vst [vmem:[#allocation19_spill] sm:$0xff] %v12172_v1  ;;  %15063 = vst [vmem:[#allocation31_spill] sm:$0xff] %v12176_v35  ;;  %v12188_v7 = vadd.f32 %v11931_v19, %v15067_v24  ;;  %v12196_v34 = vadd.f32 %v11931_v19, %v15070_v3  ;;  %v15072_v35 = vld [vmem:[#allocation57_spill] sm:$0xff]  ;;  %v15078_v3 = vld [vmem:[#allocation116_spill] sm:$0xff] }
 0x381   :  { %15065 = vst [vmem:[#allocation21_spill] sm:$0xff] %v12180_v23  ;;  %15066 = vst [vmem:[#allocation96_spill] sm:$0xff] %v12184_v14  ;;  %v12200_v37 = vadd.f32 %v11934_v51, %v15072_v35  ;;  %v15074_v23 = vld [vmem:[#allocation24_spill] sm:$0xff]  ;;  %v15076_v14 = vld [vmem:[#allocation97_spill] sm:$0xff] }
 0x382   :  { %15068 = vst [vmem:[#allocation25_spill] sm:$0xff] %v12188_v7  ;;  %15069 = vst [vmem:[#allocation27_spill] sm:$0xff] %v12192_v54  ;;  %v12204_v26 = vadd.f32 %v11931_v19, %v15074_v23  ;;  %v12208_v24 = vadd.f32 %v11934_v51, %v15076_v14  ;;  %v4114_v54 = vpack.c.bf16 %v11968_v42, %v11960_v55  ;;  %v15079_v7 = vld [vmem:[#allocation118_spill] sm:$0xff]  ;;  %v15082_v51 = vld [vmem:[#allocation119_spill] sm:$0xff] }
 0x383   :  { %15071 = vst [vmem:[#allocation56_spill] sm:$0xff] %v12196_v34  ;;  %15073 = vst [vmem:[#allocation46_spill] sm:$0xff] %v12200_v37  ;;  %v3985_v34 = vadd.f32 %v11943_v15, %v15078_v3  ;;  %v3989_v35 = vadd.f32 %v11943_v15, %v15079_v7  ;;  %v15080_v37 = vld [vmem:[#allocation79_spill] sm:$0xff]  ;;  %v15081_v23 = vld [vmem:[#allocation30_spill] sm:$0xff]  ;;  %v3993_v14 = vadd.f32 %v11943_v15, %v15082_v51 }
 0x384   :  { %15075 = vst [vmem:[#allocation49_spill] sm:$0xff] %v12204_v26  ;;  %15077 = vst [vmem:[#allocation66_spill] sm:$0xff] %v12208_v24  ;;  %v3987_v19 = vadd.f32 %v11946_v10, %v15080_v37  ;;  %v3991_v26 = vadd.f32 %v11946_v10, %v15081_v23  ;;  %v15083_v24 = vld [vmem:[#allocation120_spill] sm:$0xff]  ;;  %v15085_v3 = vld [vmem:[#allocation82_spill] sm:$0xff]  ;;  %v4116_v7 = vpack.c.bf16 %v11980_v45, %v11972_v12 }
 0x385   :  { %v3997_v13 = vadd.f32 %v11943_v15, %v15083_v24  ;;  %v4113_v22 = vpack.c.bf16 %v3989_v35, %v3985_v34  ;;  %v15084_v55 = vld [vmem:[#allocation32_spill] sm:$0xff]  ;;  %v3999_v1 = vadd.f32 %v11946_v10, %v15085_v3  ;;  %v4118_v23 = vpack.c.bf16 %v11984_v58, %v11976_v60  ;;  %v15087_v34 = vld [vmem:[#allocation33_spill] sm:$0xff]  ;;  %v15090_v45 = vld [vmem:[#allocation18_spill] sm:$0xff] }
 0x386   :  { %v3995_v42 = vadd.f32 %v11946_v10, %v15084_v55  ;;  %v4115_v37 = vpack.c.bf16 %v3991_v26, %v3987_v19  ;;  %v4001_v51 = vadd.f32 %v11943_v15, %v15086_v46  ;;  %v4005_v35 = vadd.f32 %v11943_v15, %v15087_v34  ;;  %v15088_v55 = vld [vmem:[#allocation34_spill] sm:$0xff]  ;;  %v15089_v3 = vld [vmem:[#allocation36_spill] sm:$0xff]  ;;  %v15114_v12 = vld [vmem:[#allocation121_spill] sm:$0xff] }
 0x387   :  { %v4117_v21 = vpack.c.bf16 %v3997_v13, %v3993_v14  ;;  %4604 = vmatprep.mubr.bf16.mxu0 %v4113_v22  ;;  %v4003_v43 = vadd.f32 %v11946_v10, %v15088_v55  ;;  %v4007_v50 = vadd.f32 %v11946_v10, %v15089_v3  ;;  %v12248_v58 = vadd.f32 %v11943_v15, %v15090_v45  ;;  %v15091_v26 = vld [vmem:[#allocation2_spill] sm:$0xff] }
 0x388   :  { %v4119_v24 = vpack.c.bf16 %v3999_v1, %v3995_v42  ;;  %4797 = vmatprep.mubr.bf16.mxu1 %v4115_v37  ;;  %4605 = vmatmul.mubr.bf16.vlgmr.msra.gmra.mxu0 %v4112_v11  ;;  %v4121_v46 = vpack.c.bf16 %v4005_v35, %v4001_v51  ;;  %v12252_v19 = vadd.f32 %v11943_v15, %v15091_v26  ;;  %v15092_v11 = vld [vmem:[#allocation85_spill] sm:$0xff]  ;;  %v15093_v13 = vld [vmem:[#allocation38_spill] sm:$0xff]  ;;  %v15095_v37 = vld [vmem:[#allocation20_spill] sm:$0xff] }
 0x389   :  { %4798 = vmatmul.mubr.bf16.vlgmr.msra.gmra.mxu1 %v4114_v54  ;;  %4614 = vmatprep.mubr.bf16.mxu0 %v4117_v21  ;;  %v4123_v1 = vpack.c.bf16 %v4007_v50, %v4003_v43  ;;  %v12256_v14 = vadd.f32 %v11946_v10, %v15092_v11  ;;  %v12260_v22 = vadd.f32 %v11946_v10, %v15093_v13  ;;  %v15094_v43 = vld [vmem:[#allocation123_spill] sm:$0xff]  ;;  %v15098_v11 = vld [vmem:[#allocation124_spill] sm:$0xff]  ;;  %v15112_v60 = vld [vmem:[#allocation86_spill] sm:$0xff] }
 0x38a   :  { %4807 = vmatprep.mubr.bf16.mxu1 %v4119_v24  ;;  %v4125_v50 = vpack.c.bf16 %v12252_v19, %v12248_v58  ;;  %v12270_v54 = vadd.f32 %v11943_v15, %v15094_v43  ;;  %v12274_v51 = vadd.f32 %v11943_v15, %v15095_v37  ;;  %v15096_v24 = vld [vmem:[#allocation40_spill] sm:$0xff]  ;;  %v12284_v55 = vadd.f32 %v11946_v10, %v11876_v61  ;;  %v15097_v26 = vld [vmem:[#allocation39_spill] sm:$0xff]  ;;  %v15102_v43 = vld [vmem:[#allocation73_spill] sm:$0xff] }
 0x38b   :  { %v12278_v34 = vadd.f32 %v11946_v10, %v15096_v24  ;;  %v4127_v35 = vpack.c.bf16 %v12260_v22, %v12256_v14  ;;  %v12294_v19 = vadd.f32 %v11943_v15, %v15097_v26  ;;  %v12298_v14 = vadd.f32 %v11943_v15, %v15098_v11  ;;  %v15099_v26 = vld [vmem:[#allocation70_spill] sm:$0xff]  ;;  %v15100_v11 = vld [vmem:[#allocation125_spill] sm:$0xff]  ;;  %v15106_v13 = vld [vmem:[#allocation88_spill] sm:$0xff] }
 0x38c   :  { %v12302_v61 = vadd.f32 %v11946_v10, %v11879_v5  ;;  %v12308_v22 = vadd.f32 %v11946_v10, %v11882_v40  ;;  %v12318_v5 = vadd.f32 %v11943_v15, %v15099_v26  ;;  %v12322_v45 = vadd.f32 %v11943_v15, %v15100_v11  ;;  %v15101_v11 = vld [vmem:[#allocation72_spill] sm:$0xff]  ;;  %v15104_v26 = vld [vmem:[#allocation22_spill] sm:$0xff] }
 0x38d   :  { %v12326_v40 = vadd.f32 %v11946_v10, %v11885_v25  ;;  %v12332_v37 = vadd.f32 %v11946_v10, %v11889_v30  ;;  %v12346_v3 = vadd.f32 %v11943_v15, %v15102_v43  ;;  %v12352_v24 = vadd.f32 %v11946_v10, %v11892_v2  ;;  %v15105_v25 = vld [vmem:[#allocation83_spill] sm:$0xff]  ;;  %v15108_v58 = vld [vmem:[#allocation42_spill] sm:$0xff]  ;;  %v15116_v43 = vld [vmem:[#allocation44_spill] sm:$0xff] }
 0x38e   :  { %v12366_v30 = vadd.f32 %v11943_v15, %v15104_v26  ;;  %v12370_v2 = vadd.f32 %v11943_v15, %v15105_v25  ;;  %v12400_v21 = vadd.f32 %v11946_v10, %v15116_v43  ;;  %v15127_v25 = vld [vmem:[#allocation45_spill] sm:$0xff] }
 0x390   :  { %4615 = vmatmul.mubr.bf16.gmra.mxu0 %v4116_v7  ;;  %v12342_v7 = vadd.f32 %v11943_v15, %v15101_v11  ;;  %v12380_v11 = vadd.f32 %v11946_v10, %v15108_v58  ;;  %15117 = vst [vmem:[#allocation68_spill] sm:$0xff] %v12400_v21  ;;  %v12414_v58 = vadd.f32 %v11943_v15, %v15122_v49 }
 0x391   :  { %4808 = vmatmul.mubr.bf16.gmra.mxu1 %v4118_v23  ;;  %4624 = vmatprep.mubr.bf16.mxu0 %v4121_v46  ;;  %v12356_v23 = vadd.f32 %v11946_v10, %v11895_v29  ;;  %v12376_v46 = vadd.f32 %v11946_v10, %v15106_v13  ;;  %v12390_v29 = vadd.f32 %v11943_v15, %v15112_v60 }
 0x392   :  { %4817 = vmatprep.mubr.bf16.mxu1 %v4123_v1  ;;  %15109 = vst [vmem:[#allocation74_spill] sm:$0xff] %v12380_v11  ;;  %v12394_v13 = vadd.f32 %v11943_v15, %v15114_v12  ;;  %v15118_v1 = vld [vmem:[#allocation91_spill] sm:$0xff]  ;;  %15123 = vst [vmem:[#allocation3_spill] sm:$0xff] %v12414_v58  ;;  %v12427_v60 = vadd.f32 %v11946_v10, %v15127_v25  ;;  %v12450_v49 = vadd.f32 %v11943_v15, %v15135_v17  ;;  %v15143_v17 = vld [vmem:[#allocation132_spill] sm:$0xff] }
 0x393   :  { %15107 = vst [vmem:[#allocation71_spill] sm:$0xff] %v12376_v46  ;;  %15113 = vst [vmem:[#allocation55_spill] sm:$0xff] %v12390_v29  ;;  %v12404_v26 = vadd.f32 %v11946_v10, %v15118_v1  ;;  %v15124_v46 = vld [vmem:[#allocation126_spill] sm:$0xff]  ;;  %v15126_v1 = vpack.c.bf16 %v11996_v0, %v11988_v33  ;;  %v15129_v12 = vld [vmem:[#allocation47_spill] sm:$0xff] }
 0x394   :  { %15115 = vst [vmem:[#allocation29_spill] sm:$0xff] %v12394_v13  ;;  %v12418_v43 = vadd.f32 %v11943_v15, %v15124_v46  ;;  %15128 = vst [vmem:[#allocation135_spill] sm:$0xff] %v12427_v60  ;;  %v12431_v63 = vadd.f32 %v11946_v10, %v15129_v12  ;;  %v15132_v46 = vpack.c.bf16 %v12000_v8, %v11992_v36  ;;  %v15134_v25 = vld [vmem:[#allocation67_spill] sm:$0xff]  ;;  %v15136_v36 = vld [vmem:[#allocation94_spill] sm:$0xff] }
 0x395   :  { %15119 = vst [vmem:[#allocation65_spill] sm:$0xff] %v12404_v26  ;;  %v12444_v42 = vadd.f32 %v11943_v15, %v15134_v25  ;;  %v12454_v8 = vadd.f32 %v11946_v10, %v15136_v36  ;;  %v12466_v12 = vadd.f32 %v11943_v15, %v15142_v44  ;;  %v12470_v60 = vadd.f32 %v11943_v15, %v15143_v17  ;;  %v15146_v0 = vld [vmem:[#allocation14_spill] sm:$0xff]  ;;  %v15148_v33 = vld [vmem:[#allocation15_spill] sm:$0xff]  ;;  %v15149_v58 = vld [vmem:[#allocation16_spill] sm:$0xff] }
 0x396   :  { %15125 = vst [vmem:[#allocation75_spill] sm:$0xff] %v12418_v43  ;;  %15130 = vst [vmem:[#allocation37_spill] sm:$0xff] %v12431_v63  ;;  %v15144_v63 = vld [vmem:[#allocation50_spill] sm:$0xff]  ;;  %v15152_v43 = vld [vmem:[#allocation53_spill] sm:$0xff] }
 0x397   :  { %v4157_v36 = vpack.c.bf16 %v12450_v49, %v12444_v42  ;;  %v12478_v25 = vadd.f32 %v11946_v10, %v15144_v63  ;;  %v4161_v44 = vpack.c.bf16 %v12470_v60, %v12466_v12  ;;  %v15147_v17 = vld [vmem:[#allocation90_spill] sm:$0xff]  ;;  %v4162_v42 = vpack.c.bf16 %v15149_v58, %v15148_v33  ;;  %v15150_v49 = vld [vmem:[#allocation129_spill] sm:$0xff]  ;;  %v15153_v60 = vld [vmem:[#allocation52_spill] sm:$0xff] }
 0x398   :  { %4625 = vmatmul.mubr.bf16.gmra.mxu0 %v15126_v1  ;;  %v15145_v1 = vld [vmem:[#allocation23_spill] sm:$0xff]  ;;  %v4091_v41 = vadd.f32 %v11946_v10, %v15152_v43  ;;  %v4095_v12 = vadd.f32 %v11946_v10, %v15153_v60  ;;  %v15156_v58 = vld [vmem:[#allocation93_spill] sm:$0xff]  ;;  %v15161_v60 = vld [vmem:[#allocation54_spill] sm:$0xff] }
 0x399   :  { %4818 = vmatmul.mubr.bf16.gmra.mxu1 %v15132_v46  ;;  %4634 = vmatprep.mubr.bf16.mxu0 %v4125_v50  ;;  %v15137_v50 = vld [vmem:[#allocation48_spill] sm:$0xff]  ;;  %v12482_v48 = vadd.f32 %v11946_v10, %v15145_v1  ;;  %v15157_v33 = vld [vmem:[#allocation31_spill] sm:$0xff]  ;;  %v4099_v11 = vadd.f32 %v11946_v10, %v15161_v60 }
 0x39a   :  { %4827 = vmatprep.mubr.bf16.mxu1 %v4127_v35  ;;  %v12458_v46 = vadd.f32 %v11946_v10, %v15137_v50  ;;  %v4160_v35 = vpack.c.bf16 %v15147_v17, %v15146_v0  ;;  %v15154_v0 = vld [vmem:[#allocation17_spill] sm:$0xff]  ;;  %v15155_v17 = vld [vmem:[#allocation19_spill] sm:$0xff]  ;;  %v4166_v26 = vpack.c.bf16 %v15157_v33, %v15156_v58  ;;  %v15163_v58 = vpack.c.bf16 %v12016_v16, %v12008_v56  ;;  %v15170_v60 = vld [vmem:[#allocation92_spill] sm:$0xff] }
 0x39b   :  { %v4163_v63 = vpack.c.bf16 %v12482_v48, %v12478_v25  ;;  %v4164_v21 = vpack.c.bf16 %v15155_v17, %v15154_v0  ;;  %v15159_v13 = vld [vmem:[#allocation43_spill] sm:$0xff]  ;;  %v15160_v25 = vpack.c.bf16 %v12012_v62, %v12004_v27  ;;  %v15162_v0 = vld [vmem:[#allocation60_spill] sm:$0xff]  ;;  %v15165_v27 = vld [vmem:[#allocation21_spill] sm:$0xff]  ;;  %v4105_v56 = vadd.f32 %v11943_v15, %v15170_v60 }
 0x39c   :  { %v4159_v50 = vpack.c.bf16 %v12458_v46, %v12454_v8  ;;  %v12492_v8 = vadd.f32 %v11943_v15, %v15150_v49  ;;  %v15151_v46 = vld [vmem:[#allocation131_spill] sm:$0xff]  ;;  %v4101_v48 = vadd.f32 %v11943_v15, %v15159_v13  ;;  %v4103_v17 = vadd.f32 %v11946_v10, %v15162_v0  ;;  %v15166_v62 = vld [vmem:[#allocation25_spill] sm:$0xff] }
 0x39d   :  { %v4093_v1 = vadd.f32 %v11943_v15, %v15151_v46  ;;  %v15158_v49 = vld [vmem:[#allocation7_spill] sm:$0xff]  ;;  %v4167_v46 = vpack.c.bf16 %v4095_v12, %v4091_v41  ;;  %v15164_v13 = vpack.c.bf16 %v12274_v51, %v12270_v54  ;;  %v15169_v12 = vpack.c.bf16 %v12284_v55, %v12278_v34  ;;  %v15171_v16 = vld [vmem:[#allocation89_spill] sm:$0xff] }
 0x39e   :  { %v4097_v29 = vadd.f32 %v11943_v15, %v15158_v49  ;;  %v4168_v49 = vpack.c.bf16 %v15166_v62, %v15165_v27  ;;  %v15168_v41 = vld [vmem:[#allocation27_spill] sm:$0xff]  ;;  %v4109_v0 = vadd.f32 %v11943_v15, %v15171_v16  ;;  %v15176_v62 = vld [vmem:[#allocation46_spill] sm:$0xff]  ;;  %v15179_v15 = vpack.c.bf16 %v12032_v31, %v12024_v18  ;;  %v15212_v60 = vld [vmem:[#allocation77_spill] sm:$0xff] }
 0x39f   :  { %v4165_v43 = vpack.c.bf16 %v4093_v1, %v12492_v8  ;;  %v15167_v8 = vld [vmem:[#allocation96_spill] sm:$0xff]  ;;  %v15172_v54 = vld [vmem:[#allocation51_spill] sm:$0xff]  ;;  %v15184_v18 = vpack.c.bf16 %v12322_v45, %v12318_v5  ;;  %v15186_v31 = vpack.c.bf16 %v12060_v47, %v12052_v6  ;;  %v15191_v45 = vld [vmem:[#allocation62_spill] sm:$0xff] }
 0x3a0   :  { %4635 = vmatmul.mubr.bf16.gmra.mxu0 %v15160_v25  ;;  %v4169_v33 = vpack.c.bf16 %v4101_v48, %v4097_v29  ;;  %v4170_v1 = vpack.c.bf16 %v15168_v41, %v15167_v8  ;;  %v4171_v25 = vpack.c.bf16 %v4103_v17, %v4099_v11  ;;  %v4107_v51 = vadd.f32 %v11946_v10, %v15172_v54  ;;  %v15173_v29 = vld [vmem:[#allocation6_spill] sm:$0xff]  ;;  %v15206_v5 = vld [vmem:[#allocation65_spill] sm:$0xff]  ;;  %v15216_v54 = vld [vmem:[#allocation3_spill] sm:$0xff] }
 0x3a1   :  { %4828 = vmatmul.mubr.bf16.gmra.mxu1 %v15163_v58  ;;  %4644 = vmatprep.mubr.bf16.mxu0 %v15164_v13  ;;  %v4111_v48 = vadd.f32 %v11946_v10, %v15173_v29  ;;  %v15174_v58 = vld [vmem:[#allocation56_spill] sm:$0xff]  ;;  %v15175_v13 = vld [vmem:[#allocation49_spill] sm:$0xff]  ;;  %v15177_v8 = vld [vmem:[#allocation66_spill] sm:$0xff]  ;;  %v4173_v55 = vpack.c.bf16 %v4109_v0, %v4105_v56  ;;  %v15178_v17 = vpack.c.bf16 %v12028_v53, %v12020_v28 }
 0x3a2   :  { %4837 = vmatprep.mubr.bf16.mxu1 %v15169_v12  ;;  %v4172_v27 = vpack.c.bf16 %v15175_v13, %v15174_v58  ;;  %v4174_v34 = vpack.c.bf16 %v15177_v8, %v15176_v62  ;;  %v15180_v41 = vpack.c.bf16 %v12298_v14, %v12294_v19  ;;  %v15181_v10 = vpack.c.bf16 %v12308_v22, %v12302_v61  ;;  %v15194_v47 = vld [vmem:[#allocation74_spill] sm:$0xff]  ;;  %v15198_v14 = vld [vmem:[#allocation63_spill] sm:$0xff]  ;;  %v15200_v22 = vld [vmem:[#allocation80_spill] sm:$0xff] }
 0x3a3   :  { %v4175_v11 = vpack.c.bf16 %v4111_v48, %v4107_v51  ;;  %v15182_v12 = vpack.c.bf16 %v12044_v32, %v12036_v38  ;;  %v15183_v28 = vpack.c.bf16 %v12048_v9, %v12040_v52  ;;  %v15185_v53 = vpack.c.bf16 %v12332_v37, %v12326_v40  ;;  %v15197_v19 = vld [vmem:[#allocation78_spill] sm:$0xff]  ;;  %v15201_v37 = vld [vmem:[#allocation69_spill] sm:$0xff]  ;;  %v15207_v40 = vld [vmem:[#allocation68_spill] sm:$0xff] }
 0x3a4   :  { %v15187_v38 = vpack.c.bf16 %v12064_v57, %v12056_v39  ;;  %v15188_v52 = vpack.c.bf16 %v12346_v3, %v12342_v7  ;;  %v15189_v32 = vpack.c.bf16 %v12356_v23, %v12352_v24  ;;  %v15190_v9 = vpack.c.bf16 %v12076_v59, %v12068_v20  ;;  %v15195_v57 = vld [vmem:[#allocation71_spill] sm:$0xff]  ;;  %v15203_v59 = vld [vmem:[#allocation29_spill] sm:$0xff]  ;;  %v15210_v23 = vld [vmem:[#allocation28_spill] sm:$0xff] }
 0x3a5   :  { %v15192_v6 = vpack.c.bf16 %v12080_v4, %v15191_v45  ;;  %v15193_v39 = vpack.c.bf16 %v12370_v2, %v12366_v30  ;;  %v15196_v3 = vpack.c.bf16 %v15194_v47, %v15195_v57  ;;  %v15199_v61 = vpack.c.bf16 %v15197_v19, %v15198_v14  ;;  %v15204_v24 = vld [vmem:[#allocation55_spill] sm:$0xff]  ;;  %v15209_v30 = vld [vmem:[#allocation4_spill] sm:$0xff]  ;;  %v15218_v29 = vld [vmem:[#allocation37_spill] sm:$0xff] }
 0x3a6   :  { %v15202_v20 = vpack.c.bf16 %v15200_v22, %v15201_v37  ;;  %v15205_v4 = vpack.c.bf16 %v15203_v59, %v15204_v24  ;;  %v15208_v7 = vpack.c.bf16 %v15206_v5, %v15207_v40  ;;  %v15211_v2 = vpack.c.bf16 %v15209_v30, %v15210_v23  ;;  %v15213_v56 = vld [vmem:[#allocation8_spill] sm:$0xff]  ;;  %v15215_v0 = vld [vmem:[#allocation75_spill] sm:$0xff]  ;;  %v15221_v13 = vld [vmem:[#allocation10_spill] sm:$0xff] }
 0x3a7   :  { %v15214_v16 = vpack.c.bf16 %v15212_v60, %v15213_v56  ;;  %v15217_v51 = vpack.c.bf16 %v15215_v0, %v15216_v54  ;;  %v15219_v48 = vld [vmem:[#allocation135_spill] sm:$0xff]  ;;  %v15222_v62 = vld [vmem:[#allocation9_spill] sm:$0xff] }
 0x3a8   :  { %4645 = vmatmul.mubr.bf16.gmra.mxu0 %v15178_v17  ;;  %v15220_v58 = vpack.c.bf16 %v15218_v29, %v15219_v48  ;;  %v15223_v8 = vpack.c.bf16 %v15221_v13, %v15222_v62  ;;  %v15224_v17 = vld [vmem:[#allocation11_spill] sm:$0xff] }
 0x3a9   :  { %4838 = vmatmul.mubr.bf16.gmra.mxu1 %v15179_v15  ;;  %4654 = vmatprep.mubr.bf16.mxu0 %v15180_v41  ;;  %v15225_v15 = vld [vmem:[#allocation81_spill] sm:$0xff] }
 0x3aa   :  { %4847 = vmatprep.mubr.bf16.mxu1 %v15181_v10  ;;  %v15226_v41 = vpack.c.bf16 %v15224_v17, %v15225_v15  ;;  %v15227_v10 = vld [vmem:[#allocation13_spill] sm:$0xff] }
 0x3b0   :  { %4655 = vmatmul.mubr.bf16.gmra.mxu0 %v15182_v12  ;;  %v15228_v12 = vld [vmem:[#allocation84_spill] sm:$0xff] }
 0x3b1   :  { %4848 = vmatmul.mubr.bf16.gmra.mxu1 %v15183_v28  ;;  %4664 = vmatprep.mubr.bf16.mxu0 %v15184_v18  ;;  %v15229_v28 = vpack.c.bf16 %v15227_v10, %v15228_v12  ;;  %v15230_v18 = vld [vmem:[#allocation87_spill] sm:$0xff] }
 0x3b2   :  { %4857 = vmatprep.mubr.bf16.mxu1 %v15185_v53  ;;  %v15231_v53 = vld [vmem:[#allocation12_spill] sm:$0xff] }
 0x3b8   :  { %4665 = vmatmul.mubr.bf16.gmra.mxu0 %v15186_v31  ;;  %v15232_v31 = vpack.c.bf16 %v15230_v18, %v15231_v53 }
 0x3b9   :  { %4858 = vmatmul.mubr.bf16.gmra.mxu1 %v15187_v38  ;;  %4674 = vmatprep.mubr.bf16.mxu0 %v15188_v52 }
 0x3ba   :  { %4867 = vmatprep.mubr.bf16.mxu1 %v15189_v32 }
 0x3c0   :  { %4675 = vmatmul.mubr.bf16.gmra.mxu0 %v15190_v9 }
 0x3c1   :  { %4868 = vmatmul.mubr.bf16.gmra.mxu1 %v15192_v6  ;;  %4684 = vmatprep.mubr.bf16.mxu0 %v15193_v39 }
 0x3c2   :  { %4877 = vmatprep.mubr.bf16.mxu1 %v15196_v3 }
 0x3c8   :  { %4685 = vmatmul.mubr.bf16.gmra.mxu0 %v15199_v61 }
 0x3c9   :  { %4878 = vmatmul.mubr.bf16.gmra.mxu1 %v15202_v20  ;;  %4694 = vmatprep.mubr.bf16.mxu0 %v15205_v4 }
 0x3ca   :  { %4887 = vmatprep.mubr.bf16.mxu1 %v15208_v7 }
 0x3d0   :  { %4695 = vmatmul.mubr.bf16.gmra.mxu0 %v15211_v2 }
 0x3d1   :  { %4888 = vmatmul.mubr.bf16.gmra.mxu1 %v15214_v16  ;;  %4704 = vmatprep.mubr.bf16.mxu0 %v15217_v51 }
 0x3d2   :  { %4897 = vmatprep.mubr.bf16.mxu1 %v15220_v58 }
 0x3d8   :  { %4705 = vmatmul.mubr.bf16.gmra.mxu0 %v15223_v8 }
 0x3d9   :  { %4898 = vmatmul.mubr.bf16.gmra.mxu1 %v15226_v41  ;;  %4714 = vmatprep.mubr.bf16.mxu0 %v4157_v36  ;;  %v7193_v36 = vld [vmem:[%s14071_s9 + $0x78] sm:$0xff]  }
 0x3da   :  { %4907 = vmatprep.mubr.bf16.mxu1 %v4159_v50  ;;  %6585 = vmatprep.subr.bf16.mxu0 %v7193_v36  ;;  %v7197_v50 = vld [vmem:[%s14071_s9 + $0x68] sm:$0xff]  }
 0x3e0   :  { %4715 = vmatmul.mubr.bf16.gmra.mxu0 %v15229_v28 }
 0x3e1   :  { %4908 = vmatmul.mubr.bf16.gmra.mxu1 %v15232_v31  ;;  %4724 = vmatprep.mubr.bf16.mxu0 %v4161_v44  ;;  %v7198_v44 = vld [vmem:[%s14071_s9 + $0x28] sm:$0xff]  }
 0x3e2   :  { %4917 = vmatprep.mubr.bf16.mxu1 %v4163_v63  ;;  %v7200_v63 = vld [vmem:[%s14071_s9 + $0x20] sm:$0xff]  }
 0x3e8   :  { %4725 = vmatmul.mubr.bf16.gmra.mxu0 %v4160_v35  ;;  %v7194_v35 = vld [vmem:[%s14071_s9 + $0x38] sm:$0xff]  }
 0x3e9   :  { %4918 = vmatmul.mubr.bf16.gmra.mxu1 %v4162_v42  ;;  %4734 = vmatprep.mubr.bf16.mxu0 %v4165_v43  ;;  %v7199_v42 = vld [vmem:[%s14071_s9 + $0x60] sm:$0xff]  }
 0x3ea   :  { %4927 = vmatprep.mubr.bf16.mxu1 %v4167_v46  ;;  %6586 = vmatpush3.bf16.msra.mxu0 %v7194_v35  ;;  %v4240_v43 = vld [vmem:[%s14072_s6] sm:$0x3] }
 0x3eb   :  { %v15233_v46 = vld [vmem:[#allocation58_spill] sm:$0xff] }
 0x3f0   :  { %4735 = vmatmul.mubr.bf16.gmra.mxu0 %v4164_v21  ;;  %v7195_v21 = vld [vmem:[%s14071_s9 + $0x70] sm:$0xff]  }
 0x3f1   :  { %4928 = vmatmul.mubr.bf16.gmra.mxu1 %v4166_v26  ;;  %4744 = vmatprep.mubr.bf16.mxu0 %v4169_v33  ;;  %v7196_v26 = vld [vmem:[%s14071_s9 + $0x30] sm:$0xff]   ;;  %v12655_v33 = vrot.slane %v4240_v43, %v15233_v46 }
 0x3f2   :  { %4937 = vmatprep.mubr.bf16.mxu1 %v4171_v25  ;;  %6587 = vmatprep.subr.bf16.mxu0 %v7195_v21 }
 0x3f3   :  { %6588 = vmatpush3.bf16.msra.mxu0 %v7196_v26 }
 0x3f4   :  { %6589 = vmatprep.subr.bf16.mxu0 %v7197_v50 }
 0x3f7   :  { %6590 = vmatpush3.bf16.msra.mxu0 %v7198_v44 }
 0x3f8   :  { %4745 = vmatmul.mubr.bf16.gmra.mxu0 %v4168_v49  ;;  %6591 = vmatprep.subr.bf16.mxu0 %v7199_v42  ;;  %v15234_v49 = vld [vmem:[#allocation59_spill] sm:$0xff] }
 0x3f9   :  { %4938 = vmatmul.mubr.bf16.gmra.mxu1 %v4170_v1  ;;  %4754 = vmatprep.mubr.bf16.mxu0 %v4173_v55  ;;  %v12658_v1 = vrot.slane %v4240_v43, %v15234_v49 }
 0x3fa   :  { %4947 = vmatprep.mubr.bf16.mxu1 %v4175_v11 }
 0x3fb   :  { %6592 = vmatpush3.bf16.msra.mxu0 %v7200_v63 }
 0x400   :  { %4755 = vmatmul.mubr.bf16.gmra.mxu0 %v4172_v27 }
 0x401   :  { %4948 = vmatmul.mubr.bf16.gmra.mxu1 %v4174_v34 }
 0x448   :  { %v4606_v25 = vpop.f32.mrf.mxu0 }
 0x449   :  { %v4607_v27 = vadd.f32 %v4606_v25, %v12655_v33  ;;  %v4799_v34 = vpop.f32.mrf.mxu1 }
 0x44a   :  { %v4608_v55 = vpop.f32.mrf.mxu0 }
 0x44b   :  { %v4800_v11 = vadd.f32 %v4799_v34, %v4607_v27  ;;  %v4609_v38 = vadd.f32 %v4608_v55, %v12658_v1  ;;  %v4801_v52 = vpop.f32.mrf.mxu1 }
 0x44c   :  { %v4610_v32 = vpop.f32.mrf.mxu0 }
 0x44d   :  { %v4802_v9 = vadd.f32 %v4801_v52, %v4609_v38  ;;  %v4803_v45 = vpop.f32.mrf.mxu1  ;;  %v4611_v29 = vadd.f32 %v4610_v32, %v12655_v33  ;;  %v12705_v63 = vmax.f32 %v4800_v11, 0.0 }
 0x44e   :  { %v4612_v6 = vpop.f32.mrf.mxu0 }
 0x44f   :  { %v4805_v39 = vpop.f32.mrf.mxu1  ;;  %v4613_v48 = vadd.f32 %v4612_v6, %v12658_v1  ;;  %v4804_v41 = vadd.f32 %v4803_v45, %v4611_v29  ;;  %v12707_v43 = vmax.f32 %v4802_v9, 0.0 }
 0x450   :  { %v4616_v47 = vpop.f32.mrf.mxu0 }
 0x451   :  { %v4809_v57 = vpop.f32.mrf.mxu1  ;;  %v4617_v8 = vadd.f32 %v4616_v47, %v12655_v33  ;;  %v4806_v10 = vadd.f32 %v4805_v39, %v4613_v48  ;;  %v12698_v26 = vmax.f32 %v4804_v41, 0.0 }
 0x452   :  { %v4618_v3 = vpop.f32.mrf.mxu0 }
 0x453   :  { %v4811_v19 = vpop.f32.mrf.mxu1  ;;  %v4619_v17 = vadd.f32 %v4618_v3, %v12658_v1  ;;  %v4810_v36 = vadd.f32 %v4809_v57, %v4617_v8  ;;  %v12700_v50 = vmax.f32 %v4806_v10, 0.0  ;;  %v5100_v11 = vmul.f32 %v12698_v26, %v12698_v26 }
 0x454   :  { %v4620_v14 = vpop.f32.mrf.mxu0  ;;  %v5098_v3 = vmul.f32 %v12705_v63, %v12705_v63 }
 0x455   :  { %v4813_v61 = vpop.f32.mrf.mxu1  ;;  %v4621_v28 = vadd.f32 %v4620_v14, %v12655_v33  ;;  %v4812_v35 = vadd.f32 %v4811_v19, %v4619_v17  ;;  %v12715_v32 = vmax.f32 %v4810_v36, 0.0  ;;  %v5101_v9 = vmul.f32 %v12700_v50, %v12700_v50 }
 0x456   :  { %v4622_v22 = vpop.f32.mrf.mxu0  ;;  %v5099_v19 = vmul.f32 %v12707_v43, %v12707_v43  ;;  %v5162_v17 = vadd.f32 %v5100_v11, %v5098_v3 }
 0x457   :  { %v4815_v37 = vpop.f32.mrf.mxu1  ;;  %v4623_v53 = vadd.f32 %v4622_v22, %v12658_v1  ;;  %v4814_v25 = vadd.f32 %v4813_v61, %v4621_v28  ;;  %v12717_v45 = vmax.f32 %v4812_v35, 0.0 }
 0x458   :  { %v4626_v20 = vpop.f32.mrf.mxu0  ;;  %v5199_v41 = vadd.f32 %v5101_v9, %v5099_v19 }
 0x459   :  { %v4819_v59 = vpop.f32.mrf.mxu1  ;;  %v4627_v44 = vadd.f32 %v4626_v20, %v12655_v33  ;;  %v4816_v55 = vadd.f32 %v4815_v37, %v4623_v53  ;;  %v12732_v14 = vmax.f32 %v4814_v25, 0.0  ;;  %v5022_v37 = vadd.f32 %v12698_v26, %v12705_v63 }
 0x45a   :  { %v4628_v24 = vpop.f32.mrf.mxu0  ;;  %v5059_v20 = vadd.f32 %v12700_v50, %v12707_v43  ;;  %v5103_v29 = vmul.f32 %v12717_v45, %v12717_v45 }
 0x45b   :  { %v4821_v4 = vpop.f32.mrf.mxu1  ;;  %v4629_v27 = vadd.f32 %v4628_v24, %v12658_v1  ;;  %v4820_v39 = vadd.f32 %v4819_v59, %v4627_v44  ;;  %v12740_v59 = vmax.f32 %v4816_v55, 0.0  ;;  %v5023_v53 = vadd.f32 %v5022_v37, %v12715_v32 }
 0x45c   :  { %v4630_v5 = vpop.f32.mrf.mxu0  ;;  %v5060_v36 = vadd.f32 %v5059_v20, %v12717_v45  ;;  %v5104_v35 = vmul.f32 %v12732_v14, %v12732_v14  ;;  %v5200_v11 = vadd.f32 %v5199_v41, %v5103_v29 }
 0x45d   :  { %v4823_v40 = vpop.f32.mrf.mxu1  ;;  %v4631_v38 = vadd.f32 %v4630_v5, %v12655_v33  ;;  %v4822_v61 = vadd.f32 %v4821_v4, %v4629_v27  ;;  %v12752_v10 = vmax.f32 %v4820_v39, 0.0  ;;  %v5105_v44 = vmul.f32 %v12740_v59, %v12740_v59 }
 0x45e   :  { %v4632_v7 = vpop.f32.mrf.mxu0  ;;  %v5024_v3 = vadd.f32 %v5023_v53, %v12732_v14  ;;  %v5061_v19 = vadd.f32 %v5060_v36, %v12740_v59 }
 0x45f   :  { %v12662_v30 = vpop.f32.mrf.mxu1  ;;  %v4633_v47 = vadd.f32 %v4632_v7, %v12658_v1  ;;  %v4824_v24 = vadd.f32 %v4823_v40, %v4631_v38  ;;  %v5102_v7 = vmul.f32 %v12715_v32, %v12715_v32 }
 0x460   :  { %v4636_v23 = vpop.f32.mrf.mxu0  ;;  %v5025_v41 = vadd.f32 %v5024_v3, %v12752_v10 }
 0x461   :  { %v12664_v2 = vpop.f32.mrf.mxu1  ;;  %v4637_v4 = vadd.f32 %v4636_v23, %v12655_v33  ;;  %v4826_v40 = vadd.f32 %v12662_v30, %v4633_v47  ;;  %v12761_v23 = vmax.f32 %v4822_v61, 0.0  ;;  %v12767_v25 = vmax.f32 %v4824_v24, 0.0 }
 0x462   :  { %v4638_v60 = vpop.f32.mrf.mxu0  ;;  %v5163_v38 = vadd.f32 %v5162_v17, %v5102_v7  ;;  %v5201_v7 = vadd.f32 %v5200_v11, %v5105_v44 }
 0x463   :  { %v12666_v56 = vpop.f32.mrf.mxu1  ;;  %v4639_v48 = vadd.f32 %v4638_v60, %v12658_v1  ;;  %v4830_v9 = vadd.f32 %v12664_v2, %v4637_v4  ;;  %v12783_v61 = vmax.f32 %v4826_v40, 0.0  ;;  %v5107_v20 = vmul.f32 %v12761_v23, %v12761_v23 }
 0x464   :  { %v12668_v16 = vpop.f32.mrf.mxu0  ;;  %v5164_v37 = vadd.f32 %v5163_v38, %v5104_v35  ;;  %v5108_v29 = vmul.f32 %v12767_v25, %v12767_v25  ;;  %v5062_v35 = vadd.f32 %v5061_v19, %v12761_v23 }
 0x465   :  { %v12670_v0 = vpop.f32.mrf.mxu1  ;;  %v4641_v30 = vadd.f32 %v12668_v16, %v12655_v33  ;;  %v4832_v39 = vadd.f32 %v12666_v56, %v4639_v48  ;;  %v5106_v16 = vmul.f32 %v12752_v10, %v12752_v10  ;;  %v12802_v40 = vmax.f32 %v4830_v9, 0.0 }
 0x466   :  { %v12672_v54 = vpop.f32.mrf.mxu0 }
 0x467   :  { %v12674_v51 = vpop.f32.mrf.mxu1  ;;  %v4643_v27 = vadd.f32 %v12672_v54, %v12658_v1  ;;  %v4834_v4 = vadd.f32 %v12670_v0, %v4641_v30  ;;  %15235 = vst [vmem:[#allocation35_spill] sm:$0xff] %v12802_v40  ;;  %v5165_v36 = vadd.f32 %v5164_v37, %v5106_v16  ;;  %v5109_v0 = vmul.f32 %v12783_v61, %v12783_v61 }
 0x468   :  { %v12678_v58 = vpop.f32.mrf.mxu0  ;;  %v5202_v30 = vadd.f32 %v5201_v7, %v5107_v20  ;;  %v5063_v16 = vadd.f32 %v5062_v35, %v12783_v61  ;;  %v5110_v37 = vmul.f32 %v12802_v40, %v12802_v40 }
 0x469   :  { %v12680_v13 = vpop.f32.mrf.mxu1  ;;  %v4647_v2 = vadd.f32 %v12678_v58, %v12655_v33  ;;  %v4836_v48 = vadd.f32 %v12674_v51, %v4643_v27  ;;  %v12804_v58 = vmax.f32 %v4832_v39, 0.0  ;;  %v5026_v27 = vadd.f32 %v5025_v41, %v12767_v25 }
 0x46a   :  { %v12682_v62 = vpop.f32.mrf.mxu0  ;;  %v5166_v9 = vadd.f32 %v5165_v36, %v5108_v29  ;;  %v12822_v39 = vmax.f32 %v4834_v4, 0.0 }
 0x46b   :  { %v12686_v15 = vpop.f32.mrf.mxu1  ;;  %v4649_v56 = vadd.f32 %v12682_v62, %v12658_v1  ;;  %v4840_v38 = vadd.f32 %v12680_v13, %v4647_v2  ;;  %v12824_v3 = vmax.f32 %v4836_v48, 0.0  ;;  %v5111_v13 = vmul.f32 %v12804_v58, %v12804_v58 }
 0x46c   :  { %v12688_v12 = vpop.f32.mrf.mxu0  ;;  %15236 = vst [vmem:[#allocation41_spill] sm:$0xff] %v12822_v39  ;;  %v5203_v2 = vadd.f32 %v5202_v30, %v5109_v0  ;;  %v5064_v4 = vadd.f32 %v5063_v16, %v12804_v58  ;;  %v5112_v36 = vmul.f32 %v12822_v39, %v12822_v39 }
 0x46d   :  { %v12691_v18 = vpop.f32.mrf.mxu1  ;;  %v4651_v62 = vadd.f32 %v12688_v12, %v12655_v33  ;;  %v4842_v12 = vadd.f32 %v12686_v15, %v4649_v56  ;;  %v5027_v56 = vadd.f32 %v5026_v27, %v12802_v40  ;;  %v12845_v48 = vmax.f32 %v4840_v38, 0.0 }
 0x46e   :  { %v12694_v31 = vpop.f32.mrf.mxu0  ;;  %v5204_v30 = vadd.f32 %v5203_v2, %v5111_v13  ;;  %v5065_v16 = vadd.f32 %v5064_v4, %v12824_v3 }
 0x46f   :  { %v12696_v21 = vpop.f32.mrf.mxu1  ;;  %v4653_v51 = vadd.f32 %v12694_v31, %v12658_v1  ;;  %v4844_v15 = vadd.f32 %v12691_v18, %v4651_v62  ;;  %15237 = vst [vmem:[#allocation117_spill] sm:$0xff] %v12845_v48  ;;  %v12847_v41 = vmax.f32 %v4842_v12, 0.0  ;;  %v5028_v12 = vadd.f32 %v5027_v56, %v12822_v39 }
 0x470   :  { %v12703_v42 = vpop.f32.mrf.mxu0 }
 0x471   :  { %v12710_v34 = vpop.f32.mrf.mxu1  ;;  %v4657_v19 = vadd.f32 %v12703_v42, %v12655_v33  ;;  %v4846_v7 = vadd.f32 %v12696_v21, %v4653_v51  ;;  %15238 = vst [vmem:[#allocation122_spill] sm:$0xff] %v12847_v41  ;;  %v5113_v21 = vmul.f32 %v12824_v3, %v12824_v3  ;;  %v5167_v51 = vadd.f32 %v5166_v9, %v5110_v37 }
 0x472   :  { %v12713_v52 = vpop.f32.mrf.mxu0  ;;  %v12862_v27 = vmax.f32 %v4844_v15, 0.0  ;;  %v5114_v9 = vmul.f32 %v12845_v48, %v12845_v48  ;;  %v5066_v4 = vadd.f32 %v5065_v16, %v12847_v41 }
 0x473   :  { %v12719_v6 = vpop.f32.mrf.mxu1  ;;  %v4659_v42 = vadd.f32 %v12713_v52, %v12658_v1  ;;  %v4850_v52 = vadd.f32 %v12710_v34, %v4657_v19  ;;  %v12870_v40 = vmax.f32 %v4846_v7, 0.0  ;;  %v5115_v19 = vmul.f32 %v12847_v41, %v12847_v41 }
 0x474   :  { %v12726_v57 = vpop.f32.mrf.mxu0  ;;  %15239 = vst [vmem:[#allocation98_spill] sm:$0xff] %v12862_v27  ;;  %v5168_v15 = vadd.f32 %v5167_v51, %v5112_v36  ;;  %v5205_v2 = vadd.f32 %v5204_v30, %v5113_v21  ;;  %v5116_v39 = vmul.f32 %v12862_v27, %v12862_v27 }
 0x475   :  { %v12734_v22 = vpop.f32.mrf.mxu1  ;;  %v4661_v18 = vadd.f32 %v12726_v57, %v12655_v33  ;;  %15240 = vst [vmem:[#allocation99_spill] sm:$0xff] %v12870_v40  ;;  %v4852_v34 = vadd.f32 %v12719_v6, %v4659_v42  ;;  %v12884_v56 = vmax.f32 %v4850_v52, 0.0  ;;  %v5029_v42 = vadd.f32 %v5028_v12, %v12845_v48 }
 0x476   :  { %v12742_v5 = vpop.f32.mrf.mxu0  ;;  %v5206_v51 = vadd.f32 %v5205_v2, %v5115_v19 }
 0x477   :  { %v12750_v8 = vpop.f32.mrf.mxu1  ;;  %v4663_v35 = vadd.f32 %v12742_v5, %v12658_v1  ;;  %15241 = vst [vmem:[#allocation127_spill] sm:$0xff] %v12884_v56  ;;  %v12896_v36 = vmax.f32 %v4852_v34, 0.0  ;;  %v5030_v12 = vadd.f32 %v5029_v42, %v12862_v27  ;;  %v5118_v16 = vmul.f32 %v12884_v56, %v12884_v56 }
 0x478   :  { %v12755_v28 = vpop.f32.mrf.mxu0 }
 0x479   :  { %v12763_v60 = vpop.f32.mrf.mxu1  ;;  %v4667_v57 = vadd.f32 %v12755_v28, %v12655_v33  ;;  %v4854_v28 = vadd.f32 %v12734_v22, %v4661_v18  ;;  %v4856_v6 = vadd.f32 %v12750_v8, %v4663_v35  ;;  %15242 = vst [vmem:[#allocation100_spill] sm:$0xff] %v12896_v36  ;;  %v5169_v35 = vadd.f32 %v5168_v15, %v5114_v9 }
 0x47a   :  { %v12773_v55 = vpop.f32.mrf.mxu0  ;;  %v5067_v9 = vadd.f32 %v5066_v4, %v12870_v40  ;;  %v5119_v15 = vmul.f32 %v12896_v36, %v12896_v36 }
 0x47b   :  { %v12777_v47 = vpop.f32.mrf.mxu1  ;;  %v4669_v37 = vadd.f32 %v12773_v55, %v12658_v1  ;;  %v4860_v22 = vadd.f32 %v12763_v60, %v4667_v57  ;;  %v5117_v55 = vmul.f32 %v12870_v40, %v12870_v40  ;;  %v12902_v30 = vmax.f32 %v4854_v28, 0.0 }
 0x47c   :  { %v12785_v54 = vpop.f32.mrf.mxu0  ;;  %v12910_v34 = vmax.f32 %v4856_v6, 0.0  ;;  %v5170_v48 = vadd.f32 %v5169_v35, %v5116_v39  ;;  %v5031_v39 = vadd.f32 %v5030_v12, %v12884_v56 }
 0x47d   :  { %v12793_v24 = vpop.f32.mrf.mxu1  ;;  %v4671_v8 = vadd.f32 %v12785_v54, %v12655_v33  ;;  %15243 = vst [vmem:[#allocation101_spill] sm:$0xff] %v12902_v30  ;;  %v4862_v60 = vadd.f32 %v12777_v47, %v4669_v37  ;;  %v12915_v19 = vmax.f32 %v4860_v22, 0.0  ;;  %v5207_v37 = vadd.f32 %v5206_v51, %v5117_v55  ;;  %v7201_v55 = vld [vmem:[%s14071_s9 + $0x58] sm:$0xff]  }
 0x47e   :  { %v12799_v17 = vpop.f32.mrf.mxu0  ;;  %15244 = vst [vmem:[#allocation130_spill] sm:$0xff] %v12910_v34  ;;  %v5120_v42 = vmul.f32 %v12902_v30, %v12902_v30  ;;  %6593 = vmatprep.subr.bf16.mxu0 %v7201_v55 }
 0x47f   :  { %v12808_v53 = vpop.f32.mrf.mxu1  ;;  %v4673_v21 = vadd.f32 %v12799_v17, %v12658_v1  ;;  %15245 = vst [vmem:[#allocation142_spill] sm:$0xff] %v12915_v19  ;;  %v4864_v2 = vadd.f32 %v12793_v24, %v4671_v8  ;;  %v12928_v4 = vmax.f32 %v4862_v60, 0.0  ;;  %v7202_v24 = vld [vmem:[%s14071_s9 + $0x18] sm:$0xff]   ;;  %v5171_v8 = vadd.f32 %v5170_v48, %v5118_v16 }
 0x480   :  { %v12815_v44 = vpop.f32.mrf.mxu0  ;;  %v5032_v60 = vadd.f32 %v5031_v39, %v12902_v30  ;;  %v5122_v12 = vmul.f32 %v12915_v19, %v12915_v19  ;;  %v5208_v48 = vadd.f32 %v5207_v37, %v5119_v15  ;;  %6594 = vmatpush3.bf16.msra.mxu0 %v7202_v24 }
 0x481   :  { %v12820_v11 = vpop.f32.mrf.mxu1  ;;  %v4677_v54 = vadd.f32 %v12815_v44, %v12655_v33  ;;  %v4866_v6 = vadd.f32 %v12808_v53, %v4673_v21  ;;  %15246 = vst [vmem:[#allocation133_spill] sm:$0xff] %v12928_v4  ;;  %v7203_v53 = vld [vmem:[%s14071_s9 + $0x50] sm:$0xff]   ;;  %v5068_v21 = vadd.f32 %v5067_v9, %v12896_v36  ;;  %v12955_v16 = vmax.f32 %v4864_v2, 0.0 }
 0x482   :  { %v12828_v31 = vpop.f32.mrf.mxu0  ;;  %6595 = vmatprep.subr.bf16.mxu0 %v7203_v53 }
 0x483   :  { %v12836_v20 = vpop.f32.mrf.mxu1  ;;  %v4679_v47 = vadd.f32 %v12828_v31, %v12658_v1  ;;  %v4870_v35 = vadd.f32 %v12820_v11, %v4677_v54  ;;  %15247 = vst [vmem:[#allocation102_spill] sm:$0xff] %v12955_v16  ;;  %v12957_v9 = vmax.f32 %v4866_v6, 0.0  ;;  %v5069_v2 = vadd.f32 %v5068_v21, %v12910_v34 }
 0x484   :  { %v12842_v29 = vpop.f32.mrf.mxu0  ;;  %v5124_v30 = vmul.f32 %v12955_v16, %v12955_v16 }
 0x485   :  { %v12851_v62 = vpop.f32.mrf.mxu1  ;;  %v4681_v31 = vadd.f32 %v12842_v29, %v12655_v33  ;;  %v5121_v29 = vmul.f32 %v12910_v34, %v12910_v34  ;;  %v4872_v56 = vadd.f32 %v12836_v20, %v4679_v47  ;;  %15248 = vst [vmem:[#allocation134_spill] sm:$0xff] %v12957_v9  ;;  %v7204_v20 = vld [vmem:[%s14071_s9 + $0x10] sm:$0xff]   ;;  %v5172_v47 = vadd.f32 %v5171_v8, %v5120_v42 }
 0x486   :  { %v12860_v0 = vpop.f32.mrf.mxu0  ;;  %v12974_v55 = vmax.f32 %v4870_v35, 0.0  ;;  %v5033_v8 = vadd.f32 %v5032_v60, %v12915_v19  ;;  %v5125_v21 = vmul.f32 %v12957_v9, %v12957_v9  ;;  %6596 = vmatpush3.bf16.msra.mxu0 %v7204_v20 }
 0x487   :  { %v12866_v38 = vpop.f32.mrf.mxu1  ;;  %v4683_v27 = vadd.f32 %v12860_v0, %v12658_v1  ;;  %v5123_v0 = vmul.f32 %v12928_v4, %v12928_v4  ;;  %v4874_v39 = vadd.f32 %v12851_v62, %v4681_v31  ;;  %v5209_v6 = vadd.f32 %v5208_v48, %v5121_v29 }
 0x488   :  { %v12873_v5 = vpop.f32.mrf.mxu0  ;;  %15249 = vst [vmem:[#allocation103_spill] sm:$0xff] %v12974_v55  ;;  %v5173_v62 = vadd.f32 %v5172_v47, %v5122_v12  ;;  %v12978_v31 = vmax.f32 %v4872_v56, 0.0  ;;  %v7206_v56 = vld [vmem:[%s14071_s9 + $0x8] sm:$0xff]  }
 0x489   :  { %v12882_v13 = vpop.f32.mrf.mxu1  ;;  %v4687_v11 = vadd.f32 %v12873_v5, %v12655_v33  ;;  %v7205_v5 = vld [vmem:[%s14071_s9 + $0x48] sm:$0xff]   ;;  %v12993_v60 = vmax.f32 %v4874_v39, 0.0 }
 0x48a   :  { %v4688_v7 = vpop.f32.mrf.mxu0  ;;  %15250 = vst [vmem:[#allocation144_spill] sm:$0xff] %v12978_v31  ;;  %6597 = vmatprep.subr.bf16.mxu0 %v7205_v5 }
 0x48b   :  { %v12892_v18 = vpop.f32.mrf.mxu1  ;;  %v4689_v37 = vadd.f32 %v4688_v7, %v12658_v1  ;;  %v4876_v7 = vadd.f32 %v12866_v38, %v4683_v27  ;;  %v4880_v29 = vadd.f32 %v12882_v13, %v4687_v11  ;;  %v5070_v27 = vadd.f32 %v5069_v2, %v12928_v4  ;;  %15251 = vst [vmem:[#allocation104_spill] sm:$0xff] %v12993_v60  ;;  %v7207_v13 = vld [vmem:[%s14071_s9 + $0x40] sm:$0xff]  }
 0x48c   :  { %v4690_v52 = vpop.f32.mrf.mxu0  ;;  %v5210_v38 = vadd.f32 %v5209_v6, %v5123_v0  ;;  %v5126_v11 = vmul.f32 %v12974_v55, %v12974_v55  ;;  %v5174_v6 = vadd.f32 %v5173_v62, %v5124_v30  ;;  %6598 = vmatpush3.bf16.msra.mxu0 %v7206_v56 }
 0x48d   :  { %v12905_v57 = vpop.f32.mrf.mxu1  ;;  %v4691_v42 = vadd.f32 %v4690_v52, %v12655_v33  ;;  %v4882_v12 = vadd.f32 %v12892_v18, %v4689_v37  ;;  %v5071_v39 = vadd.f32 %v5070_v27, %v12957_v9  ;;  %v5127_v18 = vmul.f32 %v12978_v31, %v12978_v31  ;;  %6599 = vmatprep.subr.bf16.mxu0 %v7207_v13 }
 0x48e   :  { %v4692_v17 = vpop.f32.mrf.mxu0  ;;  %v13007_v37 = vmax.f32 %v4876_v7, 0.0  ;;  %v5128_v7 = vmul.f32 %v12993_v60, %v12993_v60  ;;  %v5175_v62 = vadd.f32 %v5174_v6, %v5126_v11 }
 0x48f   :  { %v12919_v28 = vpop.f32.mrf.mxu1  ;;  %v4693_v52 = vadd.f32 %v4692_v17, %v12658_v1  ;;  %v5034_v17 = vadd.f32 %v5033_v8, %v12955_v16  ;;  %v4884_v20 = vadd.f32 %v12905_v57, %v4691_v42  ;;  %v5211_v8 = vadd.f32 %v5210_v38, %v5125_v21 }
 0x490   :  { %v4696_v44 = vpop.f32.mrf.mxu0  ;;  %15252 = vst [vmem:[#allocation136_spill] sm:$0xff] %v13007_v37  ;;  %v13010_v16 = vmax.f32 %v4880_v29, 0.0  ;;  %v13019_v27 = vmax.f32 %v4882_v12, 0.0  ;;  %v5129_v38 = vmul.f32 %v13007_v37, %v13007_v37 }
 0x491   :  { %v12932_v22 = vpop.f32.mrf.mxu1  ;;  %v4697_v47 = vadd.f32 %v4696_v44, %v12655_v33  ;;  %v4886_v19 = vadd.f32 %v12919_v28, %v4693_v52  ;;  %v7208_v44 = vld [vmem:[%s14071_s9] sm:$0xff]   ;;  %v5035_v42 = vadd.f32 %v5034_v17, %v12974_v55  ;;  %v5072_v28 = vadd.f32 %v5071_v39, %v12978_v31 }
 0x492   :  { %v4698_v51 = vpop.f32.mrf.mxu0  ;;  %15253 = vst [vmem:[#allocation137_spill] sm:$0xff] %v13019_v27  ;;  %v13023_v21 = vmax.f32 %v4884_v20, 0.0  ;;  %v5212_v56 = vadd.f32 %v5211_v8, %v5127_v18  ;;  %v5130_v13 = vmul.f32 %v13010_v16, %v13010_v16  ;;  %6600 = vmatpush3.bf16.msra.mxu0 %v7208_v44 }
 0x493   :  { %v12953_v40 = vpop.f32.mrf.mxu1  ;;  %v4699_v5 = vadd.f32 %v4698_v51, %v12658_v1  ;;  %v4890_v29 = vadd.f32 %v12932_v22, %v4697_v47  ;;  %v13033_v11 = vmax.f32 %v4886_v19, 0.0  ;;  %v5176_v47 = vadd.f32 %v5175_v62, %v5128_v7 }
 0x494   :  { %v4700_v54 = vpop.f32.mrf.mxu0  ;;  %v5073_v39 = vadd.f32 %v5072_v28, %v13007_v37  ;;  %v5132_v6 = vmul.f32 %v13023_v21, %v13023_v21  ;;  %v5213_v44 = vadd.f32 %v5212_v56, %v5129_v38 }
 0x495   :  { %v12968_v15 = vpop.f32.mrf.mxu1  ;;  %v4701_v30 = vadd.f32 %v4700_v54, %v12655_v33  ;;  %v4892_v17 = vadd.f32 %v12953_v40, %v4699_v5  ;;  %v5036_v54 = vadd.f32 %v5035_v42, %v12993_v60  ;;  %15254 = vst [vmem:[#allocation105_spill] sm:$0xff] %v13033_v11  ;;  %v5131_v40 = vmul.f32 %v13019_v27, %v13019_v27 }
 0x496   :  { %v4702_v24 = vpop.f32.mrf.mxu0  ;;  %v13043_v19 = vmax.f32 %v4890_v29, 0.0  ;;  %v5074_v37 = vadd.f32 %v5073_v39, %v13019_v27 }
 0x497   :  { %v12981_v53 = vpop.f32.mrf.mxu1  ;;  %v4703_v12 = vadd.f32 %v4702_v24, %v12658_v1  ;;  %v4894_v24 = vadd.f32 %v12968_v15, %v4701_v30  ;;  %v5037_v5 = vadd.f32 %v5036_v54, %v13010_v16  ;;  %v13046_v42 = vmax.f32 %v4892_v17, 0.0 }
 0x498   :  { %v4706_v35 = vpop.f32.mrf.mxu0  ;;  %v5177_v15 = vadd.f32 %v5176_v47, %v5130_v13  ;;  %v5133_v30 = vmul.f32 %v13033_v11, %v13033_v11 }
 0x499   :  { %v4899_v48 = vpop.f32.mrf.mxu1  ;;  %v4707_v20 = vadd.f32 %v4706_v35, %v12655_v33  ;;  %v4896_v7 = vadd.f32 %v12981_v53, %v4703_v12  ;;  %v5038_v56 = vadd.f32 %v5037_v5, %v13023_v21  ;;  %v13055_v38 = vmax.f32 %v4894_v24, 0.0 }
 0x49a   :  { %v4708_v0 = vpop.f32.mrf.mxu0  ;;  %v5178_v53 = vadd.f32 %v5177_v15, %v5132_v6  ;;  %v5075_v24 = vadd.f32 %v5074_v37, %v13033_v11 }
 0x49b   :  { %v4901_v2 = vpop.f32.mrf.mxu1  ;;  %v4709_v35 = vadd.f32 %v4708_v0, %v12658_v1  ;;  %v4900_v54 = vadd.f32 %v4899_v48, %v4707_v20  ;;  %v5214_v0 = vadd.f32 %v5213_v44, %v5131_v40  ;;  %v5135_v48 = vmul.f32 %v13046_v42, %v13046_v42 }
 0x49c   :  { %v4710_v57 = vpop.f32.mrf.mxu0 }
 0x49d   :  { %v4903_v51 = vpop.f32.mrf.mxu1  ;;  %v4711_v62 = vadd.f32 %v4710_v57, %v12655_v33  ;;  %v5134_v57 = vmul.f32 %v13043_v19, %v13043_v19  ;;  %v4902_v12 = vadd.f32 %v4901_v2, %v4709_v35  ;;  %v5215_v5 = vadd.f32 %v5214_v0, %v5133_v30 }
 0x49e   :  { %v4712_v52 = vpop.f32.mrf.mxu0  ;;  %v13066_v6 = vmax.f32 %v4900_v54, 0.0  ;;  %v5039_v2 = vadd.f32 %v5038_v56, %v13043_v19 }
 0x49f   :  { %v4905_v55 = vpop.f32.mrf.mxu1  ;;  %v4713_v60 = vadd.f32 %v4712_v52, %v12658_v1  ;;  %v13062_v52 = vmax.f32 %v4896_v7, 0.0  ;;  %v4904_v20 = vadd.f32 %v4903_v51, %v4711_v62  ;;  %v5179_v62 = vadd.f32 %v5178_v53, %v5134_v57 }
 0x4a0   :  { %v4716_v22 = vpop.f32.mrf.mxu0  ;;  %v13074_v27 = vmax.f32 %v4902_v12, 0.0  ;;  %v5216_v54 = vadd.f32 %v5215_v5, %v5135_v48 }
 0x4a1   :  { %v4909_v18 = vpop.f32.mrf.mxu1  ;;  %v4717_v13 = vadd.f32 %v4716_v22, %v12655_v33  ;;  %v4906_v44 = vadd.f32 %v4905_v55, %v4713_v60  ;;  %v5136_v22 = vmul.f32 %v13055_v38, %v13055_v38  ;;  %v5137_v55 = vmul.f32 %v13062_v52, %v13062_v52 }
 0x4a2   :  { %v4718_v8 = vpop.f32.mrf.mxu0  ;;  %v13078_v60 = vmax.f32 %v4904_v20, 0.0 }
 0x4a3   :  { %v4911_v28 = vpop.f32.mrf.mxu1  ;;  %v4719_v39 = vadd.f32 %v4718_v8, %v12658_v1  ;;  %v5076_v8 = vadd.f32 %v5075_v24, %v13046_v42  ;;  %v4910_v37 = vadd.f32 %v4909_v18, %v4717_v13  ;;  %v13083_v53 = vmax.f32 %v4906_v44, 0.0 }
 0x4a4   :  { %v4720_v29 = vpop.f32.mrf.mxu0  ;;  %v5180_v18 = vadd.f32 %v5179_v62, %v5136_v22  ;;  %v5217_v11 = vadd.f32 %v5216_v54, %v5137_v55  ;;  %v5140_v22 = vmul.f32 %v13078_v60, %v13078_v60 }
 0x4a5   :  { %v4913_v17 = vpop.f32.mrf.mxu1  ;;  %v4721_v35 = vadd.f32 %v4720_v29, %v12655_v33  ;;  %v4912_v0 = vadd.f32 %v4911_v28, %v4719_v39  ;;  %v5040_v29 = vadd.f32 %v5039_v2, %v13055_v38  ;;  %15255 = vst [vmem:[#allocation147_spill] sm:$0xff] %v13083_v53  ;;  %v5077_v13 = vadd.f32 %v5076_v8, %v13062_v52 }
 0x4a6   :  { %v4722_v47 = vpop.f32.mrf.mxu0  ;;  %v5139_v28 = vmul.f32 %v13074_v27, %v13074_v27  ;;  %v13089_v20 = vmax.f32 %v4910_v37, 0.0 }
 0x4a7   :  { %v4915_v40 = vpop.f32.mrf.mxu1  ;;  %v4723_v7 = vadd.f32 %v4722_v47, %v12658_v1  ;;  %v5138_v47 = vmul.f32 %v13066_v6, %v13066_v6  ;;  %v4914_v48 = vadd.f32 %v4913_v17, %v4721_v35  ;;  %v13096_v62 = vmax.f32 %v4912_v0, 0.0 }
 0x4a8   :  { %v4726_v15 = vpop.f32.mrf.mxu0  ;;  %v5141_v35 = vmul.f32 %v13083_v53, %v13083_v53  ;;  %v5218_v0 = vadd.f32 %v5217_v11, %v5139_v28 }
 0x4a9   :  { %v4919_v51 = vpop.f32.mrf.mxu1  ;;  %v4727_v57 = vadd.f32 %v4726_v15, %v12655_v33  ;;  %v4916_v24 = vadd.f32 %v4915_v40, %v4723_v7  ;;  %v5041_v15 = vadd.f32 %v5040_v29, %v13066_v6  ;;  %15256 = vst [vmem:[#allocation106_spill] sm:$0xff] %v13096_v62  ;;  %v5181_v40 = vadd.f32 %v5180_v18, %v5138_v47 }
 0x4aa   :  { %v4728_v30 = vpop.f32.mrf.mxu0  ;;  %v5142_v47 = vmul.f32 %v13089_v20, %v13089_v20 }
 0x4ab   :  { %v4921_v56 = vpop.f32.mrf.mxu1  ;;  %v4729_v39 = vadd.f32 %v4728_v30, %v12658_v1  ;;  %v4920_v7 = vadd.f32 %v4919_v51, %v4727_v57  ;;  %v5078_v30 = vadd.f32 %v5077_v13, %v13074_v27  ;;  %v13104_v54 = vmax.f32 %v4916_v24, 0.0 }
 0x4ac   :  { %v4730_v12 = vpop.f32.mrf.mxu0  ;;  %v5042_v51 = vadd.f32 %v5041_v15, %v13078_v60  ;;  %v5182_v57 = vadd.f32 %v5181_v40, %v5140_v22  ;;  %v5143_v13 = vmul.f32 %v13096_v62, %v13096_v62 }
 0x4ad   :  { %v4923_v5 = vpop.f32.mrf.mxu1  ;;  %v4731_v2 = vadd.f32 %v4730_v12, %v12655_v33  ;;  %v13102_v12 = vmax.f32 %v4914_v48, 0.0  ;;  %15257 = vst [vmem:[#allocation139_spill] sm:$0xff] %v13104_v54  ;;  %v4922_v18 = vadd.f32 %v4921_v56, %v4729_v39  ;;  %v13114_v4 = vmax.f32 %v4920_v7, 0.0 }
 0x4ae   :  { %v4732_v44 = vpop.f32.mrf.mxu0  ;;  %v5183_v22 = vadd.f32 %v5182_v57, %v5142_v47 }
 0x4af   :  { %v4925_v17 = vpop.f32.mrf.mxu1  ;;  %v4733_v8 = vadd.f32 %v4732_v44, %v12658_v1  ;;  %v4924_v31 = vadd.f32 %v4923_v5, %v4731_v2  ;;  %v5079_v44 = vadd.f32 %v5078_v30, %v13083_v53  ;;  %v5144_v56 = vmul.f32 %v13102_v12, %v13102_v12 }
 0x4b0   :  { %v4736_v37 = vpop.f32.mrf.mxu0  ;;  %v5145_v5 = vmul.f32 %v13104_v54, %v13104_v54  ;;  %v13122_v40 = vmax.f32 %v4922_v18, 0.0 }
 0x4b1   :  { %v4737_v55 = vadd.f32 %v4736_v37, %v12655_v33  ;;  %v4929_v29 = vpop.f32.mrf.mxu1  ;;  %v5219_v37 = vadd.f32 %v5218_v0, %v5141_v35  ;;  %v4926_v11 = vadd.f32 %v4925_v17, %v4733_v8  ;;  %v13124_v35 = vmax.f32 %v4924_v31, 0.0 }
 0x4b2   :  { %v4738_v9 = vpop.f32.mrf.mxu0  ;;  %15258 = vst [vmem:[#allocation107_spill] sm:$0xff] %v13122_v40  ;;  %v5080_v17 = vadd.f32 %v5079_v44, %v13096_v62 }
 0x4b3   :  { %v4739_v48 = vadd.f32 %v4738_v9, %v12658_v1  ;;  %v4931_v24 = vpop.f32.mrf.mxu1  ;;  %v4930_v39 = vadd.f32 %v4929_v29, %v4737_v55  ;;  %v5043_v9 = vadd.f32 %v5042_v51, %v13089_v20  ;;  %v5220_v8 = vadd.f32 %v5219_v37, %v5143_v13 }
 0x4b4   :  { %v4740_v28 = vpop.f32.mrf.mxu0  ;;  %v5146_v55 = vmul.f32 %v13114_v4, %v13114_v4  ;;  %v13130_v29 = vmax.f32 %v4926_v11, 0.0  ;;  %v5184_v51 = vadd.f32 %v5183_v22, %v5144_v56  ;;  %v5081_v31 = vadd.f32 %v5080_v17, %v13104_v54 }
 0x4b5   :  { %v4741_v2 = vadd.f32 %v4740_v28, %v12655_v33  ;;  %v4933_v15 = vpop.f32.mrf.mxu1  ;;  %v4932_v30 = vadd.f32 %v4931_v24, %v4739_v48  ;;  %v5044_v36 = vadd.f32 %v5043_v9, %v13102_v12  ;;  %v5221_v57 = vadd.f32 %v5220_v8, %v5145_v5 }
 0x4b6   :  { %v4742_v7 = vpop.f32.mrf.mxu0  ;;  %15259 = vst [vmem:[#allocation140_spill] sm:$0xff] %v13130_v29  ;;  %v13134_v28 = vmax.f32 %v4930_v39, 0.0  ;;  %v5147_v48 = vmul.f32 %v13122_v40, %v13122_v40  ;;  %v5148_v24 = vmul.f32 %v13124_v35, %v13124_v35  ;;  %v5185_v9 = vadd.f32 %v5184_v51, %v5146_v55 }
 0x4b7   :  { %v4934_v0 = vadd.f32 %v4933_v15, %v4741_v2  ;;  %v4935_v34 = vpop.f32.mrf.mxu1  ;;  %v4743_v47 = vadd.f32 %v4742_v7, %v12658_v1  ;;  %v5045_v2 = vadd.f32 %v5044_v36, %v13114_v4  ;;  %v13142_v15 = vmax.f32 %v4932_v30, 0.0 }
 0x4b8   :  { %v4746_v18 = vpop.f32.mrf.mxu0  ;;  %v5082_v22 = vadd.f32 %v5081_v31, %v13122_v40  ;;  %v5149_v7 = vmul.f32 %v13130_v29, %v13130_v29  ;;  %v5150_v8 = vmul.f32 %v13134_v28, %v13134_v28  ;;  %v5186_v55 = vadd.f32 %v5185_v9, %v5148_v24 }
 0x4b9   :  { %v4939_v13 = vpop.f32.mrf.mxu1  ;;  %v4936_v44 = vadd.f32 %v4935_v34, %v4743_v47  ;;  %v4747_v37 = vadd.f32 %v4746_v18, %v12655_v33  ;;  %15260 = vst [vmem:[#allocation149_spill] sm:$0xff] %v13142_v15  ;;  %v13144_v56 = vmax.f32 %v4934_v0, 0.0  ;;  %v5222_v18 = vadd.f32 %v5221_v57, %v5147_v48 }
 0x4ba   :  { %v4748_v11 = vpop.f32.mrf.mxu0 }
 0x4bb   :  { %v4749_v5 = vadd.f32 %v4748_v11, %v12658_v1  ;;  %v4941_v39 = vpop.f32.mrf.mxu1  ;;  %v4940_v17 = vadd.f32 %v4939_v13, %v4747_v37  ;;  %v13152_v47 = vmax.f32 %v4936_v44, 0.0  ;;  %v5046_v11 = vadd.f32 %v5045_v2, %v13124_v35 }
 0x4bc   :  { %v4750_v34 = vpop.f32.mrf.mxu0  ;;  %v5151_v13 = vmul.f32 %v13142_v15, %v13142_v15  ;;  %v5152_v37 = vmul.f32 %v13144_v56, %v13144_v56  ;;  %v5187_v2 = vadd.f32 %v5186_v55, %v5150_v8 }
 0x4bd   :  { %15261 = vst [vmem:[#allocation141_spill] sm:$0xff] %v13152_v47  ;;  %v4942_v36 = vadd.f32 %v4941_v39, %v4749_v5  ;;  %v4751_v30 = vadd.f32 %v4750_v34, %v12655_v33  ;;  %v4943_v0 = vpop.f32.mrf.mxu1  ;;  %v13156_v51 = vmax.f32 %v4940_v17, 0.0  ;;  %v5083_v39 = vadd.f32 %v5082_v22, %v13130_v29 }
 0x4be   :  { %v4752_v31 = vpop.f32.mrf.mxu0  ;;  %v5223_v34 = vadd.f32 %v5222_v18, %v5149_v7  ;;  %v5047_v57 = vadd.f32 %v5046_v11, %v13134_v28  ;;  %v5153_v9 = vmul.f32 %v13152_v47, %v13152_v47  ;;  %v5188_v11 = vadd.f32 %v5187_v2, %v5152_v37 }
 0x4bf   :  { %v4944_v41 = vadd.f32 %v4943_v0, %v4751_v30  ;;  %v4753_v44 = vadd.f32 %v4752_v31, %v12658_v1  ;;  %v4945_v5 = vpop.f32.mrf.mxu1  ;;  %v13165_v48 = vmax.f32 %v4942_v36, 0.0  ;;  %v5084_v30 = vadd.f32 %v5083_v39, %v13142_v15 }
 0x4c0   :  { %v4756_v24 = vpop.f32.mrf.mxu0  ;;  %v5154_v0 = vmul.f32 %v13156_v51, %v13156_v51  ;;  %v5224_v18 = vadd.f32 %v5223_v34, %v5151_v13  ;;  %v5048_v36 = vadd.f32 %v5047_v57, %v13144_v56 }
 0x4c1   :  { %15262 = vst [vmem:[#allocation151_spill] sm:$0xff] %v13165_v48  ;;  %v13169_v17 = vmax.f32 %v4944_v41, 0.0  ;;  %v4946_v40 = vadd.f32 %v4945_v5, %v4753_v44  ;;  %v4949_v54 = vpop.f32.mrf.mxu1  ;;  %v4757_v22 = vadd.f32 %v4756_v24, %v12655_v33  ;;  %v5155_v41 = vmul.f32 %v13165_v48, %v13165_v48 }
 0x4c2   :  { %v4758_v7 = vpop.f32.mrf.mxu0  ;;  %v5085_v24 = vadd.f32 %v5084_v30, %v13152_v47  ;;  %v5225_v15 = vadd.f32 %v5224_v18, %v5153_v9  ;;  %v5049_v13 = vadd.f32 %v5048_v36, %v13156_v51  ;;  %v5189_v34 = vadd.f32 %v5188_v11, %v5154_v0 }
 0x4c3   :  { %v13176_v8 = vmax.f32 %v4946_v40, 0.0  ;;  %v4951_v55 = vpop.f32.mrf.mxu1  ;;  %v5156_v31 = vmul.f32 %v13169_v17, %v13169_v17  ;;  %v4950_v44 = vadd.f32 %v4949_v54, %v4757_v22  ;;  %v4759_v5 = vadd.f32 %v4758_v7, %v12658_v1 }
 0x4c4   :  { %v4760_v39 = vpop.f32.mrf.mxu0  ;;  %v5086_v54 = vadd.f32 %v5085_v24, %v13165_v48  ;;  %v5050_v22 = vadd.f32 %v5049_v13, %v13169_v17  ;;  %v5226_v30 = vadd.f32 %v5225_v15, %v5155_v41 }
 0x4c5   :  { %15263 = vst [vmem:[#allocation108_spill] sm:$0xff] %v13176_v8  ;;  %v4761_v37 = vadd.f32 %v4760_v39, %v12655_v33  ;;  %v4953_v40 = vpop.f32.mrf.mxu1  ;;  %v5157_v57 = vmul.f32 %v13176_v8, %v13176_v8  ;;  %v13188_v2 = vmax.f32 %v4950_v44, 0.0  ;;  %v4952_v29 = vadd.f32 %v4951_v55, %v4759_v5 }
 0x4c6   :  { %v4762_v62 = vpop.f32.mrf.mxu0  ;;  %v5190_v18 = vadd.f32 %v5189_v34, %v5156_v31  ;;  %v5087_v11 = vadd.f32 %v5086_v54, %v13176_v8 }
 0x4c7   :  { %v4954_v7 = vadd.f32 %v4953_v40, %v4761_v37  ;;  %v4763_v9 = vadd.f32 %v4762_v62, %v12658_v1  ;;  %v5158_v33 = vmul.f32 %v13188_v2, %v13188_v2  ;;  %v13195_v0 = vmax.f32 %v4952_v29, 0.0  ;;  %v4955_v36 = vpop.f32.mrf.mxu1 }
 0x4c8   :  { %v5051_v55 = vadd.f32 %v5050_v22, %v13188_v2  ;;  %v5227_v39 = vadd.f32 %v5226_v30, %v5157_v57 }
 0x4c9   :  { %v5020_v44 = vmax.f32 %v4954_v7, 0.0  ;;  %v4956_v5 = vadd.f32 %v4955_v36, %v4763_v9  ;;  %v5191_v24 = vadd.f32 %v5190_v18, %v5158_v33  ;;  %v5159_v13 = vmul.f32 %v13195_v0, %v13195_v0 }
 0x4ca   :  { %v5088_v1 = vadd.f32 %v5087_v11, %v13195_v0 }
 0x4cb   :  { %v5052_v62 = vadd.f32 %v5051_v55, %v5020_v44  ;;  %v5160_v15 = vmul.f32 %v5020_v44, %v5020_v44  ;;  %v5021_v41 = vmax.f32 %v4956_v5, 0.0  ;;  %v5228_v31 = vadd.f32 %v5227_v39, %v5159_v13 }
 0x4cd   :  { %v5053_v29 = vrot.slane %v5052_v62, 4  ;;  %v5192_v37 = vadd.f32 %v5191_v24, %v5160_v15  ;;  %v5089_v40 = vadd.f32 %v5088_v1, %v5021_v41  ;;  %v5161_v34 = vmul.f32 %v5021_v41, %v5021_v41 }
 0x4cf   :  { %v5054_v54 = vadd.f32 %v5053_v29, %v5052_v62  ;;  %v5193_v8 = vrot.slane %v5192_v37, 4  ;;  %v5090_v22 = vrot.slane %v5089_v40, 4  ;;  %v5229_v7 = vadd.f32 %v5228_v31, %v5161_v34 }
 0x4d1   :  { %v5055_v9 = vrot.slane %v5054_v54, 2  ;;  %v5194_v57 = vadd.f32 %v5193_v8, %v5192_v37  ;;  %v5091_v30 = vadd.f32 %v5090_v22, %v5089_v40  ;;  %v5230_v18 = vrot.slane %v5229_v7, 4 }
 0x4d3   :  { %v5056_v33 = vadd.f32 %v5055_v9, %v5054_v54  ;;  %v5195_v36 = vrot.slane %v5194_v57, 2  ;;  %v5092_v48 = vrot.slane %v5091_v30, 2  ;;  %v5231_v11 = vadd.f32 %v5230_v18, %v5229_v7 }
 0x4d5   :  { %v5057_v55 = vrot.slane %v5056_v33, 1  ;;  %v5196_v47 = vadd.f32 %v5195_v36, %v5194_v57  ;;  %v5093_v5 = vadd.f32 %v5092_v48, %v5091_v30  ;;  %v5232_v39 = vrot.slane %v5231_v11, 2 }
 0x4d7   :  { %v5058_v13 = vadd.f32 %v5057_v55, %v5056_v33  ;;  %v5197_v24 = vrot.slane %v5196_v47, 1  ;;  %v5094_v1 = vrot.slane %v5093_v5, 1  ;;  %v5233_v15 = vadd.f32 %v5232_v39, %v5231_v11 }
 0x4d9   :  { %v5096_v62 = vmul.f32 0.00390625, %v5058_v13  ;;  %v5198_v29 = vadd.f32 %v5197_v24, %v5196_v47  ;;  %v5095_v53 = vadd.f32 %v5094_v1, %v5093_v5  ;;  %v5234_v31 = vrot.slane %v5233_v15, 1  ;;  %v5248_v47 = vld [vmem:[%s14073_s7] sm:$0x3] }
 0x4da   :  { %v5253_v33 = vrot.slane %v5248_v47, %v15233_v46  ;;  %v5257_v5 = vrot.slane %v5248_v47, %v15234_v49 }
 0x4db   :  { %v5236_v34 = vmul.f32 0.00390625, %v5198_v29  ;;  %v5238_v8 = vmul.f32 %v5096_v62, %v5096_v62  ;;  %v5097_v37 = vmul.f32 0.00390625, %v5095_v53  ;;  %v5235_v40 = vadd.f32 %v5234_v31, %v5233_v15 }
 0x4dd   :  { %v5240_v54 = vsub.f32 %v5236_v34, %v5238_v8  ;;  %v5237_v22 = vmul.f32 0.00390625, %v5235_v40  ;;  %v5239_v9 = vmul.f32 %v5097_v37, %v5097_v37  ;;  %v15264_v40 = vld [vmem:[#allocation138_spill] sm:$0xff] }
 0x4df   :  { %v5242_v7 = vmax.f32 %v5240_v54, 0.0  ;;  %v5241_v18 = vsub.f32 %v5237_v22, %v5239_v9 }
 0x4e1   :  { %v5244_v57 = vadd.f32 1e-05, %v5242_v7  ;;  %v5243_v48 = vmax.f32 %v5241_v18, 0.0 }
 0x4e3   :  { %7225 = vrsqrt.f32 %v5244_v57  ;;  %v5245_v30 = vadd.f32 1e-05, %v5243_v48 }
 0x4e5   :  { %7227 = vrsqrt.f32 %v5245_v30 }
 0x4f0   :  { %v7226_v36 = vpop.eup %7225 }
 0x4f1   :  { %v5260_v11 = vmul.f32 %v7226_v36, %v5253_v33 }
 0x4f2   :  { %v7228_v39 = vpop.eup %7227 }
 0x4f3   :  { %v13207_v53 = vrot.slane %v5260_v11, %v15233_v46  ;;  %v5261_v13 = vmul.f32 %v7228_v39, %v5257_v5  ;;  %v5263_v29 = vmul.f32 %v5260_v11, %v5096_v62 }
 0x4f5   :  { %v5354_v55 = vmul.f32 %v13207_v53, %v5020_v44  ;;  %v5348_v24 = vmul.f32 %v13207_v53, %v13156_v51  ;;  %v5350_v1 = vmul.f32 %v13207_v53, %v13169_v17  ;;  %v5352_v15 = vmul.f32 %v13207_v53, %v13188_v2  ;;  %v5262_v51 = vld [vmem:[%s14074_s8] sm:$0x3] }
 0x4f6   :  { %v5264_v31 = vmul.f32 %v5261_v13, %v5097_v37  ;;  %v13218_v34 = vrot.slane %v5261_v13, %v15233_v46  ;;  %v5292_v2 = vmul.f32 %v13207_v53, %v12705_v63  ;;  %v5294_v62 = vmul.f32 %v13207_v53, %v12698_v26 }
 0x4f7   :  { %v5324_v37 = vmul.f32 %v13207_v53, %v13010_v16  ;;  %v5328_v9 = vmul.f32 %v13207_v53, %v13043_v19  ;;  %v5330_v63 = vmul.f32 %v13207_v53, %v13055_v38  ;;  %v5332_v26 = vmul.f32 %v13207_v53, %v13066_v6 }
 0x4f8   :  { %v5267_v8 = vcombine.low %v5263_v29, %v5264_v31  ;;  %v13221_v44 = vmul.f32 %v13218_v34, %v5021_v41  ;;  %v5326_v41 = vmul.f32 %v13207_v53, %v13023_v21  ;;  %v13243_v18 = vmul.f32 %v13218_v34, %v13195_v0 }
 0x4f9   :  { %v5334_v16 = vmul.f32 %v13207_v53, %v13078_v60  ;;  %v5336_v21 = vmul.f32 %v13207_v53, %v13089_v20  ;;  %v5338_v19 = vmul.f32 %v13207_v53, %v13102_v12  ;;  %v5340_v57 = vmul.f32 %v13207_v53, %v13114_v4 }
 0x4fa   :  { %v5274_v54 = vrot.slane %v5267_v8, %v15264_v40  ;;  %v5342_v0 = vmul.f32 %v13207_v53, %v13124_v35  ;;  %v5344_v38 = vmul.f32 %v13207_v53, %v13134_v28  ;;  %v5346_v6 = vmul.f32 %v13207_v53, %v13144_v56 }
 0x4fb   :  { %v5293_v60 = vmul.f32 %v13218_v34, %v12707_v43  ;;  %v5295_v20 = vmul.f32 %v13218_v34, %v12700_v50  ;;  %v5297_v12 = vmul.f32 %v13218_v34, %v12717_v45  ;;  %v5299_v35 = vmul.f32 %v13218_v34, %v12740_v59 }
 0x4fc   :  { %v5281_v17 = vrot.slane %v5274_v54, %v15264_v40 }
 0x4fe   :  { %v5283_v22 = vsub.f32 %v5262_v51, %v5281_v17  ;;  %v5296_v51 = vmul.f32 %v13207_v53, %v12715_v32  ;;  %v5305_v32 = vmul.f32 %v13218_v34, %v12804_v58 }
 0x500   :  { %v13239_v7 = vrot.slane %v5283_v22, %v15233_v46  ;;  %v13270_v4 = vrot.slane %v5283_v22, %v15234_v49  ;;  %v5301_v22 = vmul.f32 %v13218_v34, %v12761_v23 }
 0x502   :  { %v5367_v28 = vadd.f32 %v13239_v7, %v5292_v2  ;;  %v5369_v48 = vadd.f32 %v13239_v7, %v5294_v62  ;;  %v13277_v56 = vadd.f32 %v13239_v7, %v5324_v37  ;;  %v13280_v43 = vadd.f32 %v13239_v7, %v5326_v41 }
 0x503   :  { %v13283_v50 = vadd.f32 %v13239_v7, %v5328_v9  ;;  %v13286_v45 = vadd.f32 %v13239_v7, %v5330_v63  ;;  %v13289_v49 = vadd.f32 %v13239_v7, %v5332_v26  ;;  %v13292_v59 = vadd.f32 %v13239_v7, %v5334_v16  ;;  %v15265_v9 = vld [vmem:[#allocation147_spill] sm:$0xff]  ;;  %v15266_v63 = vld [vmem:[#allocation106_spill] sm:$0xff] }
 0x504   :  { %v13295_v30 = vadd.f32 %v13239_v7, %v5336_v21  ;;  %v13298_v47 = vadd.f32 %v13239_v7, %v5338_v19  ;;  %v13301_v33 = vadd.f32 %v13239_v7, %v5340_v57  ;;  %v13304_v36 = vadd.f32 %v13239_v7, %v5342_v0  ;;  %v15267_v26 = vld [vmem:[#allocation139_spill] sm:$0xff]  ;;  %v15269_v21 = vld [vmem:[#allocation140_spill] sm:$0xff]  ;;  %v15270_v0 = vld [vmem:[#allocation149_spill] sm:$0xff] }
 0x505   :  { %v13307_v11 = vadd.f32 %v13239_v7, %v5344_v38  ;;  %v13310_v5 = vadd.f32 %v13239_v7, %v5346_v6  ;;  %v13313_v39 = vadd.f32 %v13239_v7, %v5348_v24  ;;  %v13316_v13 = vadd.f32 %v13239_v7, %v5350_v1  ;;  %v15271_v6 = vld [vmem:[#allocation141_spill] sm:$0xff] }
 0x506   :  { %v13319_v29 = vadd.f32 %v13239_v7, %v5352_v15  ;;  %v13322_v31 = vadd.f32 %v13239_v7, %v5354_v55  ;;  %v5368_v8 = vadd.f32 %v13270_v4, %v5293_v60  ;;  %v5370_v40 = vadd.f32 %v13270_v4, %v5295_v20  ;;  %v15272_v20 = vld [vmem:[#allocation151_spill] sm:$0xff] }
 0x507   :  { %v5372_v54 = vadd.f32 %v13270_v4, %v5297_v12  ;;  %v5298_v24 = vmul.f32 %v13207_v53, %v12732_v14  ;;  %v5431_v1 = vpack.c.bf16 %v5369_v48, %v5367_v28  ;;  %v5374_v17 = vadd.f32 %v13270_v4, %v5299_v35  ;;  %v15273_v35 = vld [vmem:[#allocation108_spill] sm:$0xff] }
 0x508   :  { %v5300_v15 = vmul.f32 %v13207_v53, %v12752_v10  ;;  %v5302_v55 = vmul.f32 %v13207_v53, %v12767_v25  ;;  %v5432_v2 = vpack.c.bf16 %v5370_v40, %v5368_v8  ;;  %v5303_v62 = vmul.f32 %v13218_v34, %v12783_v61 }
 0x509   :  { %v5307_v14 = vmul.f32 %v13218_v34, %v12824_v3  ;;  %v5329_v37 = vmul.f32 %v13218_v34, %v13046_v42  ;;  %v5331_v10 = vmul.f32 %v13218_v34, %v13062_v52  ;;  %v5371_v25 = vadd.f32 %v13239_v7, %v5296_v51  ;;  %v15268_v52 = vld [vmem:[#allocation107_spill] sm:$0xff] }
 0x50a   :  { %v5373_v23 = vadd.f32 %v13239_v7, %v5298_v24  ;;  %5630 = vmatprep.mubr.bf16.mxu0 %v5432_v2  ;;  %v5434_v41 = vpack.c.bf16 %v5374_v17, %v5372_v54  ;;  %v5333_v61 = vmul.f32 %v13218_v34, %v13074_v27  ;;  %v5335_v58 = vmul.f32 %v13218_v34, %v15265_v9 }
 0x50b   :  { %v5337_v3 = vmul.f32 %v13218_v34, %v15266_v63  ;;  %v5339_v42 = vmul.f32 %v13218_v34, %v15267_v26  ;;  %5631 = vmatmul.mubr.bf16.vlgmr.msra.gmra.mxu0 %v5431_v1  ;;  %v5341_v16 = vmul.f32 %v13218_v34, %v15268_v52  ;;  %v5343_v19 = vmul.f32 %v13218_v34, %v15269_v21 }
 0x50c   :  { %5638 = vmatprep.mubr.bf16.mxu0 %v5434_v41  ;;  %v5376_v57 = vadd.f32 %v13270_v4, %v5301_v22  ;;  %v5378_v27 = vadd.f32 %v13270_v4, %v5303_v62  ;;  %v5345_v38 = vmul.f32 %v13218_v34, %v15270_v0  ;;  %v5347_v60 = vmul.f32 %v13218_v34, %v15271_v6 }
 0x50d   :  { %v5349_v12 = vmul.f32 %v13218_v34, %v15272_v20  ;;  %v5351_v28 = vmul.f32 %v13218_v34, %v15273_v35  ;;  %v5375_v48 = vadd.f32 %v13239_v7, %v5300_v15  ;;  %v5433_v8 = vpack.c.bf16 %v5373_v23, %v5371_v25  ;;  %v15275_v35 = vld [vmem:[#allocation41_spill] sm:$0xff] }
 0x50e   :  { %v5447_v40 = vpack.c.bf16 %v13280_v43, %v13277_v56  ;;  %v13376_v54 = vadd.f32 %v13270_v4, %v5329_v37  ;;  %v13379_v51 = vadd.f32 %v13270_v4, %v5331_v10  ;;  %v5449_v24 = vpack.c.bf16 %v13286_v45, %v13283_v50  ;;  %v7210_v56 = vld [vmem:[%s14075_s13 + $0x30] sm:$0xff]   ;;  %v7211_v43 = vld [vmem:[%s14075_s13 + $0x28] sm:$0xff]   ;;  %v7212_v50 = vld [vmem:[%s14075_s13 + $0x20] sm:$0xff]  }
 0x50f   :  { %v13384_v1 = vadd.f32 %v13270_v4, %v5333_v61  ;;  %v13387_v17 = vadd.f32 %v13270_v4, %v5335_v58  ;;  %v5436_v15 = vpack.c.bf16 %v5378_v27, %v5376_v57  ;;  %v5451_v22 = vpack.c.bf16 %v13292_v59, %v13289_v49  ;;  %v7213_v45 = vld [vmem:[%s14075_s13 + $0x18] sm:$0xff]  }
 0x510   :  { %v13392_v2 = vadd.f32 %v13270_v4, %v5337_v3  ;;  %v13395_v62 = vadd.f32 %v13270_v4, %v5339_v42  ;;  %v5450_v37 = vpack.c.bf16 %v13379_v51, %v13376_v54  ;;  %v5453_v25 = vpack.c.bf16 %v13298_v47, %v13295_v30 }
 0x511   :  { %v5452_v10 = vpack.c.bf16 %v13387_v17, %v13384_v1  ;;  %v13404_v23 = vadd.f32 %v13270_v4, %v5341_v16  ;;  %v13409_v61 = vadd.f32 %v13270_v4, %v5343_v19  ;;  %v5455_v9 = vpack.c.bf16 %v13304_v36, %v13301_v33  ;;  %v15280_v16 = vld [vmem:[#allocation100_spill] sm:$0xff] }
 0x512   :  { %v5454_v41 = vpack.c.bf16 %v13395_v62, %v13392_v2  ;;  %v13414_v58 = vadd.f32 %v13270_v4, %v5345_v38  ;;  %v13417_v63 = vadd.f32 %v13270_v4, %v5347_v60  ;;  %v5457_v3 = vpack.c.bf16 %v13310_v5, %v13307_v11  ;;  %v15277_v38 = vld [vmem:[#allocation99_spill] sm:$0xff] }
 0x513   :  { %5639 = vmatmul.mubr.bf16.gmra.mxu0 %v5433_v8  ;;  %v13422_v26 = vadd.f32 %v13270_v4, %v5349_v12  ;;  %v13425_v42 = vadd.f32 %v13270_v4, %v5351_v28  ;;  %v5456_v52 = vpack.c.bf16 %v13409_v61, %v13404_v23  ;;  %v13433_v21 = vadd.f32 %v13270_v4, %v13243_v18  ;;  %v15274_v12 = vld [vmem:[#allocation35_spill] sm:$0xff]  ;;  %v15276_v8 = vld [vmem:[#allocation122_spill] sm:$0xff] }
 0x514   :  { %5646 = vmatprep.mubr.bf16.mxu0 %v5436_v15  ;;  %v13437_v19 = vadd.f32 %v13270_v4, %v13221_v44  ;;  %v5377_v57 = vadd.f32 %v13239_v7, %v5302_v55  ;;  %v5458_v27 = vpack.c.bf16 %v13417_v63, %v13414_v58  ;;  %v5380_v6 = vadd.f32 %v13270_v4, %v5305_v32 }
 0x515   :  { %v5460_v0 = vpack.c.bf16 %v13425_v42, %v13422_v26  ;;  %v5382_v18 = vadd.f32 %v13270_v4, %v5307_v14  ;;  %v5304_v55 = vmul.f32 %v13207_v53, %v15274_v12  ;;  %v5306_v28 = vmul.f32 %v13207_v53, %v15275_v35  ;;  %v15278_v12 = vld [vmem:[#allocation117_spill] sm:$0xff]  ;;  %v15279_v35 = vld [vmem:[#allocation98_spill] sm:$0xff]  ;;  %v7214_v42 = vld [vmem:[%s14075_s13 + $0x10] sm:$0xff]  }
 0x516   :  { %v5435_v44 = vpack.c.bf16 %v5377_v57, %v5375_v48  ;;  %v5309_v15 = vmul.f32 %v13218_v34, %v15276_v8  ;;  %v5311_v32 = vmul.f32 %v13218_v34, %v15277_v38  ;;  %v5310_v8 = vmul.f32 %v13207_v53, %v15279_v35  ;;  %v15284_v35 = vld [vmem:[#allocation133_spill] sm:$0xff] }
 0x517   :  { %v5438_v20 = vpack.c.bf16 %v5382_v18, %v5380_v6  ;;  %v5379_v14 = vadd.f32 %v13239_v7, %v5304_v55  ;;  %v5381_v60 = vadd.f32 %v13239_v7, %v5306_v28  ;;  %v5313_v38 = vmul.f32 %v13218_v34, %v15280_v16 }
 0x518   :  { %v5384_v48 = vadd.f32 %v13270_v4, %v5309_v15  ;;  %v5386_v57 = vadd.f32 %v13270_v4, %v5311_v32  ;;  %v5385_v15 = vadd.f32 %v13239_v7, %v5310_v8 }
 0x519   :  { %v5437_v6 = vpack.c.bf16 %v5381_v60, %v5379_v14  ;;  %v5388_v60 = vadd.f32 %v13270_v4, %v5313_v38 }
 0x51a   :  { %v5440_v18 = vpack.c.bf16 %v5386_v57, %v5384_v48  ;;  %v15282_v57 = vld [vmem:[#allocation127_spill] sm:$0xff] }
 0x51b   :  { %5647 = vmatmul.mubr.bf16.gmra.mxu0 %v5435_v44  ;;  %v5308_v44 = vmul.f32 %v13207_v53, %v15278_v12  ;;  %v15283_v12 = vld [vmem:[#allocation101_spill] sm:$0xff] }
 0x51c   :  { %5654 = vmatprep.mubr.bf16.mxu0 %v5438_v20  ;;  %v15281_v20 = vld [vmem:[#allocation130_spill] sm:$0xff]  ;;  %v5314_v16 = vmul.f32 %v13207_v53, %v15283_v12 }
 0x51d   :  { %v5315_v55 = vmul.f32 %v13218_v34, %v15281_v20  ;;  %v5383_v28 = vadd.f32 %v13239_v7, %v5308_v44  ;;  %v15285_v20 = vld [vmem:[#allocation134_spill] sm:$0xff] }
 0x51e   :  { %v5319_v44 = vmul.f32 %v13218_v34, %v15285_v20  ;;  %v5389_v38 = vadd.f32 %v13239_v7, %v5314_v16  ;;  %v15289_v20 = vld [vmem:[#allocation136_spill] sm:$0xff] }
 0x51f   :  { %v5390_v32 = vadd.f32 %v13270_v4, %v5315_v55  ;;  %v5439_v14 = vpack.c.bf16 %v5385_v15, %v5383_v28 }
 0x520   :  { %v5394_v28 = vadd.f32 %v13270_v4, %v5319_v44 }
 0x521   :  { %v5442_v48 = vpack.c.bf16 %v5390_v32, %v5388_v60  ;;  %v15286_v32 = vld [vmem:[#allocation142_spill] sm:$0xff] }
 0x523   :  { %5655 = vmatmul.mubr.bf16.gmra.mxu0 %v5437_v6  ;;  %v5312_v6 = vmul.f32 %v13207_v53, %v15282_v57  ;;  %v15287_v57 = vld [vmem:[#allocation102_spill] sm:$0xff] }
 0x524   :  { %5662 = vmatprep.mubr.bf16.mxu0 %v5440_v18  ;;  %v5317_v18 = vmul.f32 %v13218_v34, %v15284_v35  ;;  %v5318_v12 = vmul.f32 %v13207_v53, %v15287_v57  ;;  %v15288_v35 = vld [vmem:[#allocation144_spill] sm:$0xff] }
 0x525   :  { %v5387_v8 = vadd.f32 %v13239_v7, %v5312_v6  ;;  %v5323_v6 = vmul.f32 %v13218_v34, %v15289_v20  ;;  %v15293_v20 = vld [vmem:[#allocation105_spill] sm:$0xff] }
 0x526   :  { %v5392_v55 = vadd.f32 %v13270_v4, %v5317_v18  ;;  %v5393_v18 = vadd.f32 %v13239_v7, %v5318_v12 }
 0x527   :  { %v5441_v15 = vpack.c.bf16 %v5389_v38, %v5387_v8  ;;  %v5398_v8 = vadd.f32 %v13270_v4, %v5323_v6 }
 0x528   :  { %v5444_v60 = vpack.c.bf16 %v5394_v28, %v5392_v55  ;;  %v15290_v28 = vld [vmem:[#allocation103_spill] sm:$0xff] }
 0x52b   :  { %5663 = vmatmul.mubr.bf16.gmra.mxu0 %v5439_v14  ;;  %v5316_v14 = vmul.f32 %v13207_v53, %v15286_v32  ;;  %v15291_v32 = vld [vmem:[#allocation104_spill] sm:$0xff] }
 0x52c   :  { %5670 = vmatprep.mubr.bf16.mxu0 %v5442_v48  ;;  %v5321_v48 = vmul.f32 %v13218_v34, %v15288_v35  ;;  %v5322_v57 = vmul.f32 %v13207_v53, %v15291_v32  ;;  %v15292_v35 = vld [vmem:[#allocation137_spill] sm:$0xff] }
 0x52d   :  { %v5391_v16 = vadd.f32 %v13239_v7, %v5316_v14  ;;  %v5327_v14 = vmul.f32 %v13218_v34, %v15293_v20 }
 0x52e   :  { %v5396_v44 = vadd.f32 %v13270_v4, %v5321_v48  ;;  %v5397_v48 = vadd.f32 %v13239_v7, %v5322_v57 }
 0x52f   :  { %v5443_v38 = vpack.c.bf16 %v5393_v18, %v5391_v16  ;;  %v5402_v16 = vadd.f32 %v13270_v4, %v5327_v14 }
 0x530   :  { %v5446_v55 = vpack.c.bf16 %v5398_v8, %v5396_v44 }
 0x533   :  { %5671 = vmatmul.mubr.bf16.gmra.mxu0 %v5441_v15  ;;  %v5320_v15 = vmul.f32 %v13207_v53, %v15290_v28  ;;  %v15294_v53 = vpack.c.bf16 %v13316_v13, %v13313_v39  ;;  %v7216_v28 = vld [vmem:[%s14075_s13] sm:$0xff]  }
 0x534   :  { %5678 = vmatprep.mubr.bf16.mxu0 %v5444_v60  ;;  %v5325_v60 = vmul.f32 %v13218_v34, %v15292_v35  ;;  %v15295_v34 = vpack.c.bf16 %v13437_v19, %v13433_v21  ;;  %v13593_v21 = vld [vmem:[%s14076_s10] ss:$0 sm:$0xff] }
 0x535   :  { %v5395_v12 = vadd.f32 %v13239_v7, %v5320_v15  ;;  %v15296_v7 = vpack.c.bf16 %v13322_v31, %v13319_v29 }
 0x536   :  { %v5400_v6 = vadd.f32 %v13270_v4, %v5325_v60  ;;  %v7209_v4 = vld [vmem:[%s14075_s13 + $0x38] sm:$0xff]  }
 0x537   :  { %v5445_v18 = vpack.c.bf16 %v5397_v48, %v5395_v12  ;;  %6721 = vmatprep.subr.bf16.mxu1 %v7209_v4 }
 0x538   :  { %v5448_v44 = vpack.c.bf16 %v5402_v16, %v5400_v6  ;;  %6722 = vmatpush3.bf16.msra.mxu1 %v7209_v4 }
 0x539   :  { %6723 = vmatprep.subr.bf16.mxu1 %v7210_v56 }
 0x53b   :  { %5679 = vmatmul.mubr.bf16.gmra.mxu0 %v5443_v38 }
 0x53c   :  { %5686 = vmatprep.mubr.bf16.mxu0 %v5446_v55  ;;  %6724 = vmatpush3.bf16.msra.mxu1 %v7210_v56 }
 0x53d   :  { %6725 = vmatprep.subr.bf16.mxu1 %v7211_v43 }
 0x540   :  { %6726 = vmatpush3.bf16.msra.mxu1 %v7211_v43 }
 0x541   :  { %6727 = vmatprep.subr.bf16.mxu1 %v7212_v50 }
 0x543   :  { %5687 = vmatmul.mubr.bf16.gmra.mxu0 %v5445_v18 }
 0x544   :  { %5694 = vmatprep.mubr.bf16.mxu0 %v5448_v44  ;;  %6728 = vmatpush3.bf16.msra.mxu1 %v7212_v50 }
 0x545   :  { %6729 = vmatprep.subr.bf16.mxu1 %v7213_v45 }
 0x548   :  { %6730 = vmatpush3.bf16.msra.mxu1 %v7213_v45 }
 0x549   :  { %6731 = vmatprep.subr.bf16.mxu1 %v7214_v42 }
 0x54b   :  { %5695 = vmatmul.mubr.bf16.gmra.mxu0 %v5447_v40 }
 0x54c   :  { %5702 = vmatprep.mubr.bf16.mxu0 %v5450_v37  ;;  %6732 = vmatpush3.bf16.msra.mxu1 %v7214_v42 }
 0x553   :  { %5703 = vmatmul.mubr.bf16.gmra.mxu0 %v5449_v24 }
 0x554   :  { %5710 = vmatprep.mubr.bf16.mxu0 %v5452_v10 }
 0x55b   :  { %5711 = vmatmul.mubr.bf16.gmra.mxu0 %v5451_v22 }
 0x55c   :  { %5718 = vmatprep.mubr.bf16.mxu0 %v5454_v41 }
 0x563   :  { %5719 = vmatmul.mubr.bf16.gmra.mxu0 %v5453_v25 }
 0x564   :  { %5726 = vmatprep.mubr.bf16.mxu0 %v5456_v52  ;;  %v7215_v52 = vld [vmem:[%s14075_s13 + $0x8] sm:$0xff]  }
 0x565   :  { %6733 = vmatprep.subr.bf16.mxu1 %v7215_v52 }
 0x566   :  { %6734 = vmatpush3.bf16.msra.mxu1 %v7215_v52 }
 0x567   :  { %6735 = vmatprep.subr.bf16.mxu1 %v7216_v28 }
 0x56a   :  { %6736 = vmatpush3.bf16.msra.mxu1 %v7216_v28 }
 0x56b   :  { %5727 = vmatmul.mubr.bf16.gmra.mxu0 %v5455_v9 }
 0x56c   :  { %5734 = vmatprep.mubr.bf16.mxu0 %v5458_v27 }
 0x573   :  { %5735 = vmatmul.mubr.bf16.gmra.mxu0 %v5457_v3 }
 0x574   :  { %5742 = vmatprep.mubr.bf16.mxu0 %v5460_v0 }
 0x57b   :  { %5743 = vmatmul.mubr.bf16.gmra.mxu0 %v15294_v53 }
 0x57c   :  { %5750 = vmatprep.mubr.bf16.mxu0 %v15295_v34 }
 0x583   :  { %5751 = vmatmul.mubr.bf16.gmra.mxu0 %v15296_v7 }
 0x5cb   :  { %v6601_v49 = vpop.f32.mrf.mxu0 }
 0x5cd   :  { %v6602_v59 = vpop.f32.mrf.mxu0 }
 0x5ce   :  { %v6603_v30 = vadd.f32 %v6602_v59, %v6601_v49 }
 0x5cf   :  { %v6604_v47 = vpop.f32.mrf.mxu0 }
 0x5d0   :  { %v5633_v38 = vadd.f32 %v6603_v30, %v13593_v21 }
 0x5d1   :  { %v6605_v33 = vpop.f32.mrf.mxu0 }
 0x5d2   :  { %v6606_v63 = vadd.f32 %v6605_v33, %v6604_v47  ;;  %v13612_v14 = vmax.f32 %v5633_v38, 0.0 }
 0x5d3   :  { %v6607_v36 = vpop.f32.mrf.mxu0 }
 0x5d4   :  { %v5636_v27 = vadd.f32 %v6606_v63, %v13593_v21  ;;  %v5829_v4 = vmul.f32 %v13612_v14, %v13612_v14 }
 0x5d5   :  { %v6608_v11 = vpop.f32.mrf.mxu0 }
 0x5d6   :  { %v6609_v26 = vadd.f32 %v6608_v11, %v6607_v36  ;;  %v13607_v57 = vmax.f32 %v5636_v27, 0.0 }
 0x5d7   :  { %v6610_v5 = vpop.f32.mrf.mxu0 }
 0x5d8   :  { %v5641_v55 = vadd.f32 %v6609_v26, %v13593_v21  ;;  %v5830_v18 = vmul.f32 %v13607_v57, %v13607_v57  ;;  %v5791_v59 = vadd.f32 %v13607_v57, %v13612_v14 }
 0x5d9   :  { %v6611_v39 = vpop.f32.mrf.mxu0 }
 0x5da   :  { %v6612_v0 = vadd.f32 %v6611_v39, %v6610_v5  ;;  %v13614_v12 = vmax.f32 %v5641_v55, 0.0  ;;  %v5861_v30 = vadd.f32 %v5830_v18, %v5829_v4 }
 0x5db   :  { %v6613_v13 = vpop.f32.mrf.mxu0 }
 0x5dc   :  { %v5644_v35 = vadd.f32 %v6612_v0, %v13593_v21  ;;  %v5831_v56 = vmul.f32 %v13614_v12, %v13614_v12  ;;  %v5792_v39 = vadd.f32 %v5791_v59, %v13614_v12 }
 0x5dd   :  { %v6614_v29 = vpop.f32.mrf.mxu0 }
 0x5de   :  { %v6615_v15 = vadd.f32 %v6614_v29, %v6613_v13  ;;  %v13621_v44 = vmax.f32 %v5644_v35, 0.0  ;;  %v5862_v13 = vadd.f32 %v5861_v30, %v5831_v56 }
 0x5df   :  { %v6616_v31 = vpop.f32.mrf.mxu0 }
 0x5e0   :  { %v5649_v48 = vadd.f32 %v6615_v15, %v13593_v21  ;;  %v5832_v47 = vmul.f32 %v13621_v44, %v13621_v44 }
 0x5e1   :  { %v6617_v40 = vpop.f32.mrf.mxu0 }
 0x5e2   :  { %v6618_v60 = vadd.f32 %v6617_v40, %v6616_v31  ;;  %v13630_v43 = vmax.f32 %v5649_v48, 0.0 }
 0x5e3   :  { %v6619_v54 = vpop.f32.mrf.mxu0 }
 0x5e4   :  { %v5652_v53 = vadd.f32 %v6618_v60, %v13593_v21  ;;  %v5833_v29 = vmul.f32 %v13630_v43, %v13630_v43 }
 0x5e5   :  { %v6620_v51 = vpop.f32.mrf.mxu0 }
 0x5e6   :  { %v6621_v6 = vadd.f32 %v6620_v51, %v6619_v54  ;;  %v13639_v33 = vmax.f32 %v5652_v53, 0.0 }
 0x5e7   :  { %v6622_v24 = vpop.f32.mrf.mxu0 }
 0x5e8   :  { %v5657_v50 = vadd.f32 %v6621_v6, %v13593_v21 }
 0x5e9   :  { %v6623_v1 = vpop.f32.mrf.mxu0 }
 0x5ea   :  { %v6624_v34 = vadd.f32 %v6623_v1, %v6622_v24  ;;  %v13647_v31 = vmax.f32 %v5657_v50, 0.0  ;;  %v5793_v24 = vadd.f32 %v5792_v39, %v13621_v44  ;;  %v5863_v1 = vadd.f32 %v5862_v13, %v5832_v47 }
 0x5eb   :  { %v6625_v17 = vpop.f32.mrf.mxu0 }
 0x5ec   :  { %v5660_v36 = vadd.f32 %v6624_v34, %v13593_v21  ;;  %v5794_v63 = vadd.f32 %v5793_v24, %v13630_v43  ;;  %v5864_v42 = vadd.f32 %v5863_v1, %v5833_v29 }
 0x5ed   :  { %v6626_v22 = vpop.f32.mrf.mxu0 }
 0x5ee   :  { %v6627_v45 = vadd.f32 %v6626_v22, %v6625_v17  ;;  %v5834_v17 = vmul.f32 %v13639_v33, %v13639_v33  ;;  %v13653_v22 = vmax.f32 %v5660_v36, 0.0  ;;  %v5795_v38 = vadd.f32 %v5794_v63, %v13639_v33 }
 0x5ef   :  { %v6628_v2 = vpop.f32.mrf.mxu0 }
 0x5f0   :  { %v5665_v40 = vadd.f32 %v6627_v45, %v13593_v21  ;;  %v5865_v55 = vadd.f32 %v5864_v42, %v5834_v17  ;;  %v5836_v28 = vmul.f32 %v13653_v22, %v13653_v22  ;;  %v5796_v60 = vadd.f32 %v5795_v38, %v13647_v31 }
 0x5f1   :  { %v6629_v62 = vpop.f32.mrf.mxu0 }
 0x5f2   :  { %v6630_v11 = vadd.f32 %v6629_v62, %v6628_v2  ;;  %v5797_v34 = vadd.f32 %v5796_v60, %v13653_v22 }
 0x5f3   :  { %v6631_v37 = vpop.f32.mrf.mxu0 }
 0x5f4   :  { %v5668_v2 = vadd.f32 %v6630_v11, %v13593_v21 }
 0x5f5   :  { %v6632_v10 = vpop.f32.mrf.mxu0 }
 0x5f6   :  { %v6633_v54 = vadd.f32 %v6632_v10, %v6631_v37  ;;  %v5835_v37 = vmul.f32 %v13647_v31, %v13647_v31  ;;  %v13661_v10 = vmax.f32 %v5665_v40, 0.0  ;;  %v13669_v15 = vmax.f32 %v5668_v2, 0.0 }
 0x5f7   :  { %v13570_v25 = vpop.f32.mrf.mxu0 }
 0x5f8   :  { %v5673_v52 = vadd.f32 %v6633_v54, %v13593_v21  ;;  %v5866_v48 = vadd.f32 %v5865_v55, %v5835_v37  ;;  %v5798_v59 = vadd.f32 %v5797_v34, %v13661_v10 }
 0x5f9   :  { %v13572_v23 = vpop.f32.mrf.mxu0 }
 0x5fa   :  { %v6636_v26 = vadd.f32 %v13572_v23, %v13570_v25  ;;  %v5867_v4 = vadd.f32 %v5866_v48, %v5836_v28  ;;  %v5799_v39 = vadd.f32 %v5798_v59, %v13669_v15 }
 0x5fb   :  { %v13574_v41 = vpop.f32.mrf.mxu0 }
 0x5fc   :  { %v5676_v23 = vadd.f32 %v6636_v26, %v13593_v21 }
 0x5fd   :  { %v13576_v61 = vpop.f32.mrf.mxu0 }
 0x5fe   :  { %v6639_v0 = vadd.f32 %v13576_v61, %v13574_v41  ;;  %v5837_v41 = vmul.f32 %v13661_v10, %v13661_v10  ;;  %v13677_v61 = vmax.f32 %v5673_v52, 0.0  ;;  %v13685_v56 = vmax.f32 %v5676_v23, 0.0 }
 0x5ff   :  { %v13578_v9 = vpop.f32.mrf.mxu0 }
 0x600   :  { %v5681_v18 = vadd.f32 %v6639_v0, %v13593_v21  ;;  %v5868_v30 = vadd.f32 %v5867_v4, %v5837_v41  ;;  %v5800_v24 = vadd.f32 %v5799_v39, %v13677_v61 }
 0x601   :  { %v13580_v58 = vpop.f32.mrf.mxu0 }
 0x602   :  { %v6642_v35 = vadd.f32 %v13580_v58, %v13578_v9  ;;  %v5838_v9 = vmul.f32 %v13669_v15, %v13669_v15  ;;  %v13693_v47 = vmax.f32 %v5681_v18, 0.0  ;;  %v5801_v26 = vadd.f32 %v5800_v24, %v13685_v56 }
 0x603   :  { %v13582_v3 = vpop.f32.mrf.mxu0 }
 0x604   :  { %v5684_v50 = vadd.f32 %v6642_v35, %v13593_v21  ;;  %v5869_v13 = vadd.f32 %v5868_v30, %v5838_v9  ;;  %v5802_v0 = vadd.f32 %v5801_v26, %v13693_v47 }
 0x605   :  { %v13595_v19 = vpop.f32.mrf.mxu0 }
 0x606   :  { %v6645_v53 = vadd.f32 %v13595_v19, %v13582_v3  ;;  %v5839_v3 = vmul.f32 %v13677_v61, %v13677_v61 }
 0x607   :  { %v13598_v8 = vpop.f32.mrf.mxu0 }
 0x608   :  { %v5689_v36 = vadd.f32 %v6645_v53, %v13593_v21  ;;  %v5870_v1 = vadd.f32 %v5869_v13, %v5839_v3 }
 0x609   :  { %v13605_v32 = vpop.f32.mrf.mxu0 }
 0x60a   :  { %v6648_v45 = vadd.f32 %v13605_v32, %v13598_v8  ;;  %v5840_v8 = vmul.f32 %v13685_v56, %v13685_v56  ;;  %v13701_v32 = vmax.f32 %v5684_v50, 0.0 }
 0x60b   :  { %v13610_v20 = vpop.f32.mrf.mxu0 }
 0x60c   :  { %v5692_v40 = vadd.f32 %v6648_v45, %v13593_v21  ;;  %v5871_v37 = vadd.f32 %v5870_v1, %v5840_v8  ;;  %v5803_v48 = vadd.f32 %v5802_v0, %v13701_v32 }
 0x60d   :  { %v13617_v16 = vpop.f32.mrf.mxu0 }
 0x60e   :  { %v6651_v11 = vadd.f32 %v13617_v16, %v13610_v20  ;;  %v5841_v20 = vmul.f32 %v13693_v47, %v13693_v47  ;;  %v13709_v16 = vmax.f32 %v5689_v36, 0.0 }
 0x60f   :  { %v13624_v7 = vpop.f32.mrf.mxu0 }
 0x610   :  { %v5697_v2 = vadd.f32 %v6651_v11, %v13593_v21  ;;  %v5872_v28 = vadd.f32 %v5871_v37, %v5841_v20  ;;  %v5843_v23 = vmul.f32 %v13709_v16, %v13709_v16  ;;  %v5804_v4 = vadd.f32 %v5803_v48, %v13709_v16 }
 0x611   :  { %v13633_v49 = vpop.f32.mrf.mxu0 }
 0x612   :  { %v6654_v54 = vadd.f32 %v13633_v49, %v13624_v7  ;;  %v5842_v7 = vmul.f32 %v13701_v32, %v13701_v32  ;;  %v13716_v49 = vmax.f32 %v5692_v40, 0.0 }
 0x613   :  { %v13642_v5 = vpop.f32.mrf.mxu0 }
 0x614   :  { %v5700_v52 = vadd.f32 %v6654_v54, %v13593_v21  ;;  %v5873_v41 = vadd.f32 %v5872_v28, %v5842_v7  ;;  %v5844_v18 = vmul.f32 %v13716_v49, %v13716_v49  ;;  %v5805_v30 = vadd.f32 %v5804_v4, %v13716_v49 }
 0x615   :  { %v6656_v51 = vpop.f32.mrf.mxu0 }
 0x616   :  { %v6657_v63 = vadd.f32 %v6656_v51, %v13642_v5  ;;  %v13722_v5 = vmax.f32 %v5697_v2, 0.0  ;;  %v13728_v53 = vmax.f32 %v5700_v52, 0.0  ;;  %v5874_v9 = vadd.f32 %v5873_v41, %v5843_v23 }
 0x617   :  { %v6658_v62 = vpop.f32.mrf.mxu0 }
 0x618   :  { %v5705_v51 = vadd.f32 %v6657_v63, %v13593_v21  ;;  %v5845_v50 = vmul.f32 %v13722_v5, %v13722_v5  ;;  %v5875_v3 = vadd.f32 %v5874_v9, %v5844_v18  ;;  %v5846_v36 = vmul.f32 %v13728_v53, %v13728_v53 }
 0x619   :  { %v6659_v27 = vpop.f32.mrf.mxu0  ;;  %v5806_v13 = vadd.f32 %v5805_v30, %v13722_v5 }
 0x61a   :  { %v6660_v38 = vadd.f32 %v6659_v27, %v6658_v62  ;;  %v5876_v8 = vadd.f32 %v5875_v3, %v5845_v50 }
 0x61b   :  { %v6661_v25 = vpop.f32.mrf.mxu0 }
 0x61c   :  { %v5708_v62 = vadd.f32 %v6660_v38, %v13593_v21  ;;  %v5877_v20 = vadd.f32 %v5876_v8, %v5846_v36 }
 0x61d   :  { %v6662_v6 = vpop.f32.mrf.mxu0 }
 0x61e   :  { %v6663_v35 = vadd.f32 %v6662_v6, %v6661_v25  ;;  %v13734_v25 = vmax.f32 %v5705_v51, 0.0 }
 0x61f   :  { %v6664_v58 = vpop.f32.mrf.mxu0 }
 0x620   :  { %v5713_v6 = vadd.f32 %v6663_v35, %v13593_v21  ;;  %v5847_v40 = vmul.f32 %v13734_v25, %v13734_v25 }
 0x621   :  { %v6665_v19 = vpop.f32.mrf.mxu0 }
 0x622   :  { %v6666_v27 = vadd.f32 %v6665_v19, %v6664_v58  ;;  %v13740_v58 = vmax.f32 %v5708_v62, 0.0  ;;  %v5878_v52 = vadd.f32 %v5877_v20, %v5847_v40 }
 0x623   :  { %v6667_v29 = vpop.f32.mrf.mxu0 }
 0x624   :  { %v5716_v19 = vadd.f32 %v6666_v27, %v13593_v21  ;;  %v5848_v2 = vmul.f32 %v13740_v58, %v13740_v58 }
 0x625   :  { %v6668_v17 = vpop.f32.mrf.mxu0 }
 0x626   :  { %v6669_v45 = vadd.f32 %v6668_v17, %v6667_v29  ;;  %v13746_v29 = vmax.f32 %v5713_v6, 0.0  ;;  %v5807_v17 = vadd.f32 %v5806_v13, %v13728_v53  ;;  %v13752_v63 = vmax.f32 %v5716_v19, 0.0 }
 0x627   :  { %v6670_v42 = vpop.f32.mrf.mxu0  ;;  %v5879_v35 = vadd.f32 %v5878_v52, %v5848_v2 }
 0x628   :  { %v5721_v54 = vadd.f32 %v6669_v45, %v13593_v21  ;;  %v5808_v7 = vadd.f32 %v5807_v17, %v13734_v25  ;;  %v5849_v0 = vmul.f32 %v13746_v29, %v13746_v29 }
 0x629   :  { %v6671_v55 = vpop.f32.mrf.mxu0 }
 0x62a   :  { %v6672_v11 = vadd.f32 %v6671_v55, %v6670_v42  ;;  %v13758_v38 = vmax.f32 %v5721_v54, 0.0  ;;  %v5809_v51 = vadd.f32 %v5808_v7, %v13740_v58 }
 0x62b   :  { %v6673_v60 = vpop.f32.mrf.mxu0 }
 0x62c   :  { %v5724_v26 = vadd.f32 %v6672_v11, %v13593_v21  ;;  %v5810_v62 = vadd.f32 %v5809_v51, %v13746_v29  ;;  %v5851_v4 = vmul.f32 %v13758_v38, %v13758_v38 }
 0x62d   :  { %v6674_v34 = vpop.f32.mrf.mxu0 }
 0x62e   :  { %v6675_v24 = vadd.f32 %v6674_v34, %v6673_v60  ;;  %v5850_v60 = vmul.f32 %v13752_v63, %v13752_v63  ;;  %v13764_v48 = vmax.f32 %v5724_v26, 0.0  ;;  %v5880_v34 = vadd.f32 %v5879_v35, %v5849_v0 }
 0x62f   :  { %v6676_v59 = vpop.f32.mrf.mxu0  ;;  %v5811_v45 = vadd.f32 %v5810_v62, %v13752_v63 }
 0x630   :  { %v5729_v55 = vadd.f32 %v6675_v24, %v13593_v21  ;;  %v5852_v30 = vmul.f32 %v13764_v48, %v13764_v48 }
 0x631   :  { %v6677_v39 = vpop.f32.mrf.mxu0  ;;  %v5812_v11 = vadd.f32 %v5811_v45, %v13758_v38 }
 0x632   :  { %v6678_v42 = vadd.f32 %v6677_v39, %v6676_v59  ;;  %v13770_v9 = vmax.f32 %v5729_v55, 0.0  ;;  %v5881_v59 = vadd.f32 %v5880_v34, %v5850_v60 }
 0x633   :  { %v6679_v1 = vpop.f32.mrf.mxu0  ;;  %v5813_v24 = vadd.f32 %v5812_v11, %v13764_v48 }
 0x634   :  { %v5732_v41 = vadd.f32 %v6678_v42, %v13593_v21  ;;  %v5882_v13 = vadd.f32 %v5881_v59, %v5851_v4  ;;  %v5853_v8 = vmul.f32 %v13770_v9, %v13770_v9 }
 0x635   :  { %v6680_v37 = vpop.f32.mrf.mxu0  ;;  %v5814_v42 = vadd.f32 %v5813_v24, %v13770_v9 }
 0x636   :  { %v6681_v28 = vadd.f32 %v6680_v37, %v6679_v1  ;;  %v13776_v3 = vmax.f32 %v5732_v41, 0.0  ;;  %v5883_v17 = vadd.f32 %v5882_v13, %v5852_v30 }
 0x637   :  { %v6682_v23 = vpop.f32.mrf.mxu0 }
 0x638   :  { %v5737_v50 = vadd.f32 %v6681_v28, %v13593_v21  ;;  %v5854_v20 = vmul.f32 %v13776_v3, %v13776_v3  ;;  %v5884_v7 = vadd.f32 %v5883_v17, %v5853_v8  ;;  %v5815_v55 = vadd.f32 %v5814_v42, %v13776_v3 }
 0x639   :  { %v6683_v18 = vpop.f32.mrf.mxu0 }
 0x63a   :  { %v6684_v27 = vadd.f32 %v6683_v18, %v6682_v23  ;;  %v13782_v40 = vmax.f32 %v5737_v50, 0.0  ;;  %v5885_v51 = vadd.f32 %v5884_v7, %v5854_v20 }
 0x63b   :  { %v6685_v6 = vpop.f32.mrf.mxu0 }
 0x63c   :  { %v5740_v36 = vadd.f32 %v6684_v27, %v13593_v21  ;;  %v5855_v52 = vmul.f32 %v13782_v40, %v13782_v40  ;;  %v5816_v41 = vadd.f32 %v5815_v55, %v13782_v40 }
 0x63d   :  { %v6686_v19 = vpop.f32.mrf.mxu0 }
 0x63e   :  { %v6687_v39 = vadd.f32 %v6686_v19, %v6685_v6  ;;  %v13788_v2 = vmax.f32 %v5740_v36, 0.0  ;;  %v5886_v27 = vadd.f32 %v5885_v51, %v5855_v52 }
 0x63f   :  { %v6688_v54 = vpop.f32.mrf.mxu0 }
 0x640   :  { %v5745_v1 = vadd.f32 %v6687_v39, %v13593_v21  ;;  %v5856_v35 = vmul.f32 %v13788_v2, %v13788_v2  ;;  %v5817_v4 = vadd.f32 %v5816_v41, %v13788_v2 }
 0x641   :  { %v6689_v26 = vpop.f32.mrf.mxu0 }
 0x642   :  { %v6690_v37 = vadd.f32 %v6689_v26, %v6688_v54  ;;  %v13794_v28 = vmax.f32 %v5745_v1, 0.0  ;;  %v5887_v45 = vadd.f32 %v5886_v27, %v5856_v35 }
 0x643   :  { %v6691_v0 = vpop.f32.mrf.mxu0 }
 0x644   :  { %v5748_v23 = vadd.f32 %v6690_v37, %v13593_v21  ;;  %v5857_v50 = vmul.f32 %v13794_v28, %v13794_v28  ;;  %v5818_v30 = vadd.f32 %v5817_v4, %v13794_v28 }
 0x645   :  { %v6692_v60 = vpop.f32.mrf.mxu0 }
 0x646   :  { %v13800_v18 = vmax.f32 %v5748_v23, 0.0  ;;  %v6693_v62 = vadd.f32 %v6692_v60, %v6691_v0  ;;  %v5888_v39 = vadd.f32 %v5887_v45, %v5857_v50 }
 0x647   :  { %v6694_v34 = vpop.f32.mrf.mxu0 }
 0x648   :  { %v5753_v6 = vadd.f32 %v6693_v62, %v13593_v21  ;;  %v5858_v36 = vmul.f32 %v13800_v18, %v13800_v18  ;;  %v5819_v13 = vadd.f32 %v5818_v30, %v13800_v18  ;;  %v5904_v30 = vld [vmem:[%s14077_s11] sm:$0x1] }
 0x649   :  { %v6695_v59 = vpop.f32.mrf.mxu0 }
 0x64a   :  { %v13809_v19 = vmax.f32 %v5753_v6, 0.0  ;;  %v6696_v11 = vadd.f32 %v6695_v59, %v6694_v34  ;;  %v5889_v24 = vadd.f32 %v5888_v39, %v5858_v36  ;;  %v5906_v39 = vld [vmem:[%s14078_s12] sm:$0x1] }
 0x64c   :  { %v5859_v8 = vmul.f32 %v13809_v19, %v13809_v19  ;;  %v5756_v54 = vadd.f32 %v6696_v11, %v13593_v21  ;;  %v5820_v1 = vadd.f32 %v5819_v13, %v13809_v19 }
 0x64e   :  { %v5790_v17 = vmax.f32 %v5756_v54, 0.0  ;;  %v5890_v20 = vadd.f32 %v5889_v24, %v5859_v8 }
 0x650   :  { %v5821_v26 = vadd.f32 %v5820_v1, %v5790_v17  ;;  %v5860_v42 = vmul.f32 %v5790_v17, %v5790_v17 }
 0x652   :  { %v5822_v37 = vrot.slane %v5821_v26, 4  ;;  %v5891_v7 = vadd.f32 %v5890_v20, %v5860_v42 }
 0x654   :  { %v5823_v52 = vadd.f32 %v5822_v37, %v5821_v26  ;;  %v5892_v0 = vrot.slane %v5891_v7, 4 }
 0x656   :  { %v5824_v55 = vrot.slane %v5823_v52, 2  ;;  %v5893_v23 = vadd.f32 %v5892_v0, %v5891_v7 }
 0x658   :  { %v5825_v51 = vadd.f32 %v5824_v55, %v5823_v52  ;;  %v5894_v35 = vrot.slane %v5893_v23, 2 }
 0x65a   :  { %v5826_v60 = vrot.slane %v5825_v51, 1  ;;  %v5895_v41 = vadd.f32 %v5894_v35, %v5893_v23 }
 0x65c   :  { %v5827_v62 = vadd.f32 %v5826_v60, %v5825_v51  ;;  %v5896_v27 = vrot.slane %v5895_v41, 1 }
 0x65e   :  { %v5828_v21 = vmul.f32 0.00390625, %v5827_v62  ;;  %v5897_v34 = vadd.f32 %v5896_v27, %v5895_v41 }
 0x660   :  { %v5898_v4 = vmul.f32 0.00390625, %v5897_v34  ;;  %v5899_v50 = vmul.f32 %v5828_v21, %v5828_v21 }
 0x662   :  { %v5900_v6 = vsub.f32 %v5898_v4, %v5899_v50 }
 0x664   :  { %v5901_v45 = vmax.f32 %v5900_v6, 0.0 }
 0x666   :  { %v5902_v59 = vadd.f32 1e-05, %v5901_v45 }
 0x668   :  { %7229 = vrsqrt.f32 %v5902_v59 }
 0x675   :  { %v7230_v36 = vpop.eup %7229 }
 0x676   :  { %v5905_v11 = vmul.f32 %v7230_v36, %v5904_v30 }
 0x678   :  { %v5907_v13 = vmul.f32 %v5905_v11, %v5828_v21  ;;  %v13823_v54 = vrot.slane %v5905_v11, %v15233_v46 }
 0x67a   :  { %v5908_v8 = vsub.f32 %v5906_v39, %v5907_v13  ;;  %v5915_v1 = vmul.f32 %v13823_v54, %v13614_v12  ;;  %v5916_v20 = vmul.f32 %v13823_v54, %v13621_v44  ;;  %v5913_v26 = vmul.f32 %v13823_v54, %v13612_v14 }
 0x67b   :  { %v5914_v42 = vmul.f32 %v13823_v54, %v13607_v57  ;;  %v5917_v37 = vmul.f32 %v13823_v54, %v13630_v43  ;;  %v5918_v7 = vmul.f32 %v13823_v54, %v13639_v33  ;;  %v5919_v43 = vmul.f32 %v13823_v54, %v13647_v31 }
 0x67c   :  { %v13826_v24 = vrot.slane %v5908_v8, %v15233_v46  ;;  %v5920_v33 = vmul.f32 %v13823_v54, %v13653_v22  ;;  %v5921_v51 = vmul.f32 %v13823_v54, %v13661_v10  ;;  %v5922_v35 = vmul.f32 %v13823_v54, %v13669_v15 }
 0x67d   :  { %v5941_v60 = vmul.f32 %v13823_v54, %v13794_v28  ;;  %v5942_v41 = vmul.f32 %v13823_v54, %v13800_v18  ;;  %v5944_v22 = vmul.f32 %v13823_v54, %v5790_v17  ;;  %v5943_v27 = vmul.f32 %v13823_v54, %v13809_v19 }
 0x67e   :  { %v5953_v46 = vadd.f32 %v13826_v24, %v5915_v1  ;;  %v5954_v52 = vadd.f32 %v13826_v24, %v5916_v20  ;;  %v5951_v12 = vadd.f32 %v13826_v24, %v5913_v26  ;;  %v5952_v44 = vadd.f32 %v13826_v24, %v5914_v42 }
 0x67f   :  { %v5955_v0 = vadd.f32 %v13826_v24, %v5917_v37  ;;  %v5956_v14 = vadd.f32 %v13826_v24, %v5918_v7  ;;  %v5957_v62 = vadd.f32 %v13826_v24, %v5919_v43  ;;  %v5958_v31 = vadd.f32 %v13826_v24, %v5920_v33 }
 0x680   :  { %v5984_v55 = vpack.c.bf16 %v5954_v52, %v5953_v46  ;;  %v5983_v57 = vpack.c.bf16 %v5952_v44, %v5951_v12  ;;  %v5959_v10 = vadd.f32 %v13826_v24, %v5921_v51  ;;  %v5960_v15 = vadd.f32 %v13826_v24, %v5922_v35 }
 0x681   :  { %v5985_v23 = vpack.c.bf16 %v5956_v14, %v5955_v0  ;;  %v13866_v21 = vadd.f32 %v13826_v24, %v5941_v60  ;;  %v13869_v28 = vadd.f32 %v13826_v24, %v5942_v41  ;;  %v13872_v18 = vadd.f32 %v13826_v24, %v5943_v27  ;;  %v13935_v41 = vld [vmem:[%s14079_s14] ss:$0 sm:$0xff] }
 0x682   :  { %6737 = vmatprep.mubr.bf16.mxu1 %v5983_v57  ;;  %v5982_v34 = vadd.f32 %v13826_v24, %v5944_v22  ;;  %v5986_v4 = vpack.c.bf16 %v5958_v31, %v5957_v62  ;;  %v5987_v19 = vpack.c.bf16 %v5960_v15, %v5959_v10  ;;  %v5923_v6 = vmul.f32 %v13823_v54, %v13677_v61 }
 0x683   :  { %6738 = vmatmul.mubr.bf16.vlgmr.msra.gmra.mxu1 %v5984_v55  ;;  %v5997_v17 = vpack.c.bf16 %v13869_v28, %v13866_v21  ;;  %v5924_v45 = vmul.f32 %v13823_v54, %v13685_v56  ;;  %v5925_v59 = vmul.f32 %v13823_v54, %v13693_v47  ;;  %v5926_v30 = vmul.f32 %v13823_v54, %v13701_v32 }
 0x684   :  { %6741 = vmatprep.mubr.bf16.mxu1 %v5985_v23  ;;  %v5998_v50 = vpack.c.bf16 %v5982_v34, %v13872_v18  ;;  %v5961_v36 = vadd.f32 %v13826_v24, %v5923_v6  ;;  %v5927_v56 = vmul.f32 %v13823_v54, %v13709_v16  ;;  %v5928_v47 = vmul.f32 %v13823_v54, %v13716_v49 }
 0x685   :  { %v5962_v11 = vadd.f32 %v13826_v24, %v5924_v45  ;;  %v5963_v39 = vadd.f32 %v13826_v24, %v5925_v59  ;;  %v5964_v13 = vadd.f32 %v13826_v24, %v5926_v30  ;;  %v5929_v32 = vmul.f32 %v13823_v54, %v13722_v5 }
 0x686   :  { %v5930_v1 = vmul.f32 %v13823_v54, %v13728_v53  ;;  %v5965_v20 = vadd.f32 %v13826_v24, %v5927_v56  ;;  %v5966_v26 = vadd.f32 %v13826_v24, %v5928_v47  ;;  %v5931_v49 = vmul.f32 %v13823_v54, %v13734_v25 }
 0x687   :  { %v5988_v61 = vpack.c.bf16 %v5962_v11, %v5961_v36  ;;  %v5989_v8 = vpack.c.bf16 %v5964_v13, %v5963_v39  ;;  %v5967_v42 = vadd.f32 %v13826_v24, %v5929_v32  ;;  %v5932_v5 = vmul.f32 %v13823_v54, %v13740_v58 }
 0x688   :  { %v5968_v37 = vadd.f32 %v13826_v24, %v5930_v1  ;;  %v5990_v16 = vpack.c.bf16 %v5966_v26, %v5965_v20  ;;  %v5933_v53 = vmul.f32 %v13823_v54, %v13746_v29  ;;  %v5934_v46 = vmul.f32 %v13823_v54, %v13752_v63 }
 0x689   :  { %v5969_v52 = vadd.f32 %v13826_v24, %v5931_v49  ;;  %v5970_v12 = vadd.f32 %v13826_v24, %v5932_v5  ;;  %v5935_v58 = vmul.f32 %v13823_v54, %v13758_v38  ;;  %v5936_v29 = vmul.f32 %v13823_v54, %v13764_v48 }
 0x68a   :  { %v5991_v7 = vpack.c.bf16 %v5968_v37, %v5967_v42  ;;  %v5971_v44 = vadd.f32 %v13826_v24, %v5933_v53  ;;  %v5972_v0 = vadd.f32 %v13826_v24, %v5934_v46  ;;  %v5937_v63 = vmul.f32 %v13823_v54, %v13770_v9 }
 0x68b   :  { %6742 = vmatmul.mubr.bf16.gmra.mxu1 %v5986_v4  ;;  %v5992_v25 = vpack.c.bf16 %v5970_v12, %v5969_v52  ;;  %v5938_v55 = vmul.f32 %v13823_v54, %v13776_v3  ;;  %v5973_v57 = vadd.f32 %v13826_v24, %v5935_v58  ;;  %v5974_v23 = vadd.f32 %v13826_v24, %v5936_v29 }
 0x68c   :  { %6745 = vmatprep.mubr.bf16.mxu1 %v5987_v19  ;;  %v5993_v14 = vpack.c.bf16 %v5972_v0, %v5971_v44  ;;  %v5975_v43 = vadd.f32 %v13826_v24, %v5937_v63  ;;  %v5939_v48 = vmul.f32 %v13823_v54, %v13782_v40  ;;  %v5940_v9 = vmul.f32 %v13823_v54, %v13788_v2 }
 0x68d   :  { %v5976_v33 = vadd.f32 %v13826_v24, %v5938_v55  ;;  %v5994_v38 = vpack.c.bf16 %v5974_v23, %v5973_v57 }
 0x68e   :  { %v5977_v3 = vadd.f32 %v13826_v24, %v5939_v48  ;;  %v5978_v35 = vadd.f32 %v13826_v24, %v5940_v9 }
 0x68f   :  { %v5995_v51 = vpack.c.bf16 %v5976_v33, %v5975_v43 }
 0x690   :  { %v5996_v60 = vpack.c.bf16 %v5978_v35, %v5977_v3 }
 0x693   :  { %6746 = vmatmul.mubr.bf16.gmra.mxu1 %v5988_v61 }
 0x694   :  { %6749 = vmatprep.mubr.bf16.mxu1 %v5989_v8 }
 0x69b   :  { %6750 = vmatmul.mubr.bf16.gmra.mxu1 %v5990_v16 }
 0x69c   :  { %6753 = vmatprep.mubr.bf16.mxu1 %v5991_v7 }
 0x6a3   :  { %6754 = vmatmul.mubr.bf16.gmra.mxu1 %v5992_v25 }
 0x6a4   :  { %6757 = vmatprep.mubr.bf16.mxu1 %v5993_v14 }
 0x6ab   :  { %6758 = vmatmul.mubr.bf16.gmra.mxu1 %v5994_v38 }
 0x6ac   :  { %6761 = vmatprep.mubr.bf16.mxu1 %v5995_v51 }
 0x6b3   :  { %6762 = vmatmul.mubr.bf16.gmra.mxu1 %v5996_v60 }
 0x6b4   :  { %6765 = vmatprep.mubr.bf16.mxu1 %v5997_v17 }
 0x6bb   :  { %6766 = vmatmul.mubr.bf16.gmra.mxu1 %v5998_v50 }
 0x743   :  { %v6739_v62 = vpop.f32.mrf.mxu1 }
 0x744   :  { %v6113_v40 = vadd.f32 %v6739_v62, %v13935_v41 }
 0x745   :  { %v6104_v31 = vpop.f32.mrf.mxu1 }
 0x746   :  { %6233 = vst [vmem:[%s14080_s15 + $0x10] sm:$0xff] %v6113_v40  ;;  %v6105_v2 = vadd.f32 %v13935_v41, %v6104_v31 }
 0x747   :  { %v6740_v54 = vpop.f32.mrf.mxu1 }
 0x748   :  { %6231 = vst [vmem:[%s14080_s15] sm:$0xff] %v6105_v2  ;;  %v6116_v24 = vadd.f32 %v6740_v54, %v13935_v41 }
 0x749   :  { %v6107_v22 = vpop.f32.mrf.mxu1 }
 0x74a   :  { %6234 = vst [vmem:[%s14080_s15 + $0x18] sm:$0xff] %v6116_v24  ;;  %v6108_v27 = vadd.f32 %v13935_v41, %v6107_v22 }
 0x74b   :  { %v6743_v10 = vpop.f32.mrf.mxu1 }
 0x74c   :  { %6232 = vst [vmem:[%s14080_s15 + $0x8] sm:$0xff] %v6108_v27  ;;  %v6129_v15 = vadd.f32 %v6743_v10, %v13935_v41 }
 0x74d   :  { %v6120_v21 = vpop.f32.mrf.mxu1 }
 0x74e   :  { %6237 = vst [vmem:[%s14080_s15 + $0x30] sm:$0xff] %v6129_v15  ;;  %v6121_v28 = vadd.f32 %v13935_v41, %v6120_v21 }
 0x74f   :  { %v6744_v18 = vpop.f32.mrf.mxu1 }
 0x750   :  { %6235 = vst [vmem:[%s14080_s15 + $0x20] sm:$0xff] %v6121_v28  ;;  %v6132_v34 = vadd.f32 %v6744_v18, %v13935_v41 }
 0x751   :  { %v6123_v4 = vpop.f32.mrf.mxu1 }
 0x752   :  { %6238 = vst [vmem:[%s14080_s15 + $0x38] sm:$0xff] %v6132_v34  ;;  %v6124_v17 = vadd.f32 %v13935_v41, %v6123_v4 }
 0x753   :  { %v6747_v19 = vpop.f32.mrf.mxu1 }
 0x754   :  { %6236 = vst [vmem:[%s14080_s15 + $0x28] sm:$0xff] %v6124_v17  ;;  %v6145_v50 = vadd.f32 %v6747_v19, %v13935_v41 }
 0x755   :  { %v6136_v6 = vpop.f32.mrf.mxu1 }
 0x756   :  { %6241 = vst [vmem:[%s14080_s15 + $0x50] sm:$0xff] %v6145_v50  ;;  %v6137_v45 = vadd.f32 %v13935_v41, %v6136_v6 }
 0x757   :  { %v6748_v59 = vpop.f32.mrf.mxu1 }
 0x758   :  { %6239 = vst [vmem:[%s14080_s15 + $0x40] sm:$0xff] %v6137_v45  ;;  %v6148_v30 = vadd.f32 %v6748_v59, %v13935_v41 }
 0x759   :  { %v6139_v36 = vpop.f32.mrf.mxu1 }
 0x75a   :  { %6242 = vst [vmem:[%s14080_s15 + $0x58] sm:$0xff] %v6148_v30  ;;  %v6140_v11 = vadd.f32 %v13935_v41, %v6139_v36 }
 0x75b   :  { %v6751_v39 = vpop.f32.mrf.mxu1 }
 0x75c   :  { %6240 = vst [vmem:[%s14080_s15 + $0x48] sm:$0xff] %v6140_v11  ;;  %v6161_v13 = vadd.f32 %v6751_v39, %v13935_v41 }
 0x75d   :  { %v6152_v61 = vpop.f32.mrf.mxu1 }
 0x75e   :  { %6245 = vst [vmem:[%s14080_s15 + $0x70] sm:$0xff] %v6161_v13  ;;  %v6153_v8 = vadd.f32 %v13935_v41, %v6152_v61 }
 0x75f   :  { %v6752_v56 = vpop.f32.mrf.mxu1 }
 0x760   :  { %6243 = vst [vmem:[%s14080_s15 + $0x60] sm:$0xff] %v6153_v8  ;;  %v6164_v47 = vadd.f32 %v6752_v56, %v13935_v41 }
 0x761   :  { %v6155_v32 = vpop.f32.mrf.mxu1 }
 0x762   :  { %6246 = vst [vmem:[%s14080_s15 + $0x78] sm:$0xff] %v6164_v47  ;;  %v6156_v1 = vadd.f32 %v13935_v41, %v6155_v32 }
 0x763   :  { %v6755_v20 = vpop.f32.mrf.mxu1 }
 0x764   :  { %6244 = vst [vmem:[%s14080_s15 + $0x68] sm:$0xff] %v6156_v1  ;;  %v6177_v26 = vadd.f32 %v6755_v20, %v13935_v41 }
 0x765   :  { %v6168_v42 = vpop.f32.mrf.mxu1 }
 0x766   :  { %6249 = vst [vmem:[%s14080_s15 + $0x90] sm:$0xff] %v6177_v26  ;;  %v6169_v37 = vadd.f32 %v13935_v41, %v6168_v42 }
 0x767   :  { %v6756_v16 = vpop.f32.mrf.mxu1 }
 0x768   :  { %6247 = vst [vmem:[%s14080_s15 + $0x80] sm:$0xff] %v6169_v37  ;;  %v6180_v7 = vadd.f32 %v6756_v16, %v13935_v41 }
 0x769   :  { %v6171_v49 = vpop.f32.mrf.mxu1 }
 0x76a   :  { %6250 = vst [vmem:[%s14080_s15 + $0x98] sm:$0xff] %v6180_v7  ;;  %v6172_v5 = vadd.f32 %v13935_v41, %v6171_v49 }
 0x76b   :  { %v6759_v53 = vpop.f32.mrf.mxu1 }
 0x76c   :  { %6248 = vst [vmem:[%s14080_s15 + $0x88] sm:$0xff] %v6172_v5  ;;  %v6193_v46 = vadd.f32 %v6759_v53, %v13935_v41 }
 0x76d   :  { %v6184_v52 = vpop.f32.mrf.mxu1 }
 0x76e   :  { %6253 = vst [vmem:[%s14080_s15 + $0xb0] sm:$0xff] %v6193_v46  ;;  %v6185_v12 = vadd.f32 %v13935_v41, %v6184_v52 }
 0x76f   :  { %v6760_v44 = vpop.f32.mrf.mxu1 }
 0x770   :  { %6251 = vst [vmem:[%s14080_s15 + $0xa0] sm:$0xff] %v6185_v12  ;;  %v6196_v0 = vadd.f32 %v6760_v44, %v13935_v41 }
 0x771   :  { %v6187_v25 = vpop.f32.mrf.mxu1 }
 0x772   :  { %6254 = vst [vmem:[%s14080_s15 + $0xb8] sm:$0xff] %v6196_v0  ;;  %v6188_v14 = vadd.f32 %v13935_v41, %v6187_v25 }
 0x773   :  { %v6763_v58 = vpop.f32.mrf.mxu1 }
 0x774   :  { %6252 = vst [vmem:[%s14080_s15 + $0xa8] sm:$0xff] %v6188_v14  ;;  %v6209_v29 = vadd.f32 %v6763_v58, %v13935_v41 }
 0x775   :  { %v6200_v63 = vpop.f32.mrf.mxu1 }
 0x776   :  { %6257 = vst [vmem:[%s14080_s15 + $0xd0] sm:$0xff] %v6209_v29  ;;  %v6201_v55 = vadd.f32 %v13935_v41, %v6200_v63 }
 0x777   :  { %v6764_v57 = vpop.f32.mrf.mxu1 }
 0x778   :  { %6255 = vst [vmem:[%s14080_s15 + $0xc0] sm:$0xff] %v6201_v55  ;;  %v6212_v23 = vadd.f32 %v6764_v57, %v13935_v41 }
 0x779   :  { %v6203_v43 = vpop.f32.mrf.mxu1 }
 0x77a   :  { %6258 = vst [vmem:[%s14080_s15 + $0xd8] sm:$0xff] %v6212_v23  ;;  %v6204_v33 = vadd.f32 %v13935_v41, %v6203_v43 }
 0x77b   :  { %v6767_v38 = vpop.f32.mrf.mxu1 }
 0x77c   :  { %6256 = vst [vmem:[%s14080_s15 + $0xc8] sm:$0xff] %v6204_v33  ;;  %v6225_v51 = vadd.f32 %v6767_v38, %v13935_v41 }
 0x77d   :  { %v6216_v48 = vpop.f32.mrf.mxu1 }
 0x77e   :  { %6261 = vst [vmem:[%s14080_s15 + $0xf0] sm:$0xff] %v6225_v51  ;;  %v6217_v9 = vadd.f32 %v13935_v41, %v6216_v48 }
 0x77f   :  { %v6768_v3 = vpop.f32.mrf.mxu1 }
 0x780   :  { %6259 = vst [vmem:[%s14080_s15 + $0xe0] sm:$0xff] %v6217_v9  ;;  %v6228_v35 = vadd.f32 %v6768_v3, %v13935_v41 }
 0x781   :  { %v6219_v60 = vpop.f32.mrf.mxu1 }
 0x782   :  { %6262 = vst [vmem:[%s14080_s15 + $0xf8] sm:$0xff] %v6228_v35  ;;  %v6220_v62 = vadd.f32 %v13935_v41, %v6219_v60 }
 0x784   :  { %6260 = vst [vmem:[%s14080_s15 + $0xe8] sm:$0xff] %v6220_v62 }

</bundles_post_ra>
